<compile_context>
chip_gen: v6e
topology: v6e:2x2x1
jax: 0.10.0
libtpu: 0.0.40
codegen_flags: <defaults>
</compile_context>

<pallas_src>
import functools

import numpy as np
import jax
import jax.numpy as jnp
from jax import lax
from jax.experimental import pallas as pl
from jax.experimental.pallas import tpu as pltpu

KERNEL_SIZE = 15
THRESHOLD = 0.6
ITERATIONS = 1


# --------------------------------------------------------------------------- weights
def make_erosion_weight(kernel_size=KERNEL_SIZE):
    """Deterministic distance-based kernel, identical to the torch __init__."""
    r = kernel_size // 2
    yy, xx = np.meshgrid(
        np.arange(kernel_size, dtype=np.float32),
        np.arange(kernel_size, dtype=np.float32),
        indexing="ij",  # torch.meshgrid default ('ij')
    )
    dist = np.sqrt((xx - r) ** 2 + (yy - r) ** 2)
    k = dist.max() - dist
    k = k / k.sum()
    return k.astype(np.float32)  # (K, K)


def make_banded_weight(k2d, W):
    """Banded weight stack Bw: (K, W, W), Bw[dy, xin, xout] = k[dy, xin - xout + r].

    conv[y, xout] = sum_dy  x_rows(dy)[y, :] @ Bw[dy][:, xout]
    with x_rows(dy)[y, xin] = x[y + dy - r, xin] (zero outside [0, H)).
    The horizontal zero-padding of the conv is folded into the band structure,
    so only the vertical halo has to be materialized inside the kernel.
    Precomputed with numpy outside jit (weights become a kernel operand).
    """
    K = k2d.shape[0]
    r = K // 2
    xin = np.arange(W)[:, None]
    xout = np.arange(W)[None, :]
    dx = xin - xout + r                     # (W, W)
    valid = (dx >= 0) & (dx < K)
    dxc = np.clip(dx, 0, K - 1)
    bw = np.where(valid[None, :, :], k2d[:, dxc], 0.0)   # (K, W, W)
    return bw.astype(np.float32)


# --------------------------------------------------------------------------- kernels
def _conv_kernel(x_ref, bw_ref, conv_ref, pmax_ref, xp_ref, *,
                 B, H, W, K, r, threshold, fuse_min):
    # x_ref   : (B, H, W)      f32  unpadded input block (B images)
    # bw_ref  : (K, W, W)      f32  banded weights (grid-invariant -> stays resident)
    # conv_ref: (B, H, W)      f32  conv output (min(x, conv) when fuse_min)
    # pmax_ref: (1, 1, 128)    f32  per-block max over UNmasked conv values
    # xp_ref  : (B, H+K-1, W)  f32  VMEM scratch: x with a zero vertical halo

    # Build the vertically padded copy in VMEM (no HBM-side jnp.pad).
    xp_ref[:, :r, :] = jnp.zeros((B, r, W), jnp.float32)
    xp_ref[:, r + H:, :] = jnp.zeros((B, r, W), jnp.float32)
    xp_ref[:, r:r + H, :] = x_ref[...]

    # 15 MXU matmuls: (B*H, W) @ (W, W), f32 accumulation.  The LHS slices are
    # sublane-only shifts of the padded scratch (no lane-unaligned accesses).
    acc = jnp.zeros((B * H, W), jnp.float32)
    for dy in range(K):
        lhs = xp_ref[:, dy:dy + H, :].reshape(B * H, W)
        acc = acc + jnp.dot(lhs, bw_ref[dy],
                            preferred_element_type=jnp.float32,
                            precision=lax.Precision.HIGHEST)

    if fuse_min:
        # iterations > 1 path: fuse x = min(x, conv(x)) into the epilogue.
        out = jnp.minimum(x_ref[...].reshape(B * H, W), acc)
    else:
        out = acc
    conv_ref[...] = out.reshape(B, H, W)

    # Partial max of unmasked conv values; the finalize pass reduces across blocks.
    unmasked = jnp.where(acc >= threshold, -jnp.inf, acc)
    m = jnp.max(unmasked, axis=1, keepdims=True)   # lane reduce    -> (B*H, 1)
    m = jnp.max(m, axis=0, keepdims=True)          # sublane reduce -> (1, 1)
    pmax_ref[...] = jnp.broadcast_to(m.reshape(1, 1, 1), (1, 1, 128))


def _finalize_kernel(pmax_ref, conv_ref, out_ref, mask_ref, *, threshold):
    # pmax_ref: (G, 1, 128) f32  per-conv-block partial maxima (whole array, resident)
    # conv_ref: (R, 128)    f32  lane-dense flat block of conv values
    # out_ref : (R, 128)    f32
    # mask_ref: (R, 128)    int8
    p = pmax_ref[...].reshape(-1, 128)
    gm = jnp.max(p, axis=1, keepdims=True)
    gm = jnp.max(gm, axis=0, keepdims=True)        # (1, 1) global unmasked max
    inv = jnp.float32(1.0) / gm                    # -inf -> -0.0, matches c / -inf

    c = conv_ref[...]
    mask = c >= threshold
    out_ref[...] = jnp.where(mask, jnp.float32(1.0), c * inv)
    mask_ref[...] = mask.astype(jnp.int8)


# --------------------------------------------------------------------------- wrappers
def _pick_block_batch(n, max_b=8):
    """Largest power-of-two batch <= max_b dividing n; keep >= 2 grid steps when
    possible so both v7x TensorCores get work."""
    b = 1
    for cand in (max_b, 4, 2, 1):
        if n % cand == 0:
            b = cand
            break
    while b > 1 and n // b < 2:
        b //= 2
    return b


def _pallas_conv(x_nhw, bw, fuse_min):
    N, H, W = x_nhw.shape
    K = bw.shape[0]
    r = K // 2
    Hp = H + 2 * r
    B = _pick_block_batch(N)
    assert N % B == 0
    G = N // B

    kern = functools.partial(_conv_kernel, B=B, H=H, W=W, K=K, r=r,
                             threshold=THRESHOLD, fuse_min=fuse_min)
    conv, pmax = pl.pallas_call(
        kern,
        out_shape=(
            jax.ShapeDtypeStruct((N, H, W), jnp.float32),
            jax.ShapeDtypeStruct((G, 1, 128), jnp.float32),
        ),
        grid_spec=pltpu.PrefetchScalarGridSpec(
            num_scalar_prefetch=0,
            grid=(G,),
            in_specs=[
                pl.BlockSpec((B, H, W), lambda n: (n, 0, 0)),
                pl.BlockSpec((K, W, W), lambda n: (0, 0, 0)),  # weights loaded once
            ],
            out_specs=[
                pl.BlockSpec((B, H, W), lambda n: (n, 0, 0)),
                pl.BlockSpec((1, 1, 128), lambda n: (n, 0, 0)),
            ],
            scratch_shapes=[pltpu.VMEM((B, Hp, W), jnp.float32)],
        ),
        compiler_params=pltpu.CompilerParams(
            dimension_semantics=("parallel",),
            vmem_limit_bytes=32 * 1024 * 1024,  # headroom vs. v7x's 64 MiB physical VMEM
        ),
    )(x_nhw, jnp.asarray(bw, jnp.float32))
    return conv, pmax


def _pallas_finalize(conv, pmax):
    N, H, W = conv.shape
    L = N * H * W
    T = pl.cdiv(L, 128)
    flat = conv.reshape(-1)
    if T * 128 != L:                       # only when H*W*N is not lane-aligned
        flat = jnp.pad(flat, (0, T * 128 - L))
    flat = flat.reshape(T, 128)            # lane-dense view -> unmasked stores

    R = min(T, 1024)
    G2 = pl.cdiv(T, R)
    Gp = pmax.shape[0]

    kern = functools.partial(_finalize_kernel, threshold=THRESHOLD)
    out_flat, mask_flat = pl.pallas_call(
        kern,
        out_shape=(
            jax.ShapeDtypeStruct((T, 128), jnp.float32),
            jax.ShapeDtypeStruct((T, 128), jnp.int8),
        ),
        grid_spec=pltpu.PrefetchScalarGridSpec(
            num_scalar_prefetch=0,
            grid=(G2,),
            in_specs=[
                pl.BlockSpec((Gp, 1, 128), lambda i: (0, 0, 0)),  # partial maxima, resident
                pl.BlockSpec((R, 128), lambda i: (i, 0)),
            ],
            out_specs=[
                pl.BlockSpec((R, 128), lambda i: (i, 0)),
                pl.BlockSpec((R, 128), lambda i: (i, 0)),
            ],
        ),
        compiler_params=pltpu.CompilerParams(
            dimension_semantics=("parallel",),
            vmem_limit_bytes=32 * 1024 * 1024,
        ),
    )(pmax, flat)

    out = out_flat.reshape(-1)[:L].reshape(N, H, W)
    mask = mask_flat.reshape(-1)[:L].reshape(N, H, W)
    return out, mask


def soft_erosion(x, bw):
    """x: (N, C, H, W), C must be 1.  Returns (x_out f32, mask bool) in NCHW."""
    N, C, H, W = x.shape
    assert C == 1, "groups=C with a (1,1,k,k) weight only type-checks for C == 1"
    x32 = x.astype(jnp.float32).reshape(N, H, W)

    # iterations > 1 path: x = min(x, conv(x)) fused into the conv kernel epilogue.
    for _ in range(ITERATIONS - 1):
        x32, _ = _pallas_conv(x32, bw, fuse_min=True)

    conv, pmax = _pallas_conv(x32, bw, fuse_min=False)
    out, mask_i8 = _pallas_finalize(conv, pmax)

    out = out.reshape(N, C, H, W)
    mask = mask_i8.astype(jnp.bool_).reshape(N, C, H, W)
    return out, mask


# --------------------------------------------------------------------------- reference
def reference_soft_erosion(x, k2d):
    x = x.astype(jnp.float32)
    w = jnp.asarray(k2d).reshape(1, 1, KERNEL_SIZE, KERNEL_SIZE)
    r = KERNEL_SIZE // 2

    def conv(z):
        return lax.conv_general_dilated(
            z, w, window_strides=(1, 1), padding=[(r, r), (r, r)],
            dimension_numbers=("NCHW", "OIHW", "NCHW"),
            feature_group_count=z.shape[1],
            precision=lax.Precision.HIGHEST)

    for _ in range(ITERATIONS - 1):
        x = jnp.minimum(x, conv(x))
    x = conv(x)
    mask = x >= THRESHOLD
    gmax = jnp.max(jnp.where(mask, -jnp.inf, x))
    out = jnp.where(mask, 1.0, x / gmax)
    return out, mask, x


if __name__ == "__main__":
    N, C, H, W = 2, 1, 64, 64
    key = jax.random.PRNGKey(0)
    noise = jax.random.uniform(key, (N, C, H, W), dtype=jnp.float32)
    base = jnp.zeros((N, C, H, W), jnp.float32).at[:, :, 16:48, 16:48].set(1.0)
    x = jnp.clip(0.9 * base + 0.1 * noise, 0.0, 1.0)

    k2d = make_erosion_weight()
    bw = make_banded_weight(k2d, W)   # numpy, outside jit

    fn = jax.jit(lambda a: soft_erosion(a, bw))
    out, mask = fn(x)
    out = jax.block_until_ready(out)
    mask = jax.block_until_ready(mask)

    ref_out, ref_mask, ref_conv = reference_soft_erosion(x, k2d)
    # Skip pixels whose conv value sits numerically on the threshold
    # (accumulation order differs between MXU matmul and XLA's conv).
    safe = jnp.abs(ref_conv - THRESHOLD) > 1e-3
    assert bool(jnp.all(jnp.where(safe, mask == ref_mask, True)))
    assert bool(jnp.all(jnp.where(safe, jnp.abs(out - ref_out) < 1e-4, True)))
    assert out.dtype == jnp.float32 and mask.dtype == jnp.bool_

    print("KERNEL_OK")
</pallas_src>

<mosaic_0001>
module attributes {stable_mosaic.version = 11 : i64} {
  func.func @_conv_kernel(%arg0: i32, %arg1: memref<1x64x64xf32, #tpu.memory_space<vmem>>, %arg2: memref<15x64x64xf32, #tpu.memory_space<vmem>>, %arg3: memref<1x64x64xf32, #tpu.memory_space<vmem>>, %arg4: memref<1x1x128xf32, #tpu.memory_space<vmem>>, %arg5: memref<1x78x64xf32, #tpu.memory_space<vmem>>) attributes {dimension_semantics = [#tpu.dimension_semantics<parallel>], iteration_bounds = array<i64: 2>, scalar_prefetch = 0 : i64, scratch_operands = 1 : i64, tpu.core_type = #tpu.core_type<tc>, window_params = [{transform_indices = @transform_0, window_bounds = array<i64: 1, 64, 64>}, {pipeline_mode = #tpu.pipeline_mode<synchronous>, transform_indices = @transform_1, window_bounds = array<i64: 15, 64, 64>}, {transform_indices = @transform_2, window_bounds = array<i64: 1, 64, 64>}, {transform_indices = @transform_3, window_bounds = array<i64: 1, 1, 128>}]} {
    %cst = arith.constant 0.000000e+00 : f32
    %0 = vector.broadcast %cst : f32 to vector<1x7x64xf32>
    %c0 = arith.constant 0 : index
    %c0_0 = arith.constant 0 : index
    %c0_1 = arith.constant 0 : index
    %1 = vector.load %arg5[%c0, %c0_0, %c0_1] : memref<1x78x64xf32, #tpu.memory_space<vmem>>, vector<1x7x64xf32>
    tpu.vector_store %arg5[%c0, %c0_0, %c0_1], %0 {strides = array<i32>} : memref<1x78x64xf32, #tpu.memory_space<vmem>>, vector<1x7x64xf32>,
    %cst_2 = arith.constant 0.000000e+00 : f32
    %2 = vector.broadcast %cst_2 : f32 to vector<1x7x64xf32>
    %c0_3 = arith.constant 0 : index
    %c71 = arith.constant 71 : index
    %c0_4 = arith.constant 0 : index
    %3 = vector.load %arg5[%c0_3, %c71, %c0_4] : memref<1x78x64xf32, #tpu.memory_space<vmem>>, vector<1x7x64xf32>
    tpu.vector_store %arg5[%c0_3, %c71, %c0_4], %2 {strides = array<i32>} : memref<1x78x64xf32, #tpu.memory_space<vmem>>, vector<1x7x64xf32>,
    %c0_5 = arith.constant 0 : index
    %c0_6 = arith.constant 0 : index
    %c0_7 = arith.constant 0 : index
    %4 = vector.load %arg1[%c0_5, %c0_6, %c0_7] : memref<1x64x64xf32, #tpu.memory_space<vmem>>, vector<1x64x64xf32>
    %c0_8 = arith.constant 0 : index
    %c7 = arith.constant 7 : index
    %c0_9 = arith.constant 0 : index
    %5 = vector.load %arg5[%c0_8, %c7, %c0_9] : memref<1x78x64xf32, #tpu.memory_space<vmem>>, vector<1x64x64xf32>
    tpu.vector_store %arg5[%c0_8, %c7, %c0_9], %4 {strides = array<i32>} : memref<1x78x64xf32, #tpu.memory_space<vmem>>, vector<1x64x64xf32>,
    %cst_10 = arith.constant 0.000000e+00 : f32
    %6 = vector.broadcast %cst_10 : f32 to vector<64x64xf32>
    %c0_11 = arith.constant 0 : index
    %c0_12 = arith.constant 0 : index
    %c0_13 = arith.constant 0 : index
    %7 = vector.load %arg5[%c0_11, %c0_12, %c0_13] : memref<1x78x64xf32, #tpu.memory_space<vmem>>, vector<1x64x64xf32>
    %8 = vector.shape_cast %7 : vector<1x64x64xf32> to vector<64x64xf32>
    %c0_14 = arith.constant 0 : index
    %c0_15 = arith.constant 0 : index
    %c0_16 = arith.constant 0 : index
    %9 = vector.load %arg2[%c0_14, %c0_15, %c0_16] : memref<15x64x64xf32, #tpu.memory_space<vmem>>, vector<1x64x64xf32>
    %10 = vector.shape_cast %9 : vector<1x64x64xf32> to vector<64x64xf32>
    %cst_17 = arith.constant dense<0.000000e+00> : vector<64x64xf32>
    %11 = tpu.matmul %8, %10, %cst_17 {dimension_numbers = #tpu.dot_dimension_numbers<[1], [0], [0], [1], [0, 0, 1, 1], [], []>, precision = #tpu.contract_precision<fp32>} : vector<64x64xf32>, vector<64x64xf32>, vector<64x64xf32> -> vector<64x64xf32>
    %12 = arith.addf %6, %11 : vector<64x64xf32>
    %c0_18 = arith.constant 0 : index
    %c1 = arith.constant 1 : index
    %c0_19 = arith.constant 0 : index
    %13 = vector.load %arg5[%c0_18, %c1, %c0_19] : memref<1x78x64xf32, #tpu.memory_space<vmem>>, vector<1x64x64xf32>
    %14 = vector.shape_cast %13 : vector<1x64x64xf32> to vector<64x64xf32>
    %c1_20 = arith.constant 1 : index
    %c0_21 = arith.constant 0 : index
    %c0_22 = arith.constant 0 : index
    %15 = vector.load %arg2[%c1_20, %c0_21, %c0_22] : memref<15x64x64xf32, #tpu.memory_space<vmem>>, vector<1x64x64xf32>
    %16 = vector.shape_cast %15 : vector<1x64x64xf32> to vector<64x64xf32>
    %cst_23 = arith.constant dense<0.000000e+00> : vector<64x64xf32>
    %17 = tpu.matmul %14, %16, %cst_23 {dimension_numbers = #tpu.dot_dimension_numbers<[1], [0], [0], [1], [0, 0, 1, 1], [], []>, precision = #tpu.contract_precision<fp32>} : vector<64x64xf32>, vector<64x64xf32>, vector<64x64xf32> -> vector<64x64xf32>
    %18 = arith.addf %12, %17 : vector<64x64xf32>
    %c0_24 = arith.constant 0 : index
    %c2 = arith.constant 2 : index
    %c0_25 = arith.constant 0 : index
    %19 = vector.load %arg5[%c0_24, %c2, %c0_25] : memref<1x78x64xf32, #tpu.memory_space<vmem>>, vector<1x64x64xf32>
    %20 = vector.shape_cast %19 : vector<1x64x64xf32> to vector<64x64xf32>
    %c2_26 = arith.constant 2 : index
    %c0_27 = arith.constant 0 : index
    %c0_28 = arith.constant 0 : index
    %21 = vector.load %arg2[%c2_26, %c0_27, %c0_28] : memref<15x64x64xf32, #tpu.memory_space<vmem>>, vector<1x64x64xf32>
    %22 = vector.shape_cast %21 : vector<1x64x64xf32> to vector<64x64xf32>
    %cst_29 = arith.constant dense<0.000000e+00> : vector<64x64xf32>
    %23 = tpu.matmul %20, %22, %cst_29 {dimension_numbers = #tpu.dot_dimension_numbers<[1], [0], [0], [1], [0, 0, 1, 1], [], []>, precision = #tpu.contract_precision<fp32>} : vector<64x64xf32>, vector<64x64xf32>, vector<64x64xf32> -> vector<64x64xf32>
    %24 = arith.addf %18, %23 : vector<64x64xf32>
    %c0_30 = arith.constant 0 : index
    %c3 = arith.constant 3 : index
    %c0_31 = arith.constant 0 : index
    %25 = vector.load %arg5[%c0_30, %c3, %c0_31] : memref<1x78x64xf32, #tpu.memory_space<vmem>>, vector<1x64x64xf32>
    %26 = vector.shape_cast %25 : vector<1x64x64xf32> to vector<64x64xf32>
    %c3_32 = arith.constant 3 : index
    %c0_33 = arith.constant 0 : index
    %c0_34 = arith.constant 0 : index
    %27 = vector.load %arg2[%c3_32, %c0_33, %c0_34] : memref<15x64x64xf32, #tpu.memory_space<vmem>>, vector<1x64x64xf32>
    %28 = vector.shape_cast %27 : vector<1x64x64xf32> to vector<64x64xf32>
    %cst_35 = arith.constant dense<0.000000e+00> : vector<64x64xf32>
    %29 = tpu.matmul %26, %28, %cst_35 {dimension_numbers = #tpu.dot_dimension_numbers<[1], [0], [0], [1], [0, 0, 1, 1], [], []>, precision = #tpu.contract_precision<fp32>} : vector<64x64xf32>, vector<64x64xf32>, vector<64x64xf32> -> vector<64x64xf32>
    %30 = arith.addf %24, %29 : vector<64x64xf32>
    %c0_36 = arith.constant 0 : index
    %c4 = arith.constant 4 : index
    %c0_37 = arith.constant 0 : index
    %31 = vector.load %arg5[%c0_36, %c4, %c0_37] : memref<1x78x64xf32, #tpu.memory_space<vmem>>, vector<1x64x64xf32>
    %32 = vector.shape_cast %31 : vector<1x64x64xf32> to vector<64x64xf32>
    %c4_38 = arith.constant 4 : index
    %c0_39 = arith.constant 0 : index
    %c0_40 = arith.constant 0 : index
    %33 = vector.load %arg2[%c4_38, %c0_39, %c0_40] : memref<15x64x64xf32, #tpu.memory_space<vmem>>, vector<1x64x64xf32>
    %34 = vector.shape_cast %33 : vector<1x64x64xf32> to vector<64x64xf32>
    %cst_41 = arith.constant dense<0.000000e+00> : vector<64x64xf32>
    %35 = tpu.matmul %32, %34, %cst_41 {dimension_numbers = #tpu.dot_dimension_numbers<[1], [0], [0], [1], [0, 0, 1, 1], [], []>, precision = #tpu.contract_precision<fp32>} : vector<64x64xf32>, vector<64x64xf32>, vector<64x64xf32> -> vector<64x64xf32>
    %36 = arith.addf %30, %35 : vector<64x64xf32>
    %c0_42 = arith.constant 0 : index
    %c5 = arith.constant 5 : index
    %c0_43 = arith.constant 0 : index
    %37 = vector.load %arg5[%c0_42, %c5, %c0_43] : memref<1x78x64xf32, #tpu.memory_space<vmem>>, vector<1x64x64xf32>
    %38 = vector.shape_cast %37 : vector<1x64x64xf32> to vector<64x64xf32>
    %c5_44 = arith.constant 5 : index
    %c0_45 = arith.constant 0 : index
    %c0_46 = arith.constant 0 : index
    %39 = vector.load %arg2[%c5_44, %c0_45, %c0_46] : memref<15x64x64xf32, #tpu.memory_space<vmem>>, vector<1x64x64xf32>
    %40 = vector.shape_cast %39 : vector<1x64x64xf32> to vector<64x64xf32>
    %cst_47 = arith.constant dense<0.000000e+00> : vector<64x64xf32>
    %41 = tpu.matmul %38, %40, %cst_47 {dimension_numbers = #tpu.dot_dimension_numbers<[1], [0], [0], [1], [0, 0, 1, 1], [], []>, precision = #tpu.contract_precision<fp32>} : vector<64x64xf32>, vector<64x64xf32>, vector<64x64xf32> -> vector<64x64xf32>
    %42 = arith.addf %36, %41 : vector<64x64xf32>
    %c0_48 = arith.constant 0 : index
    %c6 = arith.constant 6 : index
    %c0_49 = arith.constant 0 : index
    %43 = vector.load %arg5[%c0_48, %c6, %c0_49] : memref<1x78x64xf32, #tpu.memory_space<vmem>>, vector<1x64x64xf32>
    %44 = vector.shape_cast %43 : vector<1x64x64xf32> to vector<64x64xf32>
    %c6_50 = arith.constant 6 : index
    %c0_51 = arith.constant 0 : index
    %c0_52 = arith.constant 0 : index
    %45 = vector.load %arg2[%c6_50, %c0_51, %c0_52] : memref<15x64x64xf32, #tpu.memory_space<vmem>>, vector<1x64x64xf32>
    %46 = vector.shape_cast %45 : vector<1x64x64xf32> to vector<64x64xf32>
    %cst_53 = arith.constant dense<0.000000e+00> : vector<64x64xf32>
    %47 = tpu.matmul %44, %46, %cst_53 {dimension_numbers = #tpu.dot_dimension_numbers<[1], [0], [0], [1], [0, 0, 1, 1], [], []>, precision = #tpu.contract_precision<fp32>} : vector<64x64xf32>, vector<64x64xf32>, vector<64x64xf32> -> vector<64x64xf32>
    %48 = arith.addf %42, %47 : vector<64x64xf32>
    %c0_54 = arith.constant 0 : index
    %c7_55 = arith.constant 7 : index
    %c0_56 = arith.constant 0 : index
    %49 = vector.load %arg5[%c0_54, %c7_55, %c0_56] : memref<1x78x64xf32, #tpu.memory_space<vmem>>, vector<1x64x64xf32>
    %50 = vector.shape_cast %49 : vector<1x64x64xf32> to vector<64x64xf32>
    %c7_57 = arith.constant 7 : index
    %c0_58 = arith.constant 0 : index
    %c0_59 = arith.constant 0 : index
    %51 = vector.load %arg2[%c7_57, %c0_58, %c0_59] : memref<15x64x64xf32, #tpu.memory_space<vmem>>, vector<1x64x64xf32>
    %52 = vector.shape_cast %51 : vector<1x64x64xf32> to vector<64x64xf32>
    %cst_60 = arith.constant dense<0.000000e+00> : vector<64x64xf32>
    %53 = tpu.matmul %50, %52, %cst_60 {dimension_numbers = #tpu.dot_dimension_numbers<[1], [0], [0], [1], [0, 0, 1, 1], [], []>, precision = #tpu.contract_precision<fp32>} : vector<64x64xf32>, vector<64x64xf32>, vector<64x64xf32> -> vector<64x64xf32>
    %54 = arith.addf %48, %53 : vector<64x64xf32>
    %c0_61 = arith.constant 0 : index
    %c8 = arith.constant 8 : index
    %c0_62 = arith.constant 0 : index
    %55 = vector.load %arg5[%c0_61, %c8, %c0_62] : memref<1x78x64xf32, #tpu.memory_space<vmem>>, vector<1x64x64xf32>
    %56 = vector.shape_cast %55 : vector<1x64x64xf32> to vector<64x64xf32>
    %c8_63 = arith.constant 8 : index
    %c0_64 = arith.constant 0 : index
    %c0_65 = arith.constant 0 : index
    %57 = vector.load %arg2[%c8_63, %c0_64, %c0_65] : memref<15x64x64xf32, #tpu.memory_space<vmem>>, vector<1x64x64xf32>
    %58 = vector.shape_cast %57 : vector<1x64x64xf32> to vector<64x64xf32>
    %cst_66 = arith.constant dense<0.000000e+00> : vector<64x64xf32>
    %59 = tpu.matmul %56, %58, %cst_66 {dimension_numbers = #tpu.dot_dimension_numbers<[1], [0], [0], [1], [0, 0, 1, 1], [], []>, precision = #tpu.contract_precision<fp32>} : vector<64x64xf32>, vector<64x64xf32>, vector<64x64xf32> -> vector<64x64xf32>
    %60 = arith.addf %54, %59 : vector<64x64xf32>
    %c0_67 = arith.constant 0 : index
    %c9 = arith.constant 9 : index
    %c0_68 = arith.constant 0 : index
    %61 = vector.load %arg5[%c0_67, %c9, %c0_68] : memref<1x78x64xf32, #tpu.memory_space<vmem>>, vector<1x64x64xf32>
    %62 = vector.shape_cast %61 : vector<1x64x64xf32> to vector<64x64xf32>
    %c9_69 = arith.constant 9 : index
    %c0_70 = arith.constant 0 : index
    %c0_71 = arith.constant 0 : index
    %63 = vector.load %arg2[%c9_69, %c0_70, %c0_71] : memref<15x64x64xf32, #tpu.memory_space<vmem>>, vector<1x64x64xf32>
    %64 = vector.shape_cast %63 : vector<1x64x64xf32> to vector<64x64xf32>
    %cst_72 = arith.constant dense<0.000000e+00> : vector<64x64xf32>
    %65 = tpu.matmul %62, %64, %cst_72 {dimension_numbers = #tpu.dot_dimension_numbers<[1], [0], [0], [1], [0, 0, 1, 1], [], []>, precision = #tpu.contract_precision<fp32>} : vector<64x64xf32>, vector<64x64xf32>, vector<64x64xf32> -> vector<64x64xf32>
    %66 = arith.addf %60, %65 : vector<64x64xf32>
    %c0_73 = arith.constant 0 : index
    %c10 = arith.constant 10 : index
    %c0_74 = arith.constant 0 : index
    %67 = vector.load %arg5[%c0_73, %c10, %c0_74] : memref<1x78x64xf32, #tpu.memory_space<vmem>>, vector<1x64x64xf32>
    %68 = vector.shape_cast %67 : vector<1x64x64xf32> to vector<64x64xf32>
    %c10_75 = arith.constant 10 : index
    %c0_76 = arith.constant 0 : index
    %c0_77 = arith.constant 0 : index
    %69 = vector.load %arg2[%c10_75, %c0_76, %c0_77] : memref<15x64x64xf32, #tpu.memory_space<vmem>>, vector<1x64x64xf32>
    %70 = vector.shape_cast %69 : vector<1x64x64xf32> to vector<64x64xf32>
    %cst_78 = arith.constant dense<0.000000e+00> : vector<64x64xf32>
    %71 = tpu.matmul %68, %70, %cst_78 {dimension_numbers = #tpu.dot_dimension_numbers<[1], [0], [0], [1], [0, 0, 1, 1], [], []>, precision = #tpu.contract_precision<fp32>} : vector<64x64xf32>, vector<64x64xf32>, vector<64x64xf32> -> vector<64x64xf32>
    %72 = arith.addf %66, %71 : vector<64x64xf32>
    %c0_79 = arith.constant 0 : index
    %c11 = arith.constant 11 : index
    %c0_80 = arith.constant 0 : index
    %73 = vector.load %arg5[%c0_79, %c11, %c0_80] : memref<1x78x64xf32, #tpu.memory_space<vmem>>, vector<1x64x64xf32>
    %74 = vector.shape_cast %73 : vector<1x64x64xf32> to vector<64x64xf32>
    %c11_81 = arith.constant 11 : index
    %c0_82 = arith.constant 0 : index
    %c0_83 = arith.constant 0 : index
    %75 = vector.load %arg2[%c11_81, %c0_82, %c0_83] : memref<15x64x64xf32, #tpu.memory_space<vmem>>, vector<1x64x64xf32>
    %76 = vector.shape_cast %75 : vector<1x64x64xf32> to vector<64x64xf32>
    %cst_84 = arith.constant dense<0.000000e+00> : vector<64x64xf32>
    %77 = tpu.matmul %74, %76, %cst_84 {dimension_numbers = #tpu.dot_dimension_numbers<[1], [0], [0], [1], [0, 0, 1, 1], [], []>, precision = #tpu.contract_precision<fp32>} : vector<64x64xf32>, vector<64x64xf32>, vector<64x64xf32> -> vector<64x64xf32>
    %78 = arith.addf %72, %77 : vector<64x64xf32>
    %c0_85 = arith.constant 0 : index
    %c12 = arith.constant 12 : index
    %c0_86 = arith.constant 0 : index
    %79 = vector.load %arg5[%c0_85, %c12, %c0_86] : memref<1x78x64xf32, #tpu.memory_space<vmem>>, vector<1x64x64xf32>
    %80 = vector.shape_cast %79 : vector<1x64x64xf32> to vector<64x64xf32>
    %c12_87 = arith.constant 12 : index
    %c0_88 = arith.constant 0 : index
    %c0_89 = arith.constant 0 : index
    %81 = vector.load %arg2[%c12_87, %c0_88, %c0_89] : memref<15x64x64xf32, #tpu.memory_space<vmem>>, vector<1x64x64xf32>
    %82 = vector.shape_cast %81 : vector<1x64x64xf32> to vector<64x64xf32>
    %cst_90 = arith.constant dense<0.000000e+00> : vector<64x64xf32>
    %83 = tpu.matmul %80, %82, %cst_90 {dimension_numbers = #tpu.dot_dimension_numbers<[1], [0], [0], [1], [0, 0, 1, 1], [], []>, precision = #tpu.contract_precision<fp32>} : vector<64x64xf32>, vector<64x64xf32>, vector<64x64xf32> -> vector<64x64xf32>
    %84 = arith.addf %78, %83 : vector<64x64xf32>
    %c0_91 = arith.constant 0 : index
    %c13 = arith.constant 13 : index
    %c0_92 = arith.constant 0 : index
    %85 = vector.load %arg5[%c0_91, %c13, %c0_92] : memref<1x78x64xf32, #tpu.memory_space<vmem>>, vector<1x64x64xf32>
    %86 = vector.shape_cast %85 : vector<1x64x64xf32> to vector<64x64xf32>
    %c13_93 = arith.constant 13 : index
    %c0_94 = arith.constant 0 : index
    %c0_95 = arith.constant 0 : index
    %87 = vector.load %arg2[%c13_93, %c0_94, %c0_95] : memref<15x64x64xf32, #tpu.memory_space<vmem>>, vector<1x64x64xf32>
    %88 = vector.shape_cast %87 : vector<1x64x64xf32> to vector<64x64xf32>
    %cst_96 = arith.constant dense<0.000000e+00> : vector<64x64xf32>
    %89 = tpu.matmul %86, %88, %cst_96 {dimension_numbers = #tpu.dot_dimension_numbers<[1], [0], [0], [1], [0, 0, 1, 1], [], []>, precision = #tpu.contract_precision<fp32>} : vector<64x64xf32>, vector<64x64xf32>, vector<64x64xf32> -> vector<64x64xf32>
    %90 = arith.addf %84, %89 : vector<64x64xf32>
    %c0_97 = arith.constant 0 : index
    %c14 = arith.constant 14 : index
    %c0_98 = arith.constant 0 : index
    %91 = vector.load %arg5[%c0_97, %c14, %c0_98] : memref<1x78x64xf32, #tpu.memory_space<vmem>>, vector<1x64x64xf32>
    %92 = vector.shape_cast %91 : vector<1x64x64xf32> to vector<64x64xf32>
    %c14_99 = arith.constant 14 : index
    %c0_100 = arith.constant 0 : index
    %c0_101 = arith.constant 0 : index
    %93 = vector.load %arg2[%c14_99, %c0_100, %c0_101] : memref<15x64x64xf32, #tpu.memory_space<vmem>>, vector<1x64x64xf32>
    %94 = vector.shape_cast %93 : vector<1x64x64xf32> to vector<64x64xf32>
    %cst_102 = arith.constant dense<0.000000e+00> : vector<64x64xf32>
    %95 = tpu.matmul %92, %94, %cst_102 {dimension_numbers = #tpu.dot_dimension_numbers<[1], [0], [0], [1], [0, 0, 1, 1], [], []>, precision = #tpu.contract_precision<fp32>} : vector<64x64xf32>, vector<64x64xf32>, vector<64x64xf32> -> vector<64x64xf32>
    %96 = arith.addf %90, %95 : vector<64x64xf32>
    %97 = vector.shape_cast %96 : vector<64x64xf32> to vector<1x64x64xf32>
    %c0_103 = arith.constant 0 : index
    %c0_104 = arith.constant 0 : index
    %c0_105 = arith.constant 0 : index
    %98 = vector.load %arg3[%c0_103, %c0_104, %c0_105] : memref<1x64x64xf32, #tpu.memory_space<vmem>>, vector<1x64x64xf32>
    tpu.vector_store %arg3[%c0_103, %c0_104, %c0_105], %97 {strides = array<i32>} : memref<1x64x64xf32, #tpu.memory_space<vmem>>, vector<1x64x64xf32>,
    %cst_106 = arith.constant 6.000000e-01 : f32
    %99 = vector.broadcast %cst_106 : f32 to vector<64x64xf32>
    %100 = arith.cmpf oge, %96, %99 : vector<64x64xf32>
    %cst_107 = arith.constant 0xFF800000 : f32
    %101 = vector.broadcast %cst_107 : f32 to vector<64x64xf32>
    %102 = arith.select %100, %101, %96 : vector<64x64xi1>, vector<64x64xf32>
    %cst_108 = arith.constant dense<0xFF800000> : vector<64xf32>
    %103 = vector.multi_reduction <maximumf>, %102, %cst_108 [1] : vector<64x64xf32> to vector<64xf32>
    %104 = vector.shape_cast %103 : vector<64xf32> to vector<64x1xf32>
    %cst_109 = arith.constant dense<0xFF800000> : vector<1xf32>
    %105 = vector.multi_reduction <maximumf>, %104, %cst_109 [0] : vector<64x1xf32> to vector<1xf32>
    %106 = vector.shape_cast %105 : vector<1xf32> to vector<1x1xf32>
    %107 = vector.shape_cast %106 : vector<1x1xf32> to vector<1x1x1xf32>
    %108 = vector.shape_cast %107 : vector<1x1x1xf32> to vector<1x1x1xf32>
    %109 = vector.broadcast %108 : vector<1x1x1xf32> to vector<1x1x128xf32>
    %c0_110 = arith.constant 0 : index
    %c0_111 = arith.constant 0 : index
    %c0_112 = arith.constant 0 : index
    %110 = vector.load %arg4[%c0_110, %c0_111, %c0_112] : memref<1x1x128xf32, #tpu.memory_space<vmem>>, vector<1x1x128xf32>
    tpu.vector_store %arg4[%c0_110, %c0_111, %c0_112], %109 {strides = array<i32>} : memref<1x1x128xf32, #tpu.memory_space<vmem>>, vector<1x1x128xf32>,
    return
  }
  func.func @transform_0(%arg0: i32) -> (i32, i32, i32) {
    %c0_i32 = arith.constant 0 : i32
    %c0_i32_0 = arith.constant 0 : i32
    %c0_i32_1 = arith.constant 0 : i32
    return %arg0, %c0_i32, %c0_i32_0 : i32, i32, i32
  }
  func.func @transform_1(%arg0: i32) -> (i32, i32, i32) {
    %c0_i32 = arith.constant 0 : i32
    %c0_i32_0 = arith.constant 0 : i32
    %c0_i32_1 = arith.constant 0 : i32
    %c0_i32_2 = arith.constant 0 : i32
    return %c0_i32, %c0_i32_0, %c0_i32_1 : i32, i32, i32
  }
  func.func @transform_2(%arg0: i32) -> (i32, i32, i32) {
    %c0_i32 = arith.constant 0 : i32
    %c0_i32_0 = arith.constant 0 : i32
    %c0_i32_1 = arith.constant 0 : i32
    return %arg0, %c0_i32, %c0_i32_0 : i32, i32, i32
  }
  func.func @transform_3(%arg0: i32) -> (i32, i32, i32) {
    %c0_i32 = arith.constant 0 : i32
    %c0_i32_0 = arith.constant 0 : i32
    %c0_i32_1 = arith.constant 0 : i32
    return %arg0, %c0_i32, %c0_i32_0 : i32, i32, i32
  }
}

module attributes {stable_mosaic.version = 11 : i64} {
  func.func @_finalize_kernel(%arg0: i32, %arg1: memref<2x1x128xf32, #tpu.memory_space<vmem>>, %arg2: memref<64x128xf32, #tpu.memory_space<vmem>>, %arg3: memref<64x128xf32, #tpu.memory_space<vmem>>, %arg4: memref<64x128xi8, #tpu.memory_space<vmem>>) attributes {dimension_semantics = [#tpu.dimension_semantics<parallel>], iteration_bounds = array<i64: 1>, scalar_prefetch = 0 : i64, scratch_operands = 0 : i64, tpu.core_type = #tpu.core_type<tc>, window_params = [{pipeline_mode = #tpu.pipeline_mode<synchronous>, transform_indices = @transform_0, window_bounds = array<i64: 2, 1, 128>}, {transform_indices = @transform_1, window_bounds = array<i64: 64, 128>}, {transform_indices = @transform_2, window_bounds = array<i64: 64, 128>}, {transform_indices = @transform_3, window_bounds = array<i64: 64, 128>}]} {
    %c0 = arith.constant 0 : index
    %c0_0 = arith.constant 0 : index
    %c0_1 = arith.constant 0 : index
    %0 = vector.load %arg1[%c0, %c0_0, %c0_1] : memref<2x1x128xf32, #tpu.memory_space<vmem>>, vector<2x1x128xf32>
    %1 = vector.shape_cast %0 : vector<2x1x128xf32> to vector<2x128xf32>
    %cst = arith.constant dense<0xFF800000> : vector<2xf32>
    %2 = vector.multi_reduction <maximumf>, %1, %cst [1] : vector<2x128xf32> to vector<2xf32>
    %3 = vector.shape_cast %2 : vector<2xf32> to vector<2x1xf32>
    %cst_2 = arith.constant dense<0xFF800000> : vector<1xf32>
    %4 = vector.multi_reduction <maximumf>, %3, %cst_2 [0] : vector<2x1xf32> to vector<1xf32>
    %5 = vector.shape_cast %4 : vector<1xf32> to vector<1x1xf32>
    %cst_3 = arith.constant 1.000000e+00 : f32
    %6 = vector.broadcast %cst_3 : f32 to vector<1x1xf32>
    %7 = arith.divf %6, %5 : vector<1x1xf32>
    %c0_4 = arith.constant 0 : index
    %c0_5 = arith.constant 0 : index
    %8 = vector.load %arg2[%c0_4, %c0_5] : memref<64x128xf32, #tpu.memory_space<vmem>>, vector<64x128xf32>
    %cst_6 = arith.constant 6.000000e-01 : f32
    %9 = vector.broadcast %cst_6 : f32 to vector<64x128xf32>
    %10 = arith.cmpf oge, %8, %9 : vector<64x128xf32>
    %11 = vector.broadcast %7 : vector<1x1xf32> to vector<64x128xf32>
    %12 = arith.mulf %8, %11 : vector<64x128xf32>
    %cst_7 = arith.constant 1.000000e+00 : f32
    %13 = vector.broadcast %cst_7 : f32 to vector<64x128xf32>
    %14 = arith.select %10, %13, %12 : vector<64x128xi1>, vector<64x128xf32>
    %c0_8 = arith.constant 0 : index
    %c0_9 = arith.constant 0 : index
    %15 = vector.load %arg3[%c0_8, %c0_9] : memref<64x128xf32, #tpu.memory_space<vmem>>, vector<64x128xf32>
    tpu.vector_store %arg3[%c0_8, %c0_9], %14 {strides = array<i32>} : memref<64x128xf32, #tpu.memory_space<vmem>>, vector<64x128xf32>,
    %16 = arith.extui %10 : vector<64x128xi1> to vector<64x128xi8>
    %c0_10 = arith.constant 0 : index
    %c0_11 = arith.constant 0 : index
    %17 = vector.load %arg4[%c0_10, %c0_11] : memref<64x128xi8, #tpu.memory_space<vmem>>, vector<64x128xi8>
    tpu.vector_store %arg4[%c0_10, %c0_11], %16 {strides = array<i32>} : memref<64x128xi8, #tpu.memory_space<vmem>>, vector<64x128xi8>,
    return
  }
  func.func @transform_0(%arg0: i32) -> (i32, i32, i32) {
    %c0_i32 = arith.constant 0 : i32
    %c0_i32_0 = arith.constant 0 : i32
    %c0_i32_1 = arith.constant 0 : i32
    %c0_i32_2 = arith.constant 0 : i32
    return %c0_i32, %c0_i32_0, %c0_i32_1 : i32, i32, i32
  }
  func.func @transform_1(%arg0: i32) -> (i32, i32) {
    %c0_i32 = arith.constant 0 : i32
    %c0_i32_0 = arith.constant 0 : i32
    return %arg0, %c0_i32 : i32, i32
  }
  func.func @transform_2(%arg0: i32) -> (i32, i32) {
    %c0_i32 = arith.constant 0 : i32
    %c0_i32_0 = arith.constant 0 : i32
    return %arg0, %c0_i32 : i32, i32
  }
  func.func @transform_3(%arg0: i32) -> (i32, i32) {
    %c0_i32 = arith.constant 0 : i32
    %c0_i32_0 = arith.constant 0 : i32
    return %arg0, %c0_i32 : i32, i32
  }
}

</mosaic_0001>

<bundles_post_ra>
// kernel: _lambda_.3
= control target key start
LH: loop header
LB: loop body
LE: loop exit
PB: predicated region body
PF: predicated region fallthrough
CT: control target
= control target key end

     0   :  { %v23_v0 = vlaneseq  ;;  %v110_v3 = vmov 1966171168   ;;  %vm35_vm0 = vcmask 1041408   ;;  %v111_v20 = vmov 0   ;;  %s210_s0 = inlined_call_operand.vmem [shape: f32[2,1,128], index: 0, kind: input, shape index: {}]   ;;  %s211_s1 = inlined_call_operand.vmem [shape: f32[64,128], index: 1, kind: input, shape index: {}]   ;;  %s212_s3 = inlined_call_operand.vmem [shape: s8[64,128], index: 3, kind: output, shape index: {1}]   ;;  %s213_s2 = inlined_call_operand.vmem [shape: f32[64,128], index: 2, kind: output, shape index: {0}]  }
   0x1   :  { %v15_v1 = vld [vmem:[%s210_s0] sm:$0x1]  ;;  %v16_v2 = vld [vmem:[%s210_s0 + $0x1] sm:$0x1]  ;;  %v21_v4 = vunpack.c.l.s4 %v110_v3  ;;  %v49_v13 = vld [vmem:[%s211_s1 + $0x8] sm:$0xff] }
   0x2   :  { %v24_v5 = vshrl.u32 %v23_v0, 7  ;;  %v19_v6 = vcombine.low %v15_v1, %v16_v2  ;;  %v48_v12 = vld [vmem:[%s211_s1] sm:$0xff]  ;;  %v50_v14 = vld [vmem:[%s211_s1 + $0x10] sm:$0xff]  ;;  %v51_v15 = vld [vmem:[%s211_s1 + $0x18] sm:$0xff]  ;;  %vm57_vm2 = vcmp.ge.f32.partialorder %v49_v13, 0.6 }
   0x3   :  { %v22_v7 = vunpack.c.0.s8 %v21_v4  ;;  %v52_v16 = vld [vmem:[%s211_s1 + $0x20] sm:$0xff]  ;;  %v53_v17 = vld [vmem:[%s211_s1 + $0x28] sm:$0xff]  ;;  %vm56_vm1 = vcmp.ge.f32.partialorder %v48_v12, 0.6  ;;  %v54_v18 = vld [vmem:[%s211_s1 + $0x30] sm:$0xff] }
   0x4   :  { %v55_v19 = vld [vmem:[%s211_s1 + $0x38] sm:$0xff]  ;;  %vm58_vm3 = vcmp.ge.f32.partialorder %v50_v14, 0.6  ;;  %vm59_vm4 = vcmp.ge.f32.partialorder %v51_v15, 0.6  ;;  %vm88_vm7 = vmpackc.low %vm57_vm2, %vm56_vm1 }
   0x5   :  { %v25_v8 = vsub.s32 %v22_v7, %v24_v5  ;;  %vm60_vm5 = vcmp.ge.f32.partialorder %v52_v16, 0.6  ;;  %vm61_vm6 = vcmp.ge.f32.partialorder %v53_v17, 0.6  ;;  %vm62_vm8 = vcmp.ge.f32.partialorder %v54_v18, 0.6  ;;  %vm89_vm10 = vmpackc.low %vm59_vm4, %vm58_vm3 }
   0x6   :  { %vm63_vm9 = vcmp.ge.f32.partialorder %v55_v19, 0.6  ;;  %vm90_vm11 = vmpackc.even %vm89_vm10, %vm88_vm7 }
   0x7   :  { %v26_v9 = vrot.slane %v19_v6, %v25_v8  ;;  %vm91_vm12 = vmpackc.low %vm61_vm6, %vm60_vm5  ;;  %v94_v21 = vsel %vm90_vm11, 16843009, %v111_v20 }
   0x8   :  { %vm92_vm13 = vmpackc.low %vm63_vm9, %vm62_vm8  ;;  %96 = vst [vmem:[%s212_s3] sm:$0xff] %v94_v21 }
   0x9   :  { %v33_v10 = vrot.slane %v26_v9, %v25_v8  ;;  %vm93_vm14 = vmpackc.even %vm92_vm13, %vm91_vm12 }
   0xa   :  { %v95_v22 = vsel %vm93_vm14, 16843009, %v111_v20 }
   0xb   :  { %v36_v11 = vsel %vm35_vm0, %v33_v10, -inf  ;;  %97 = vst [vmem:[%s212_s3 + $0x8] sm:$0xff] %v95_v22 }
   0xc   :  { %37 = vmax.xlane.f32.xlu0 %v36_v11 }
  0x95   :  { %v38_v23 = vpop.xlane.xlu0 %37 }
  0x96   :  { %v39_v24 = vsel %vm35_vm0, %v38_v23, -inf }
  0x97   :  { %v40_v25 = vrot.slane %v39_v24, 4 }
  0x99   :  { %v41_v26 = vmax.f32 %v39_v24, %v40_v25 }
  0x9b   :  { %v42_v27 = vrot.slane %v41_v26, 2 }
  0x9d   :  { %v43_v28 = vmax.f32 %v41_v26, %v42_v27 }
  0x9f   :  { %v44_v29 = vrot.slane %v43_v28, 1 }
  0xa1   :  { %v45_v30 = vmax.f32 %v43_v28, %v44_v29 }
  0xa3   :  { %108 = vrcp.f32 %v45_v30 }
  0xb0   :  { %v109_v31 = vpop.eup %108 }
  0xb1   :  { %v64_v32 = vmul.f32 %v109_v31, %v48_v12  ;;  %v65_v33 = vmul.f32 %v109_v31, %v49_v13  ;;  %v66_v34 = vmul.f32 %v109_v31, %v50_v14  ;;  %v67_v35 = vmul.f32 %v109_v31, %v51_v15 }
  0xb2   :  { %v68_v36 = vmul.f32 %v109_v31, %v52_v16  ;;  %v69_v37 = vmul.f32 %v109_v31, %v53_v17  ;;  %v70_v38 = vmul.f32 %v109_v31, %v54_v18  ;;  %v71_v39 = vmul.f32 %v109_v31, %v55_v19 }
  0xb3   :  { %v72_v40 = vsel %vm56_vm1, 1.0, %v64_v32  ;;  %v73_v41 = vsel %vm57_vm2, 1.0, %v65_v33  ;;  %v74_v42 = vsel %vm58_vm3, 1.0, %v66_v34  ;;  %v75_v43 = vsel %vm59_vm4, 1.0, %v67_v35 }
  0xb4   :  { %v76_v44 = vsel %vm60_vm5, 1.0, %v68_v36  ;;  %v77_v45 = vsel %vm61_vm6, 1.0, %v69_v37  ;;  %v78_v46 = vsel %vm62_vm8, 1.0, %v70_v38  ;;  %v79_v47 = vsel %vm63_vm9, 1.0, %v71_v39  ;;  %80 = vst [vmem:[%s213_s2] sm:$0xff] %v72_v40  ;;  %81 = vst [vmem:[%s213_s2 + $0x8] sm:$0xff] %v73_v41 }
  0xb5   :  { %82 = vst [vmem:[%s213_s2 + $0x10] sm:$0xff] %v74_v42  ;;  %83 = vst [vmem:[%s213_s2 + $0x18] sm:$0xff] %v75_v43 }
  0xb6   :  { %84 = vst [vmem:[%s213_s2 + $0x20] sm:$0xff] %v76_v44  ;;  %85 = vst [vmem:[%s213_s2 + $0x28] sm:$0xff] %v77_v45 }
  0xb7   :  { %86 = vst [vmem:[%s213_s2 + $0x30] sm:$0xff] %v78_v46  ;;  %87 = vst [vmem:[%s213_s2 + $0x38] sm:$0xff] %v79_v47 }

// kernel: _lambda_.2
= control target key start
LH: loop header
LB: loop body
LE: loop exit
PB: predicated region body
PF: predicated region fallthrough
CT: control target
= control target key end

     0   :  { %9 = vsyncpa [#allocation4], 0  ;;  %s23572_s0 = inlined_call_operand.hbm [shape: f32[2,64,64], index: 0, kind: input, shape index: {}]   ;;  %s23573_s1 = inlined_call_operand.hbm [shape: f32[15,64,64], index: 1, kind: input, shape index: {}]   ;;  %s23574_s2 = inlined_call_operand.vmem [shape: f32[2,64,64], index: 2, kind: output, shape index: {0}]   ;;  %s23575_s3 = inlined_call_operand.vmem [shape: f32[2,1,128], index: 3, kind: output, shape index: {1}]  }
   0x1   :  { %11 = vsyncpa [#allocation4 + $0x1], 0 }
   0x2   :  { %12 = vsyncpa [#allocation6], 0  ;;  %s17835_s12 = smov 0   ;;  %s17837_s13 = smov 0  }
   0x3   :  { %s17839_s14 = smov 0   ;;  %s17841_s15 = smov 0  }
   0x4 LB: > { %s17854_s16 = sadd.s32 4294967295, %s17808_s15   ;;  %p38_p0 = scmp.ne.s32.totalorder %s17800_s13, %s17796_s12  ;;  %s17808_s15 = sphi %s17841_s15, %s24376_s15   ;;  %s17804_s14 = sphi %s17839_s14, %s24375_s14   ;;  %s17800_s13 = sphi %s17837_s13, %s24374_s13   ;;  %s17796_s12 = sphi %s17835_s12, %s24373_s12  }
   0x5   : > { %p23576_p1 = scmp.eq.s32.totalorder %s17854_s16, 0  ;;  %p13688_p2 = scmp.ge.s32.totalorder %s17808_s15, 1 }
   0x6   : > { %p122_p3 = scmp.lt.s32.totalorder %s17808_s15, 3  ;;  %s17810_s19 = smov [#allocation5]  }
   0x7   : > { %p17862_p4 = por %p23576_p1, %p38_p0  ;;  %s134_s20 = sshll.u32 %s17810_s19, 4  ;;  %s135_s20 = int_to_ptr.vmem [resolvable:$true] %s134_s20 }
   0x8   : > { %p17866_p5 = pnand %p13688_p2, %p122_p3  ;;  %s17879_s22 = sadd.s32 1, %s17808_s15  }
   0x9   : > { %s23647_s17 = scalar_select %p17862_p4, 1, 0 }
   0xa   : > { %s23648_s18 = scalar_select %p17866_p5, 1, 0 }
   0xb   : > { %p17669_p6 = pneg %p17866_p5  ;;  %s25_s23 = sadd.s32 1, %s17804_s14 }
   0xc   : > { %s22_s24 = ssub.s32 %s17808_s15, %s17879_s22  ;;  %s17727_s25 = scalar_lea.vmem %s135_s20, 15360 }
   0xd   : > { %p17874_p7 = pnand %p17669_p6, %p23576_p1  ;;  %p17728_p9 = scmp.ne.s32.totalorder %s135_s20, %s17727_s25 }
   0xe   : > { %p17735_p12 = scmp.lt.s32.totalorder %s135_s20, %s135_s20  ;;  %p17736_p13 = scmp.lt.s32.totalorder %s17727_s25, %s17727_s25 }
   0xf   : > { %p17718_p8 = pneg %p17874_p7 }
  0x10   : > { %p17737_p0 = por %p17736_p13, %p17735_p12 }
  0x11   : > { %p17730_p10 = pnand %p17728_p9, %p17718_p8 }
  0x13   : > { %p17731_p11 = pneg %p17730_p10 }
  0x15   : > { %p17738_p2 = pnand %p17737_p0, %p17731_p11 }
  0x17   : > { %17741 = shalt.err (!%p17738_p2)
}
  0x18   : > { %s17811_s26 = smov 128   ;;  %s17812_s27 = smov 8  }
  0x19   : > { %17672 = dma.hbm_to_vmem [thread:$0]  (!%p17874_p7), %s23573_s1, 15360, %s135_s20, [#allocation6], %s17811_s26, %s17811_s26, %s17812_s27  }
  0x1a   : > { %p23_p3 = scmp.eq.s32.totalorder %s22_s24, 0  ;;  %p32_p6 = scmp.ne.s32.totalorder %s17804_s14, %s17800_s13 }
  0x1b   : > { %p33_p8 = scmp.eq.s32.totalorder %s17808_s15, 0  ;;  %p17678_p9 = scmp.lt.s32.totalorder %s17808_s15, 2 }
  0x1c   : > { %s17899_s30 = scalar_select %p23_p3, %s17804_s14, %s25_s23  }
  0x1d   : > { %p34_p10 = por %p33_p8, %p32_p6  ;;  %s148_s4 = sand.u32 1, %s17804_s14  }
  0x1e   : > { %s13691_s5 = sshll.u32 %s148_s4, 6  ;;  %s13701_s6 = sshll.u32 %s17808_s15, 10 }
  0x1f   : > { %s17906_s9 = scalar_lea.hbm %s23572_s0, %s13701_s6  ;;  %s152_s10 = scalar_lea.vmem [#allocation3], %s13691_s5 }
  0x20   : > { %s159_s11 = sshll.u32 %s152_s10, 4  ;;  %p17910_p7 = pnand %p17678_p9, %p34_p10  ;;  %s17908_s11 = int_to_ptr.vmem [resolvable:$true] %s159_s11 }
  0x21   : > { %s17914_s19 = scalar_lea.sflag [#allocation4], %s148_s4  ;;  %s17742_s15 = scalar_lea.hbm %s17906_s9, 1024 }
  0x22   : > { %p17743_p11 = scmp.ne.s32.totalorder %s17906_s9, %s17742_s15  ;;  %p17744_p12 = pneg %p17910_p7 }
  0x23   : > { %s17747_s23 = scalar_lea.hbm %s23572_s0, 2048  ;;  %p17748_p2 = scmp.lt.s32.totalorder %s17906_s9, %s23572_s0 }
  0x24   : > { %p17745_p13 = pnand %p17744_p12, %p17743_p11  ;;  %p17749_p3 = scmp.lt.s32.totalorder %s17747_s23, %s17742_s15 }
  0x26   : > { %p17746_p0 = pneg %p17745_p13  ;;  %p17750_p6 = por %p17749_p3, %p17748_p2 }
  0x28   : > { %p17751_p8 = pnand %p17750_p6, %p17746_p0 }
  0x2a   : > { %17754 = shalt.err (!%p17751_p8)
}
  0x2b   : > { %s17755_s28 = scalar_lea.vmem %s17908_s11, 1024  ;;  %s17813_s29 = smov [#allocation3]  }
  0x2c   : > { %p17756_p9 = scmp.ne.s32.totalorder %s17908_s11, %s17755_s28  ;;  %s17760_s4 = sshll.u32 %s17813_s29, 4  ;;  %s17761_s4 = int_to_ptr.vmem [resolvable:$false] %s17760_s4 }
  0x2d   : > { %s17762_s5 = scalar_lea.vmem %s17761_s4, 2048  ;;  %p17763_p13 = scmp.lt.s32.totalorder %s17908_s11, %s17761_s4 }
  0x2e   : > { %p17758_p10 = pnand %p17756_p9, %p17744_p12  ;;  %p17764_p1 = scmp.lt.s32.totalorder %s17762_s5, %s17755_s28 }
  0x30   : > { %p17759_p11 = pneg %p17758_p10  ;;  %p17765_p4 = por %p17764_p1, %p17763_p13 }
  0x32   : > { %p17766_p5 = pnand %p17765_p4, %p17759_p11 }
  0x34   : > { %17769 = shalt.err (!%p17766_p5)
}
  0x35   : > { %17676 = dma.hbm_to_vmem [thread:$0]  (!%p17910_p7), %s17906_s9, 1024, %s17908_s11, %s17914_s19, %s17811_s26, %s17811_s26, %s17812_s27  }
  0x36   : > { %p23651_p12 = scmp.ne.s32.totalorder %s23648_s18, 0 }
  0x38   : > { %171 = sbr.rel (%p23651_p12) target bundleno = 1526 (0x5f6), region = 28 }
  0x3d   : > { %s173_s6 = sand.u32 1, %s17800_s13   ;;  %p23652_p1 = scmp.ne.s32.totalorder %s23647_s17, 0 }
  0x3e   : > { %s13695_s7 = sshll.u32 %s173_s6, 6  ;;  %s174_s8 = scalar_lea.sflag [#allocation4], %s173_s6 }
  0x3f   : > { %s17941_s10 = scalar_lea.vmem [#allocation3], %s13695_s7 }
  0x40   : > { %17787 = dma.done.wait (%p23652_p1), %s174_s8, 1024  }
  0x41   : > { %17789 = vsyncadd (%p23652_p1), %s174_s8, 4294966272  ;;  %p23653_p4 = scmp.eq.s32.totalorder %s17854_s16, 0 }
  0x43   : > { %17791 = dma.done.wait (%p23653_p4), [#allocation6], 15360   ;;  %p23654_p5 = pmov %p23653_p4 }
  0x44   : > { %vm215_vm0 = vcmask 522240   ;;  %v17814_v0 = vmov 0.0   ;;  %v267_v1 = vld [vmem:[#allocation5 + $0x78] sm:$0xff]  ;;  %v266_v2 = vld [vmem:[#allocation5 + $0x70] sm:$0xff]  ;;  %v265_v3 = vld [vmem:[#allocation5 + $0x68] sm:$0xff]  ;;  %vm226_vm1 = vcmask 523264  }
  0x45   : > { %17793 = vsyncadd (%p23654_p5), [#allocation6], 4294951936  ;;  %216 = vst.msk [vmem:[#allocation2] sm:$0x7f] %vm215_vm0, %v17814_v0  ;;  %v17951_v4 = vand.u32 4294901760, %v267_v1  ;;  %v17953_v5 = vand.u32 4294901760, %v266_v2 }
  0x46   : > { %217 = vst.msk [vmem:[#allocation2 + $0x47] sm:$0x7f] %vm215_vm0, %v17814_v0  ;;  %v17955_v6 = vand.u32 4294901760, %v265_v3  ;;  %v264_v7 = vld [vmem:[#allocation5 + $0x60] sm:$0xff]  ;;  %v263_v8 = vld [vmem:[#allocation5 + $0x58] sm:$0xff]  ;;  %v262_v9 = vld [vmem:[#allocation5 + $0x50] sm:$0xff] }
  0x47   : > { %v17957_v10 = vand.u32 4294901760, %v264_v7  ;;  %v17959_v11 = vand.u32 4294901760, %v263_v8  ;;  %v17961_v12 = vand.u32 4294901760, %v262_v9  ;;  %v261_v13 = vld [vmem:[#allocation5 + $0x48] sm:$0xff]  ;;  %v260_v14 = vld [vmem:[#allocation5 + $0x40] sm:$0xff]  ;;  %15143 = vmatprep.subr.mxu0 %v17951_v4  ;;  %v17966_v16 = vsub.f32 %v267_v1, %v17951_v4  ;;  %v220_v21 = vld [vmem:[%s17941_s10 + $0x10] sm:$0xff] }
  0x48   : > { %v218_v15 = vld [vmem:[%s17941_s10] sm:$0xff]  ;;  %v17969_v17 = vsub.f32 %v266_v2, %v17953_v5  ;;  %v17972_v18 = vsub.f32 %v265_v3, %v17955_v6  ;;  %v17974_v19 = vand.u32 4294901760, %v261_v13  ;;  %v219_v20 = vld [vmem:[%s17941_s10 + $0x8] sm:$0xff]  ;;  %v221_v22 = vld [vmem:[%s17941_s10 + $0x18] sm:$0xff]  ;;  %15144 = vmatpush3.msra.mxu0 %v17951_v4  ;;  %v17984_v24 = vand.u32 4294901760, %v260_v14  ;;  %229 = vst.msk [vmem:[#allocation2 + $0x17] sm:$0xff] %vm226_vm1, %v220_v21 }
  0x49   : > { %227 = vst.msk [vmem:[#allocation2 + $0x7] sm:$0xff] %vm226_vm1, %v218_v15  ;;  %v17982_v23 = vsub.f32 %v264_v7, %v17957_v10  ;;  %v17987_v25 = vsub.f32 %v263_v8, %v17959_v11  ;;  %228 = vst.msk [vmem:[#allocation2 + $0xf] sm:$0xff] %vm226_vm1, %v219_v20  ;;  %v17991_v26 = vsub.f32 %v262_v9, %v17961_v12  ;;  %v222_v27 = vld [vmem:[%s17941_s10 + $0x20] sm:$0xff]  ;;  %v223_v28 = vld [vmem:[%s17941_s10 + $0x28] sm:$0xff]  ;;  %15145 = vmatprep.subr.mxu0 %v17953_v5  ;;  %p207_p7 = scmp.lt.s32.totalorder %s17854_s16, 1 }
  0x4a   : > { %230 = vst.msk [vmem:[#allocation2 + $0x1f] sm:$0xff] %vm226_vm1, %v221_v22  ;;  %v224_v29 = vld [vmem:[%s17941_s10 + $0x30] sm:$0xff]  ;;  %v18000_v30 = vand.u32 4294901760, %v17966_v16  ;;  %v18003_v31 = vand.u32 4294901760, %v17969_v17  ;;  %v18006_v32 = vand.u32 4294901760, %v17972_v18  ;;  %v18009_v33 = vsub.f32 %v261_v13, %v17974_v19  ;;  %231 = vst.msk [vmem:[#allocation2 + $0x27] sm:$0xff] %vm226_vm1, %v222_v27  ;;  %15146 = vmatpush3.msra.mxu0 %v17953_v5 }
  0x4b   : > { %232 = vst.msk [vmem:[#allocation2 + $0x2f] sm:$0xff] %vm226_vm1, %v223_v28  ;;  %233 = vst.msk [vmem:[#allocation2 + $0x37] sm:$0xff] %vm226_vm1, %v224_v29  ;;  %v225_v34 = vld [vmem:[%s17941_s10 + $0x38] sm:$0xff]  ;;  %v18017_v35 = vand.u32 4294901760, %v17982_v23  ;;  %v18020_v36 = vand.u32 4294901760, %v17987_v25  ;;  %v18023_v37 = vand.u32 4294901760, %v17991_v26  ;;  %v18026_v38 = vsub.f32 %v260_v14, %v17984_v24  ;;  %15147 = vmatprep.subr.mxu0 %v17955_v6 }
  0x4c   : > { %234 = vst.msk [vmem:[#allocation2 + $0x3f] sm:$0xff] %vm226_vm1, %v225_v34  ;;  %v465_v39 = vsub.f32 %v17966_v16, %v18000_v30  ;;  %v472_v40 = vsub.f32 %v17969_v17, %v18003_v31  ;;  %v479_v41 = vsub.f32 %v17972_v18, %v18006_v32  ;;  %v18037_v42 = vand.u32 4294901760, %v18009_v33  ;;  %15148 = vmatpush3.msra.mxu0 %v17955_v6  ;;  %s24378_s16 = smov (!%p207_p7, %s17854_s16), 1 }
  0x4d   : > { %v486_v43 = vsub.f32 %v17982_v23, %v18017_v35  ;;  %v493_v44 = vsub.f32 %v17987_v25, %v18020_v36  ;;  %v500_v45 = vsub.f32 %v17991_v26, %v18023_v37  ;;  %15149 = vmatprep.subr.mxu0 %v17957_v10  ;;  %v18048_v48 = vand.u32 4294901760, %v18026_v38  ;;  %s13702_s17 = sshll.u32 %s24378_s16, 6  ;;  %s214_s12 = scalar_lea.vmem %s23575_s3, %s24378_s16 }
  0x4e   : > { %v466_v46 = vand.u32 4294901760, %v465_v39  ;;  %v473_v47 = vand.u32 4294901760, %v472_v40  ;;  %15150 = vmatpush3.msra.mxu0 %v17957_v10  ;;  %v480_v49 = vand.u32 4294901760, %v479_v41  ;;  %v507_v56 = vsub.f32 %v18009_v33, %v18037_v42  ;;  %s23520_s27 = scalar_lea.vmem %s23574_s2, %s13702_s17 }
  0x4f   : > { %v487_v50 = vand.u32 4294901760, %v486_v43  ;;  %15151 = vmatprep.subr.mxu0 %v17959_v11  ;;  %v494_v52 = vand.u32 4294901760, %v493_v44  ;;  %v18053_v55 = vand.u32 4294901760, %v500_v45  ;;  %v514_v7 = vsub.f32 %v18026_v38, %v18048_v48 }
  0x50   : > { %v251_v51 = vld [vmem:[#allocation2 + $0x1] sm:$0xff]  ;;  %15171 = vmatprep.subr.mxu1 %v466_v46  ;;  %v252_v54 = vld [vmem:[#allocation2 + $0x9] sm:$0xff]  ;;  %v253_v57 = vld [vmem:[#allocation2 + $0x11] sm:$0xff]  ;;  %15152 = vmatpush3.msra.mxu0 %v17959_v11 }
  0x51   : > { %v269_v53 = vsel %vm226_vm1, %v251_v51, 0  ;;  %v254_v58 = vld [vmem:[#allocation2 + $0x19] sm:$0xff]  ;;  %15172 = vmatpush3.msra.mxu1 %v466_v46  ;;  %v272_v60 = vsel %vm226_vm1, %v252_v54, 0  ;;  %v275_v61 = vsel %vm226_vm1, %v253_v57, 0  ;;  %v255_v63 = vld [vmem:[#allocation2 + $0x21] sm:$0xff]  ;;  %15153 = vmatprep.subr.mxu0 %v17961_v12 }
  0x52   : > { %v18058_v59 = vand.u32 4294901760, %v269_v53  ;;  %v278_v62 = vsel %vm226_vm1, %v254_v58, 0  ;;  %v256_v0 = vld [vmem:[#allocation2 + $0x29] sm:$0xff]  ;;  %15173 = vmatprep.subr.mxu1 %v473_v47  ;;  %v18064_v1 = vand.u32 4294901760, %v272_v60  ;;  %v18066_v2 = vand.u32 4294901760, %v275_v61  ;;  %v257_v8 = vld [vmem:[#allocation2 + $0x31] sm:$0xff]  ;;  %15154 = vmatpush3.msra.mxu0 %v17961_v12 }
  0x53   : > { %v18068_v3 = vand.u32 4294901760, %v278_v62  ;;  %v258_v9 = vld [vmem:[#allocation2 + $0x39] sm:$0xff]  ;;  %15174 = vmatpush3.msra.mxu1 %v473_v47  ;;  %v281_v14 = vsel %vm226_vm1, %v255_v63, 0  ;;  %v284_v15 = vsel %vm226_vm1, %v256_v0, 0  ;;  %v287_v20 = vsel %vm226_vm1, %v257_v8, 0  ;;  %15155 = vmatprep.subr.mxu0 %v17974_v19 }
  0x54   : > { %v18074_v13 = vsub.f32 %v269_v53, %v18058_v59  ;;  %15175 = vmatprep.subr.mxu1 %v480_v49  ;;  %v18081_v21 = vsub.f32 %v272_v60, %v18064_v1  ;;  %v18084_v22 = vsub.f32 %v275_v61, %v18066_v2  ;;  %v18089_v28 = vand.u32 4294901760, %v281_v14  ;;  %15156 = vmatpush3.msra.mxu0 %v17974_v19 }
  0x55   : > { %v18087_v27 = vsub.f32 %v278_v62, %v18068_v3  ;;  %15176 = vmatpush3.msra.mxu1 %v480_v49  ;;  %v18093_v34 = vand.u32 4294901760, %v284_v15  ;;  %v18095_v39 = vand.u32 4294901760, %v287_v20  ;;  %v290_v40 = vsel %vm226_vm1, %v258_v9, 0  ;;  %15157 = vmatprep.subr.mxu0 %v17984_v24 }
  0x56   : > { %v367_v29 = vand.u32 4294901760, %v18074_v13  ;;  %15177 = vmatprep.subr.mxu1 %v487_v50  ;;  %v377_v41 = vand.u32 4294901760, %v18081_v21  ;;  %v387_v43 = vand.u32 4294901760, %v18084_v22  ;;  %v18103_v45 = vsub.f32 %v281_v14, %v18089_v28  ;;  %15158 = vmatpush3.msra.mxu0 %v17984_v24 }
  0x57   : > { %v397_v44 = vand.u32 4294901760, %v18087_v27  ;;  %15178 = vmatpush3.msra.mxu1 %v487_v50  ;;  %v508_v47 = vand.u32 4294901760, %v507_v56  ;;  %v18110_v49 = vsub.f32 %v284_v15, %v18093_v34  ;;  %v18112_v51 = vand.u32 4294901760, %v290_v40  ;;  %15199 = vmatprep.subr.mxu0 %v17966_v16 }
  0x58   : > { %v368_v46 = vsub.f32 %v18074_v13, %v367_v29  ;;  %15179 = vmatprep.subr.mxu1 %v494_v52  ;;  %v378_v53 = vsub.f32 %v18081_v21, %v377_v41  ;;  %v388_v50 = vsub.f32 %v18084_v22, %v387_v43  ;;  %v407_v56 = vand.u32 4294901760, %v18103_v45  ;;  %15187 = vmatprep.mubr.f32.mxu1 %v18058_v59 }
  0x59   : > { %v398_v54 = vsub.f32 %v18087_v27, %v397_v44  ;;  %15180 = vmatpush3.msra.mxu1 %v494_v52  ;;  %v417_v58 = vand.u32 4294901760, %v18110_v49  ;;  %v18128_v60 = vsub.f32 %v287_v20, %v18095_v39  ;;  %v515_v63 = vand.u32 4294901760, %v514_v7 }
  0x5a   : > { %v369_v57 = vand.u32 4294901760, %v368_v46  ;;  %v379_v61 = vand.u32 4294901760, %v378_v53  ;;  %15181 = vmatprep.subr.mxu1 %v18053_v55  ;;  %v389_v62 = vand.u32 4294901760, %v388_v50  ;;  %v408_v0 = vsub.f32 %v18103_v45, %v407_v56 }
  0x5b   : > { %15182 = vmatpush3.msra.mxu1 %v18053_v55  ;;  %v18136_v52 = vsub.f32 %v290_v40, %v18112_v51  ;;  %v399_v8 = vand.u32 4294901760, %v398_v54  ;;  %v418_v9 = vsub.f32 %v18110_v49, %v417_v58  ;;  %v427_v55 = vand.u32 4294901760, %v18128_v60  ;;  %v243_v54 = vld [vmem:[#allocation5] sm:$0xff] }
  0x5c   : > { %15159 = vmatprep.mubr.f32.mxu0 %v369_v57  ;;  %15183 = vmatprep.subr.mxu1 %v508_v47  ;;  %v409_v7 = vand.u32 4294901760, %v408_v0  ;;  %v18325_v0 = vand.u32 4294901760, %v243_v54 }
  0x5d   : > { %15160 = vmatmul.mubr.f32.vlgmr.msra.gmra.mxu0 %v379_v61  ;;  %15184 = vmatpush3.msra.mxu1 %v508_v47  ;;  %v437_v14 = vand.u32 4294901760, %v18136_v52  ;;  %v428_v15 = vsub.f32 %v18128_v60, %v427_v55 }
  0x5e   : > { %15200 = vmatpush3.msra.mxu0 %v17966_v16  ;;  %15162 = vmatprep.mubr.f32.mxu0 %v389_v62  ;;  %v419_v16 = vand.u32 4294901760, %v418_v9  ;;  %v239_v62 = vld [vmem:[#allocation2 + $0x20] sm:$0xff]  ;;  %v240_v9 = vld [vmem:[#allocation2 + $0x28] sm:$0xff] }
  0x5f   : > { %15201 = vmatprep.subr.mxu0 %v17969_v17  ;;  %15185 = vmatprep.subr.mxu1 %v515_v63 }
  0x60   : > { %15202 = vmatpush3.msra.mxu0 %v17969_v17  ;;  %15186 = vmatpush3.msra.mxu1 %v515_v63  ;;  %v438_v17 = vsub.f32 %v18136_v52, %v437_v14 }
  0x61   : > { %15163 = vmatmul.mubr.f32.gmra.mxu0 %v399_v8  ;;  %15203 = vmatprep.subr.mxu0 %v17972_v18 }
  0x62   : > { %15204 = vmatpush3.msra.mxu0 %v17972_v18  ;;  %15188 = vmatmul.mubr.f32.vlgmr.msra.gmra.mxu1 %v18064_v1  ;;  %v429_v18 = vand.u32 4294901760, %v428_v15  ;;  %v439_v20 = vand.u32 4294901760, %v438_v17 }
  0x63   : > { %15205 = vmatprep.subr.mxu0 %v17982_v23  ;;  %15227 = vmatprep.subr.mxu1 %v17951_v4 }
  0x64   : > { %15165 = vmatprep.mubr.f32.mxu0 %v409_v7  ;;  %15206 = vmatpush3.msra.mxu0 %v17982_v23  ;;  %v250_v23 = vld [vmem:[#allocation5 + $0x38] sm:$0xff] }
  0x65   : > { %15228 = vmatpush3.msra.mxu1 %v17951_v4  ;;  %15166 = vmatmul.mubr.f32.gmra.mxu0 %v419_v16 }
  0x66   : > { %15207 = vmatprep.subr.mxu0 %v17987_v25  ;;  %15229 = vmatprep.subr.mxu1 %v17953_v5 }
  0x67   : > { %15190 = vmatprep.mubr.f32.mxu1 %v18066_v2  ;;  %15208 = vmatpush3.msra.mxu0 %v17987_v25  ;;  %v18213_v25 = vand.u32 4294901760, %v250_v23 }
  0x68   : > { %15230 = vmatpush3.msra.mxu1 %v17953_v5  ;;  %15209 = vmatprep.subr.mxu0 %v17991_v26 }
  0x69   : > { %15191 = vmatmul.mubr.f32.gmra.mxu1 %v18068_v3  ;;  %15231 = vmatprep.subr.mxu1 %v17955_v6 }
  0x6a   : > { %15168 = vmatprep.mubr.f32.mxu0 %v429_v18  ;;  %15210 = vmatpush3.msra.mxu0 %v17991_v26  ;;  %v249_v26 = vld [vmem:[#allocation5 + $0x30] sm:$0xff]  ;;  %v1146_v18 = vsel %vm226_vm1, %v240_v9, 0 }
  0x6b   : > { %15232 = vmatpush3.msra.mxu1 %v17955_v6  ;;  %15169 = vmatmul.mubr.f32.gmra.mxu0 %v439_v20 }
  0x6c   : > { %15211 = vmatprep.subr.mxu0 %v18009_v33  ;;  %15233 = vmatprep.subr.mxu1 %v17957_v10 }
  0x6d   : > { %15193 = vmatprep.mubr.f32.mxu1 %v18089_v28  ;;  %15212 = vmatpush3.msra.mxu0 %v18009_v33  ;;  %v235_v33 = vld [vmem:[#allocation2] sm:$0xff] }
  0x6e   : > { %15234 = vmatpush3.msra.mxu1 %v17957_v10  ;;  %15213 = vmatprep.subr.mxu0 %v18026_v38 }
  0x6f   : > { %15194 = vmatmul.mubr.f32.gmra.mxu1 %v18093_v34  ;;  %15235 = vmatprep.subr.mxu1 %v17959_v11 }
  0x70   : > { %15214 = vmatpush3.msra.mxu0 %v18026_v38  ;;  %15215 = vmatprep.mubr.f32.mxu0 %v18074_v13  ;;  %v245_v38 = vld [vmem:[#allocation5 + $0x10] sm:$0xff] }
  0x71   : > { %15236 = vmatpush3.msra.mxu1 %v17959_v11  ;;  %15216 = vmatmul.mubr.f32.vlgmr.msra.gmra.mxu0 %v18081_v21  ;;  %v18276_v40 = vand.u32 4294901760, %v245_v38 }
  0x72   : > { %15237 = vmatprep.subr.mxu1 %v17961_v12  ;;  %15255 = vmatprep.subr.mxu0 %v18000_v30 }
  0x73   : > { %15196 = vmatprep.mubr.f32.mxu1 %v18095_v39  ;;  %15238 = vmatpush3.msra.mxu1 %v17961_v12  ;;  %v18308_v57 = vsub.f32 %v245_v38, %v18276_v40 }
  0x74   : > { %15256 = vmatpush3.msra.mxu0 %v18000_v30  ;;  %15197 = vmatmul.mubr.f32.gmra.mxu1 %v18112_v51  ;;  %v248_v30 = vld [vmem:[#allocation5 + $0x28] sm:$0xff] }
  0x75   : > { %15239 = vmatprep.subr.mxu1 %v17974_v19  ;;  %15257 = vmatprep.subr.mxu0 %v18003_v31 }
  0x76   : > { %15218 = vmatprep.mubr.f32.mxu0 %v18084_v22  ;;  %15240 = vmatpush3.msra.mxu1 %v17974_v19 }
  0x77   : > { %15258 = vmatpush3.msra.mxu0 %v18003_v31  ;;  %15241 = vmatprep.subr.mxu1 %v17984_v24  ;;  %v247_v31 = vld [vmem:[#allocation5 + $0x20] sm:$0xff] }
  0x78   : > { %15219 = vmatmul.mubr.f32.gmra.mxu0 %v18087_v27  ;;  %15259 = vmatprep.subr.mxu0 %v18006_v32 }
  0x79   : > { %15242 = vmatpush3.msra.mxu1 %v17984_v24  ;;  %15243 = vmatprep.mubr.f32.mxu1 %v367_v29  ;;  %v237_v29 = vld [vmem:[#allocation2 + $0x10] sm:$0xff] }
  0x7a   : > { %15260 = vmatpush3.msra.mxu0 %v18006_v32  ;;  %15244 = vmatmul.mubr.f32.vlgmr.msra.gmra.mxu1 %v377_v41  ;;  %v1137_v47 = vsel %vm226_vm1, %v237_v29, 0 }
  0x7b   : > { %15261 = vmatprep.subr.mxu0 %v18017_v35  ;;  %15283 = vmatprep.subr.mxu1 %v17951_v4  ;;  %v18318_v61 = vand.u32 4294901760, %v1137_v47 }
  0x7c   : > { %15221 = vmatprep.mubr.f32.mxu0 %v18103_v45  ;;  %15262 = vmatpush3.msra.mxu0 %v18017_v35  ;;  %v18244_v35 = vand.u32 4294901760, %v247_v31  ;;  %v238_v45 = vld [vmem:[#allocation2 + $0x18] sm:$0xff] }
  0x7d   : > { %15284 = vmatpush3.msra.mxu1 %v17951_v4  ;;  %15222 = vmatmul.mubr.f32.gmra.mxu0 %v18110_v49  ;;  %v18222_v4 = vand.u32 4294901760, %v249_v26  ;;  %v18345_v17 = vsub.f32 %v1137_v47, %v18318_v61 }
  0x7e   : > { %15263 = vmatprep.subr.mxu0 %v18020_v36  ;;  %15285 = vmatprep.subr.mxu1 %v17953_v5  ;;  %v18271_v27 = vsub.f32 %v247_v31, %v18244_v35  ;;  %v241_v31 = vld [vmem:[#allocation2 + $0x30] sm:$0xff] }
  0x7f   : > { %15246 = vmatprep.mubr.f32.mxu1 %v387_v43  ;;  %15264 = vmatpush3.msra.mxu0 %v18020_v36  ;;  %v18240_v32 = vsub.f32 %v249_v26, %v18222_v4  ;;  %v244_v43 = vld [vmem:[#allocation5 + $0x8] sm:$0xff]  ;;  %v18356_v26 = vsub.f32 %v243_v54, %v18325_v0  ;;  %v1249_v38 = vand.u32 4294901760, %v18345_v17 }
  0x80   : > { %15286 = vmatpush3.msra.mxu1 %v17953_v5  ;;  %15265 = vmatprep.subr.mxu0 %v18023_v37  ;;  %v18227_v5 = vsub.f32 %v250_v23, %v18213_v25  ;;  %v18295_v53 = vand.u32 4294901760, %v18271_v27 }
  0x81   : > { %15247 = vmatmul.mubr.f32.gmra.mxu1 %v397_v44  ;;  %15287 = vmatprep.subr.mxu1 %v17955_v6  ;;  %v18261_v13 = vand.u32 4294901760, %v18240_v32 }
  0x82   : > { %15224 = vmatprep.mubr.f32.mxu0 %v18128_v60  ;;  %15266 = vmatpush3.msra.mxu0 %v18023_v37  ;;  %v18247_v36 = vand.u32 4294901760, %v18227_v5  ;;  %v246_v37 = vld [vmem:[#allocation5 + $0x18] sm:$0xff] }
  0x83   : > { %15288 = vmatpush3.msra.mxu1 %v17955_v6  ;;  %15225 = vmatmul.mubr.f32.gmra.mxu0 %v18136_v52  ;;  %v18234_v6 = vand.u32 4294901760, %v248_v30  ;;  %v18268_v22 = vand.u32 4294901760, %v246_v37  ;;  %v1334_v46 = vsub.f32 %v18240_v32, %v18261_v13 }
  0x84   : > { %15267 = vmatprep.subr.mxu0 %v18037_v42  ;;  %15289 = vmatprep.subr.mxu1 %v17957_v10  ;;  %v1327_v21 = vsub.f32 %v18227_v5, %v18247_v36 }
  0x85   : > { %15249 = vmatprep.mubr.f32.mxu1 %v407_v56  ;;  %15268 = vmatpush3.msra.mxu0 %v18037_v42  ;;  %v18254_v42 = vsub.f32 %v248_v30, %v18234_v6  ;;  %v18298_v50 = vsub.f32 %v246_v37, %v18268_v22  ;;  %v1335_v63 = vand.u32 4294901760, %v1334_v46 }
  0x86   : > { %15290 = vmatpush3.msra.mxu1 %v17957_v10  ;;  %15269 = vmatprep.subr.mxu0 %v18048_v48  ;;  %v236_v10 = vld [vmem:[#allocation2 + $0x8] sm:$0xff]  ;;  %v1328_v49 = vand.u32 4294901760, %v1327_v21  ;;  %v1149_v21 = vsel %vm226_vm1, %v241_v31, 0 }
  0x87   : > { %15250 = vmatmul.mubr.f32.gmra.mxu1 %v417_v58  ;;  %15291 = vmatprep.subr.mxu1 %v17959_v11  ;;  %v1140_v58 = vsel %vm226_vm1, %v238_v45, 0  ;;  %v18328_v52 = vand.u32 4294901760, %v18298_v50  ;;  %v18383_v45 = vand.u32 4294901760, %v18356_v26 }
  0x88   : > { %15270 = vmatpush3.msra.mxu0 %v18048_v48  ;;  %15271 = vmatprep.mubr.f32.mxu0 %v18058_v59  ;;  %v1131_v48 = vsel %vm226_vm1, %v235_v33, 0  ;;  %v18330_v8 = vand.u32 4294901760, %v1140_v58 }
  0x89   : > { %15292 = vmatpush3.msra.mxu1 %v17959_v11  ;;  %15272 = vmatmul.mubr.f32.vlgmr.msra.gmra.mxu0 %v18064_v1  ;;  %v1134_v11 = vsel %vm226_vm1, %v236_v10, 0  ;;  %v18278_v41 = vand.u32 4294901760, %v1131_v48  ;;  %v1355_v20 = vsub.f32 %v18298_v50, %v18328_v52  ;;  %v1376_v9 = vsub.f32 %v18356_v26, %v18383_v45 }
  0x8a   : > { %15293 = vmatprep.subr.mxu1 %v17961_v12  ;;  %15311 = vmatprep.subr.mxu0 %v18213_v25  ;;  %v18285_v44 = vand.u32 4294901760, %v1134_v11  ;;  %v18353_v23 = vsub.f32 %v1140_v58, %v18330_v8 }
  0x8b   : > { %15252 = vmatprep.mubr.f32.mxu1 %v427_v55  ;;  %15294 = vmatpush3.msra.mxu1 %v17961_v12  ;;  %v18283_v12 = vand.u32 4294901760, %v18254_v42  ;;  %v18305_v56 = vsub.f32 %v1131_v48, %v18278_v41  ;;  %v18335_v55 = vand.u32 4294901760, %v18308_v57  ;;  %v18375_v48 = vand.u32 4294901760, %v1146_v18 }
  0x8c   : > { %15312 = vmatpush3.msra.mxu0 %v18213_v25  ;;  %15253 = vmatmul.mubr.f32.gmra.mxu1 %v437_v14  ;;  %v1143_v14 = vsel %vm226_vm1, %v239_v62, 0  ;;  %v1356_v29 = vand.u32 4294901760, %v1355_v20  ;;  %v1250_v62 = vsub.f32 %v18345_v17, %v1249_v38 }
  0x8d   : > { %15295 = vmatprep.subr.mxu1 %v17974_v19  ;;  %15313 = vmatprep.subr.mxu0 %v18222_v4  ;;  %v1341_v60 = vsub.f32 %v18254_v42, %v18283_v12  ;;  %v18358_v30 = vand.u32 4294901760, %v1143_v14  ;;  %v1362_v10 = vsub.f32 %v18308_v57, %v18335_v55 }
  0x8e   : > { %15274 = vmatprep.mubr.f32.mxu0 %v18066_v2  ;;  %15296 = vmatpush3.msra.mxu1 %v17974_v19  ;;  %v18302_v19 = vand.u32 4294901760, %v244_v43 }
  0x8f   : > { %15314 = vmatpush3.msra.mxu0 %v18222_v4  ;;  %15297 = vmatprep.subr.mxu1 %v17984_v24  ;;  %v1342_v16 = vand.u32 4294901760, %v1341_v60  ;;  %v18386_v46 = vsub.f32 %v1143_v14, %v18358_v30 }
  0x90   : > { %15275 = vmatmul.mubr.f32.gmra.mxu0 %v18068_v3  ;;  %15315 = vmatprep.subr.mxu0 %v18234_v6  ;;  %v18338_v7 = vsub.f32 %v244_v43, %v18302_v19  ;;  %v1259_v43 = vand.u32 4294901760, %v18353_v23 }
  0x91   : > { %15298 = vmatpush3.msra.mxu1 %v17984_v24  ;;  %15299 = vmatprep.mubr.f32.mxu1 %v18058_v59  ;;  %v18316_v24 = vsub.f32 %v1134_v11, %v18285_v44  ;;  %v1348_v59 = vsub.f32 %v18271_v27, %v18295_v53  ;;  %v242_v11 = vld [vmem:[#allocation2 + $0x38] sm:$0xff]  ;;  %v1269_v14 = vand.u32 4294901760, %v18386_v46 }
  0x92   : > { %15316 = vmatpush3.msra.mxu0 %v18234_v6  ;;  %15300 = vmatmul.mubr.f32.vlgmr.msra.gmra.mxu1 %v18064_v1  ;;  %v1229_v1 = vand.u32 4294901760, %v18305_v56  ;;  %v18368_v37 = vand.u32 4294901760, %v18338_v7  ;;  %v1152_v58 = vsel %vm226_vm1, %v242_v11, 0 }
  0x93   : > { %15317 = vmatprep.subr.mxu0 %v18244_v35  ;;  %15339 = vmatprep.subr.mxu1 %v1328_v49  ;;  %v1239_v15 = vand.u32 4294901760, %v18316_v24 }
  0x94   : > { %15277 = vmatprep.mubr.f32.mxu0 %v18089_v28  ;;  %15318 = vmatpush3.msra.mxu0 %v18244_v35  ;;  %v1230_v33 = vsub.f32 %v18305_v56, %v1229_v1  ;;  %v1369_v54 = vsub.f32 %v18338_v7, %v18368_v37 }
  0x95   : > { %15340 = vmatpush3.msra.mxu1 %v1328_v49  ;;  %15278 = vmatmul.mubr.f32.gmra.mxu0 %v18093_v34  ;;  %v1363_v49 = vand.u32 4294901760, %v1362_v10  ;;  %v1270_v10 = vsub.f32 %v18386_v46, %v1269_v14 }
  0x96   : > { %15319 = vmatprep.subr.mxu0 %v18268_v22  ;;  %15341 = vmatprep.subr.mxu1 %v1335_v63  ;;  %v1231_v47 = vand.u32 4294901760, %v1230_v33  ;;  %v1377_v33 = vand.u32 4294901760, %v1376_v9 }
  0x97   : > { %15302 = vmatprep.mubr.f32.mxu1 %v18066_v2  ;;  %15320 = vmatpush3.msra.mxu0 %v18268_v22  ;;  %v1349_v2 = vand.u32 4294901760, %v1348_v59  ;;  %v18399_v59 = vand.u32 4294901760, %v1149_v21  ;;  %v1271_v11 = vand.u32 4294901760, %v1270_v10 }
  0x98   : > { %15342 = vmatpush3.msra.mxu1 %v1335_v63  ;;  %15321 = vmatprep.subr.mxu0 %v18276_v40  ;;  %v18397_v63 = vsub.f32 %v1146_v18, %v18375_v48  ;;  %v1370_v18 = vand.u32 4294901760, %v1369_v54 }
  0x99   : > { %15303 = vmatmul.mubr.f32.gmra.mxu1 %v18068_v3  ;;  %15343 = vmatprep.subr.mxu1 %v1342_v16  ;;  %v1240_v3 = vsub.f32 %v18316_v24, %v1239_v15  ;;  %v18414_v31 = vsub.f32 %v1149_v21, %v18399_v59 }
  0x9a   : > { %15280 = vmatprep.mubr.f32.mxu0 %v18095_v39  ;;  %15322 = vmatpush3.msra.mxu0 %v18276_v40  ;;  %v1279_v20 = vand.u32 4294901760, %v18397_v63 }
  0x9b   : > { %15344 = vmatpush3.msra.mxu1 %v1342_v16  ;;  %15281 = vmatmul.mubr.f32.gmra.mxu0 %v18112_v51  ;;  %v1241_v60 = vand.u32 4294901760, %v1240_v3  ;;  %v18410_v16 = vand.u32 4294901760, %v1152_v58 }
  0x9c   : > { %15323 = vmatprep.subr.mxu0 %v18302_v19  ;;  %15345 = vmatprep.subr.mxu1 %v1349_v2 }
  0x9d   : > { %15305 = vmatprep.mubr.f32.mxu1 %v18089_v28  ;;  %15324 = vmatpush3.msra.mxu0 %v18302_v19  ;;  %v1260_v28 = vsub.f32 %v18353_v23, %v1259_v43  ;;  %v18423_v3 = vsub.f32 %v1152_v58, %v18410_v16 }
  0x9e   : > { %15346 = vmatpush3.msra.mxu1 %v1349_v2  ;;  %15325 = vmatprep.subr.mxu0 %v18325_v0 }
  0x9f   : > { %15306 = vmatmul.mubr.f32.gmra.mxu1 %v18093_v34  ;;  %15347 = vmatprep.subr.mxu1 %v1356_v29  ;;  %v1251_v34 = vand.u32 4294901760, %v1250_v62  ;;  %v1261_v2 = vand.u32 4294901760, %v1260_v28  ;;  %v1299_v21 = vand.u32 4294901760, %v18423_v3  ;;  %v2001_v28 = vld [vmem:[#allocation5 + $0x80] sm:$0xff] }
  0xa0   : > { %15326 = vmatpush3.msra.mxu0 %v18325_v0  ;;  %15327 = vmatprep.mubr.f32.mxu0 %v1231_v47 }
  0xa1   : > { %15348 = vmatpush3.msra.mxu1 %v1356_v29  ;;  %15328 = vmatmul.mubr.f32.vlgmr.msra.gmra.mxu0 %v1241_v60 }
  0xa2   : > { %15349 = vmatprep.subr.mxu1 %v1363_v49  ;;  %15367 = vmatprep.subr.mxu0 %v18227_v5 }
  0xa3   : > { %15308 = vmatprep.mubr.f32.mxu1 %v18095_v39  ;;  %15350 = vmatpush3.msra.mxu1 %v1363_v49  ;;  %v1280_v39 = vsub.f32 %v18397_v63, %v1279_v20  ;;  %v1995_v49 = vld [vmem:[#allocation2 + $0x1a] sm:$0xff] }
  0xa4   : > { %15368 = vmatpush3.msra.mxu0 %v18227_v5  ;;  %15309 = vmatmul.mubr.f32.gmra.mxu1 %v18112_v51  ;;  %v1289_v5 = vand.u32 4294901760, %v18414_v31 }
  0xa5   : > { %15351 = vmatprep.subr.mxu1 %v1370_v18  ;;  %15369 = vmatprep.subr.mxu0 %v18240_v32  ;;  %v1281_v51 = vand.u32 4294901760, %v1280_v39  ;;  %v1997_v39 = vld [vmem:[#allocation2 + $0x2a] sm:$0xff] }
  0xa6   : > { %15330 = vmatprep.mubr.f32.mxu0 %v1251_v34  ;;  %15352 = vmatpush3.msra.mxu1 %v1370_v18  ;;  %v1290_v29 = vsub.f32 %v18414_v31, %v1289_v5  ;;  %v2019_v18 = vsel %vm226_vm1, %v1995_v49, 0 }
  0xa7   : > { %15370 = vmatpush3.msra.mxu0 %v18240_v32  ;;  %15353 = vmatprep.subr.mxu1 %v1377_v33  ;;  %v1300_v32 = vsub.f32 %v18423_v3, %v1299_v21 }
  0xa8   : > { %15331 = vmatmul.mubr.f32.gmra.mxu0 %v1261_v2  ;;  %15371 = vmatprep.subr.mxu0 %v18254_v42 }
  0xa9   : > { %15354 = vmatpush3.msra.mxu1 %v1377_v33  ;;  %15355 = vmatprep.mubr.f32.mxu1 %v18278_v41  ;;  %v1301_v47 = vand.u32 4294901760, %v1300_v32  ;;  %v18613_v33 = vand.u32 4294901760, %v2001_v28 }
  0xaa   : > { %15372 = vmatpush3.msra.mxu0 %v18254_v42  ;;  %15356 = vmatmul.mubr.f32.vlgmr.msra.gmra.mxu1 %v18285_v44  ;;  %v1291_v42 = vand.u32 4294901760, %v1290_v29 }
  0xab   : > { %15373 = vmatprep.subr.mxu0 %v18271_v27  ;;  %15395 = vmatprep.subr.mxu1 %v18213_v25 }
  0xac   : > { %15333 = vmatprep.mubr.f32.mxu0 %v1271_v11  ;;  %15374 = vmatpush3.msra.mxu0 %v18271_v27  ;;  %v2007_v27 = vld [vmem:[#allocation5 + $0xb0] sm:$0xff] }
  0xad   : > { %15396 = vmatpush3.msra.mxu1 %v18213_v25  ;;  %15334 = vmatmul.mubr.f32.gmra.mxu0 %v1281_v51 }
  0xae   : > { %15375 = vmatprep.subr.mxu0 %v18298_v50  ;;  %15397 = vmatprep.subr.mxu1 %v18222_v4 }
  0xaf   : > { %15358 = vmatprep.mubr.f32.mxu1 %v18318_v61  ;;  %15376 = vmatpush3.msra.mxu0 %v18298_v50 }
  0xb0   : > { %15398 = vmatpush3.msra.mxu1 %v18222_v4  ;;  %15377 = vmatprep.subr.mxu0 %v18308_v57 }
  0xb1   : > { %15359 = vmatmul.mubr.f32.gmra.mxu1 %v18330_v8  ;;  %15399 = vmatprep.subr.mxu1 %v18234_v6 }
  0xb2   : > { %15336 = vmatprep.mubr.f32.mxu0 %v1291_v42  ;;  %15378 = vmatpush3.msra.mxu0 %v18308_v57  ;;  %v2025_v42 = vsel %vm226_vm1, %v1997_v39, 0 }
  0xb3   : > { %15400 = vmatpush3.msra.mxu1 %v18234_v6  ;;  %15337 = vmatmul.mubr.f32.gmra.mxu0 %v1301_v47 }
  0xb4   : > { %15379 = vmatprep.subr.mxu0 %v18338_v7  ;;  %15401 = vmatprep.subr.mxu1 %v18244_v35 }
  0xb5   : > { %15361 = vmatprep.mubr.f32.mxu1 %v18358_v30  ;;  %15380 = vmatpush3.msra.mxu0 %v18338_v7 }
  0xb6   : > { %15402 = vmatpush3.msra.mxu1 %v18244_v35  ;;  %15381 = vmatprep.subr.mxu0 %v18356_v26 }
  0xb7   : > { %15362 = vmatmul.mubr.f32.gmra.mxu1 %v18375_v48  ;;  %15403 = vmatprep.subr.mxu1 %v18268_v22 }
  0xb8   : > { %15382 = vmatpush3.msra.mxu0 %v18356_v26  ;;  %15383 = vmatprep.mubr.f32.mxu0 %v18305_v56  ;;  %v1992_v56 = vld [vmem:[#allocation2 + $0x2] sm:$0xff] }
  0xb9   : > { %15404 = vmatpush3.msra.mxu1 %v18268_v22  ;;  %15384 = vmatmul.mubr.f32.vlgmr.msra.gmra.mxu0 %v18316_v24  ;;  %v2010_v7 = vsel %vm226_vm1, %v1992_v56, 0 }
  0xba   : > { %15405 = vmatprep.subr.mxu1 %v18276_v40  ;;  %15423 = vmatprep.subr.mxu0 %v18247_v36 }
  0xbb   : > { %15364 = vmatprep.mubr.f32.mxu1 %v18399_v59  ;;  %15406 = vmatpush3.msra.mxu1 %v18276_v40 }
  0xbc   : > { %15424 = vmatpush3.msra.mxu0 %v18247_v36  ;;  %15365 = vmatmul.mubr.f32.gmra.mxu1 %v18410_v16  ;;  %v2008_v36 = vld [vmem:[#allocation5 + $0xb8] sm:$0xff] }
  0xbd   : > { %15407 = vmatprep.subr.mxu1 %v18302_v19  ;;  %15425 = vmatprep.subr.mxu0 %v18261_v13 }
  0xbe   : > { %15386 = vmatprep.mubr.f32.mxu0 %v18345_v17  ;;  %15408 = vmatpush3.msra.mxu1 %v18302_v19 }
  0xbf   : > { %15426 = vmatpush3.msra.mxu0 %v18261_v13  ;;  %15409 = vmatprep.subr.mxu1 %v18325_v0  ;;  %v18501_v13 = vand.u32 4294901760, %v2008_v36 }
  0xc0   : > { %15387 = vmatmul.mubr.f32.gmra.mxu0 %v18353_v23  ;;  %15427 = vmatprep.subr.mxu0 %v18283_v12 }
  0xc1   : > { %15410 = vmatpush3.msra.mxu1 %v18325_v0  ;;  %15411 = vmatprep.mubr.f32.mxu1 %v1229_v1  ;;  %v2003_v1 = vld [vmem:[#allocation5 + $0x90] sm:$0xff] }
  0xc2   : > { %15428 = vmatpush3.msra.mxu0 %v18283_v12  ;;  %15412 = vmatmul.mubr.f32.vlgmr.msra.gmra.mxu1 %v1239_v15  ;;  %v2006_v12 = vld [vmem:[#allocation5 + $0xa8] sm:$0xff] }
  0xc3   : > { %15429 = vmatprep.subr.mxu0 %v18295_v53  ;;  %15451 = vmatprep.subr.mxu1 %v18213_v25 }
  0xc4   : > { %15389 = vmatprep.mubr.f32.mxu0 %v18386_v46  ;;  %15430 = vmatpush3.msra.mxu0 %v18295_v53  ;;  %v2005_v53 = vld [vmem:[#allocation5 + $0xa0] sm:$0xff] }
  0xc5   : > { %15452 = vmatpush3.msra.mxu1 %v18213_v25  ;;  %15390 = vmatmul.mubr.f32.gmra.mxu0 %v18397_v63  ;;  %v18510_v25 = vand.u32 4294901760, %v2007_v27  ;;  %v18532_v57 = vand.u32 4294901760, %v2005_v53 }
  0xc6   : > { %15431 = vmatprep.subr.mxu0 %v18328_v52  ;;  %15453 = vmatprep.subr.mxu1 %v18222_v4 }
  0xc7   : > { %15414 = vmatprep.mubr.f32.mxu1 %v1249_v38  ;;  %15432 = vmatpush3.msra.mxu0 %v18328_v52  ;;  %v18528_v50 = vsub.f32 %v2007_v27, %v18510_v25  ;;  %v2004_v52 = vld [vmem:[#allocation5 + $0x98] sm:$0xff]  ;;  %v18559_v26 = vsub.f32 %v2005_v53, %v18532_v57  ;;  %v18564_v38 = vand.u32 4294901760, %v2003_v1  ;;  %v18644_v27 = vsub.f32 %v2001_v28, %v18613_v33  ;;  %v1998_v53 = vld [vmem:[#allocation2 + $0x32] sm:$0xff] }
  0xc8   : > { %15454 = vmatpush3.msra.mxu1 %v18222_v4  ;;  %15433 = vmatprep.subr.mxu0 %v18335_v55  ;;  %v18515_v4 = vsub.f32 %v2008_v36, %v18501_v13  ;;  %v18556_v23 = vand.u32 4294901760, %v2004_v52 }
  0xc9   : > { %15415 = vmatmul.mubr.f32.gmra.mxu1 %v1259_v43  ;;  %15455 = vmatprep.subr.mxu1 %v18234_v6  ;;  %v18549_v15 = vand.u32 4294901760, %v18528_v50  ;;  %v18566_v43 = vand.u32 4294901760, %v2010_v7  ;;  %v18583_v62 = vand.u32 4294901760, %v18559_v26  ;;  %v18671_v49 = vand.u32 4294901760, %v18644_v27 }
  0xca   : > { %15392 = vmatprep.mubr.f32.mxu0 %v18414_v31  ;;  %15434 = vmatpush3.msra.mxu0 %v18335_v55  ;;  %v18535_v24 = vand.u32 4294901760, %v18515_v4  ;;  %v18586_v63 = vsub.f32 %v2004_v52, %v18556_v23  ;;  %v1996_v31 = vld [vmem:[#allocation2 + $0x22] sm:$0xff] }
  0xcb   : > { %15456 = vmatpush3.msra.mxu1 %v18234_v6  ;;  %15393 = vmatmul.mubr.f32.gmra.mxu0 %v18423_v3  ;;  %v18522_v6 = vand.u32 4294901760, %v2006_v12  ;;  %v2213_v54 = vsub.f32 %v18528_v50, %v18549_v15  ;;  %v18593_v9 = vsub.f32 %v2010_v7, %v18566_v43  ;;  %v18618_v3 = vand.u32 4294901760, %v2019_v18 }
  0xcc   : > { %15435 = vmatprep.subr.mxu0 %v18368_v37  ;;  %15457 = vmatprep.subr.mxu1 %v18244_v35  ;;  %v2206_v17 = vsub.f32 %v18515_v4, %v18535_v24  ;;  %v18616_v10 = vand.u32 4294901760, %v18586_v63  ;;  %v18663_v7 = vand.u32 4294901760, %v2025_v42  ;;  %v2255_v39 = vsub.f32 %v18644_v27, %v18671_v49 }
  0xcd   : > { %15417 = vmatprep.mubr.f32.mxu1 %v1269_v14  ;;  %15436 = vmatpush3.msra.mxu0 %v18368_v37  ;;  %v18542_v55 = vsub.f32 %v2006_v12, %v18522_v6  ;;  %v1994_v37 = vld [vmem:[#allocation2 + $0x12] sm:$0xff]  ;;  %v18596_v14 = vsub.f32 %v2003_v1, %v18564_v38  ;;  %v2214_v2 = vand.u32 4294901760, %v2213_v54  ;;  %v18641_v36 = vsub.f32 %v2019_v18, %v18618_v3 }
  0xce   : > { %15458 = vmatpush3.msra.mxu1 %v18244_v35  ;;  %15437 = vmatprep.subr.mxu0 %v18383_v45  ;;  %v1993_v35 = vld [vmem:[#allocation2 + $0xa] sm:$0xff]  ;;  %v2016_v58 = vsel %vm226_vm1, %v1994_v37, 0  ;;  %v2207_v60 = vand.u32 4294901760, %v2206_v17  ;;  %v2234_v47 = vsub.f32 %v18586_v63, %v18616_v10  ;;  %v2028_v17 = vsel %vm226_vm1, %v1998_v53, 0 }
  0xcf   : > { %15418 = vmatmul.mubr.f32.gmra.mxu1 %v1279_v20  ;;  %15459 = vmatprep.subr.mxu1 %v18268_v22  ;;  %v18606_v20 = vand.u32 4294901760, %v2016_v58 }
  0xd0   : > { %15438 = vmatpush3.msra.mxu0 %v18383_v45  ;;  %15439 = vmatprep.mubr.f32.mxu0 %v18278_v41  ;;  %v2002_v45 = vld [vmem:[#allocation5 + $0x88] sm:$0xff]  ;;  %v2235_v37 = vand.u32 4294901760, %v2234_v47 }
  0xd1   : > { %15460 = vmatpush3.msra.mxu1 %v18268_v22  ;;  %15440 = vmatmul.mubr.f32.vlgmr.msra.gmra.mxu0 %v18285_v44  ;;  %v2013_v22 = vsel %vm226_vm1, %v1993_v35, 0  ;;  %v18633_v32 = vsub.f32 %v2016_v58, %v18606_v20 }
  0xd2   : > { %15461 = vmatprep.subr.mxu1 %v18276_v40  ;;  %15479 = vmatprep.subr.mxu0 %v18501_v13  ;;  %v18573_v46 = vand.u32 4294901760, %v2013_v22 }
  0xd3   : > { %15420 = vmatprep.mubr.f32.mxu1 %v1289_v5  ;;  %15462 = vmatpush3.msra.mxu1 %v18276_v40  ;;  %v18571_v40 = vand.u32 4294901760, %v18542_v55  ;;  %v18623_v5 = vand.u32 4294901760, %v18596_v14  ;;  %v2128_v1 = vand.u32 4294901760, %v18633_v32 }
  0xd4   : > { %15480 = vmatpush3.msra.mxu0 %v18501_v13  ;;  %15421 = vmatmul.mubr.f32.gmra.mxu1 %v1299_v21  ;;  %v2022_v21 = vsel %vm226_vm1, %v1996_v31, 0 }
  0xd5   : > { %15463 = vmatprep.subr.mxu1 %v18302_v19  ;;  %15481 = vmatprep.subr.mxu0 %v18510_v25  ;;  %v2220_v34 = vsub.f32 %v18542_v55, %v18571_v40  ;;  %v18646_v12 = vand.u32 4294901760, %v2022_v21  ;;  %v2241_v35 = vsub.f32 %v18596_v14, %v18623_v5  ;;  %v2129_v31 = vsub.f32 %v18633_v32, %v2128_v1 }
  0xd6   : > { %15442 = vmatprep.mubr.f32.mxu0 %v18318_v61  ;;  %15464 = vmatpush3.msra.mxu1 %v18302_v19  ;;  %v18590_v19 = vand.u32 4294901760, %v2002_v45 }
  0xd7   : > { %15482 = vmatpush3.msra.mxu0 %v18510_v25  ;;  %15465 = vmatprep.subr.mxu1 %v18325_v0  ;;  %v2221_v51 = vand.u32 4294901760, %v2220_v34  ;;  %v18674_v54 = vsub.f32 %v2022_v21, %v18646_v12 }
  0xd8   : > { %15443 = vmatmul.mubr.f32.gmra.mxu0 %v18330_v8  ;;  %15483 = vmatprep.subr.mxu0 %v18522_v6  ;;  %v18626_v11 = vsub.f32 %v2002_v45, %v18590_v19  ;;  %v2138_v45 = vand.u32 4294901760, %v18641_v36 }
  0xd9   : > { %15466 = vmatpush3.msra.mxu1 %v18325_v0  ;;  %15467 = vmatprep.mubr.f32.mxu1 %v18278_v41  ;;  %v18604_v0 = vsub.f32 %v2013_v22, %v18573_v46  ;;  %v2227_v41 = vsub.f32 %v18559_v26, %v18583_v62  ;;  %v1999_v22 = vld [vmem:[#allocation2 + $0x3a] sm:$0xff]  ;;  %v2148_v21 = vand.u32 4294901760, %v18674_v54 }
  0xda   : > { %15484 = vmatpush3.msra.mxu0 %v18522_v6  ;;  %15468 = vmatmul.mubr.f32.vlgmr.msra.gmra.mxu1 %v18285_v44  ;;  %v2108_v44 = vand.u32 4294901760, %v18593_v9  ;;  %v18656_v52 = vand.u32 4294901760, %v18626_v11  ;;  %v2031_v18 = vsel %vm226_vm1, %v1999_v22, 0 }
  0xdb   : > { %15485 = vmatprep.subr.mxu0 %v18532_v57  ;;  %15507 = vmatprep.subr.mxu1 %v2207_v60  ;;  %v2118_v29 = vand.u32 4294901760, %v18604_v0 }
  0xdc   : > { %15445 = vmatprep.mubr.f32.mxu0 %v18358_v30  ;;  %15486 = vmatpush3.msra.mxu0 %v18532_v57  ;;  %v2109_v56 = vsub.f32 %v18593_v9, %v2108_v44  ;;  %v2248_v28 = vsub.f32 %v18626_v11, %v18656_v52 }
  0xdd   : > { %15508 = vmatpush3.msra.mxu1 %v2207_v60  ;;  %15446 = vmatmul.mubr.f32.gmra.mxu0 %v18375_v48  ;;  %v2242_v60 = vand.u32 4294901760, %v2241_v35  ;;  %v2149_v35 = vsub.f32 %v18674_v54, %v2148_v21 }
  0xde   : > { %15487 = vmatprep.subr.mxu0 %v18556_v23  ;;  %15509 = vmatprep.subr.mxu1 %v2214_v2  ;;  %v2110_v58 = vand.u32 4294901760, %v2109_v56  ;;  %v2256_v56 = vand.u32 4294901760, %v2255_v39  ;;  %v2888_v39 = vld [vmem:[#allocation5 + $0xc0] sm:$0xff] }
  0xdf   : > { %15470 = vmatprep.mubr.f32.mxu1 %v18318_v61  ;;  %15488 = vmatpush3.msra.mxu0 %v18556_v23  ;;  %v2228_v61 = vand.u32 4294901760, %v2227_v41  ;;  %v18687_v41 = vand.u32 4294901760, %v2028_v17  ;;  %v2150_v22 = vand.u32 4294901760, %v2149_v35  ;;  %v2883_v35 = vld [vmem:[#allocation2 + $0x23] sm:$0xff] }
  0xe0   : > { %15510 = vmatpush3.msra.mxu1 %v2214_v2  ;;  %15489 = vmatprep.subr.mxu0 %v18564_v38  ;;  %v18685_v2 = vsub.f32 %v2025_v42, %v18663_v7  ;;  %v2249_v42 = vand.u32 4294901760, %v2248_v28  ;;  %v2882_v28 = vld [vmem:[#allocation2 + $0x1b] sm:$0xff] }
  0xe1   : > { %15471 = vmatmul.mubr.f32.gmra.mxu1 %v18330_v8  ;;  %15511 = vmatprep.subr.mxu1 %v2221_v51  ;;  %v2119_v8 = vsub.f32 %v18604_v0, %v2118_v29  ;;  %v18702_v53 = vsub.f32 %v2028_v17, %v18687_v41 }
  0xe2   : > { %15448 = vmatprep.mubr.f32.mxu0 %v18399_v59  ;;  %15490 = vmatpush3.msra.mxu0 %v18564_v38  ;;  %v2158_v47 = vand.u32 4294901760, %v18685_v2 }
  0xe3   : > { %15512 = vmatpush3.msra.mxu1 %v2221_v51  ;;  %15449 = vmatmul.mubr.f32.gmra.mxu0 %v18410_v16  ;;  %v2120_v34 = vand.u32 4294901760, %v2119_v8  ;;  %v18698_v51 = vand.u32 4294901760, %v2031_v18 }
  0xe4   : > { %15491 = vmatprep.subr.mxu0 %v18590_v19  ;;  %15513 = vmatprep.subr.mxu1 %v2228_v61 }
  0xe5   : > { %15473 = vmatprep.mubr.f32.mxu1 %v18358_v30  ;;  %15492 = vmatpush3.msra.mxu0 %v18590_v19  ;;  %v2139_v30 = vsub.f32 %v18641_v36, %v2138_v45  ;;  %v18711_v8 = vsub.f32 %v2031_v18, %v18698_v51 }
  0xe6   : > { %15514 = vmatpush3.msra.mxu1 %v2228_v61  ;;  %15493 = vmatprep.subr.mxu0 %v18613_v33 }
  0xe7   : > { %15474 = vmatmul.mubr.f32.gmra.mxu1 %v18375_v48  ;;  %15515 = vmatprep.subr.mxu1 %v2235_v37  ;;  %v2130_v48 = vand.u32 4294901760, %v2129_v31  ;;  %v2140_v61 = vand.u32 4294901760, %v2139_v30  ;;  %v2178_v17 = vand.u32 4294901760, %v18711_v8 }
  0xe8   : > { %15494 = vmatpush3.msra.mxu0 %v18613_v33  ;;  %15495 = vmatprep.mubr.f32.mxu0 %v2110_v58 }
  0xe9   : > { %15516 = vmatpush3.msra.mxu1 %v2235_v37  ;;  %15496 = vmatmul.mubr.f32.vlgmr.msra.gmra.mxu0 %v2120_v34 }
  0xea   : > { %15517 = vmatprep.subr.mxu1 %v2242_v60  ;;  %15535 = vmatprep.subr.mxu0 %v18515_v4 }
  0xeb   : > { %15476 = vmatprep.mubr.f32.mxu1 %v18399_v59  ;;  %15518 = vmatpush3.msra.mxu1 %v2242_v60  ;;  %v2159_v59 = vsub.f32 %v18685_v2, %v2158_v47  ;;  %v2889_v60 = vld [vmem:[#allocation5 + $0xc8] sm:$0xff] }
  0xec   : > { %15536 = vmatpush3.msra.mxu0 %v18515_v4  ;;  %15477 = vmatmul.mubr.f32.gmra.mxu1 %v18410_v16  ;;  %v2168_v4 = vand.u32 4294901760, %v18702_v53 }
  0xed   : > { %15519 = vmatprep.subr.mxu1 %v2249_v42  ;;  %15537 = vmatprep.subr.mxu0 %v18528_v50  ;;  %v2160_v16 = vand.u32 4294901760, %v2159_v59  ;;  %v18900_v59 = vand.u32 4294901760, %v2888_v39 }
  0xee   : > { %15498 = vmatprep.mubr.f32.mxu0 %v2130_v48  ;;  %15520 = vmatpush3.msra.mxu1 %v2249_v42  ;;  %v2169_v37 = vsub.f32 %v18702_v53, %v2168_v4 }
  0xef   : > { %15538 = vmatpush3.msra.mxu0 %v18528_v50  ;;  %15521 = vmatprep.subr.mxu1 %v2256_v56  ;;  %v2179_v50 = vsub.f32 %v18711_v8, %v2178_v17 }
  0xf0   : > { %15499 = vmatmul.mubr.f32.gmra.mxu0 %v2140_v61  ;;  %15539 = vmatprep.subr.mxu0 %v18542_v55 }
  0xf1   : > { %15522 = vmatpush3.msra.mxu1 %v2256_v56  ;;  %15523 = vmatprep.mubr.f32.mxu1 %v18566_v43  ;;  %v2180_v58 = vand.u32 4294901760, %v2179_v50 }
  0xf2   : > { %15540 = vmatpush3.msra.mxu0 %v18542_v55  ;;  %15524 = vmatmul.mubr.f32.vlgmr.msra.gmra.mxu1 %v18573_v46  ;;  %v2170_v55 = vand.u32 4294901760, %v2169_v37 }
  0xf3   : > { %15541 = vmatprep.subr.mxu0 %v18559_v26  ;;  %15563 = vmatprep.subr.mxu1 %v18501_v13 }
  0xf4   : > { %15501 = vmatprep.mubr.f32.mxu0 %v2150_v22  ;;  %15542 = vmatpush3.msra.mxu0 %v18559_v26  ;;  %v2894_v26 = vld [vmem:[#allocation5 + $0xf0] sm:$0xff] }
  0xf5   : > { %15564 = vmatpush3.msra.mxu1 %v18501_v13  ;;  %15502 = vmatmul.mubr.f32.gmra.mxu0 %v2160_v16 }
  0xf6   : > { %15543 = vmatprep.subr.mxu0 %v18586_v63  ;;  %15565 = vmatprep.subr.mxu1 %v18510_v25 }
  0xf7   : > { %15526 = vmatprep.mubr.f32.mxu1 %v18606_v20  ;;  %15544 = vmatpush3.msra.mxu0 %v18586_v63 }
  0xf8   : > { %15566 = vmatpush3.msra.mxu1 %v18510_v25  ;;  %15545 = vmatprep.subr.mxu0 %v18596_v14 }
  0xf9   : > { %15527 = vmatmul.mubr.f32.gmra.mxu1 %v18618_v3  ;;  %15567 = vmatprep.subr.mxu1 %v18522_v6 }
  0xfa   : > { %15504 = vmatprep.mubr.f32.mxu0 %v2170_v55  ;;  %15546 = vmatpush3.msra.mxu0 %v18596_v14  ;;  %v2880_v14 = vld [vmem:[#allocation2 + $0xb] sm:$0xff] }
  0xfb   : > { %15568 = vmatpush3.msra.mxu1 %v18522_v6  ;;  %15505 = vmatmul.mubr.f32.gmra.mxu0 %v2180_v58 }
  0xfc   : > { %15547 = vmatprep.subr.mxu0 %v18626_v11  ;;  %15569 = vmatprep.subr.mxu1 %v18532_v57 }
  0xfd   : > { %15529 = vmatprep.mubr.f32.mxu1 %v18646_v12  ;;  %15548 = vmatpush3.msra.mxu0 %v18626_v11  ;;  %v2900_v11 = vsel %vm226_vm1, %v2880_v14, 0 }
  0xfe   : > { %15570 = vmatpush3.msra.mxu1 %v18532_v57  ;;  %15549 = vmatprep.subr.mxu0 %v18644_v27 }
  0xff   : > { %15530 = vmatmul.mubr.f32.gmra.mxu1 %v18663_v7  ;;  %15571 = vmatprep.subr.mxu1 %v18556_v23 }
 0x100   : > { %15550 = vmatpush3.msra.mxu0 %v18644_v27  ;;  %15551 = vmatprep.mubr.f32.mxu0 %v18593_v9  ;;  %v2879_v9 = vld [vmem:[#allocation2 + $0x3] sm:$0xff] }
 0x101   : > { %15572 = vmatpush3.msra.mxu1 %v18556_v23  ;;  %15552 = vmatmul.mubr.f32.vlgmr.msra.gmra.mxu0 %v18604_v0 }
 0x102   : > { %15573 = vmatprep.subr.mxu1 %v18564_v38  ;;  %15591 = vmatprep.subr.mxu0 %v18535_v24 }
 0x103   : > { %15532 = vmatprep.mubr.f32.mxu1 %v18687_v41  ;;  %15574 = vmatpush3.msra.mxu1 %v18564_v38 }
 0x104   : > { %15592 = vmatpush3.msra.mxu0 %v18535_v24  ;;  %15533 = vmatmul.mubr.f32.gmra.mxu1 %v18698_v51  ;;  %v2895_v24 = vld [vmem:[#allocation5 + $0xf8] sm:$0xff] }
 0x105   : > { %15575 = vmatprep.subr.mxu1 %v18590_v19  ;;  %15593 = vmatprep.subr.mxu0 %v18549_v15 }
 0x106   : > { %15554 = vmatprep.mubr.f32.mxu0 %v18633_v32  ;;  %15576 = vmatpush3.msra.mxu1 %v18590_v19 }
 0x107   : > { %15594 = vmatpush3.msra.mxu0 %v18549_v15  ;;  %15577 = vmatprep.subr.mxu1 %v18613_v33  ;;  %v18789_v15 = vand.u32 4294901760, %v2895_v24 }
 0x108   : > { %15555 = vmatmul.mubr.f32.gmra.mxu0 %v18641_v36  ;;  %15595 = vmatprep.subr.mxu0 %v18571_v40 }
 0x109   : > { %15578 = vmatpush3.msra.mxu1 %v18613_v33  ;;  %15579 = vmatprep.mubr.f32.mxu1 %v2108_v44 }
 0x10a   : > { %15596 = vmatpush3.msra.mxu0 %v18571_v40  ;;  %15580 = vmatmul.mubr.f32.vlgmr.msra.gmra.mxu1 %v2118_v29  ;;  %v2893_v40 = vld [vmem:[#allocation5 + $0xe8] sm:$0xff] }
 0x10b   : > { %15597 = vmatprep.subr.mxu0 %v18583_v62  ;;  %15619 = vmatprep.subr.mxu1 %v18501_v13 }
 0x10c   : > { %15557 = vmatprep.mubr.f32.mxu0 %v18674_v54  ;;  %15598 = vmatpush3.msra.mxu0 %v18583_v62  ;;  %v2892_v62 = vld [vmem:[#allocation5 + $0xe0] sm:$0xff] }
 0x10d   : > { %15620 = vmatpush3.msra.mxu1 %v18501_v13  ;;  %15558 = vmatmul.mubr.f32.gmra.mxu0 %v18685_v2  ;;  %v18798_v13 = vand.u32 4294901760, %v2894_v26  ;;  %v18820_v0 = vand.u32 4294901760, %v2892_v62 }
 0x10e   : > { %15599 = vmatprep.subr.mxu0 %v18616_v10  ;;  %15621 = vmatprep.subr.mxu1 %v18510_v25 }
 0x10f   : > { %15582 = vmatprep.mubr.f32.mxu1 %v2128_v1  ;;  %15600 = vmatpush3.msra.mxu0 %v18616_v10  ;;  %v18816_v63 = vsub.f32 %v2894_v26, %v18798_v13  ;;  %v2891_v10 = vld [vmem:[#allocation5 + $0xd8] sm:$0xff]  ;;  %v18847_v27 = vsub.f32 %v2892_v62, %v18820_v0 }
 0x110   : > { %15622 = vmatpush3.msra.mxu1 %v18510_v25  ;;  %15601 = vmatprep.subr.mxu0 %v18623_v5  ;;  %v18803_v25 = vsub.f32 %v2895_v24, %v18789_v15  ;;  %v18844_v36 = vand.u32 4294901760, %v2891_v10  ;;  %v2909_v24 = vsel %vm226_vm1, %v2883_v35, 0 }
 0x111   : > { %15583 = vmatmul.mubr.f32.gmra.mxu1 %v2138_v45  ;;  %15623 = vmatprep.subr.mxu1 %v18522_v6  ;;  %v18838_v29 = vand.u32 4294901760, %v18816_v63  ;;  %v18854_v45 = vand.u32 4294901760, %v2900_v11  ;;  %v18873_v30 = vand.u32 4294901760, %v18847_v27 }
 0x112   : > { %15560 = vmatprep.mubr.f32.mxu0 %v18702_v53  ;;  %15602 = vmatpush3.msra.mxu0 %v18623_v5  ;;  %v2897_v5 = vsel %vm226_vm1, %v2879_v9, 0 }
 0x113   : > { %15624 = vmatpush3.msra.mxu1 %v18522_v6  ;;  %15561 = vmatmul.mubr.f32.gmra.mxu0 %v18711_v8  ;;  %v18810_v6 = vand.u32 4294901760, %v2893_v40  ;;  %v18852_v1 = vand.u32 4294901760, %v2897_v5  ;;  %v3100_v18 = vsub.f32 %v18816_v63, %v18838_v29  ;;  %v18886_v48 = vsub.f32 %v2900_v11, %v18854_v45 }
 0x114   : > { %15603 = vmatprep.subr.mxu0 %v18656_v52  ;;  %15625 = vmatprep.subr.mxu1 %v18532_v57  ;;  %v3114_v22 = vsub.f32 %v18847_v27, %v18873_v30 }
 0x115   : > { %15585 = vmatprep.mubr.f32.mxu1 %v2148_v21  ;;  %15604 = vmatpush3.msra.mxu0 %v18656_v52  ;;  %v18830_v44 = vsub.f32 %v2893_v40, %v18810_v6  ;;  %v2881_v52 = vld [vmem:[#allocation2 + $0x13] sm:$0xff]  ;;  %v18880_v21 = vand.u32 4294901760, %v2889_v60  ;;  %v18883_v42 = vsub.f32 %v2897_v5, %v18852_v1  ;;  %v3101_v8 = vand.u32 4294901760, %v3100_v18 }
 0x116   : > { %15626 = vmatpush3.msra.mxu1 %v18532_v57  ;;  %15605 = vmatprep.subr.mxu0 %v18671_v49  ;;  %v18823_v57 = vand.u32 4294901760, %v18803_v25  ;;  %v2903_v34 = vsel %vm226_vm1, %v2881_v52, 0  ;;  %v23579_v55 = vand.u32 4294901760, %v18886_v48  ;;  %v2885_v52 = vld [vmem:[#allocation2 + $0x33] sm:$0xff] }
 0x117   : > { %15586 = vmatmul.mubr.f32.gmra.mxu1 %v2158_v47  ;;  %15627 = vmatprep.subr.mxu1 %v18556_v23  ;;  %v18861_v54 = vand.u32 4294901760, %v18830_v44  ;;  %v2906_v47 = vsel %vm226_vm1, %v2882_v28, 0  ;;  %v18896_v56 = vand.u32 4294901760, %v2903_v34  ;;  %v23580_v50 = vand.u32 4294901760, %v18883_v42 }
 0x118   : > { %15606 = vmatpush3.msra.mxu0 %v18671_v49  ;;  %15607 = vmatprep.mubr.f32.mxu0 %v18566_v43  ;;  %v3093_v32 = vsub.f32 %v18803_v25, %v18823_v57  ;;  %v18910_v16 = vand.u32 4294901760, %v2906_v47  ;;  %v18918_v58 = vsub.f32 %v2889_v60, %v18880_v21  ;;  %v3006_v28 = vsub.f32 %v18886_v48, %v23579_v55 }
 0x119   : > { %15628 = vmatpush3.msra.mxu1 %v18556_v23  ;;  %15608 = vmatmul.mubr.f32.vlgmr.msra.gmra.mxu0 %v18573_v46  ;;  %v2890_v23 = vld [vmem:[#allocation5 + $0xd0] sm:$0xff]  ;;  %v3107_v61 = vsub.f32 %v18830_v44, %v18861_v54  ;;  %v18929_v9 = vsub.f32 %v2903_v34, %v18896_v56  ;;  %v2996_v60 = vsub.f32 %v18883_v42, %v23580_v50 }
 0x11a   : > { %15629 = vmatprep.subr.mxu1 %v18564_v38  ;;  %15647 = vmatprep.subr.mxu0 %v18789_v15  ;;  %v18858_v49 = vand.u32 4294901760, %v2890_v23  ;;  %v3094_v2 = vand.u32 4294901760, %v3093_v32  ;;  %v18942_v32 = vand.u32 4294901760, %v2909_v24  ;;  %v18955_v18 = vand.u32 4294901760, %v18918_v58 }
 0x11b   : > { %15588 = vmatprep.mubr.f32.mxu1 %v2168_v4  ;;  %15630 = vmatpush3.msra.mxu1 %v18564_v38  ;;  %v3108_v40 = vand.u32 4294901760, %v3107_v61  ;;  %v3007_v55 = vand.u32 4294901760, %v3006_v28 }
 0x11c   : > { %15648 = vmatpush3.msra.mxu0 %v18789_v15  ;;  %15589 = vmatmul.mubr.f32.gmra.mxu1 %v2178_v17 }
 0x11d   : > { %15631 = vmatprep.subr.mxu1 %v18590_v19  ;;  %v15161_v38 = vpop.f32.mrf.mxu0  ;;  %15649 = vmatprep.subr.mxu0 %v18798_v13 }
 0x11e   : > { %15610 = vmatprep.mubr.f32.mxu0 %v18606_v20  ;;  %15632 = vmatpush3.msra.mxu1 %v18590_v19  ;;  %v18876_v19 = vsub.f32 %v2891_v10, %v18844_v36  ;;  %v18933_v10 = vsub.f32 %v2888_v39, %v18900_v59 }
 0x11f   : > { %15650 = vmatpush3.msra.mxu0 %v18798_v13  ;;  %v18868_v31 = vpop.f32.mrf.mxu0  ;;  %15633 = vmatprep.subr.mxu1 %v18613_v33 }
 0x120   : > { %23655 = vst [vmem:[#allocation9_spill] sm:$0xff] %v18868_v31  ;;  %15611 = vmatmul.mubr.f32.gmra.mxu0 %v18618_v3  ;;  %15651 = vmatprep.subr.mxu0 %v18810_v6  ;;  %v18908_v17 = vand.u32 4294901760, %v18876_v19  ;;  %v18967_v35 = vand.u32 4294901760, %v18933_v10 }
 0x121   : > { %15634 = vmatpush3.msra.mxu1 %v18613_v33  ;;  %v15164_v53 = vpop.f32.mrf.mxu0  ;;  %15635 = vmatprep.mubr.f32.mxu1 %v18566_v43  ;;  %v18894_v33 = vsub.f32 %v2890_v23, %v18858_v49  ;;  %v18940_v23 = vsub.f32 %v2906_v47, %v18910_v16  ;;  %v2886_v47 = vld [vmem:[#allocation2 + $0x3b] sm:$0xff] }
 0x122   : > { %15652 = vmatpush3.msra.mxu0 %v18810_v6  ;;  %15636 = vmatmul.mubr.f32.vlgmr.msra.gmra.mxu1 %v18573_v46  ;;  %v15189_v43 = vpop.f32.mrf.mxu1  ;;  %v2884_v46 = vld [vmem:[#allocation2 + $0x2b] sm:$0xff]  ;;  %v3121_v11 = vsub.f32 %v18876_v19, %v18908_v17  ;;  %v2918_v50 = vsel %vm226_vm1, %v2886_v47, 0 }
 0x123   : > { %15653 = vmatprep.subr.mxu0 %v18820_v0  ;;  %v18902_v4 = vpop.f32.mrf.mxu0  ;;  %15675 = vmatprep.subr.mxu1 %v3094_v2  ;;  %v18912_v37 = vadd.f32 %v15189_v43, %v15161_v38  ;;  %v18926_v62 = vand.u32 4294901760, %v18894_v33  ;;  %v2912_v5 = vsel %vm226_vm1, %v2884_v46, 0  ;;  %v23661_v28 = vand.u32 4294901760, %v18940_v23 }
 0x124   : > { %23656 = vst [vmem:[#allocation10_spill] sm:$0xff] %v18902_v4  ;;  %15613 = vmatprep.mubr.f32.mxu0 %v18646_v12  ;;  %15654 = vmatpush3.msra.mxu0 %v18820_v0  ;;  %v18921_v26 = vpop.f32.mrf.mxu1  ;;  %v18961_v39 = vand.u32 4294901760, %v2912_v5  ;;  %v19002_v47 = vand.u32 4294901760, %v2918_v50 }
 0x125   : > { %15676 = vmatpush3.msra.mxu1 %v3094_v2  ;;  %23657 = vst [vmem:[#allocation11_spill] sm:$0xff] %v18921_v26  ;;  %15614 = vmatmul.mubr.f32.gmra.mxu0 %v18663_v7  ;;  %v15167_v14 = vpop.f32.mrf.mxu0  ;;  %v23581_v2 = vand.u32 4294901760, %v18929_v9 }
 0x126   : > { %15655 = vmatprep.subr.mxu0 %v18844_v36  ;;  %15677 = vmatprep.subr.mxu1 %v3101_v8  ;;  %v18987_v46 = vsub.f32 %v2912_v5, %v18961_v39  ;;  %v3026_v5 = vsub.f32 %v18940_v23, %v23661_v28 }
 0x127   : > { %15638 = vmatprep.mubr.f32.mxu1 %v18606_v20  ;;  %15656 = vmatpush3.msra.mxu0 %v18844_v36  ;;  %v18944_v38 = vpop.f32.mrf.mxu0  ;;  %v3115_v20 = vand.u32 4294901760, %v3114_v22  ;;  %v3122_v22 = vand.u32 4294901760, %v3121_v11 }
 0x128   : > { %15678 = vmatpush3.msra.mxu1 %v3101_v8  ;;  %23658 = vst [vmem:[#allocation12_spill] sm:$0xff] %v18944_v38  ;;  %15657 = vmatprep.subr.mxu0 %v18858_v49  ;;  %v2915_v8 = vsel %vm226_vm1, %v2885_v52, 0  ;;  %v3135_v52 = vsub.f32 %v18918_v58, %v18955_v18  ;;  %v3045_v4 = vand.u32 4294901760, %v18987_v46 }
 0x129   : > { %15639 = vmatmul.mubr.f32.gmra.mxu1 %v18618_v3  ;;  %v15192_v34 = vpop.f32.mrf.mxu1  ;;  %15679 = vmatprep.subr.mxu1 %v3108_v40  ;;  %v3128_v3 = vsub.f32 %v18894_v33, %v18926_v62  ;;  %v18989_v38 = vand.u32 4294901760, %v2915_v8 }
 0x12a   : > { %15616 = vmatprep.mubr.f32.mxu0 %v18687_v41  ;;  %v18963_v61 = vadd.f32 %v15192_v34, %v15164_v53  ;;  %15658 = vmatpush3.msra.mxu0 %v18858_v49  ;;  %v18976_v53 = vsub.f32 %v2909_v24, %v18942_v32  ;;  %v3016_v24 = vsub.f32 %v18929_v9, %v23581_v2 }
 0x12b   : > { %15680 = vmatpush3.msra.mxu1 %v3108_v40  ;;  %v18970_v43 = vpop.f32.mrf.mxu1  ;;  %15617 = vmatmul.mubr.f32.gmra.mxu0 %v18698_v51  ;;  %v15170_v34 = vpop.f32.mrf.mxu0  ;;  %v2997_v40 = vand.u32 4294901760, %v2996_v60  ;;  %v3129_v11 = vand.u32 4294901760, %v3128_v3  ;;  %v3142_v60 = vsub.f32 %v18933_v10, %v18967_v35  ;;  %v19008_v26 = vsub.f32 %v2915_v8, %v18989_v38 }
 0x12c   : > { %23659 = vst [vmem:[#allocation13_spill] sm:$0xff] %v18970_v43  ;;  %15659 = vmatprep.subr.mxu0 %v18880_v21  ;;  %15681 = vmatprep.subr.mxu1 %v3115_v20  ;;  %v3035_v3 = vand.u32 4294901760, %v18976_v53  ;;  %v3017_v43 = vand.u32 4294901760, %v3016_v24 }
 0x12d   : > { %15641 = vmatprep.mubr.f32.mxu1 %v18646_v12  ;;  %15660 = vmatpush3.msra.mxu0 %v18880_v21  ;;  %v18991_v12 = vpop.f32.mrf.mxu0 }
 0x12e   : > { %15682 = vmatpush3.msra.mxu1 %v3115_v20  ;;  %23660 = vst [vmem:[#allocation14_spill] sm:$0xff] %v18991_v12  ;;  %15661 = vmatprep.subr.mxu0 %v18900_v59 }
 0x12f   : > { %15642 = vmatmul.mubr.f32.gmra.mxu1 %v18663_v7  ;;  %v15195_v20 = vpop.f32.mrf.mxu1  ;;  %15683 = vmatprep.subr.mxu1 %v3122_v22  ;;  %v3136_v7 = vand.u32 4294901760, %v3135_v52  ;;  %v19018_v52 = vsub.f32 %v2918_v50, %v19002_v47 }
 0x130   : > { %15662 = vmatpush3.msra.mxu0 %v18900_v59  ;;  %v583_v2 = vadd.f32 %v15195_v20, %v15167_v14  ;;  %15663 = vmatprep.mubr.f32.mxu0 %v2997_v40  ;;  %v3143_v40 = vand.u32 4294901760, %v3142_v60 }
 0x131   : > { %15684 = vmatpush3.msra.mxu1 %v3122_v22  ;;  %v19004_v12 = vpop.f32.mrf.mxu1  ;;  %15664 = vmatmul.mubr.f32.vlgmr.msra.gmra.mxu0 %v3007_v55  ;;  %v15217_v31 = vpop.f32.mrf.mxu0  ;;  %v3027_v22 = vand.u32 4294901760, %v3026_v5  ;;  %v3036_v55 = vsub.f32 %v18976_v53, %v3035_v3 }
 0x132   : > { %23662 = vst [vmem:[#allocation15_spill] sm:$0xff] %v19004_v12  ;;  %15685 = vmatprep.subr.mxu1 %v3129_v11  ;;  %15703 = vmatprep.subr.mxu0 %v18803_v25  ;;  %v690_v14 = vadd.f32 %v15217_v31, %v18912_v37  ;;  %v3055_v31 = vand.u32 4294901760, %v19008_v26 }
 0x133   : > { %15644 = vmatprep.mubr.f32.mxu1 %v18687_v41  ;;  %15686 = vmatpush3.msra.mxu1 %v3129_v11  ;;  %v19020_v8 = vpop.f32.mrf.mxu0  ;;  %v3065_v11 = vand.u32 4294901760, %v19018_v52 }
 0x134   : > { %15704 = vmatpush3.msra.mxu0 %v18803_v25  ;;  %23663 = vst [vmem:[#allocation16_spill] sm:$0xff] %v19020_v8  ;;  %15645 = vmatmul.mubr.f32.gmra.mxu1 %v18698_v51  ;;  %v15198_v41 = vpop.f32.mrf.mxu1  ;;  %v3046_v25 = vsub.f32 %v18987_v46, %v3045_v4  ;;  %v3037_v51 = vand.u32 4294901760, %v3036_v55 }
 0x135   : > { %15687 = vmatprep.subr.mxu1 %v3136_v7  ;;  %15705 = vmatprep.subr.mxu0 %v18816_v63  ;;  %v595_v37 = vadd.f32 %v15198_v41, %v15170_v34 }
 0x136   : > { %15666 = vmatprep.mubr.f32.mxu0 %v3017_v43  ;;  %15688 = vmatpush3.msra.mxu1 %v3136_v7  ;;  %v19029_v50 = vpop.f32.mrf.mxu1  ;;  %v3047_v34 = vand.u32 4294901760, %v3046_v25 }
 0x137   : > { %15706 = vmatpush3.msra.mxu0 %v18816_v63  ;;  %23664 = vst [vmem:[#allocation17_spill] sm:$0xff] %v19029_v50  ;;  %15689 = vmatprep.subr.mxu1 %v3143_v40  ;;  %v3056_v63 = vsub.f32 %v19008_v26, %v3055_v31 }
 0x138   : > { %15667 = vmatmul.mubr.f32.gmra.mxu0 %v3027_v22  ;;  %v15220_v24 = vpop.f32.mrf.mxu0  ;;  %15707 = vmatprep.subr.mxu0 %v18830_v44 }
 0x139   : > { %15690 = vmatpush3.msra.mxu1 %v3143_v40  ;;  %v704_v43 = vadd.f32 %v15220_v24, %v18963_v61  ;;  %15691 = vmatprep.mubr.f32.mxu1 %v18852_v1  ;;  %v3066_v61 = vsub.f32 %v19018_v52, %v3065_v11  ;;  %v3057_v5 = vand.u32 4294901760, %v3056_v63 }
 0x13a   : > { %15708 = vmatpush3.msra.mxu0 %v18830_v44  ;;  %v19039_v60 = vpop.f32.mrf.mxu0  ;;  %15692 = vmatmul.mubr.f32.vlgmr.msra.gmra.mxu1 %v18854_v45  ;;  %v15245_v20 = vpop.f32.mrf.mxu1 }
 0x13b   : > { %23665 = vst [vmem:[#allocation18_spill] sm:$0xff] %v19039_v60  ;;  %15709 = vmatprep.subr.mxu0 %v18847_v27  ;;  %15731 = vmatprep.subr.mxu1 %v18789_v15  ;;  %v821_v44 = vadd.f32 %v15245_v20, %v690_v14  ;;  %v3067_v14 = vand.u32 4294901760, %v3066_v61  ;;  %v23673_v61 = vand.u32 4294901760, %v18883_v42 }
 0x13c   : > { %15669 = vmatprep.mubr.f32.mxu0 %v3037_v51  ;;  %15710 = vmatpush3.msra.mxu0 %v18847_v27  ;;  %v19049_v28 = vpop.f32.mrf.mxu1 }
 0x13d   : > { %15732 = vmatpush3.msra.mxu1 %v18789_v15  ;;  %23666 = vst [vmem:[#allocation19_spill] sm:$0xff] %v19049_v28  ;;  %15670 = vmatmul.mubr.f32.gmra.mxu0 %v3047_v34  ;;  %v15223_v7 = vpop.f32.mrf.mxu0 }
 0x13e   : > { %15711 = vmatprep.subr.mxu0 %v18876_v19  ;;  %15733 = vmatprep.subr.mxu1 %v18798_v13  ;;  %v718_v22 = vadd.f32 %v15223_v7, %v583_v2 }
 0x13f   : > { %15694 = vmatprep.mubr.f32.mxu1 %v18896_v56  ;;  %15712 = vmatpush3.msra.mxu0 %v18876_v19  ;;  %v19056_v27 = vpop.f32.mrf.mxu0 }
 0x140   : > { %15734 = vmatpush3.msra.mxu1 %v18798_v13  ;;  %23667 = vst [vmem:[#allocation20_spill] sm:$0xff] %v19056_v27  ;;  %15713 = vmatprep.subr.mxu0 %v18894_v33 }
 0x141   : > { %15695 = vmatmul.mubr.f32.gmra.mxu1 %v18910_v16  ;;  %v15248_v40 = vpop.f32.mrf.mxu1  ;;  %15735 = vmatprep.subr.mxu1 %v18810_v6 }
 0x142   : > { %15672 = vmatprep.mubr.f32.mxu0 %v3057_v5  ;;  %v837_v55 = vadd.f32 %v15248_v40, %v704_v43  ;;  %15714 = vmatpush3.msra.mxu0 %v18894_v33 }
 0x143   : > { %15736 = vmatpush3.msra.mxu1 %v18810_v6  ;;  %v19063_v2 = vpop.f32.mrf.mxu1  ;;  %15673 = vmatmul.mubr.f32.gmra.mxu0 %v3067_v14  ;;  %v15226_v19 = vpop.f32.mrf.mxu0 }
 0x144   : > { %23668 = vst [vmem:[#allocation21_spill] sm:$0xff] %v19063_v2  ;;  %15715 = vmatprep.subr.mxu0 %v18918_v58  ;;  %15737 = vmatprep.subr.mxu1 %v18820_v0  ;;  %v732_v41 = vadd.f32 %v15226_v19, %v595_v37 }
 0x145   : > { %15697 = vmatprep.mubr.f32.mxu1 %v18942_v32  ;;  %15716 = vmatpush3.msra.mxu0 %v18918_v58  ;;  %v19070_v25 = vpop.f32.mrf.mxu0 }
 0x146   : > { %15738 = vmatpush3.msra.mxu1 %v18820_v0  ;;  %23669 = vst [vmem:[#allocation22_spill] sm:$0xff] %v19070_v25  ;;  %15717 = vmatprep.subr.mxu0 %v18933_v10 }
 0x147   : > { %15698 = vmatmul.mubr.f32.gmra.mxu1 %v18961_v39  ;;  %v15251_v33 = vpop.f32.mrf.mxu1  ;;  %15739 = vmatprep.subr.mxu1 %v18844_v36 }
 0x148   : > { %15718 = vmatpush3.msra.mxu0 %v18933_v10  ;;  %v853_v51 = vadd.f32 %v15251_v33, %v718_v22  ;;  %15719 = vmatprep.mubr.f32.mxu0 %v18883_v42  ;;  %v3782_v42 = vld [vmem:[#allocation5 + $0x138] sm:$0xff]  ;;  %v23677_v22 = vand.u32 4294901760, %v18929_v9 }
 0x149   : > { %15740 = vmatpush3.msra.mxu1 %v18844_v36  ;;  %v19078_v37 = vpop.f32.mrf.mxu1  ;;  %15720 = vmatmul.mubr.f32.vlgmr.msra.gmra.mxu0 %v18886_v48  ;;  %v15273_v58 = vpop.f32.mrf.mxu0 }
 0x14a   : > { %23670 = vst [vmem:[#allocation23_spill] sm:$0xff] %v19078_v37  ;;  %15741 = vmatprep.subr.mxu1 %v18858_v49  ;;  %15759 = vmatprep.subr.mxu0 %v18823_v57  ;;  %v970_v24 = vadd.f32 %v15273_v58, %v821_v44  ;;  %v3766_v58 = vld [vmem:[#allocation2 + $0x4] sm:$0xff] }
 0x14b   : > { %15700 = vmatprep.mubr.f32.mxu1 %v18989_v38  ;;  %15742 = vmatpush3.msra.mxu1 %v18858_v49  ;;  %v19086_v10 = vpop.f32.mrf.mxu0 }
 0x14c   : > { %15760 = vmatpush3.msra.mxu0 %v18823_v57  ;;  %23671 = vst [vmem:[#allocation24_spill] sm:$0xff] %v19086_v10  ;;  %15701 = vmatmul.mubr.f32.gmra.mxu1 %v19002_v47  ;;  %v15254_v43 = vpop.f32.mrf.mxu1  ;;  %v3773_v10 = vld [vmem:[#allocation2 + $0x3c] sm:$0xff] }
 0x14d   : > { %15743 = vmatprep.subr.mxu1 %v18880_v21  ;;  %15761 = vmatprep.subr.mxu0 %v18838_v29  ;;  %v869_v34 = vadd.f32 %v15254_v43, %v732_v41 }
 0x14e   : > { %15722 = vmatprep.mubr.f32.mxu0 %v18929_v9  ;;  %15744 = vmatpush3.msra.mxu1 %v18880_v21  ;;  %v19094_v63 = vpop.f32.mrf.mxu1 }
 0x14f   : > { %15762 = vmatpush3.msra.mxu0 %v18838_v29  ;;  %23672 = vst [vmem:[#allocation25_spill] sm:$0xff] %v19094_v63  ;;  %15745 = vmatprep.subr.mxu1 %v18900_v59  ;;  %v23675_v29 = vand.u32 4294901760, %v18886_v48 }
 0x150   : > { %15723 = vmatmul.mubr.f32.gmra.mxu0 %v18940_v23  ;;  %v15276_v57 = vpop.f32.mrf.mxu0  ;;  %15763 = vmatprep.subr.mxu0 %v18861_v54 }
 0x151   : > { %15746 = vmatpush3.msra.mxu1 %v18900_v59  ;;  %v982_v20 = vadd.f32 %v15276_v57, %v837_v55  ;;  %15747 = vmatprep.mubr.f32.mxu1 %v23673_v61  ;;  %v23679_v55 = vand.u32 4294901760, %v18940_v23 }
 0x152   : > { %15764 = vmatpush3.msra.mxu0 %v18861_v54  ;;  %v19103_v44 = vpop.f32.mrf.mxu0  ;;  %15748 = vmatmul.mubr.f32.vlgmr.msra.gmra.mxu1 %v23675_v29  ;;  %v15301_v5 = vpop.f32.mrf.mxu1  ;;  %v3777_v29 = vld [vmem:[#allocation5 + $0x110] sm:$0xff] }
 0x153   : > { %23674 = vst [vmem:[#allocation26_spill] sm:$0xff] %v19103_v44  ;;  %15765 = vmatprep.subr.mxu0 %v18873_v30  ;;  %15787 = vmatprep.subr.mxu1 %v18789_v15  ;;  %v19110_v7 = vadd.f32 %v15301_v5, %v970_v24 }
 0x154   : > { %15725 = vmatprep.mubr.f32.mxu0 %v18976_v53  ;;  %15766 = vmatpush3.msra.mxu0 %v18873_v30  ;;  %v19114_v54 = vpop.f32.mrf.mxu1  ;;  %v19123_v30 = vand.u32 4294901760, %v3782_v42  ;;  %v3767_v53 = vld [vmem:[#allocation2 + $0xc] sm:$0xff] }
 0x155   : > { %15788 = vmatpush3.msra.mxu1 %v18789_v15  ;;  %23676 = vst [vmem:[#allocation27_spill] sm:$0xff] %v19114_v54  ;;  %15726 = vmatmul.mubr.f32.gmra.mxu0 %v18987_v46  ;;  %v15279_v48 = vpop.f32.mrf.mxu0  ;;  %v3781_v15 = vld [vmem:[#allocation5 + $0x130] sm:$0xff]  ;;  %v3784_v46 = vsel %vm226_vm1, %v3766_v58, 0 }
 0x156   : > { %15767 = vmatprep.subr.mxu0 %v18908_v17  ;;  %15789 = vmatprep.subr.mxu1 %v18798_v13  ;;  %v994_v14 = vadd.f32 %v15279_v48, %v853_v51  ;;  %v19143_v23 = vsub.f32 %v3782_v42, %v19123_v30 }
 0x157   : > { %15750 = vmatprep.mubr.f32.mxu1 %v23677_v22  ;;  %15768 = vmatpush3.msra.mxu0 %v18908_v17  ;;  %v19125_v40 = vpop.f32.mrf.mxu0  ;;  %v3780_v17 = vld [vmem:[#allocation5 + $0x128] sm:$0xff] }
 0x158   : > { %15790 = vmatpush3.msra.mxu1 %v18798_v13  ;;  %23678 = vst [vmem:[#allocation28_spill] sm:$0xff] %v19125_v40  ;;  %15769 = vmatprep.subr.mxu0 %v18926_v62  ;;  %v19136_v13 = vand.u32 4294901760, %v3781_v15  ;;  %v19150_v51 = vand.u32 4294901760, %v3780_v17 }
 0x159   : > { %15751 = vmatmul.mubr.f32.gmra.mxu1 %v23679_v55  ;;  %v15304_v19 = vpop.f32.mrf.mxu1  ;;  %15791 = vmatprep.subr.mxu1 %v18810_v6 }
 0x15a   : > { %15728 = vmatprep.mubr.f32.mxu0 %v19008_v26  ;;  %v19132_v9 = vadd.f32 %v15304_v19, %v982_v20  ;;  %15770 = vmatpush3.msra.mxu0 %v18926_v62  ;;  %v3779_v62 = vld [vmem:[#allocation5 + $0x120] sm:$0xff]  ;;  %v19158_v43 = vsub.f32 %v3781_v15, %v19136_v13  ;;  %v3787_v20 = vsel %vm226_vm1, %v3767_v53, 0  ;;  %v19196_v26 = vand.u32 4294901760, %v3784_v46  ;;  %v3776_v19 = vld [vmem:[#allocation5 + $0x108] sm:$0xff] }
 0x15b   : > { %15792 = vmatpush3.msra.mxu1 %v18810_v6  ;;  %v19138_v41 = vpop.f32.mrf.mxu1  ;;  %15729 = vmatmul.mubr.f32.gmra.mxu0 %v19018_v52  ;;  %v15282_v33 = vpop.f32.mrf.mxu0  ;;  %v19207_v15 = vand.u32 4294901760, %v3777_v29 }
 0x15c   : > { %23680 = vst [vmem:[#allocation29_spill] sm:$0xff] %v19138_v41  ;;  %15771 = vmatprep.subr.mxu0 %v18955_v18  ;;  %15793 = vmatprep.subr.mxu1 %v18820_v0  ;;  %v1006_v6 = vadd.f32 %v15282_v33, %v869_v34 }
 0x15d   : > { %15753 = vmatprep.mubr.f32.mxu1 %v3035_v3  ;;  %15772 = vmatpush3.msra.mxu0 %v18955_v18  ;;  %v19152_v24 = vpop.f32.mrf.mxu0  ;;  %v19165_v18 = vand.u32 4294901760, %v19143_v23 }
 0x15e   : > { %15794 = vmatpush3.msra.mxu1 %v18820_v0  ;;  %23681 = vst [vmem:[#allocation30_spill] sm:$0xff] %v19152_v24  ;;  %15773 = vmatprep.subr.mxu0 %v18967_v35  ;;  %v19162_v0 = vand.u32 4294901760, %v3779_v62  ;;  %v3771_v24 = vld [vmem:[#allocation2 + $0x2c] sm:$0xff] }
 0x15f   : > { %15754 = vmatmul.mubr.f32.gmra.mxu1 %v3045_v4  ;;  %v15307_v3 = vpop.f32.mrf.mxu1  ;;  %15795 = vmatprep.subr.mxu1 %v18844_v36  ;;  %v3778_v4 = vld [vmem:[#allocation5 + $0x118] sm:$0xff]  ;;  %v3980_v42 = vsub.f32 %v19143_v23, %v19165_v18 }
 0x160   : > { %15774 = vmatpush3.msra.mxu0 %v18967_v35  ;;  %v19167_v34 = vadd.f32 %v15307_v3, %v994_v14  ;;  %15775 = vmatprep.mubr.f32.mxu0 %v18852_v1  ;;  %v19177_v35 = vsub.f32 %v3780_v17, %v19150_v51  ;;  %v19191_v48 = vand.u32 4294901760, %v3778_v4  ;;  %v19194_v22 = vsub.f32 %v3779_v62, %v19162_v0  ;;  %v3769_v17 = vld [vmem:[#allocation2 + $0x1c] sm:$0xff] }
 0x161   : > { %15796 = vmatpush3.msra.mxu1 %v18844_v36  ;;  %v19172_v57 = vpop.f32.mrf.mxu1  ;;  %15776 = vmatmul.mubr.f32.vlgmr.msra.gmra.mxu0 %v18854_v45  ;;  %v15329_v61 = vpop.f32.mrf.mxu0  ;;  %v19184_v36 = vand.u32 4294901760, %v19158_v43  ;;  %v3981_v58 = vand.u32 4294901760, %v3980_v42  ;;  %v19230_v3 = vsub.f32 %v3784_v46, %v19196_v26  ;;  %v3793_v42 = vsel %vm226_vm1, %v3769_v17, 0 }
 0x162   : > { %23682 = vst [vmem:[#allocation31_spill] sm:$0xff] %v19172_v57  ;;  %15797 = vmatprep.subr.mxu1 %v18858_v49  ;;  %15815 = vmatprep.subr.mxu0 %v19123_v30  ;;  %v1244_v5 = vadd.f32 %v15329_v61, %v19110_v7  ;;  %v19210_v55 = vand.u32 4294901760, %v19177_v35  ;;  %v19224_v53 = vand.u32 4294901760, %v19194_v22  ;;  %v19246_v46 = vsub.f32 %v3777_v29, %v19207_v15  ;;  %v3770_v57 = vld [vmem:[#allocation2 + $0x24] sm:$0xff] }
 0x163   : > { %15756 = vmatprep.mubr.f32.mxu1 %v3055_v31  ;;  %15798 = vmatpush3.msra.mxu1 %v18858_v49  ;;  %v3768_v31 = vld [vmem:[#allocation2 + $0x14] sm:$0xff]  ;;  %v19198_v14 = vpop.f32.mrf.mxu0  ;;  %v19203_v49 = vand.u32 4294901760, %v3787_v20  ;;  %v3987_v52 = vsub.f32 %v19158_v43, %v19184_v36  ;;  %v3796_v40 = vsel %vm226_vm1, %v3770_v57, 0  ;;  %v3799_v57 = vsel %vm226_vm1, %v3771_v24, 0 }
 0x164   : > { %15816 = vmatpush3.msra.mxu0 %v19123_v30  ;;  %23683 = vst [vmem:[#allocation32_spill] sm:$0xff] %v19198_v14  ;;  %15757 = vmatmul.mubr.f32.gmra.mxu1 %v3065_v11  ;;  %v15310_v7 = vpop.f32.mrf.mxu1  ;;  %v3790_v11 = vsel %vm226_vm1, %v3768_v31, 0  ;;  %v19234_v31 = vand.u32 4294901760, %v3776_v19 }
 0x165   : > { %15799 = vmatprep.subr.mxu1 %v18880_v21  ;;  %15817 = vmatprep.subr.mxu0 %v19136_v13  ;;  %v19212_v33 = vadd.f32 %v15310_v7, %v1006_v6  ;;  %v3775_v6 = vld [vmem:[#allocation5 + $0x100] sm:$0xff]  ;;  %v19237_v7 = vsub.f32 %v3787_v20, %v19203_v49 }
 0x166   : > { %15778 = vmatprep.mubr.f32.mxu0 %v18896_v56  ;;  %15800 = vmatpush3.msra.mxu1 %v18880_v21  ;;  %v19219_v62 = vpop.f32.mrf.mxu1  ;;  %v19227_v21 = vsub.f32 %v3778_v4, %v19191_v48  ;;  %v3994_v4 = vsub.f32 %v19177_v35, %v19210_v55  ;;  %v19254_v20 = vand.u32 4294901760, %v3775_v6  ;;  %v19270_v41 = vsub.f32 %v3776_v19, %v19234_v31 }
 0x167   : > { %15818 = vmatpush3.msra.mxu0 %v19136_v13  ;;  %23684 = vst [vmem:[#allocation33_spill] sm:$0xff] %v19219_v62  ;;  %15801 = vmatprep.subr.mxu1 %v18900_v59 }
 0x168   : > { %15779 = vmatmul.mubr.f32.gmra.mxu0 %v18910_v16  ;;  %v15332_v61 = vpop.f32.mrf.mxu0  ;;  %15819 = vmatprep.subr.mxu0 %v19150_v51  ;;  %v19258_v17 = vand.u32 4294901760, %v19227_v21  ;;  %v19285_v19 = vsub.f32 %v3775_v6, %v19254_v20  ;;  %v3772_v6 = vld [vmem:[#allocation2 + $0x34] sm:$0xff] }
 0x169   : > { %15802 = vmatpush3.msra.mxu1 %v18900_v59  ;;  %v1264_v62 = vadd.f32 %v15332_v61, %v19132_v9  ;;  %15803 = vmatprep.mubr.f32.mxu1 %v18852_v1  ;;  %v19248_v59 = vand.u32 4294901760, %v3790_v11  ;;  %v3988_v9 = vand.u32 4294901760, %v3987_v52  ;;  %v19261_v61 = vand.u32 4294901760, %v3793_v42 }
 0x16a   : > { %15820 = vmatpush3.msra.mxu0 %v19150_v51  ;;  %v19250_v14 = vpop.f32.mrf.mxu0  ;;  %15804 = vmatmul.mubr.f32.vlgmr.msra.gmra.mxu1 %v18854_v45  ;;  %v15357_v1 = vpop.f32.mrf.mxu1  ;;  %v4001_v45 = vsub.f32 %v19194_v22, %v19224_v53  ;;  %v3802_v37 = vsel %vm226_vm1, %v3772_v6, 0 }
 0x16b   : > { %23685 = vst [vmem:[#allocation34_spill] sm:$0xff] %v19250_v14  ;;  %15821 = vmatprep.subr.mxu0 %v19162_v0  ;;  %15843 = vmatprep.subr.mxu1 %v3981_v58  ;;  %v19263_v14 = vadd.f32 %v15357_v1, %v1244_v5  ;;  %v3995_v5 = vand.u32 4294901760, %v3994_v4  ;;  %v19278_v1 = vand.u32 4294901760, %v19246_v46  ;;  %v4008_v4 = vsub.f32 %v19227_v21, %v19258_v17 }
 0x16c   : > { %15781 = vmatprep.mubr.f32.mxu0 %v18942_v32  ;;  %15822 = vmatpush3.msra.mxu0 %v19162_v0  ;;  %v19273_v54 = vpop.f32.mrf.mxu1  ;;  %v19296_v44 = vsub.f32 %v3793_v42, %v19261_v61  ;;  %v4002_v24 = vand.u32 4294901760, %v4001_v45 }
 0x16d   : > { %15844 = vmatpush3.msra.mxu1 %v3981_v58  ;;  %23686 = vst [vmem:[#allocation35_spill] sm:$0xff] %v19273_v54  ;;  %15782 = vmatmul.mubr.f32.gmra.mxu0 %v18961_v39  ;;  %v19281_v58 = vsub.f32 %v3790_v11, %v19248_v59  ;;  %v15335_v29 = vpop.f32.mrf.mxu0  ;;  %v23687_v11 = vand.u32 4294901760, %v19230_v3  ;;  %v4015_v42 = vsub.f32 %v19246_v46, %v19278_v1 }
 0x16e   : > { %15823 = vmatprep.subr.mxu0 %v19191_v48  ;;  %15845 = vmatprep.subr.mxu1 %v3988_v9  ;;  %v1284_v52 = vadd.f32 %v15335_v29, %v19167_v34  ;;  %v23689_v34 = vand.u32 4294901760, %v19237_v7  ;;  %v19308_v29 = vand.u32 4294901760, %v19270_v41 }
 0x16f   : > { %15806 = vmatprep.mubr.f32.mxu1 %v18896_v56  ;;  %15824 = vmatpush3.msra.mxu0 %v19191_v48  ;;  %v3883_v54 = vsub.f32 %v19230_v3, %v23687_v11  ;;  %v19298_v56 = vand.u32 4294901760, %v3796_v40  ;;  %v19300_v63 = vpop.f32.mrf.mxu0 }
 0x170   : > { %15846 = vmatpush3.msra.mxu1 %v3988_v9  ;;  %23688 = vst [vmem:[#allocation36_spill] sm:$0xff] %v19300_v63  ;;  %15825 = vmatprep.subr.mxu0 %v19207_v15  ;;  %v3893_v9 = vsub.f32 %v19237_v7, %v23689_v34  ;;  %v19320_v34 = vand.u32 4294901760, %v19285_v19  ;;  %v4009_v63 = vand.u32 4294901760, %v4008_v4  ;;  %v4022_v6 = vsub.f32 %v19270_v41, %v19308_v29 }
 0x171   : > { %15807 = vmatmul.mubr.f32.gmra.mxu1 %v18910_v16  ;;  %v15360_v11 = vpop.f32.mrf.mxu1  ;;  %15847 = vmatprep.subr.mxu1 %v3995_v5  ;;  %v19314_v16 = vand.u32 4294901760, %v3799_v57  ;;  %v3884_v2 = vand.u32 4294901760, %v3883_v54  ;;  %v4016_v54 = vand.u32 4294901760, %v4015_v42  ;;  %v23691_v4 = vand.u32 4294901760, %v19281_v58 }
 0x172   : > { %15784 = vmatprep.mubr.f32.mxu0 %v18989_v38  ;;  %v19316_v45 = vadd.f32 %v15360_v11, %v1264_v62  ;;  %15826 = vmatpush3.msra.mxu0 %v19207_v15  ;;  %v19329_v62 = vsub.f32 %v3796_v40, %v19298_v56 }
 0x173   : > { %15848 = vmatpush3.msra.mxu1 %v3995_v5  ;;  %v19323_v25 = vpop.f32.mrf.mxu1  ;;  %15785 = vmatmul.mubr.f32.gmra.mxu0 %v19002_v47  ;;  %v15338_v11 = vpop.f32.mrf.mxu0  ;;  %v3894_v5 = vand.u32 4294901760, %v3893_v9  ;;  %v3903_v40 = vsub.f32 %v19281_v58, %v23691_v4  ;;  %v19341_v27 = vsub.f32 %v3799_v57, %v19314_v16 }
 0x174   : > { %23690 = vst [vmem:[#allocation37_spill] sm:$0xff] %v19323_v25  ;;  %15827 = vmatprep.subr.mxu0 %v19234_v31  ;;  %15849 = vmatprep.subr.mxu1 %v4002_v24  ;;  %v3805_v25 = vsel %vm226_vm1, %v3773_v10, 0  ;;  %v1304_v28 = vadd.f32 %v15338_v11, %v19212_v33  ;;  %v4029_v10 = vsub.f32 %v19285_v19, %v19320_v34  ;;  %v3922_v42 = vand.u32 4294901760, %v19329_v62 }
 0x175   : > { %15809 = vmatprep.mubr.f32.mxu1 %v18942_v32  ;;  %15828 = vmatpush3.msra.mxu0 %v19234_v31  ;;  %v19343_v32 = vand.u32 4294901760, %v3802_v37  ;;  %v19345_v9 = vpop.f32.mrf.mxu0  ;;  %v19356_v11 = vand.u32 4294901760, %v3805_v25  ;;  %v3904_v60 = vand.u32 4294901760, %v3903_v40  ;;  %v3932_v50 = vand.u32 4294901760, %v19341_v27 }
 0x176   : > { %15850 = vmatpush3.msra.mxu1 %v4002_v24  ;;  %23692 = vst [vmem:[#allocation38_spill] sm:$0xff] %v19345_v9  ;;  %15829 = vmatprep.subr.mxu0 %v19254_v20  ;;  %v23693_v24 = vand.u32 4294901760, %v19296_v44 }
 0x177   : > { %15810 = vmatmul.mubr.f32.gmra.mxu1 %v18961_v39  ;;  %v15363_v33 = vpop.f32.mrf.mxu1  ;;  %15851 = vmatprep.subr.mxu1 %v4009_v63  ;;  %v4023_v39 = vand.u32 4294901760, %v4022_v6  ;;  %v19362_v8 = vsub.f32 %v3802_v37, %v19343_v32  ;;  %v19372_v6 = vsub.f32 %v3805_v25, %v19356_v11 }
 0x178   : > { %15830 = vmatpush3.msra.mxu0 %v19254_v20  ;;  %v3913_v57 = vsub.f32 %v19296_v44, %v23693_v24  ;;  %v1445_v4 = vadd.f32 %v15363_v33, %v1284_v52  ;;  %15831 = vmatprep.mubr.f32.mxu0 %v3884_v2 }
 0x179   : > { %15852 = vmatpush3.msra.mxu1 %v4009_v63  ;;  %v19358_v9 = vpop.f32.mrf.mxu1  ;;  %15832 = vmatmul.mubr.f32.vlgmr.msra.gmra.mxu0 %v3894_v5  ;;  %v15385_v12 = vpop.f32.mrf.mxu0  ;;  %v4030_v63 = vand.u32 4294901760, %v4029_v10  ;;  %v3923_v5 = vsub.f32 %v19329_v62, %v3922_v42 }
 0x17a   : > { %23694 = vst [vmem:[#allocation39_spill] sm:$0xff] %v19358_v9  ;;  %15853 = vmatprep.subr.mxu1 %v4016_v54  ;;  %15871 = vmatprep.subr.mxu0 %v19143_v23  ;;  %v1552_v52 = vadd.f32 %v15385_v12, %v19263_v14  ;;  %v3914_v2 = vand.u32 4294901760, %v3913_v57  ;;  %v3933_v12 = vsub.f32 %v19341_v27, %v3932_v50 }
 0x17b   : > { %15812 = vmatprep.mubr.f32.mxu1 %v18989_v38  ;;  %15854 = vmatpush3.msra.mxu1 %v4016_v54  ;;  %v19374_v37 = vpop.f32.mrf.mxu0  ;;  %v3952_v54 = vand.u32 4294901760, %v19372_v6 }
 0x17c   : > { %15872 = vmatpush3.msra.mxu0 %v19143_v23  ;;  %23695 = vst [vmem:[#allocation40_spill] sm:$0xff] %v19374_v37  ;;  %15813 = vmatmul.mubr.f32.gmra.mxu1 %v19002_v47  ;;  %v15366_v38 = vpop.f32.mrf.mxu1  ;;  %v3942_v23 = vand.u32 4294901760, %v19362_v8  ;;  %v3924_v47 = vand.u32 4294901760, %v3923_v5 }
 0x17d   : > { %15855 = vmatprep.subr.mxu1 %v4023_v39  ;;  %15873 = vmatprep.subr.mxu0 %v19158_v43  ;;  %v1457_v14 = vadd.f32 %v15366_v38, %v1304_v28  ;;  %v3934_v28 = vand.u32 4294901760, %v3933_v12 }
 0x17e   : > { %15834 = vmatprep.mubr.f32.mxu0 %v3904_v60  ;;  %15856 = vmatpush3.msra.mxu1 %v4023_v39  ;;  %v19383_v25 = vpop.f32.mrf.mxu1 }
 0x17f   : > { %15874 = vmatpush3.msra.mxu0 %v19158_v43  ;;  %23696 = vst [vmem:[#allocation41_spill] sm:$0xff] %v19383_v25  ;;  %15857 = vmatprep.subr.mxu1 %v4030_v63  ;;  %v3943_v43 = vsub.f32 %v19362_v8, %v3942_v23 }
 0x180   : > { %15835 = vmatmul.mubr.f32.gmra.mxu0 %v3914_v2  ;;  %v15388_v40 = vpop.f32.mrf.mxu0  ;;  %15875 = vmatprep.subr.mxu0 %v19177_v35 }
 0x181   : > { %15858 = vmatpush3.msra.mxu1 %v4030_v63  ;;  %v1566_v60 = vadd.f32 %v15388_v40, %v19316_v45  ;;  %15859 = vmatprep.mubr.f32.mxu1 %v19196_v26  ;;  %v3953_v45 = vsub.f32 %v19372_v6, %v3952_v54  ;;  %v3944_v57 = vand.u32 4294901760, %v3943_v43 }
 0x182   : > { %15876 = vmatpush3.msra.mxu0 %v19177_v35  ;;  %v19393_v10 = vpop.f32.mrf.mxu0  ;;  %15860 = vmatmul.mubr.f32.vlgmr.msra.gmra.mxu1 %v19203_v49  ;;  %v15413_v33 = vpop.f32.mrf.mxu1 }
 0x183   : > { %23697 = vst [vmem:[#allocation42_spill] sm:$0xff] %v19393_v10  ;;  %15877 = vmatprep.subr.mxu0 %v19194_v22  ;;  %15899 = vmatprep.subr.mxu1 %v19123_v30  ;;  %v1683_v35 = vadd.f32 %v15413_v33, %v1552_v52  ;;  %v3954_v52 = vand.u32 4294901760, %v3953_v45  ;;  %v23705_v45 = vand.u32 4294901760, %v19230_v3 }
 0x184   : > { %15837 = vmatprep.mubr.f32.mxu0 %v3924_v47  ;;  %15878 = vmatpush3.msra.mxu0 %v19194_v22  ;;  %v19403_v24 = vpop.f32.mrf.mxu1 }
 0x185   : > { %15900 = vmatpush3.msra.mxu1 %v19123_v30  ;;  %23698 = vst [vmem:[#allocation43_spill] sm:$0xff] %v19403_v24  ;;  %15838 = vmatmul.mubr.f32.gmra.mxu0 %v3934_v28  ;;  %v15391_v39 = vpop.f32.mrf.mxu0 }
 0x186   : > { %15879 = vmatprep.subr.mxu0 %v19227_v21  ;;  %15901 = vmatprep.subr.mxu1 %v19136_v13  ;;  %v1580_v2 = vadd.f32 %v15391_v39, %v1445_v4 }
 0x187   : > { %15862 = vmatprep.mubr.f32.mxu1 %v19248_v59  ;;  %15880 = vmatpush3.msra.mxu0 %v19227_v21  ;;  %v19410_v22 = vpop.f32.mrf.mxu0 }
 0x188   : > { %15902 = vmatpush3.msra.mxu1 %v19136_v13  ;;  %23699 = vst [vmem:[#allocation44_spill] sm:$0xff] %v19410_v22  ;;  %15881 = vmatprep.subr.mxu0 %v19246_v46 }
 0x189   : > { %15863 = vmatmul.mubr.f32.gmra.mxu1 %v19261_v61  ;;  %v15416_v63 = vpop.f32.mrf.mxu1  ;;  %15903 = vmatprep.subr.mxu1 %v19150_v51 }
 0x18a   : > { %15840 = vmatprep.mubr.f32.mxu0 %v3944_v57  ;;  %v1699_v5 = vadd.f32 %v15416_v63, %v1566_v60  ;;  %15882 = vmatpush3.msra.mxu0 %v19246_v46 }
 0x18b   : > { %15904 = vmatpush3.msra.mxu1 %v19150_v51  ;;  %v19417_v4 = vpop.f32.mrf.mxu1  ;;  %15841 = vmatmul.mubr.f32.gmra.mxu0 %v3954_v52  ;;  %v15394_v21 = vpop.f32.mrf.mxu0 }
 0x18c   : > { %23700 = vst [vmem:[#allocation45_spill] sm:$0xff] %v19417_v4  ;;  %15883 = vmatprep.subr.mxu0 %v19270_v41  ;;  %15905 = vmatprep.subr.mxu1 %v19162_v0  ;;  %v1594_v38 = vadd.f32 %v15394_v21, %v1457_v14  ;;  %v4660_v4 = vld [vmem:[#allocation2 + $0x3d] sm:$0xff] }
 0x18d   : > { %15865 = vmatprep.mubr.f32.mxu1 %v19298_v56  ;;  %15884 = vmatpush3.msra.mxu0 %v19270_v41  ;;  %v19424_v12 = vpop.f32.mrf.mxu0 }
 0x18e   : > { %15906 = vmatpush3.msra.mxu1 %v19162_v0  ;;  %23701 = vst [vmem:[#allocation46_spill] sm:$0xff] %v19424_v12  ;;  %15885 = vmatprep.subr.mxu0 %v19285_v19 }
 0x18f   : > { %15866 = vmatmul.mubr.f32.gmra.mxu1 %v19314_v16  ;;  %v15419_v46 = vpop.f32.mrf.mxu1  ;;  %15907 = vmatprep.subr.mxu1 %v19191_v48 }
 0x190   : > { %15886 = vmatpush3.msra.mxu0 %v19285_v19  ;;  %v1715_v47 = vadd.f32 %v15419_v46, %v1580_v2  ;;  %15887 = vmatprep.mubr.f32.mxu0 %v19230_v3  ;;  %v4669_v3 = vld [vmem:[#allocation5 + $0x178] sm:$0xff]  ;;  %v23709_v2 = vand.u32 4294901760, %v19281_v58 }
 0x191   : > { %15908 = vmatpush3.msra.mxu1 %v19191_v48  ;;  %v19432_v14 = vpop.f32.mrf.mxu1  ;;  %15888 = vmatmul.mubr.f32.vlgmr.msra.gmra.mxu0 %v19237_v7  ;;  %v15441_v41 = vpop.f32.mrf.mxu0 }
 0x192   : > { %23702 = vst [vmem:[#allocation47_spill] sm:$0xff] %v19432_v14  ;;  %15909 = vmatprep.subr.mxu1 %v19207_v15  ;;  %15927 = vmatprep.subr.mxu0 %v19165_v18  ;;  %v1832_v40 = vadd.f32 %v15441_v41, %v1683_v35 }
 0x193   : > { %15868 = vmatprep.mubr.f32.mxu1 %v19343_v32  ;;  %15910 = vmatpush3.msra.mxu1 %v19207_v15  ;;  %v19440_v19 = vpop.f32.mrf.mxu0 }
 0x194   : > { %15928 = vmatpush3.msra.mxu0 %v19165_v18  ;;  %23703 = vst [vmem:[#allocation48_spill] sm:$0xff] %v19440_v19  ;;  %15869 = vmatmul.mubr.f32.gmra.mxu1 %v19356_v11  ;;  %v15422_v60 = vpop.f32.mrf.mxu1 }
 0x195   : > { %15911 = vmatprep.subr.mxu1 %v19234_v31  ;;  %15929 = vmatprep.subr.mxu0 %v19184_v36  ;;  %v1731_v28 = vadd.f32 %v15422_v60, %v1594_v38 }
 0x196   : > { %15890 = vmatprep.mubr.f32.mxu0 %v19281_v58  ;;  %15912 = vmatpush3.msra.mxu1 %v19234_v31  ;;  %v19448_v43 = vpop.f32.mrf.mxu1 }
 0x197   : > { %15930 = vmatpush3.msra.mxu0 %v19184_v36  ;;  %23704 = vst [vmem:[#allocation49_spill] sm:$0xff] %v19448_v43  ;;  %15913 = vmatprep.subr.mxu1 %v19254_v20  ;;  %v23707_v36 = vand.u32 4294901760, %v19237_v7 }
 0x198   : > { %15891 = vmatmul.mubr.f32.gmra.mxu0 %v19296_v44  ;;  %v15444_v18 = vpop.f32.mrf.mxu0  ;;  %15931 = vmatprep.subr.mxu0 %v19210_v55 }
 0x199   : > { %15914 = vmatpush3.msra.mxu1 %v19254_v20  ;;  %v1844_v33 = vadd.f32 %v15444_v18, %v1699_v5  ;;  %15915 = vmatprep.mubr.f32.mxu1 %v23705_v45  ;;  %v23711_v5 = vand.u32 4294901760, %v19296_v44 }
 0x19a   : > { %15932 = vmatpush3.msra.mxu0 %v19210_v55  ;;  %v19457_v35 = vpop.f32.mrf.mxu0  ;;  %15916 = vmatmul.mubr.f32.vlgmr.msra.gmra.mxu1 %v23707_v36  ;;  %v15469_v57 = vpop.f32.mrf.mxu1  ;;  %v4664_v36 = vld [vmem:[#allocation5 + $0x150] sm:$0xff] }
 0x19b   : > { %23706 = vst [vmem:[#allocation50_spill] sm:$0xff] %v19457_v35  ;;  %15933 = vmatprep.subr.mxu0 %v19224_v53  ;;  %15955 = vmatprep.subr.mxu1 %v19123_v30  ;;  %v19464_v39 = vadd.f32 %v15469_v57, %v1832_v40 }
 0x19c   : > { %15893 = vmatprep.mubr.f32.mxu0 %v19329_v62  ;;  %15934 = vmatpush3.msra.mxu0 %v19224_v53  ;;  %v19468_v55 = vpop.f32.mrf.mxu1  ;;  %v19477_v53 = vand.u32 4294901760, %v4669_v3  ;;  %v4653_v62 = vld [vmem:[#allocation2 + $0x5] sm:$0xff] }
 0x19d   : > { %15956 = vmatpush3.msra.mxu1 %v19123_v30  ;;  %23708 = vst [vmem:[#allocation51_spill] sm:$0xff] %v19468_v55  ;;  %15894 = vmatmul.mubr.f32.gmra.mxu0 %v19341_v27  ;;  %v15447_v7 = vpop.f32.mrf.mxu0  ;;  %v4668_v30 = vld [vmem:[#allocation5 + $0x170] sm:$0xff]  ;;  %v4671_v18 = vsel %vm226_vm1, %v4653_v62, 0  ;;  %v4658_v55 = vld [vmem:[#allocation2 + $0x2d] sm:$0xff] }
 0x19e   : > { %15935 = vmatprep.subr.mxu0 %v19258_v17  ;;  %15957 = vmatprep.subr.mxu1 %v19136_v13  ;;  %v1856_v52 = vadd.f32 %v15447_v7, %v1715_v47  ;;  %v19497_v44 = vsub.f32 %v4669_v3, %v19477_v53 }
 0x19f   : > { %15918 = vmatprep.mubr.f32.mxu1 %v23709_v2  ;;  %15936 = vmatpush3.msra.mxu0 %v19258_v17  ;;  %v19479_v63 = vpop.f32.mrf.mxu0  ;;  %v4667_v17 = vld [vmem:[#allocation5 + $0x168] sm:$0xff] }
 0x1a0   : > { %15958 = vmatpush3.msra.mxu1 %v19136_v13  ;;  %23710 = vst [vmem:[#allocation52_spill] sm:$0xff] %v19479_v63  ;;  %15937 = vmatprep.subr.mxu0 %v19278_v1  ;;  %v19490_v13 = vand.u32 4294901760, %v4668_v30  ;;  %v19504_v47 = vand.u32 4294901760, %v4667_v17  ;;  %v4655_v2 = vld [vmem:[#allocation2 + $0x15] sm:$0xff] }
 0x1a1   : > { %15919 = vmatmul.mubr.f32.gmra.mxu1 %v23711_v5  ;;  %v15472_v21 = vpop.f32.mrf.mxu1  ;;  %15959 = vmatprep.subr.mxu1 %v19150_v51 }
 0x1a2   : > { %15896 = vmatprep.mubr.f32.mxu0 %v19362_v8  ;;  %v19486_v58 = vadd.f32 %v15472_v21, %v1844_v33  ;;  %15938 = vmatpush3.msra.mxu0 %v19278_v1  ;;  %v4666_v1 = vld [vmem:[#allocation5 + $0x160] sm:$0xff]  ;;  %v19512_v40 = vsub.f32 %v4668_v30, %v19490_v13  ;;  %v19554_v8 = vand.u32 4294901760, %v4671_v18  ;;  %v19560_v30 = vand.u32 4294901760, %v4664_v36  ;;  %v4663_v21 = vld [vmem:[#allocation5 + $0x148] sm:$0xff] }
 0x1a3   : > { %15960 = vmatpush3.msra.mxu1 %v19150_v51  ;;  %v19492_v38 = vpop.f32.mrf.mxu1  ;;  %15897 = vmatmul.mubr.f32.gmra.mxu0 %v19372_v6  ;;  %v15450_v46 = vpop.f32.mrf.mxu0 }
 0x1a4   : > { %23712 = vst [vmem:[#allocation53_spill] sm:$0xff] %v19486_v58  ;;  %23713 = vst [vmem:[#allocation54_spill] sm:$0xff] %v19492_v38  ;;  %15939 = vmatprep.subr.mxu0 %v19308_v29  ;;  %15961 = vmatprep.subr.mxu1 %v19162_v0  ;;  %v1868_v51 = vadd.f32 %v15450_v46, %v1731_v28  ;;  %v4677_v46 = vsel %vm226_vm1, %v4655_v2, 0  ;;  %v19586_v2 = vand.u32 4294901760, %v4663_v21  ;;  %v4657_v38 = vld [vmem:[#allocation2 + $0x25] sm:$0xff] }
 0x1a5   : > { %15921 = vmatprep.mubr.f32.mxu1 %v3922_v42  ;;  %15940 = vmatpush3.msra.mxu0 %v19308_v29  ;;  %v19506_v41 = vpop.f32.mrf.mxu0  ;;  %v4654_v42 = vld [vmem:[#allocation2 + $0xd] sm:$0xff]  ;;  %v19519_v29 = vand.u32 4294901760, %v19497_v44 }
 0x1a6   : > { %15962 = vmatpush3.msra.mxu1 %v19162_v0  ;;  %23714 = vst [vmem:[#allocation55_spill] sm:$0xff] %v19506_v41  ;;  %15941 = vmatprep.subr.mxu0 %v19320_v34  ;;  %v19516_v0 = vand.u32 4294901760, %v4666_v1  ;;  %v4674_v33 = vsel %vm226_vm1, %v4654_v42, 0 }
 0x1a7   : > { %15922 = vmatmul.mubr.f32.gmra.mxu1 %v3932_v50  ;;  %v15475_v60 = vpop.f32.mrf.mxu1  ;;  %15963 = vmatprep.subr.mxu1 %v19191_v48  ;;  %v4665_v50 = vld [vmem:[#allocation5 + $0x158] sm:$0xff]  ;;  %v4867_v57 = vsub.f32 %v19497_v44, %v19519_v29 }
 0x1a8   : > { %15942 = vmatpush3.msra.mxu0 %v19320_v34  ;;  %v19521_v28 = vadd.f32 %v15475_v60, %v1856_v52  ;;  %15943 = vmatprep.mubr.f32.mxu0 %v19196_v26  ;;  %v19530_v34 = vsub.f32 %v4667_v17, %v19504_v47  ;;  %v19544_v3 = vand.u32 4294901760, %v4665_v50  ;;  %v19547_v7 = vsub.f32 %v4666_v1, %v19516_v0  ;;  %v4656_v17 = vld [vmem:[#allocation2 + $0x1d] sm:$0xff] }
 0x1a9   : > { %15964 = vmatpush3.msra.mxu1 %v19191_v48  ;;  %v19525_v27 = vpop.f32.mrf.mxu1  ;;  %15944 = vmatmul.mubr.f32.vlgmr.msra.gmra.mxu0 %v19203_v49  ;;  %v15497_v45 = vpop.f32.mrf.mxu0  ;;  %v19538_v48 = vand.u32 4294901760, %v19512_v40  ;;  %v4868_v62 = vand.u32 4294901760, %v4867_v57 }
 0x1aa   : > { %23715 = vst [vmem:[#allocation56_spill] sm:$0xff] %v19521_v28  ;;  %23716 = vst [vmem:[#allocation57_spill] sm:$0xff] %v19525_v27  ;;  %15965 = vmatprep.subr.mxu1 %v19207_v15  ;;  %15983 = vmatprep.subr.mxu0 %v19477_v53  ;;  %v19563_v5 = vand.u32 4294901760, %v19530_v34  ;;  %v19577_v42 = vand.u32 4294901760, %v19547_v7  ;;  %v19600_v27 = vsub.f32 %v4664_v36, %v19560_v30 }
 0x1ab   : > { %15924 = vmatprep.mubr.f32.mxu1 %v3942_v23  ;;  %15966 = vmatpush3.msra.mxu1 %v19207_v15  ;;  %v19549_v52 = vpop.f32.mrf.mxu0  ;;  %v19556_v15 = vand.u32 4294901760, %v4674_v33 }
 0x1ac   : > { %15984 = vmatpush3.msra.mxu0 %v19477_v53  ;;  %23717 = vst [vmem:[#allocation58_spill] sm:$0xff] %v19549_v52  ;;  %15925 = vmatmul.mubr.f32.gmra.mxu1 %v3952_v54  ;;  %v15478_v23 = vpop.f32.mrf.mxu1  ;;  %v4874_v54 = vsub.f32 %v19512_v40, %v19538_v48  ;;  %v4888_v36 = vsub.f32 %v19547_v7, %v19577_v42  ;;  %v4683_v52 = vsel %vm226_vm1, %v4657_v38, 0  ;;  %v4686_v38 = vsel %vm226_vm1, %v4658_v55, 0 }
 0x1ad   : > { %15967 = vmatprep.subr.mxu1 %v19234_v31  ;;  %15985 = vmatprep.subr.mxu0 %v19490_v13  ;;  %v19565_v6 = vadd.f32 %v15478_v23, %v1868_v51  ;;  %v4662_v51 = vld [vmem:[#allocation5 + $0x140] sm:$0xff]  ;;  %v19589_v23 = vsub.f32 %v4671_v18, %v19554_v8  ;;  %v19592_v57 = vsub.f32 %v4674_v33, %v19556_v15 }
 0x1ae   : > { %15946 = vmatprep.mubr.f32.mxu0 %v19248_v59  ;;  %15968 = vmatpush3.msra.mxu1 %v19234_v31  ;;  %v19572_v1 = vpop.f32.mrf.mxu1  ;;  %v19580_v31 = vsub.f32 %v4665_v50, %v19544_v3  ;;  %v4881_v50 = vsub.f32 %v19530_v34, %v19563_v5  ;;  %v4875_v33 = vand.u32 4294901760, %v4874_v54 }
 0x1af   : > { %23718 = vst [vmem:[#allocation59_spill] sm:$0xff] %v19565_v6  ;;  %15986 = vmatpush3.msra.mxu0 %v19490_v13  ;;  %23719 = vst [vmem:[#allocation60_spill] sm:$0xff] %v19572_v1  ;;  %15969 = vmatprep.subr.mxu1 %v19254_v20  ;;  %v4680_v1 = vsel %vm226_vm1, %v4656_v17, 0  ;;  %v19608_v17 = vand.u32 4294901760, %v4662_v51  ;;  %v23723_v55 = vand.u32 4294901760, %v19589_v23 }
 0x1b0   : > { %15947 = vmatmul.mubr.f32.gmra.mxu0 %v19261_v61  ;;  %v19582_v60 = vpop.f32.mrf.mxu0  ;;  %15987 = vmatprep.subr.mxu0 %v19504_v47  ;;  %v19614_v41 = vand.u32 4294901760, %v19580_v31  ;;  %v19616_v63 = vand.u32 4294901760, %v4680_v1 }
 0x1b1   : > { %15970 = vmatpush3.msra.mxu1 %v19254_v20  ;;  %15971 = vmatprep.mubr.f32.mxu1 %v19196_v26  ;;  %v19602_v20 = vand.u32 4294901760, %v4677_v46 }
 0x1b2   : > { %15988 = vmatpush3.msra.mxu0 %v19504_v47  ;;  %v19604_v18 = vpop.f32.mrf.mxu0  ;;  %15972 = vmatmul.mubr.f32.vlgmr.msra.gmra.mxu1 %v19203_v49  ;;  %v15525_v26 = vpop.f32.mrf.mxu1  ;;  %v19646_v54 = vsub.f32 %v4680_v1, %v19616_v63 }
 0x1b3   : > { %23720 = vst [vmem:[#allocation61_spill] sm:$0xff] %v19604_v18  ;;  %15989 = vmatprep.subr.mxu0 %v19516_v0  ;;  %16011 = vmatprep.subr.mxu1 %v4868_v62  ;;  %v19618_v35 = vadd.f32 %v15525_v26, %v15497_v45  ;;  %v19624_v18 = vsub.f32 %v4663_v21, %v19586_v2  ;;  %v4882_v45 = vand.u32 4294901760, %v4881_v50  ;;  %v19632_v26 = vand.u32 4294901760, %v19600_v27 }
 0x1b4   : > { %15949 = vmatprep.mubr.f32.mxu0 %v19298_v56  ;;  %15990 = vmatpush3.msra.mxu0 %v19516_v0  ;;  %v19627_v43 = vpop.f32.mrf.mxu1  ;;  %v19639_v21 = vsub.f32 %v4662_v51, %v19608_v17  ;;  %v4895_v50 = vsub.f32 %v19580_v31, %v19614_v41  ;;  %v4770_v51 = vsub.f32 %v19589_v23, %v23723_v55 }
 0x1b5   : > { %16012 = vmatpush3.msra.mxu1 %v4868_v62  ;;  %23721 = vst [vmem:[#allocation62_spill] sm:$0xff] %v19627_v43  ;;  %15950 = vmatmul.mubr.f32.gmra.mxu0 %v19314_v16  ;;  %v19635_v62 = vsub.f32 %v4677_v46, %v19602_v20  ;;  %v15503_v49 = vpop.f32.mrf.mxu0  ;;  %v19648_v46 = vand.u32 4294901760, %v4683_v52  ;;  %v4659_v43 = vld [vmem:[#allocation2 + $0x35] sm:$0xff]  ;;  %v19661_v1 = vand.u32 4294901760, %v19624_v18 }
 0x1b6   : > { %15991 = vmatprep.subr.mxu0 %v19544_v3  ;;  %16013 = vmatprep.subr.mxu1 %v4875_v33  ;;  %v4689_v24 = vsel %vm226_vm1, %v4659_v43, 0 }
 0x1b7   : > { %15974 = vmatprep.mubr.f32.mxu1 %v19248_v59  ;;  %15992 = vmatpush3.msra.mxu0 %v19544_v3  ;;  %v19650_v19 = vpop.f32.mrf.mxu0  ;;  %v4889_v59 = vand.u32 4294901760, %v4888_v36  ;;  %v4896_v36 = vand.u32 4294901760, %v4895_v50  ;;  %v4909_v43 = vsub.f32 %v19624_v18, %v19661_v1  ;;  %v23727_v25 = vand.u32 4294901760, %v19635_v62 }
 0x1b8   : > { %16014 = vmatpush3.msra.mxu1 %v4875_v33  ;;  %23722 = vst [vmem:[#allocation63_spill] sm:$0xff] %v19650_v19  ;;  %15993 = vmatprep.subr.mxu0 %v19560_v30  ;;  %v23724_v33 = vand.u32 4294901760, %v19592_v57  ;;  %v19667_v19 = vand.u32 4294901760, %v4686_v38  ;;  %v19696_v9 = vand.u32 4294901760, %v4689_v24 }
 0x1b9   : > { %15975 = vmatmul.mubr.f32.gmra.mxu1 %v19261_v61  ;;  %v15528_v12 = vpop.f32.mrf.mxu1  ;;  %16015 = vmatprep.subr.mxu1 %v4882_v45  ;;  %v4902_v61 = vsub.f32 %v19600_v27, %v19632_v26 }
 0x1ba   : > { %v4780_v14 = vsub.f32 %v19592_v57, %v23724_v33  ;;  %15952 = vmatprep.mubr.f32.mxu0 %v19343_v32  ;;  %v19670_v55 = vadd.f32 %v15528_v12, %v19582_v60  ;;  %15994 = vmatpush3.msra.mxu0 %v19560_v30  ;;  %v19674_v33 = vand.u32 4294901760, %v19639_v21  ;;  %v19683_v12 = vsub.f32 %v4683_v52, %v19648_v46 }
 0x1bb   : > { %16016 = vmatpush3.msra.mxu1 %v4882_v45  ;;  %v19677_v22 = vpop.f32.mrf.mxu1  ;;  %15953 = vmatmul.mubr.f32.gmra.mxu0 %v19356_v11  ;;  %v15506_v60 = vpop.f32.mrf.mxu0  ;;  %v4771_v45 = vand.u32 4294901760, %v4770_v51  ;;  %v4903_v50 = vand.u32 4294901760, %v4902_v61  ;;  %v4790_v52 = vsub.f32 %v19635_v62, %v23727_v25  ;;  %v19694_v37 = vsub.f32 %v4686_v38, %v19667_v19 }
 0x1bc   : > { %23725 = vst [vmem:[#allocation64_spill] sm:$0xff] %v19674_v33  ;;  %23726 = vst [vmem:[#allocation65_spill] sm:$0xff] %v19677_v22  ;;  %15995 = vmatprep.subr.mxu0 %v19586_v2  ;;  %16017 = vmatprep.subr.mxu1 %v4889_v59  ;;  %v4781_v10 = vand.u32 4294901760, %v4780_v14  ;;  %v4692_v22 = vsel %vm226_vm1, %v4660_v4, 0  ;;  %v4916_v4 = vsub.f32 %v19639_v21, %v19674_v33  ;;  %v23729_v25 = vand.u32 4294901760, %v19646_v54 }
 0x1bd   : > { %15977 = vmatprep.mubr.f32.mxu1 %v19298_v56  ;;  %15996 = vmatpush3.msra.mxu0 %v19586_v2  ;;  %v19698_v56 = vpop.f32.mrf.mxu0  ;;  %v19709_v51 = vand.u32 4294901760, %v4692_v22  ;;  %v4791_v6 = vand.u32 4294901760, %v4790_v52  ;;  %v4819_v28 = vand.u32 4294901760, %v19694_v37  ;;  %v19715_v33 = vsub.f32 %v4689_v24, %v19696_v9 }
 0x1be   : > { %16018 = vmatpush3.msra.mxu1 %v4889_v59  ;;  %23728 = vst [vmem:[#allocation66_spill] sm:$0xff] %v19698_v56  ;;  %15997 = vmatprep.subr.mxu0 %v19608_v17  ;;  %v4800_v38 = vsub.f32 %v19646_v54, %v23729_v25  ;;  %v4809_v59 = vand.u32 4294901760, %v19683_v12 }
 0x1bf   : > { %15978 = vmatmul.mubr.f32.gmra.mxu1 %v19314_v16  ;;  %v15531_v14 = vpop.f32.mrf.mxu1  ;;  %16019 = vmatprep.subr.mxu1 %v4896_v36  ;;  %v4910_v16 = vand.u32 4294901760, %v4909_v43  ;;  %v19725_v43 = vsub.f32 %v4692_v22, %v19709_v51 }
 0x1c0   : > { %15998 = vmatpush3.msra.mxu0 %v19608_v17  ;;  %v2324_v61 = vadd.f32 %v15531_v14, %v15503_v49  ;;  %15999 = vmatprep.mubr.f32.mxu0 %v4771_v45  ;;  %v4917_v45 = vand.u32 4294901760, %v4916_v4 }
 0x1c1   : > { %16020 = vmatpush3.msra.mxu1 %v4896_v36  ;;  %v19711_v56 = vpop.f32.mrf.mxu1  ;;  %16000 = vmatmul.mubr.f32.vlgmr.msra.gmra.mxu0 %v4781_v10  ;;  %v15553_v58 = vpop.f32.mrf.mxu0  ;;  %v4801_v36 = vand.u32 4294901760, %v4800_v38  ;;  %v4810_v10 = vsub.f32 %v19683_v12, %v4809_v59 }
 0x1c2   : > { %23730 = vst [vmem:[#allocation67_spill] sm:$0xff] %v19711_v56  ;;  %16021 = vmatprep.subr.mxu1 %v4903_v50  ;;  %16039 = vmatprep.subr.mxu0 %v19497_v44  ;;  %v2431_v49 = vadd.f32 %v15553_v58, %v19618_v35  ;;  %v4820_v35 = vsub.f32 %v19694_v37, %v4819_v28  ;;  %v4829_v58 = vand.u32 4294901760, %v19715_v33 }
 0x1c3   : > { %15980 = vmatprep.mubr.f32.mxu1 %v19343_v32  ;;  %16022 = vmatpush3.msra.mxu1 %v4903_v50  ;;  %v19727_v24 = vpop.f32.mrf.mxu0  ;;  %v4839_v50 = vand.u32 4294901760, %v19725_v43 }
 0x1c4   : > { %16040 = vmatpush3.msra.mxu0 %v19497_v44  ;;  %23731 = vst [vmem:[#allocation68_spill] sm:$0xff] %v19727_v24  ;;  %15981 = vmatmul.mubr.f32.gmra.mxu1 %v19356_v11  ;;  %v15534_v32 = vpop.f32.mrf.mxu1  ;;  %v4811_v11 = vand.u32 4294901760, %v4810_v10 }
 0x1c5   : > { %16023 = vmatprep.subr.mxu1 %v4910_v16  ;;  %16041 = vmatprep.subr.mxu0 %v19512_v40  ;;  %v2336_v44 = vadd.f32 %v15534_v32, %v15506_v60  ;;  %v4821_v60 = vand.u32 4294901760, %v4820_v35 }
 0x1c6   : > { %16002 = vmatprep.mubr.f32.mxu0 %v4791_v6  ;;  %16024 = vmatpush3.msra.mxu1 %v4910_v16  ;;  %v19736_v22 = vpop.f32.mrf.mxu1 }
 0x1c7   : > { %16042 = vmatpush3.msra.mxu0 %v19512_v40  ;;  %23732 = vst [vmem:[#allocation69_spill] sm:$0xff] %v19736_v22  ;;  %16025 = vmatprep.subr.mxu1 %v4917_v45  ;;  %v4830_v40 = vsub.f32 %v19715_v33, %v4829_v58 }
 0x1c8   : > { %16003 = vmatmul.mubr.f32.gmra.mxu0 %v4801_v36  ;;  %v15556_v52 = vpop.f32.mrf.mxu0  ;;  %16043 = vmatprep.subr.mxu0 %v19530_v34 }
 0x1c9   : > { %16026 = vmatpush3.msra.mxu1 %v4917_v45  ;;  %v2445_v6 = vadd.f32 %v15556_v52, %v19670_v55  ;;  %16027 = vmatprep.mubr.f32.mxu1 %v19554_v8  ;;  %v4840_v55 = vsub.f32 %v19725_v43, %v4839_v50  ;;  %v4831_v38 = vand.u32 4294901760, %v4830_v40 }
 0x1ca   : > { %16044 = vmatpush3.msra.mxu0 %v19530_v34  ;;  %v19746_v4 = vpop.f32.mrf.mxu0  ;;  %16028 = vmatmul.mubr.f32.vlgmr.msra.gmra.mxu1 %v19556_v15  ;;  %v15581_v14 = vpop.f32.mrf.mxu1 }
 0x1cb   : > { %23733 = vst [vmem:[#allocation70_spill] sm:$0xff] %v19746_v4  ;;  %16045 = vmatprep.subr.mxu0 %v19547_v7  ;;  %16067 = vmatprep.subr.mxu1 %v19477_v53  ;;  %v2562_v34 = vadd.f32 %v15581_v14, %v2431_v49  ;;  %v4841_v49 = vand.u32 4294901760, %v4840_v55  ;;  %v23741_v55 = vand.u32 4294901760, %v19589_v23 }
 0x1cc   : > { %16005 = vmatprep.mubr.f32.mxu0 %v4811_v11  ;;  %16046 = vmatpush3.msra.mxu0 %v19547_v7  ;;  %v19756_v25 = vpop.f32.mrf.mxu1 }
 0x1cd   : > { %16068 = vmatpush3.msra.mxu1 %v19477_v53  ;;  %23734 = vst [vmem:[#allocation71_spill] sm:$0xff] %v19756_v25  ;;  %16006 = vmatmul.mubr.f32.gmra.mxu0 %v4821_v60  ;;  %v15559_v16 = vpop.f32.mrf.mxu0 }
 0x1ce   : > { %16047 = vmatprep.subr.mxu0 %v19580_v31  ;;  %16069 = vmatprep.subr.mxu1 %v19490_v13  ;;  %v2459_v36 = vadd.f32 %v15559_v16, %v2324_v61 }
 0x1cf   : > { %16030 = vmatprep.mubr.f32.mxu1 %v19602_v20  ;;  %16048 = vmatpush3.msra.mxu0 %v19580_v31  ;;  %v19763_v7 = vpop.f32.mrf.mxu0 }
 0x1d0   : > { %16070 = vmatpush3.msra.mxu1 %v19490_v13  ;;  %23735 = vst [vmem:[#allocation72_spill] sm:$0xff] %v19763_v7  ;;  %16049 = vmatprep.subr.mxu0 %v19600_v27 }
 0x1d1   : > { %16031 = vmatmul.mubr.f32.gmra.mxu1 %v19616_v63  ;;  %v15584_v45 = vpop.f32.mrf.mxu1  ;;  %16071 = vmatprep.subr.mxu1 %v19504_v47 }
 0x1d2   : > { %16008 = vmatprep.mubr.f32.mxu0 %v4831_v38  ;;  %v2578_v10 = vadd.f32 %v15584_v45, %v2445_v6  ;;  %16050 = vmatpush3.msra.mxu0 %v19600_v27 }
 0x1d3   : > { %16072 = vmatpush3.msra.mxu1 %v19504_v47  ;;  %v19770_v61 = vpop.f32.mrf.mxu1  ;;  %16009 = vmatmul.mubr.f32.gmra.mxu0 %v4841_v49  ;;  %v15562_v31 = vpop.f32.mrf.mxu0  ;;  %v23745_v49 = vand.u32 4294901760, %v19635_v62 }
 0x1d4   : > { %23736 = vst [vmem:[#allocation73_spill] sm:$0xff] %v19770_v61  ;;  %16051 = vmatprep.subr.mxu0 %v19624_v18  ;;  %16073 = vmatprep.subr.mxu1 %v19516_v0  ;;  %v2473_v32 = vadd.f32 %v15562_v31, %v2336_v44  ;;  %v23747_v31 = vand.u32 4294901760, %v19646_v54  ;;  %v5547_v61 = vld [vmem:[#allocation2 + $0x3e] sm:$0xff] }
 0x1d5   : > { %16033 = vmatprep.mubr.f32.mxu1 %v19648_v46  ;;  %16052 = vmatpush3.msra.mxu0 %v19624_v18  ;;  %v19777_v35 = vpop.f32.mrf.mxu0 }
 0x1d6   : > { %16074 = vmatpush3.msra.mxu1 %v19516_v0  ;;  %23737 = vst [vmem:[#allocation74_spill] sm:$0xff] %v19777_v35  ;;  %16053 = vmatprep.subr.mxu0 %v19639_v21 }
 0x1d7   : > { %16034 = vmatmul.mubr.f32.gmra.mxu1 %v19667_v19  ;;  %v15587_v27 = vpop.f32.mrf.mxu1  ;;  %16075 = vmatprep.subr.mxu1 %v19544_v3 }
 0x1d8   : > { %16054 = vmatpush3.msra.mxu0 %v19639_v21  ;;  %v2594_v11 = vadd.f32 %v15587_v27, %v2459_v36  ;;  %16055 = vmatprep.mubr.f32.mxu0 %v19589_v23  ;;  %v5556_v23 = vld [vmem:[#allocation5 + $0x1b8] sm:$0xff]  ;;  %v23749_v27 = vld [vmem:[#allocation53_spill] sm:$0xff] }
 0x1d9   : > { %16076 = vmatpush3.msra.mxu1 %v19544_v3  ;;  %v19785_v44 = vpop.f32.mrf.mxu1  ;;  %16056 = vmatmul.mubr.f32.vlgmr.msra.gmra.mxu0 %v19592_v57  ;;  %v15609_v18 = vpop.f32.mrf.mxu0 }
 0x1da   : > { %23738 = vst [vmem:[#allocation75_spill] sm:$0xff] %v19785_v44  ;;  %16077 = vmatprep.subr.mxu1 %v19560_v30  ;;  %16095 = vmatprep.subr.mxu0 %v19519_v29  ;;  %v2711_v52 = vadd.f32 %v15609_v18, %v2562_v34 }
 0x1db   : > { %16036 = vmatprep.mubr.f32.mxu1 %v19696_v9  ;;  %16078 = vmatpush3.msra.mxu1 %v19560_v30  ;;  %v19793_v21 = vpop.f32.mrf.mxu0 }
 0x1dc   : > { %16096 = vmatpush3.msra.mxu0 %v19519_v29  ;;  %23739 = vst [vmem:[#allocation76_spill] sm:$0xff] %v19793_v21  ;;  %16037 = vmatmul.mubr.f32.gmra.mxu1 %v19709_v51  ;;  %v15590_v6 = vpop.f32.mrf.mxu1 }
 0x1dd   : > { %16079 = vmatprep.subr.mxu1 %v19586_v2  ;;  %16097 = vmatprep.subr.mxu0 %v19538_v48  ;;  %v2610_v60 = vadd.f32 %v15590_v6, %v2473_v32 }
 0x1de   : > { %16058 = vmatprep.mubr.f32.mxu0 %v19635_v62  ;;  %16080 = vmatpush3.msra.mxu1 %v19586_v2  ;;  %v19801_v40 = vpop.f32.mrf.mxu1 }
 0x1df   : > { %16098 = vmatpush3.msra.mxu0 %v19538_v48  ;;  %23740 = vst [vmem:[#allocation77_spill] sm:$0xff] %v19801_v40  ;;  %16081 = vmatprep.subr.mxu1 %v19608_v17  ;;  %v23743_v48 = vand.u32 4294901760, %v19592_v57 }
 0x1e0   : > { %16059 = vmatmul.mubr.f32.gmra.mxu0 %v19646_v54  ;;  %v15612_v29 = vpop.f32.mrf.mxu0  ;;  %16099 = vmatprep.subr.mxu0 %v19563_v5 }
 0x1e1   : > { %16082 = vmatpush3.msra.mxu1 %v19608_v17  ;;  %v2723_v14 = vadd.f32 %v15612_v29, %v2578_v10  ;;  %16083 = vmatprep.mubr.f32.mxu1 %v23741_v55  ;;  %v23752_v29 = vld [vmem:[#allocation64_spill] sm:$0xff] }
 0x1e2   : > { %16100 = vmatpush3.msra.mxu0 %v19563_v5  ;;  %v19810_v34 = vpop.f32.mrf.mxu0  ;;  %16084 = vmatmul.mubr.f32.vlgmr.msra.gmra.mxu1 %v23743_v48  ;;  %v15637_v38 = vpop.f32.mrf.mxu1 }
 0x1e3   : > { %23742 = vst [vmem:[#allocation78_spill] sm:$0xff] %v19810_v34  ;;  %16101 = vmatprep.subr.mxu0 %v19577_v42  ;;  %16123 = vmatprep.subr.mxu1 %v19477_v53  ;;  %v2832_v16 = vadd.f32 %v15637_v38, %v2711_v52 }
 0x1e4   : > { %16061 = vmatprep.mubr.f32.mxu0 %v19683_v12  ;;  %16102 = vmatpush3.msra.mxu0 %v19577_v42  ;;  %v19819_v36 = vpop.f32.mrf.mxu1  ;;  %v5555_v42 = vld [vmem:[#allocation5 + $0x1b0] sm:$0xff] }
 0x1e5   : > { %16124 = vmatpush3.msra.mxu1 %v19477_v53  ;;  %23744 = vst [vmem:[#allocation79_spill] sm:$0xff] %v19819_v36  ;;  %16062 = vmatmul.mubr.f32.gmra.mxu0 %v19694_v37  ;;  %v19824_v5 = vadd.f32 %v2832_v16, %v19464_v39  ;;  %v15615_v57 = vpop.f32.mrf.mxu0  ;;  %v19831_v53 = vand.u32 4294901760, %v5556_v23  ;;  %v5540_v12 = vld [vmem:[#allocation2 + $0x6] sm:$0xff] }
 0x1e6   : > { %16103 = vmatprep.subr.mxu0 %v19614_v41  ;;  %16125 = vmatprep.subr.mxu1 %v19490_v13  ;;  %v2735_v45 = vadd.f32 %v15615_v57, %v2594_v11  ;;  %v5552_v37 = vld [vmem:[#allocation5 + $0x198] sm:$0xff]  ;;  %v5558_v38 = vsel %vm226_vm1, %v5540_v12, 0 }
 0x1e7   : > { %16086 = vmatprep.mubr.f32.mxu1 %v23745_v49  ;;  %16104 = vmatpush3.msra.mxu0 %v19614_v41  ;;  %v19833_v10 = vpop.f32.mrf.mxu0  ;;  %v5554_v41 = vld [vmem:[#allocation5 + $0x1a8] sm:$0xff]  ;;  %v19849_v54 = vsub.f32 %v5556_v23, %v19831_v53  ;;  %v23754_v23 = vld [vmem:[#allocation56_spill] sm:$0xff] }
 0x1e8   : > { %16126 = vmatpush3.msra.mxu1 %v19490_v13  ;;  %23746 = vst [vmem:[#allocation80_spill] sm:$0xff] %v19833_v10  ;;  %16105 = vmatprep.subr.mxu0 %v19632_v26  ;;  %v19842_v13 = vand.u32 4294901760, %v5555_v42  ;;  %v19859_v52 = vand.u32 4294901760, %v5554_v41 }
 0x1e9   : > { %16087 = vmatmul.mubr.f32.gmra.mxu1 %v23747_v31  ;;  %v15640_v39 = vpop.f32.mrf.mxu1  ;;  %16127 = vmatprep.subr.mxu1 %v19504_v47  ;;  %v19900_v31 = vand.u32 4294901760, %v5552_v37 }
 0x1ea   : > { %16064 = vmatprep.mubr.f32.mxu0 %v19715_v33  ;;  %v2844_v62 = vadd.f32 %v15640_v39, %v2723_v14  ;;  %16106 = vmatpush3.msra.mxu0 %v19632_v26  ;;  %v19867_v14 = vsub.f32 %v5555_v42, %v19842_v13  ;;  %v19883_v48 = vsub.f32 %v5554_v41, %v19859_v52  ;;  %v19910_v33 = vand.u32 4294901760, %v5558_v38 }
 0x1eb   : > { %16128 = vmatpush3.msra.mxu1 %v19504_v47  ;;  %v19844_v32 = vpop.f32.mrf.mxu1  ;;  %16065 = vmatmul.mubr.f32.gmra.mxu0 %v19725_v43  ;;  %v15618_v18 = vpop.f32.mrf.mxu0  ;;  %v5553_v47 = vld [vmem:[#allocation5 + $0x1a0] sm:$0xff] }
 0x1ec   : > { %23748 = vst [vmem:[#allocation81_spill] sm:$0xff] %v19844_v32  ;;  %16107 = vmatprep.subr.mxu0 %v19661_v1  ;;  %v19852_v11 = vadd.f32 %v2844_v62, %v23749_v27  ;;  %16129 = vmatprep.subr.mxu1 %v19516_v0  ;;  %v2747_v26 = vadd.f32 %v15618_v18, %v2610_v60  ;;  %v5542_v62 = vld [vmem:[#allocation2 + $0x16] sm:$0xff]  ;;  %v19919_v18 = vand.u32 4294901760, %v19883_v48 }
 0x1ed   : > { %16089 = vmatprep.mubr.f32.mxu1 %v4809_v59  ;;  %16108 = vmatpush3.msra.mxu0 %v19661_v1  ;;  %v19861_v6 = vpop.f32.mrf.mxu0  ;;  %v5541_v59 = vld [vmem:[#allocation2 + $0xe] sm:$0xff]  ;;  %v19874_v1 = vand.u32 4294901760, %v19849_v54  ;;  %v5564_v12 = vsel %vm226_vm1, %v5542_v62, 0 }
 0x1ee   : > { %23750 = vst [vmem:[#allocation53_spill] sm:$0xff] %v19852_v11  ;;  %16130 = vmatpush3.msra.mxu1 %v19516_v0  ;;  %23751 = vst [vmem:[#allocation82_spill] sm:$0xff] %v19861_v6  ;;  %16109 = vmatprep.subr.mxu0 %v23752_v29  ;;  %v19871_v0 = vand.u32 4294901760, %v5553_v47  ;;  %v5561_v16 = vsel %vm226_vm1, %v5541_v59, 0  ;;  %v5544_v6 = vld [vmem:[#allocation2 + $0x26] sm:$0xff] }
 0x1ef   : > { %16090 = vmatmul.mubr.f32.gmra.mxu1 %v4819_v28  ;;  %v15643_v55 = vpop.f32.mrf.mxu1  ;;  %16131 = vmatprep.subr.mxu1 %v19544_v3  ;;  %v5754_v42 = vsub.f32 %v19849_v54, %v19874_v1  ;;  %v5570_v36 = vsel %vm226_vm1, %v5544_v6, 0 }
 0x1f0   : > { %16110 = vmatpush3.msra.mxu0 %v23752_v29  ;;  %v2856_v60 = vadd.f32 %v15643_v55, %v2735_v45  ;;  %16111 = vmatprep.mubr.f32.mxu0 %v19554_v8  ;;  %v5551_v45 = vld [vmem:[#allocation5 + $0x190] sm:$0xff]  ;;  %v19903_v39 = vsub.f32 %v5553_v47, %v19871_v0  ;;  %v5550_v47 = vld [vmem:[#allocation5 + $0x188] sm:$0xff] }
 0x1f1   : > { %16132 = vmatpush3.msra.mxu1 %v19544_v3  ;;  %v19878_v28 = vpop.f32.mrf.mxu1  ;;  %16112 = vmatmul.mubr.f32.vlgmr.msra.gmra.mxu0 %v19556_v15  ;;  %v15665_v49 = vpop.f32.mrf.mxu0  ;;  %v19894_v3 = vand.u32 4294901760, %v19867_v14  ;;  %v19916_v27 = vand.u32 4294901760, %v5551_v45  ;;  %v5543_v29 = vld [vmem:[#allocation2 + $0x1e] sm:$0xff]  ;;  %v5755_v55 = vand.u32 4294901760, %v5754_v42  ;;  %v19943_v62 = vand.u32 4294901760, %v5550_v47 }
 0x1f2   : > { %23753 = vst [vmem:[#allocation64_spill] sm:$0xff] %v19878_v28  ;;  %16133 = vmatprep.subr.mxu1 %v19560_v30  ;;  %v19888_v57 = vadd.f32 %v2856_v60, %v23754_v23  ;;  %16151 = vmatprep.subr.mxu0 %v19831_v53  ;;  %v19931_v60 = vand.u32 4294901760, %v19903_v39  ;;  %v23758_v23 = vld [vmem:[#allocation59_spill] sm:$0xff]  ;;  %v19946_v42 = vsub.f32 %v5558_v38, %v19910_v33 }
 0x1f3   : > { %16092 = vmatprep.mubr.f32.mxu1 %v4829_v58  ;;  %16134 = vmatpush3.msra.mxu1 %v19560_v30  ;;  %v19905_v41 = vpop.f32.mrf.mxu0  ;;  %v19912_v30 = vand.u32 4294901760, %v5561_v16  ;;  %v19981_v10 = vsub.f32 %v5550_v47, %v19943_v62 }
 0x1f4   : > { %23755 = vst [vmem:[#allocation56_spill] sm:$0xff] %v19888_v57  ;;  %16152 = vmatpush3.msra.mxu0 %v19831_v53  ;;  %23756 = vst [vmem:[#allocation83_spill] sm:$0xff] %v19905_v41  ;;  %16093 = vmatmul.mubr.f32.gmra.mxu1 %v4839_v50  ;;  %v15646_v58 = vpop.f32.mrf.mxu1  ;;  %v5761_v50 = vsub.f32 %v19867_v14, %v19894_v3 }
 0x1f5   : > { %16135 = vmatprep.subr.mxu1 %v19586_v2  ;;  %16153 = vmatprep.subr.mxu0 %v19842_v13  ;;  %v2868_v43 = vadd.f32 %v15646_v58, %v2747_v26  ;;  %v5549_v26 = vld [vmem:[#allocation5 + $0x180] sm:$0xff] }
 0x1f6   : > { %16114 = vmatprep.mubr.f32.mxu0 %v19602_v20  ;;  %16136 = vmatpush3.msra.mxu1 %v19586_v2  ;;  %v19926_v59 = vpop.f32.mrf.mxu1  ;;  %v19934_v2 = vsub.f32 %v5552_v37, %v19900_v31  ;;  %v5567_v37 = vsel %vm226_vm1, %v5543_v29, 0  ;;  %v19965_v29 = vand.u32 4294901760, %v5549_v26 }
 0x1f7   : > { %16154 = vmatpush3.msra.mxu0 %v19842_v13  ;;  %23757 = vst [vmem:[#allocation84_spill] sm:$0xff] %v19926_v59  ;;  %16137 = vmatprep.subr.mxu1 %v19608_v17  ;;  %v19937_v58 = vadd.f32 %v2868_v43, %v23758_v23  ;;  %v19949_v59 = vsub.f32 %v5561_v16, %v19912_v30  ;;  %v5762_v16 = vand.u32 4294901760, %v5761_v50  ;;  %v19973_v32 = vand.u32 4294901760, %v5567_v37 }
 0x1f8   : > { %16115 = vmatmul.mubr.f32.gmra.mxu0 %v19616_v63  ;;  %v19939_v41 = vpop.f32.mrf.mxu0  ;;  %16155 = vmatprep.subr.mxu0 %v19859_v52  ;;  %v5768_v43 = vsub.f32 %v19883_v48, %v19919_v18  ;;  %v19957_v23 = vsub.f32 %v5551_v45, %v19916_v27  ;;  %v5775_v45 = vsub.f32 %v19903_v39, %v19931_v60  ;;  %v19971_v28 = vand.u32 4294901760, %v19934_v2 }
 0x1f9   : > { %23759 = vst [vmem:[#allocation59_spill] sm:$0xff] %v19937_v58  ;;  %16138 = vmatpush3.msra.mxu1 %v19608_v17  ;;  %16139 = vmatprep.mubr.f32.mxu1 %v19554_v8  ;;  %v19959_v17 = vand.u32 4294901760, %v5564_v12  ;;  %v19996_v47 = vsub.f32 %v5549_v26, %v19965_v29  ;;  %v20003_v50 = vsub.f32 %v5567_v37, %v19973_v32  ;;  %v23763_v26 = vand.u32 4294901760, %v19946_v42 }
 0x1fa   : > { %16156 = vmatpush3.msra.mxu0 %v19859_v52  ;;  %v19961_v38 = vpop.f32.mrf.mxu0  ;;  %16140 = vmatmul.mubr.f32.vlgmr.msra.gmra.mxu1 %v19556_v15  ;;  %v15693_v8 = vpop.f32.mrf.mxu1  ;;  %v20018_v37 = vand.u32 4294901760, %v19981_v10 }
 0x1fb   : > { %23760 = vst [vmem:[#allocation85_spill] sm:$0xff] %v19961_v38  ;;  %16157 = vmatprep.subr.mxu0 %v19871_v0  ;;  %16179 = vmatprep.subr.mxu1 %v5755_v55  ;;  %v5545_v38 = vld [vmem:[#allocation2 + $0x2e] sm:$0xff]  ;;  %v19975_v40 = vadd.f32 %v15693_v8, %v15665_v49  ;;  %v5769_v49 = vand.u32 4294901760, %v5768_v43  ;;  %v19989_v8 = vand.u32 4294901760, %v19957_v23  ;;  %v5782_v43 = vsub.f32 %v19934_v2, %v19971_v28 }
 0x1fc   : > { %16117 = vmatprep.mubr.f32.mxu0 %v19648_v46  ;;  %16158 = vmatpush3.msra.mxu0 %v19871_v0  ;;  %v19984_v34 = vpop.f32.mrf.mxu1  ;;  %v5573_v6 = vsel %vm226_vm1, %v5545_v38, 0  ;;  %v5657_v38 = vsub.f32 %v19946_v42, %v23763_v26 }
 0x1fd   : > { %16180 = vmatpush3.msra.mxu1 %v5755_v55  ;;  %23761 = vst [vmem:[#allocation86_spill] sm:$0xff] %v19984_v34  ;;  %16118 = vmatmul.mubr.f32.gmra.mxu0 %v19667_v19  ;;  %v19992_v55 = vsub.f32 %v5564_v12, %v19959_v17  ;;  %v15671_v15 = vpop.f32.mrf.mxu0  ;;  %v20005_v12 = vand.u32 4294901760, %v5570_v36  ;;  %v5546_v34 = vld [vmem:[#allocation2 + $0x36] sm:$0xff] }
 0x1fe   : > { %16159 = vmatprep.subr.mxu0 %v19900_v31  ;;  %16181 = vmatprep.subr.mxu1 %v5762_v16  ;;  %v5576_v22 = vsel %vm226_vm1, %v5546_v34, 0  ;;  %v5796_v34 = vsub.f32 %v19981_v10, %v20018_v37 }
 0x1ff   : > { %16142 = vmatprep.mubr.f32.mxu1 %v19602_v20  ;;  %16160 = vmatpush3.msra.mxu0 %v19900_v31  ;;  %v20007_v35 = vpop.f32.mrf.mxu0  ;;  %v5776_v20 = vand.u32 4294901760, %v5775_v45  ;;  %v5783_v45 = vand.u32 4294901760, %v5782_v43  ;;  %v23767_v25 = vand.u32 4294901760, %v19992_v55  ;;  %v20053_v56 = vand.u32 4294901760, %v5576_v22 }
 0x200   : > { %16182 = vmatpush3.msra.mxu1 %v5762_v16  ;;  %23762 = vst [vmem:[#allocation87_spill] sm:$0xff] %v20007_v35  ;;  %16161 = vmatprep.subr.mxu0 %v19916_v27  ;;  %v23764_v16 = vand.u32 4294901760, %v19949_v59  ;;  %v20024_v35 = vand.u32 4294901760, %v5573_v6 }
 0x201   : > { %16143 = vmatmul.mubr.f32.gmra.mxu1 %v19616_v63  ;;  %v15696_v44 = vpop.f32.mrf.mxu1  ;;  %16183 = vmatprep.subr.mxu1 %v5769_v49  ;;  %v5789_v63 = vsub.f32 %v19957_v23, %v19989_v8 }
 0x202   : > { %v5667_v21 = vsub.f32 %v19949_v59, %v23764_v16  ;;  %16120 = vmatprep.mubr.f32.mxu0 %v19696_v9  ;;  %v20027_v26 = vadd.f32 %v15696_v44, %v19939_v41  ;;  %16162 = vmatpush3.msra.mxu0 %v19916_v27  ;;  %v20031_v16 = vand.u32 4294901760, %v19996_v47  ;;  %v20040_v44 = vsub.f32 %v5570_v36, %v20005_v12 }
 0x203   : > { %16184 = vmatpush3.msra.mxu1 %v5769_v49  ;;  %v20034_v7 = vpop.f32.mrf.mxu1  ;;  %16121 = vmatmul.mubr.f32.gmra.mxu0 %v19709_v51  ;;  %v15674_v41 = vpop.f32.mrf.mxu0  ;;  %v5658_v49 = vand.u32 4294901760, %v5657_v38  ;;  %v5790_v43 = vand.u32 4294901760, %v5789_v63  ;;  %v5677_v36 = vsub.f32 %v19992_v55, %v23767_v25  ;;  %v20051_v24 = vsub.f32 %v5573_v6, %v20024_v35 }
 0x204   : > { %23765 = vst [vmem:[#allocation88_spill] sm:$0xff] %v20031_v16  ;;  %23766 = vst [vmem:[#allocation89_spill] sm:$0xff] %v20034_v7  ;;  %16163 = vmatprep.subr.mxu0 %v19943_v62  ;;  %16185 = vmatprep.subr.mxu1 %v5776_v20  ;;  %v5668_v4 = vand.u32 4294901760, %v5667_v21  ;;  %v5579_v7 = vsel %vm226_vm1, %v5547_v61, 0  ;;  %v5803_v61 = vsub.f32 %v19996_v47, %v20031_v16  ;;  %v23769_v25 = vand.u32 4294901760, %v20003_v50 }
 0x205   : > { %16145 = vmatprep.mubr.f32.mxu1 %v19648_v46  ;;  %16164 = vmatpush3.msra.mxu0 %v19943_v62  ;;  %v20055_v46 = vpop.f32.mrf.mxu0  ;;  %v20066_v38 = vand.u32 4294901760, %v5579_v7  ;;  %v5678_v58 = vand.u32 4294901760, %v5677_v36  ;;  %v5706_v57 = vand.u32 4294901760, %v20051_v24  ;;  %v20072_v16 = vsub.f32 %v5576_v22, %v20053_v56 }
 0x206   : > { %16186 = vmatpush3.msra.mxu1 %v5776_v20  ;;  %23768 = vst [vmem:[#allocation90_spill] sm:$0xff] %v20055_v46  ;;  %16165 = vmatprep.subr.mxu0 %v19965_v29  ;;  %v5687_v6 = vsub.f32 %v20003_v50, %v23769_v25  ;;  %v5696_v20 = vand.u32 4294901760, %v20040_v44 }
 0x207   : > { %16146 = vmatmul.mubr.f32.gmra.mxu1 %v19667_v19  ;;  %v15699_v21 = vpop.f32.mrf.mxu1  ;;  %16187 = vmatprep.subr.mxu1 %v5783_v45  ;;  %v5797_v19 = vand.u32 4294901760, %v5796_v34  ;;  %v20082_v34 = vsub.f32 %v5579_v7, %v20066_v38 }
 0x208   : > { %16166 = vmatpush3.msra.mxu0 %v19965_v29  ;;  %v3211_v63 = vadd.f32 %v15699_v21, %v15671_v15  ;;  %16167 = vmatprep.mubr.f32.mxu0 %v5658_v49  ;;  %v5804_v49 = vand.u32 4294901760, %v5803_v61 }
 0x209   : > { %16188 = vmatpush3.msra.mxu1 %v5783_v45  ;;  %v20068_v46 = vpop.f32.mrf.mxu1  ;;  %16168 = vmatmul.mubr.f32.vlgmr.msra.gmra.mxu0 %v5668_v4  ;;  %v15721_v11 = vpop.f32.mrf.mxu0  ;;  %v5688_v45 = vand.u32 4294901760, %v5687_v6  ;;  %v5697_v4 = vsub.f32 %v20040_v44, %v5696_v20 }
 0x20a   : > { %23770 = vst [vmem:[#allocation91_spill] sm:$0xff] %v20068_v46  ;;  %16189 = vmatprep.subr.mxu1 %v5790_v43  ;;  %16207 = vmatprep.subr.mxu0 %v19849_v54  ;;  %v3318_v15 = vadd.f32 %v15721_v11, %v19975_v40  ;;  %v5707_v40 = vsub.f32 %v20051_v24, %v5706_v57 }
 0x20b   : > { %16148 = vmatprep.mubr.f32.mxu1 %v19696_v9  ;;  %16190 = vmatpush3.msra.mxu1 %v5790_v43  ;;  %v20084_v22 = vpop.f32.mrf.mxu0  ;;  %v5726_v43 = vand.u32 4294901760, %v20082_v34 }
 0x20c   : > { %16208 = vmatpush3.msra.mxu0 %v19849_v54  ;;  %23771 = vst [vmem:[#allocation92_spill] sm:$0xff] %v20084_v22  ;;  %16149 = vmatmul.mubr.f32.gmra.mxu1 %v19709_v51  ;;  %v15702_v9 = vpop.f32.mrf.mxu1  ;;  %v5716_v54 = vand.u32 4294901760, %v20072_v16  ;;  %v5698_v51 = vand.u32 4294901760, %v5697_v4 }
 0x20d   : > { %16191 = vmatprep.subr.mxu1 %v5797_v19  ;;  %16209 = vmatprep.subr.mxu0 %v19867_v14  ;;  %v3223_v11 = vadd.f32 %v15702_v9, %v15674_v41  ;;  %v5708_v41 = vand.u32 4294901760, %v5707_v40 }
 0x20e   : > { %16170 = vmatprep.mubr.f32.mxu0 %v5678_v58  ;;  %16192 = vmatpush3.msra.mxu1 %v5797_v19  ;;  %v20093_v7 = vpop.f32.mrf.mxu1 }
 0x20f   : > { %16210 = vmatpush3.msra.mxu0 %v19867_v14  ;;  %23772 = vst [vmem:[#allocation93_spill] sm:$0xff] %v20093_v7  ;;  %16193 = vmatprep.subr.mxu1 %v5804_v49  ;;  %v5717_v14 = vsub.f32 %v20072_v16, %v5716_v54 }
 0x210   : > { %16171 = vmatmul.mubr.f32.gmra.mxu0 %v5688_v45  ;;  %v15724_v36 = vpop.f32.mrf.mxu0  ;;  %16211 = vmatprep.subr.mxu0 %v19883_v48 }
 0x211   : > { %16194 = vmatpush3.msra.mxu1 %v5804_v49  ;;  %v3332_v58 = vadd.f32 %v15724_v36, %v20027_v26  ;;  %16195 = vmatprep.mubr.f32.mxu1 %v19910_v33  ;;  %v5727_v26 = vsub.f32 %v20082_v34, %v5726_v43  ;;  %v5718_v6 = vand.u32 4294901760, %v5717_v14 }
 0x212   : > { %16212 = vmatpush3.msra.mxu0 %v19883_v48  ;;  %v20103_v61 = vpop.f32.mrf.mxu0  ;;  %16196 = vmatmul.mubr.f32.vlgmr.msra.gmra.mxu1 %v19912_v30  ;;  %v15749_v21 = vpop.f32.mrf.mxu1 }
 0x213   : > { %23773 = vst [vmem:[#allocation94_spill] sm:$0xff] %v20103_v61  ;;  %16213 = vmatprep.subr.mxu0 %v19903_v39  ;;  %16235 = vmatprep.subr.mxu1 %v19831_v53  ;;  %v3449_v48 = vadd.f32 %v15749_v21, %v3318_v15  ;;  %v5728_v15 = vand.u32 4294901760, %v5727_v26  ;;  %v23781_v26 = vand.u32 4294901760, %v19946_v42 }
 0x214   : > { %16173 = vmatprep.mubr.f32.mxu0 %v5698_v51  ;;  %16214 = vmatpush3.msra.mxu0 %v19903_v39  ;;  %v20113_v25 = vpop.f32.mrf.mxu1 }
 0x215   : > { %16236 = vmatpush3.msra.mxu1 %v19831_v53  ;;  %23774 = vst [vmem:[#allocation95_spill] sm:$0xff] %v20113_v25  ;;  %16174 = vmatmul.mubr.f32.gmra.mxu0 %v5708_v41  ;;  %v15727_v19 = vpop.f32.mrf.mxu0 }
 0x216   : > { %16215 = vmatprep.subr.mxu0 %v19934_v2  ;;  %16237 = vmatprep.subr.mxu1 %v19842_v13  ;;  %v3346_v45 = vadd.f32 %v15727_v19, %v3211_v63 }
 0x217   : > { %16198 = vmatprep.mubr.f32.mxu1 %v19959_v17  ;;  %16216 = vmatpush3.msra.mxu0 %v19934_v2  ;;  %v20120_v39 = vpop.f32.mrf.mxu0 }
 0x218   : > { %16238 = vmatpush3.msra.mxu1 %v19842_v13  ;;  %23775 = vst [vmem:[#allocation96_spill] sm:$0xff] %v20120_v39  ;;  %16217 = vmatprep.subr.mxu0 %v19957_v23 }
 0x219   : > { %16199 = vmatmul.mubr.f32.gmra.mxu1 %v19973_v32  ;;  %v15752_v49 = vpop.f32.mrf.mxu1  ;;  %16239 = vmatprep.subr.mxu1 %v19859_v52 }
 0x21a   : > { %16176 = vmatprep.mubr.f32.mxu0 %v5718_v6  ;;  %v3465_v4 = vadd.f32 %v15752_v49, %v3332_v58  ;;  %16218 = vmatpush3.msra.mxu0 %v19957_v23 }
 0x21b   : > { %16240 = vmatpush3.msra.mxu1 %v19859_v52  ;;  %v20127_v63 = vpop.f32.mrf.mxu1  ;;  %16177 = vmatmul.mubr.f32.gmra.mxu0 %v5728_v15  ;;  %v15730_v2 = vpop.f32.mrf.mxu0  ;;  %v23785_v15 = vand.u32 4294901760, %v19992_v55 }
 0x21c   : > { %23776 = vst [vmem:[#allocation97_spill] sm:$0xff] %v20127_v63  ;;  %16219 = vmatprep.subr.mxu0 %v19981_v10  ;;  %16241 = vmatprep.subr.mxu1 %v19871_v0  ;;  %v3360_v9 = vadd.f32 %v15730_v2, %v3223_v11  ;;  %v23787_v2 = vand.u32 4294901760, %v20003_v50  ;;  %v6434_v63 = vld [vmem:[#allocation2 + $0x3f] sm:$0xff] }
 0x21d   : > { %16201 = vmatprep.mubr.f32.mxu1 %v20005_v12  ;;  %16220 = vmatpush3.msra.mxu0 %v19981_v10  ;;  %v20134_v40 = vpop.f32.mrf.mxu0 }
 0x21e   : > { %16242 = vmatpush3.msra.mxu1 %v19871_v0  ;;  %23777 = vst [vmem:[#allocation98_spill] sm:$0xff] %v20134_v40  ;;  %16221 = vmatprep.subr.mxu0 %v19996_v47 }
 0x21f   : > { %16202 = vmatmul.mubr.f32.gmra.mxu1 %v20024_v35  ;;  %v15755_v23 = vpop.f32.mrf.mxu1  ;;  %16243 = vmatprep.subr.mxu1 %v19900_v31 }
 0x220   : > { %16222 = vmatpush3.msra.mxu0 %v19996_v47  ;;  %v3481_v51 = vadd.f32 %v15755_v23, %v3346_v45  ;;  %16223 = vmatprep.mubr.f32.mxu0 %v19946_v42  ;;  %v6443_v42 = vld [vmem:[#allocation5 + $0x1f8] sm:$0xff]  ;;  %v23789_v23 = vld [vmem:[#allocation53_spill] sm:$0xff] }
 0x221   : > { %16244 = vmatpush3.msra.mxu1 %v19900_v31  ;;  %v20142_v11 = vpop.f32.mrf.mxu1  ;;  %16224 = vmatmul.mubr.f32.vlgmr.msra.gmra.mxu0 %v19949_v59  ;;  %v15777_v10 = vpop.f32.mrf.mxu0 }
 0x222   : > { %23778 = vst [vmem:[#allocation99_spill] sm:$0xff] %v20142_v11  ;;  %16245 = vmatprep.subr.mxu1 %v19916_v27  ;;  %16263 = vmatprep.subr.mxu0 %v19874_v1  ;;  %v3598_v36 = vadd.f32 %v15777_v10, %v3449_v48 }
 0x223   : > { %16204 = vmatprep.mubr.f32.mxu1 %v20053_v56  ;;  %16246 = vmatpush3.msra.mxu1 %v19916_v27  ;;  %v20150_v47 = vpop.f32.mrf.mxu0 }
 0x224   : > { %16264 = vmatpush3.msra.mxu0 %v19874_v1  ;;  %23779 = vst [vmem:[#allocation100_spill] sm:$0xff] %v20150_v47  ;;  %16205 = vmatmul.mubr.f32.gmra.mxu1 %v20066_v38  ;;  %v15758_v58 = vpop.f32.mrf.mxu1 }
 0x225   : > { %16247 = vmatprep.subr.mxu1 %v19943_v62  ;;  %16265 = vmatprep.subr.mxu0 %v19894_v3  ;;  %v3497_v41 = vadd.f32 %v15758_v58, %v3360_v9 }
 0x226   : > { %16226 = vmatprep.mubr.f32.mxu0 %v19992_v55  ;;  %16248 = vmatpush3.msra.mxu1 %v19943_v62  ;;  %v20158_v14 = vpop.f32.mrf.mxu1 }
 0x227   : > { %16266 = vmatpush3.msra.mxu0 %v19894_v3  ;;  %23780 = vst [vmem:[#allocation101_spill] sm:$0xff] %v20158_v14  ;;  %16249 = vmatprep.subr.mxu1 %v19965_v29  ;;  %v23783_v3 = vand.u32 4294901760, %v19949_v59 }
 0x228   : > { %16227 = vmatmul.mubr.f32.gmra.mxu0 %v20003_v50  ;;  %v15780_v1 = vpop.f32.mrf.mxu0  ;;  %16267 = vmatprep.subr.mxu0 %v19919_v18 }
 0x229   : > { %16250 = vmatpush3.msra.mxu1 %v19965_v29  ;;  %v3610_v21 = vadd.f32 %v15780_v1, %v3465_v4  ;;  %16251 = vmatprep.mubr.f32.mxu1 %v23781_v26  ;;  %v23792_v1 = vld [vmem:[#allocation88_spill] sm:$0xff] }
 0x22a   : > { %16268 = vmatpush3.msra.mxu0 %v19919_v18  ;;  %v20167_v48 = vpop.f32.mrf.mxu0  ;;  %16252 = vmatmul.mubr.f32.vlgmr.msra.gmra.mxu1 %v23783_v3  ;;  %v15805_v6 = vpop.f32.mrf.mxu1 }
 0x22b   : > { %23782 = vst [vmem:[#allocation102_spill] sm:$0xff] %v20167_v48  ;;  %16269 = vmatprep.subr.mxu0 %v19931_v60  ;;  %16291 = vmatprep.subr.mxu1 %v19831_v53  ;;  %v3719_v19 = vadd.f32 %v15805_v6, %v3598_v36 }
 0x22c   : > { %16229 = vmatprep.mubr.f32.mxu0 %v20040_v44  ;;  %16270 = vmatpush3.msra.mxu0 %v19931_v60  ;;  %v20176_v45 = vpop.f32.mrf.mxu1  ;;  %v6442_v60 = vld [vmem:[#allocation5 + $0x1f0] sm:$0xff] }
 0x22d   : > { %16292 = vmatpush3.msra.mxu1 %v19831_v53  ;;  %23784 = vst [vmem:[#allocation103_spill] sm:$0xff] %v20176_v45  ;;  %16230 = vmatmul.mubr.f32.gmra.mxu0 %v20051_v24  ;;  %v20181_v18 = vadd.f32 %v3719_v19, %v19824_v5  ;;  %v15783_v59 = vpop.f32.mrf.mxu0  ;;  %v20188_v53 = vand.u32 4294901760, %v6443_v42  ;;  %v6427_v44 = vld [vmem:[#allocation2 + $0x7] sm:$0xff] }
 0x22e   : > { %16271 = vmatprep.subr.mxu0 %v19971_v28  ;;  %16293 = vmatprep.subr.mxu1 %v19842_v13  ;;  %v3622_v49 = vadd.f32 %v15783_v59, %v3481_v51  ;;  %v6439_v24 = vld [vmem:[#allocation5 + $0x1d8] sm:$0xff]  ;;  %v6445_v6 = vsel %vm226_vm1, %v6427_v44, 0 }
 0x22f   : > { %16254 = vmatprep.mubr.f32.mxu1 %v23785_v15  ;;  %16272 = vmatpush3.msra.mxu0 %v19971_v28  ;;  %v20190_v4 = vpop.f32.mrf.mxu0  ;;  %v6441_v28 = vld [vmem:[#allocation5 + $0x1e8] sm:$0xff]  ;;  %v20206_v50 = vsub.f32 %v6443_v42, %v20188_v53  ;;  %v23794_v42 = vld [vmem:[#allocation56_spill] sm:$0xff] }
 0x230   : > { %16294 = vmatpush3.msra.mxu1 %v19842_v13  ;;  %23786 = vst [vmem:[#allocation104_spill] sm:$0xff] %v20190_v4  ;;  %16273 = vmatprep.subr.mxu0 %v19989_v8  ;;  %v20199_v13 = vand.u32 4294901760, %v6442_v60  ;;  %v20216_v36 = vand.u32 4294901760, %v6441_v28 }
 0x231   : > { %16255 = vmatmul.mubr.f32.gmra.mxu1 %v23787_v2  ;;  %v15808_v5 = vpop.f32.mrf.mxu1  ;;  %16295 = vmatprep.subr.mxu1 %v19859_v52  ;;  %v20257_v2 = vand.u32 4294901760, %v6439_v24 }
 0x232   : > { %16232 = vmatprep.mubr.f32.mxu0 %v20072_v16  ;;  %v3731_v55 = vadd.f32 %v15808_v5, %v3610_v21  ;;  %16274 = vmatpush3.msra.mxu0 %v19989_v8  ;;  %v20224_v21 = vsub.f32 %v6442_v60, %v20199_v13  ;;  %v20240_v3 = vsub.f32 %v6441_v28, %v20216_v36  ;;  %v20267_v16 = vand.u32 4294901760, %v6445_v6 }
 0x233   : > { %16296 = vmatpush3.msra.mxu1 %v19859_v52  ;;  %v20201_v9 = vpop.f32.mrf.mxu1  ;;  %16233 = vmatmul.mubr.f32.gmra.mxu0 %v20082_v34  ;;  %v15786_v10 = vpop.f32.mrf.mxu0  ;;  %v6440_v52 = vld [vmem:[#allocation5 + $0x1e0] sm:$0xff] }
 0x234   : > { %23788 = vst [vmem:[#allocation105_spill] sm:$0xff] %v20201_v9  ;;  %16275 = vmatprep.subr.mxu0 %v20018_v37  ;;  %v20209_v51 = vadd.f32 %v3731_v55, %v23789_v23  ;;  %16297 = vmatprep.subr.mxu1 %v19871_v0  ;;  %v3634_v8 = vadd.f32 %v15786_v10, %v3497_v41  ;;  %v6429_v55 = vld [vmem:[#allocation2 + $0x17] sm:$0xff]  ;;  %v20276_v10 = vand.u32 4294901760, %v20240_v3 }
 0x235   : > { %16257 = vmatprep.mubr.f32.mxu1 %v5696_v20  ;;  %16276 = vmatpush3.msra.mxu0 %v20018_v37  ;;  %v20218_v58 = vpop.f32.mrf.mxu0  ;;  %v6428_v20 = vld [vmem:[#allocation2 + $0xf] sm:$0xff]  ;;  %v20231_v37 = vand.u32 4294901760, %v20206_v50  ;;  %v6451_v44 = vsel %vm226_vm1, %v6429_v55, 0 }
 0x236   : > { %23790 = vst [vmem:[#allocation53_spill] sm:$0xff] %v20209_v51  ;;  %16298 = vmatpush3.msra.mxu1 %v19871_v0  ;;  %23791 = vst [vmem:[#allocation106_spill] sm:$0xff] %v20218_v58  ;;  %16277 = vmatprep.subr.mxu0 %v23792_v1  ;;  %v20228_v0 = vand.u32 4294901760, %v6440_v52  ;;  %v6448_v19 = vsel %vm226_vm1, %v6428_v20, 0  ;;  %v6431_v58 = vld [vmem:[#allocation2 + $0x27] sm:$0xff] }
 0x237   : > { %16258 = vmatmul.mubr.f32.gmra.mxu1 %v5706_v57  ;;  %v15811_v26 = vpop.f32.mrf.mxu1  ;;  %16299 = vmatprep.subr.mxu1 %v19900_v31  ;;  %v6641_v60 = vsub.f32 %v20206_v50, %v20231_v37  ;;  %v6457_v48 = vsel %vm226_vm1, %v6431_v58, 0 }
 0x238   : > { %16278 = vmatpush3.msra.mxu0 %v23792_v1  ;;  %v3743_v41 = vadd.f32 %v15811_v26, %v3622_v49  ;;  %16279 = vmatprep.mubr.f32.mxu0 %v19910_v33  ;;  %v6438_v49 = vld [vmem:[#allocation5 + $0x1d0] sm:$0xff]  ;;  %v20260_v5 = vsub.f32 %v6440_v52, %v20228_v0  ;;  %v6437_v52 = vld [vmem:[#allocation5 + $0x1c8] sm:$0xff] }
 0x239   : > { %16300 = vmatpush3.msra.mxu1 %v19900_v31  ;;  %v20235_v57 = vpop.f32.mrf.mxu1  ;;  %16280 = vmatmul.mubr.f32.vlgmr.msra.gmra.mxu0 %v19912_v30  ;;  %v15833_v15 = vpop.f32.mrf.mxu0  ;;  %v20251_v31 = vand.u32 4294901760, %v20224_v21  ;;  %v20273_v23 = vand.u32 4294901760, %v6438_v49  ;;  %v6430_v1 = vld [vmem:[#allocation2 + $0x1f] sm:$0xff]  ;;  %v6642_v26 = vand.u32 4294901760, %v6641_v60  ;;  %v20300_v55 = vand.u32 4294901760, %v6437_v52 }
 0x23a   : > { %23793 = vst [vmem:[#allocation88_spill] sm:$0xff] %v20235_v57  ;;  %16301 = vmatprep.subr.mxu1 %v19916_v27  ;;  %v20245_v59 = vadd.f32 %v3743_v41, %v23794_v42  ;;  %16319 = vmatprep.subr.mxu0 %v20188_v53  ;;  %v20288_v41 = vand.u32 4294901760, %v20260_v5  ;;  %v23798_v42 = vld [vmem:[#allocation59_spill] sm:$0xff]  ;;  %v20303_v60 = vsub.f32 %v6445_v6, %v20267_v16 }
 0x23b   : > { %16260 = vmatprep.mubr.f32.mxu1 %v5716_v54  ;;  %16302 = vmatpush3.msra.mxu1 %v19916_v27  ;;  %v20262_v28 = vpop.f32.mrf.mxu0  ;;  %v20269_v27 = vand.u32 4294901760, %v6448_v19  ;;  %v20338_v45 = vsub.f32 %v6437_v52, %v20300_v55 }
 0x23c   : > { %23795 = vst [vmem:[#allocation56_spill] sm:$0xff] %v20245_v59  ;;  %16320 = vmatpush3.msra.mxu0 %v20188_v53  ;;  %23796 = vst [vmem:[#allocation107_spill] sm:$0xff] %v20262_v28  ;;  %16261 = vmatmul.mubr.f32.gmra.mxu1 %v5726_v43  ;;  %v15814_v54 = vpop.f32.mrf.mxu1  ;;  %v6648_v43 = vsub.f32 %v20224_v21, %v20251_v31 }
 0x23d   : > { %16303 = vmatprep.subr.mxu1 %v19943_v62  ;;  %16321 = vmatprep.subr.mxu0 %v20199_v13  ;;  %v3755_v34 = vadd.f32 %v15814_v54, %v3634_v8  ;;  %v6436_v8 = vld [vmem:[#allocation5 + $0x1c0] sm:$0xff] }
 0x23e   : > { %16282 = vmatprep.mubr.f32.mxu0 %v19959_v17  ;;  %16304 = vmatpush3.msra.mxu1 %v19943_v62  ;;  %v20283_v20 = vpop.f32.mrf.mxu1  ;;  %v20291_v62 = vsub.f32 %v6439_v24, %v20257_v2  ;;  %v6454_v24 = vsel %vm226_vm1, %v6430_v1, 0  ;;  %v20322_v1 = vand.u32 4294901760, %v6436_v8 }
 0x23f   : > { %16322 = vmatpush3.msra.mxu0 %v20199_v13  ;;  %23797 = vst [vmem:[#allocation108_spill] sm:$0xff] %v20283_v20  ;;  %16305 = vmatprep.subr.mxu1 %v19965_v29  ;;  %v20294_v54 = vadd.f32 %v3755_v34, %v23798_v42  ;;  %v20306_v20 = vsub.f32 %v6448_v19, %v20269_v27  ;;  %v6649_v19 = vand.u32 4294901760, %v6648_v43  ;;  %v20330_v4 = vand.u32 4294901760, %v6454_v24 }
 0x240   : > { %16283 = vmatmul.mubr.f32.gmra.mxu0 %v19973_v32  ;;  %v20296_v57 = vpop.f32.mrf.mxu0  ;;  %16323 = vmatprep.subr.mxu0 %v20216_v36  ;;  %v6655_v34 = vsub.f32 %v20240_v3, %v20276_v10  ;;  %v20314_v42 = vsub.f32 %v6438_v49, %v20273_v23  ;;  %v6662_v49 = vsub.f32 %v20260_v5, %v20288_v41  ;;  %v20328_v9 = vand.u32 4294901760, %v20291_v62 }
 0x241   : > { %23799 = vst [vmem:[#allocation59_spill] sm:$0xff] %v20294_v54  ;;  %16306 = vmatpush3.msra.mxu1 %v19965_v29  ;;  %16307 = vmatprep.mubr.f32.mxu1 %v19910_v33  ;;  %v20316_v29 = vand.u32 4294901760, %v6451_v44  ;;  %v20353_v52 = vsub.f32 %v6436_v8, %v20322_v1  ;;  %v20360_v43 = vsub.f32 %v6454_v24, %v20330_v4  ;;  %v23803_v8 = vand.u32 4294901760, %v20303_v60 }
 0x242   : > { %16324 = vmatpush3.msra.mxu0 %v20216_v36  ;;  %v20318_v6 = vpop.f32.mrf.mxu0  ;;  %16308 = vmatmul.mubr.f32.vlgmr.msra.gmra.mxu1 %v19912_v30  ;;  %v15861_v33 = vpop.f32.mrf.mxu1  ;;  %v20375_v24 = vand.u32 4294901760, %v20338_v45 }
 0x243   : > { %23800 = vst [vmem:[#allocation109_spill] sm:$0xff] %v20318_v6  ;;  %16325 = vmatprep.subr.mxu0 %v20228_v0  ;;  %16347 = vmatprep.subr.mxu1 %v6642_v26  ;;  %v6432_v6 = vld [vmem:[#allocation2 + $0x2f] sm:$0xff]  ;;  %v20332_v28 = vadd.f32 %v15861_v33, %v15833_v15  ;;  %v6656_v15 = vand.u32 4294901760, %v6655_v34  ;;  %v20346_v33 = vand.u32 4294901760, %v20314_v42  ;;  %v6669_v34 = vsub.f32 %v20291_v62, %v20328_v9 }
 0x244   : > { %16285 = vmatprep.mubr.f32.mxu0 %v20005_v12  ;;  %16326 = vmatpush3.msra.mxu0 %v20228_v0  ;;  %v20341_v14 = vpop.f32.mrf.mxu1  ;;  %v6460_v58 = vsel %vm226_vm1, %v6432_v6, 0  ;;  %v6544_v6 = vsub.f32 %v20303_v60, %v23803_v8 }
 0x245   : > { %16348 = vmatpush3.msra.mxu1 %v6642_v26  ;;  %23801 = vst [vmem:[#allocation110_spill] sm:$0xff] %v20341_v14  ;;  %16286 = vmatmul.mubr.f32.gmra.mxu0 %v20024_v35  ;;  %v20349_v26 = vsub.f32 %v6451_v44, %v20316_v29  ;;  %v15839_v30 = vpop.f32.mrf.mxu0  ;;  %v20362_v44 = vand.u32 4294901760, %v6457_v48  ;;  %v6433_v14 = vld [vmem:[#allocation2 + $0x37] sm:$0xff] }
 0x246   : > { %16327 = vmatprep.subr.mxu0 %v20257_v2  ;;  %16349 = vmatprep.subr.mxu1 %v6649_v19  ;;  %v6463_v39 = vsel %vm226_vm1, %v6433_v14, 0  ;;  %v6683_v14 = vsub.f32 %v20338_v45, %v20375_v24 }
 0x247   : > { %16310 = vmatprep.mubr.f32.mxu1 %v19959_v17  ;;  %16328 = vmatpush3.msra.mxu0 %v20257_v2  ;;  %v20364_v47 = vpop.f32.mrf.mxu0  ;;  %v6663_v17 = vand.u32 4294901760, %v6662_v49  ;;  %v6670_v49 = vand.u32 4294901760, %v6669_v34  ;;  %v23807_v7 = vand.u32 4294901760, %v20349_v26  ;;  %v20410_v22 = vand.u32 4294901760, %v6463_v39 }
 0x248   : > { %16350 = vmatpush3.msra.mxu1 %v6649_v19  ;;  %23802 = vst [vmem:[#allocation111_spill] sm:$0xff] %v20364_v47  ;;  %16329 = vmatprep.subr.mxu0 %v20273_v23  ;;  %v23804_v19 = vand.u32 4294901760, %v20306_v20  ;;  %v20381_v47 = vand.u32 4294901760, %v6460_v58 }
 0x249   : > { %16311 = vmatmul.mubr.f32.gmra.mxu1 %v19973_v32  ;;  %v15864_v40 = vpop.f32.mrf.mxu1  ;;  %16351 = vmatprep.subr.mxu1 %v6656_v15  ;;  %v6676_v32 = vsub.f32 %v20314_v42, %v20346_v33 }
 0x24a   : > { %v6554_v11 = vsub.f32 %v20306_v20, %v23804_v19  ;;  %16288 = vmatprep.mubr.f32.mxu0 %v20053_v56  ;;  %v20384_v8 = vadd.f32 %v15864_v40, %v20296_v57  ;;  %16330 = vmatpush3.msra.mxu0 %v20273_v23  ;;  %v20388_v19 = vand.u32 4294901760, %v20353_v52  ;;  %v20397_v40 = vsub.f32 %v6457_v48, %v20362_v44 }
 0x24b   : > { %16352 = vmatpush3.msra.mxu1 %v6656_v15  ;;  %v20391_v25 = vpop.f32.mrf.mxu1  ;;  %16289 = vmatmul.mubr.f32.gmra.mxu0 %v20066_v38  ;;  %v15842_v57 = vpop.f32.mrf.mxu0  ;;  %v6545_v15 = vand.u32 4294901760, %v6544_v6  ;;  %v6677_v34 = vand.u32 4294901760, %v6676_v32  ;;  %v6564_v48 = vsub.f32 %v20349_v26, %v23807_v7  ;;  %v20408_v46 = vsub.f32 %v6460_v58, %v20381_v47 }
 0x24c   : > { %23805 = vst [vmem:[#allocation112_spill] sm:$0xff] %v20388_v19  ;;  %23806 = vst [vmem:[#allocation113_spill] sm:$0xff] %v20391_v25  ;;  %16331 = vmatprep.subr.mxu0 %v20300_v55  ;;  %16353 = vmatprep.subr.mxu1 %v6663_v17  ;;  %v6555_v61 = vand.u32 4294901760, %v6554_v11  ;;  %v6466_v25 = vsel %vm226_vm1, %v6434_v63, 0  ;;  %v6690_v63 = vsub.f32 %v20353_v52, %v20388_v19  ;;  %v23809_v7 = vand.u32 4294901760, %v20360_v43 }
 0x24d   : > { %16313 = vmatprep.mubr.f32.mxu1 %v20005_v12  ;;  %16332 = vmatpush3.msra.mxu0 %v20300_v55  ;;  %v20412_v12 = vpop.f32.mrf.mxu0  ;;  %v20423_v6 = vand.u32 4294901760, %v6466_v25  ;;  %v6565_v54 = vand.u32 4294901760, %v6564_v48  ;;  %v6593_v59 = vand.u32 4294901760, %v20408_v46  ;;  %v20429_v19 = vsub.f32 %v6463_v39, %v20410_v22 }
 0x24e   : > { %16354 = vmatpush3.msra.mxu1 %v6663_v17  ;;  %23808 = vst [vmem:[#allocation114_spill] sm:$0xff] %v20412_v12  ;;  %16333 = vmatprep.subr.mxu0 %v20322_v1  ;;  %v6574_v58 = vsub.f32 %v20360_v43, %v23809_v7  ;;  %v6583_v17 = vand.u32 4294901760, %v20397_v40 }
 0x24f   : > { %16314 = vmatmul.mubr.f32.gmra.mxu1 %v20024_v35  ;;  %v15867_v11 = vpop.f32.mrf.mxu1  ;;  %16355 = vmatprep.subr.mxu1 %v6670_v49  ;;  %v6684_v35 = vand.u32 4294901760, %v6683_v14  ;;  %v20439_v14 = vsub.f32 %v6466_v25, %v20423_v6 }
 0x250   : > { %16334 = vmatpush3.msra.mxu0 %v20322_v1  ;;  %v4098_v32 = vadd.f32 %v15867_v11, %v15839_v30  ;;  %16335 = vmatprep.mubr.f32.mxu0 %v6545_v15  ;;  %v6691_v15 = vand.u32 4294901760, %v6690_v63 }
 0x251   : > { %16356 = vmatpush3.msra.mxu1 %v6670_v49  ;;  %v20425_v12 = vpop.f32.mrf.mxu1  ;;  %16336 = vmatmul.mubr.f32.vlgmr.msra.gmra.mxu0 %v6555_v61  ;;  %v15889_v51 = vpop.f32.mrf.mxu0  ;;  %v6575_v49 = vand.u32 4294901760, %v6574_v58  ;;  %v6584_v61 = vsub.f32 %v20397_v40, %v6583_v17 }
 0x252   : > { %23810 = vst [vmem:[#allocation115_spill] sm:$0xff] %v20425_v12  ;;  %16357 = vmatprep.subr.mxu1 %v6677_v34  ;;  %16375 = vmatprep.subr.mxu0 %v20206_v50  ;;  %v4205_v30 = vadd.f32 %v15889_v51, %v20332_v28  ;;  %v6603_v51 = vand.u32 4294901760, %v20429_v19 }
 0x253   : > { %16316 = vmatprep.mubr.f32.mxu1 %v20053_v56  ;;  %16358 = vmatpush3.msra.mxu1 %v6677_v34  ;;  %v20441_v39 = vpop.f32.mrf.mxu0  ;;  %v6613_v34 = vand.u32 4294901760, %v20439_v14 }
 0x254   : > { %16376 = vmatpush3.msra.mxu0 %v20206_v50  ;;  %23811 = vst [vmem:[#allocation116_spill] sm:$0xff] %v20441_v39  ;;  %16317 = vmatmul.mubr.f32.gmra.mxu1 %v20066_v38  ;;  %v15870_v56 = vpop.f32.mrf.mxu1  ;;  %v6594_v50 = vsub.f32 %v20408_v46, %v6593_v59  ;;  %v6585_v38 = vand.u32 4294901760, %v6584_v61 }
 0x255   : > { %16359 = vmatprep.subr.mxu1 %v6684_v35  ;;  %16377 = vmatprep.subr.mxu0 %v20224_v21  ;;  %v4110_v28 = vadd.f32 %v15870_v56, %v15842_v57 }
 0x256   : > { %16338 = vmatprep.mubr.f32.mxu0 %v6565_v54  ;;  %16360 = vmatpush3.msra.mxu1 %v6684_v35  ;;  %v20450_v25 = vpop.f32.mrf.mxu1  ;;  %v6595_v57 = vand.u32 4294901760, %v6594_v50 }
 0x257   : > { %16378 = vmatpush3.msra.mxu0 %v20224_v21  ;;  %23812 = vst [vmem:[#allocation117_spill] sm:$0xff] %v20450_v25  ;;  %16361 = vmatprep.subr.mxu1 %v6691_v15  ;;  %v6604_v21 = vsub.f32 %v20429_v19, %v6603_v51 }
 0x258   : > { %16339 = vmatmul.mubr.f32.gmra.mxu0 %v6575_v49  ;;  %v15892_v48 = vpop.f32.mrf.mxu0  ;;  %16379 = vmatprep.subr.mxu0 %v20240_v3 }
 0x259   : > { %16362 = vmatpush3.msra.mxu1 %v6691_v15  ;;  %v4219_v54 = vadd.f32 %v15892_v48, %v20384_v8  ;;  %16363 = vmatprep.mubr.f32.mxu1 %v20267_v16  ;;  %v6614_v8 = vsub.f32 %v20439_v14, %v6613_v34  ;;  %v6605_v58 = vand.u32 4294901760, %v6604_v21 }
 0x25a   : > { %16380 = vmatpush3.msra.mxu0 %v20240_v3  ;;  %v20460_v63 = vpop.f32.mrf.mxu0  ;;  %16364 = vmatmul.mubr.f32.vlgmr.msra.gmra.mxu1 %v20269_v27  ;;  %v15917_v11 = vpop.f32.mrf.mxu1 }
 0x25b   : > { %23813 = vst [vmem:[#allocation118_spill] sm:$0xff] %v20460_v63  ;;  %16381 = vmatprep.subr.mxu0 %v20260_v5  ;;  %16403 = vmatprep.subr.mxu1 %v20188_v53  ;;  %v4336_v3 = vadd.f32 %v15917_v11, %v4205_v30  ;;  %v6615_v30 = vand.u32 4294901760, %v6614_v8  ;;  %v23821_v8 = vand.u32 4294901760, %v20303_v60 }
 0x25c   : > { %16341 = vmatprep.mubr.f32.mxu0 %v6585_v38  ;;  %16382 = vmatpush3.msra.mxu0 %v20260_v5  ;;  %v20470_v7 = vpop.f32.mrf.mxu1 }
 0x25d   : > { %16404 = vmatpush3.msra.mxu1 %v20188_v53  ;;  %23814 = vst [vmem:[#allocation119_spill] sm:$0xff] %v20470_v7  ;;  %16342 = vmatmul.mubr.f32.gmra.mxu0 %v6595_v57  ;;  %v15895_v35 = vpop.f32.mrf.mxu0 }
 0x25e   : > { %16383 = vmatprep.subr.mxu0 %v20291_v62  ;;  %16405 = vmatprep.subr.mxu1 %v20199_v13  ;;  %v4233_v49 = vadd.f32 %v15895_v35, %v4098_v32 }
 0x25f   : > { %16366 = vmatprep.mubr.f32.mxu1 %v20316_v29  ;;  %16384 = vmatpush3.msra.mxu0 %v20291_v62  ;;  %v20477_v5 = vpop.f32.mrf.mxu0 }
 0x260   : > { %16406 = vmatpush3.msra.mxu1 %v20199_v13  ;;  %23815 = vst [vmem:[#allocation120_spill] sm:$0xff] %v20477_v5  ;;  %16385 = vmatprep.subr.mxu0 %v20314_v42 }
 0x261   : > { %16367 = vmatmul.mubr.f32.gmra.mxu1 %v20330_v4  ;;  %v15920_v15 = vpop.f32.mrf.mxu1  ;;  %16407 = vmatprep.subr.mxu1 %v20216_v36 }
 0x262   : > { %16344 = vmatprep.mubr.f32.mxu0 %v6605_v58  ;;  %v4352_v61 = vadd.f32 %v15920_v15, %v4219_v54  ;;  %16386 = vmatpush3.msra.mxu0 %v20314_v42 }
 0x263   : > { %16408 = vmatpush3.msra.mxu1 %v20216_v36  ;;  %v20484_v32 = vpop.f32.mrf.mxu1  ;;  %16345 = vmatmul.mubr.f32.gmra.mxu0 %v6615_v30  ;;  %v15898_v62 = vpop.f32.mrf.mxu0  ;;  %v23825_v30 = vand.u32 4294901760, %v20349_v26 }
 0x264   : > { %23816 = vst [vmem:[#allocation121_spill] sm:$0xff] %v20484_v32  ;;  %16387 = vmatprep.subr.mxu0 %v20338_v45  ;;  %16409 = vmatprep.subr.mxu1 %v20228_v0  ;;  %v4247_v56 = vadd.f32 %v15898_v62, %v4110_v28  ;;  %v23827_v62 = vand.u32 4294901760, %v20360_v43  ;;  %v7321_v32 = vld [vmem:[#allocation2 + $0x40] sm:$0xff] }
 0x265   : > { %16369 = vmatprep.mubr.f32.mxu1 %v20362_v44  ;;  %16388 = vmatpush3.msra.mxu0 %v20338_v45  ;;  %v20491_v50 = vpop.f32.mrf.mxu0 }
 0x266   : > { %16410 = vmatpush3.msra.mxu1 %v20228_v0  ;;  %23817 = vst [vmem:[#allocation122_spill] sm:$0xff] %v20491_v50  ;;  %16389 = vmatprep.subr.mxu0 %v20353_v52 }
 0x267   : > { %16370 = vmatmul.mubr.f32.gmra.mxu1 %v20381_v47  ;;  %v15923_v42 = vpop.f32.mrf.mxu1  ;;  %16411 = vmatprep.subr.mxu1 %v20257_v2 }
 0x268   : > { %16390 = vmatpush3.msra.mxu0 %v20353_v52  ;;  %v4368_v38 = vadd.f32 %v15923_v42, %v4233_v49  ;;  %16391 = vmatprep.mubr.f32.mxu0 %v20303_v60  ;;  %v7330_v60 = vld [vmem:[#allocation5 + $0x238] sm:$0xff]  ;;  %v23829_v42 = vld [vmem:[#allocation53_spill] sm:$0xff] }
 0x269   : > { %16412 = vmatpush3.msra.mxu1 %v20257_v2  ;;  %v20499_v28 = vpop.f32.mrf.mxu1  ;;  %16392 = vmatmul.mubr.f32.vlgmr.msra.gmra.mxu0 %v20306_v20  ;;  %v15945_v45 = vpop.f32.mrf.mxu0 }
 0x26a   : > { %23818 = vst [vmem:[#allocation123_spill] sm:$0xff] %v20499_v28  ;;  %16413 = vmatprep.subr.mxu1 %v20273_v23  ;;  %16431 = vmatprep.subr.mxu0 %v20231_v37  ;;  %v4485_v48 = vadd.f32 %v15945_v45, %v4336_v3 }
 0x26b   : > { %16372 = vmatprep.mubr.f32.mxu1 %v20410_v22  ;;  %16414 = vmatpush3.msra.mxu1 %v20273_v23  ;;  %v20507_v52 = vpop.f32.mrf.mxu0 }
 0x26c   : > { %16432 = vmatpush3.msra.mxu0 %v20231_v37  ;;  %23819 = vst [vmem:[#allocation124_spill] sm:$0xff] %v20507_v52  ;;  %16373 = vmatmul.mubr.f32.gmra.mxu1 %v20423_v6  ;;  %v15926_v54 = vpop.f32.mrf.mxu1 }
 0x26d   : > { %16415 = vmatprep.subr.mxu1 %v20300_v55  ;;  %16433 = vmatprep.subr.mxu0 %v20251_v31  ;;  %v4384_v57 = vadd.f32 %v15926_v54, %v4247_v56 }
 0x26e   : > { %16394 = vmatprep.mubr.f32.mxu0 %v20349_v26  ;;  %16416 = vmatpush3.msra.mxu1 %v20300_v55  ;;  %v20515_v21 = vpop.f32.mrf.mxu1 }
 0x26f   : > { %16434 = vmatpush3.msra.mxu0 %v20251_v31  ;;  %23820 = vst [vmem:[#allocation125_spill] sm:$0xff] %v20515_v21  ;;  %16417 = vmatprep.subr.mxu1 %v20322_v1  ;;  %v23823_v31 = vand.u32 4294901760, %v20306_v20 }
 0x270   : > { %16395 = vmatmul.mubr.f32.gmra.mxu0 %v20360_v43  ;;  %v15948_v37 = vpop.f32.mrf.mxu0  ;;  %16435 = vmatprep.subr.mxu0 %v20276_v10 }
 0x271   : > { %16418 = vmatpush3.msra.mxu1 %v20322_v1  ;;  %v4497_v11 = vadd.f32 %v15948_v37, %v4352_v61  ;;  %16419 = vmatprep.mubr.f32.mxu1 %v23821_v8  ;;  %v23832_v37 = vld [vmem:[#allocation112_spill] sm:$0xff] }
 0x272   : > { %16436 = vmatpush3.msra.mxu0 %v20276_v10  ;;  %v20524_v3 = vpop.f32.mrf.mxu0  ;;  %16420 = vmatmul.mubr.f32.vlgmr.msra.gmra.mxu1 %v23823_v31  ;;  %v15973_v58 = vpop.f32.mrf.mxu1 }
 0x273   : > { %23822 = vst [vmem:[#allocation126_spill] sm:$0xff] %v20524_v3  ;;  %16437 = vmatprep.subr.mxu0 %v20288_v41  ;;  %16459 = vmatprep.subr.mxu1 %v20188_v53  ;;  %v4606_v35 = vadd.f32 %v15973_v58, %v4485_v48 }
 0x274   : > { %16397 = vmatprep.mubr.f32.mxu0 %v20397_v40  ;;  %16438 = vmatpush3.msra.mxu0 %v20288_v41  ;;  %v20533_v49 = vpop.f32.mrf.mxu1  ;;  %v7329_v41 = vld [vmem:[#allocation5 + $0x230] sm:$0xff]  ;;  %v7314_v40 = vld [vmem:[#allocation2 + $0x8] sm:$0xff] }
 0x275   : > { %16460 = vmatpush3.msra.mxu1 %v20188_v53  ;;  %23824 = vst [vmem:[#allocation127_spill] sm:$0xff] %v20533_v49  ;;  %16398 = vmatmul.mubr.f32.gmra.mxu0 %v20408_v46  ;;  %v20538_v10 = vadd.f32 %v4606_v35, %v20181_v18  ;;  %v15951_v20 = vpop.f32.mrf.mxu0  ;;  %v20545_v53 = vand.u32 4294901760, %v7330_v60  ;;  %v7326_v46 = vld [vmem:[#allocation5 + $0x218] sm:$0xff]  ;;  %v7332_v58 = vsel %vm226_vm1, %v7314_v40, 0 }
 0x276   : > { %16439 = vmatprep.subr.mxu0 %v20328_v9  ;;  %16461 = vmatprep.subr.mxu1 %v20199_v13  ;;  %v4509_v15 = vadd.f32 %v15951_v20, %v4368_v38 }
 0x277   : > { %16422 = vmatprep.mubr.f32.mxu1 %v23825_v30  ;;  %16440 = vmatpush3.msra.mxu0 %v20328_v9  ;;  %v20547_v61 = vpop.f32.mrf.mxu0  ;;  %v7328_v9 = vld [vmem:[#allocation5 + $0x228] sm:$0xff]  ;;  %v20563_v43 = vsub.f32 %v7330_v60, %v20545_v53  ;;  %v23834_v60 = vld [vmem:[#allocation56_spill] sm:$0xff] }
 0x278   : > { %16462 = vmatpush3.msra.mxu1 %v20199_v13  ;;  %23826 = vst [vmem:[#allocation128_spill] sm:$0xff] %v20547_v61  ;;  %16441 = vmatprep.subr.mxu0 %v20346_v33  ;;  %v20556_v13 = vand.u32 4294901760, %v7329_v41  ;;  %v20573_v48 = vand.u32 4294901760, %v7328_v9 }
 0x279   : > { %16423 = vmatmul.mubr.f32.gmra.mxu1 %v23827_v62  ;;  %v15976_v18 = vpop.f32.mrf.mxu1  ;;  %16463 = vmatprep.subr.mxu1 %v20216_v36  ;;  %v20614_v62 = vand.u32 4294901760, %v7326_v46 }
 0x27a   : > { %16400 = vmatprep.mubr.f32.mxu0 %v20429_v19  ;;  %v4618_v26 = vadd.f32 %v15976_v18, %v4497_v11  ;;  %16442 = vmatpush3.msra.mxu0 %v20346_v33  ;;  %v20581_v11 = vsub.f32 %v7329_v41, %v20556_v13  ;;  %v20597_v31 = vsub.f32 %v7328_v9, %v20573_v48  ;;  %v20624_v19 = vand.u32 4294901760, %v7332_v58 }
 0x27b   : > { %16464 = vmatpush3.msra.mxu1 %v20216_v36  ;;  %v20558_v56 = vpop.f32.mrf.mxu1  ;;  %16401 = vmatmul.mubr.f32.gmra.mxu0 %v20439_v14  ;;  %v15954_v45 = vpop.f32.mrf.mxu0  ;;  %v7327_v36 = vld [vmem:[#allocation5 + $0x220] sm:$0xff] }
 0x27c   : > { %23828 = vst [vmem:[#allocation129_spill] sm:$0xff] %v20558_v56  ;;  %16443 = vmatprep.subr.mxu0 %v20375_v24  ;;  %v20566_v38 = vadd.f32 %v4618_v26, %v23829_v42  ;;  %16465 = vmatprep.subr.mxu1 %v20228_v0  ;;  %v4521_v33 = vadd.f32 %v15954_v45, %v4384_v57  ;;  %v7316_v26 = vld [vmem:[#allocation2 + $0x18] sm:$0xff]  ;;  %v20633_v45 = vand.u32 4294901760, %v20597_v31 }
 0x27d   : > { %16425 = vmatprep.mubr.f32.mxu1 %v6583_v17  ;;  %16444 = vmatpush3.msra.mxu0 %v20375_v24  ;;  %v20575_v54 = vpop.f32.mrf.mxu0  ;;  %v7315_v17 = vld [vmem:[#allocation2 + $0x10] sm:$0xff]  ;;  %v20588_v24 = vand.u32 4294901760, %v20563_v43  ;;  %v7338_v40 = vsel %vm226_vm1, %v7316_v26, 0 }
 0x27e   : > { %23830 = vst [vmem:[#allocation53_spill] sm:$0xff] %v20566_v38  ;;  %16466 = vmatpush3.msra.mxu1 %v20228_v0  ;;  %23831 = vst [vmem:[#allocation130_spill] sm:$0xff] %v20575_v54  ;;  %16445 = vmatprep.subr.mxu0 %v23832_v37  ;;  %v20585_v0 = vand.u32 4294901760, %v7327_v36  ;;  %v7335_v35 = vsel %vm226_vm1, %v7315_v17, 0 }
 0x27f   : > { %16426 = vmatmul.mubr.f32.gmra.mxu1 %v6593_v59  ;;  %v15979_v8 = vpop.f32.mrf.mxu1  ;;  %16467 = vmatprep.subr.mxu1 %v20257_v2  ;;  %v7528_v41 = vsub.f32 %v20563_v43, %v20588_v24 }
 0x280   : > { %16446 = vmatpush3.msra.mxu0 %v23832_v37  ;;  %v4630_v57 = vadd.f32 %v15979_v8, %v4509_v15  ;;  %16447 = vmatprep.mubr.f32.mxu0 %v20267_v16  ;;  %v7325_v15 = vld [vmem:[#allocation5 + $0x210] sm:$0xff]  ;;  %v20617_v18 = vsub.f32 %v7327_v36, %v20585_v0  ;;  %v7324_v36 = vld [vmem:[#allocation5 + $0x208] sm:$0xff] }
 0x281   : > { %16468 = vmatpush3.msra.mxu1 %v20257_v2  ;;  %v20592_v59 = vpop.f32.mrf.mxu1  ;;  %16448 = vmatmul.mubr.f32.vlgmr.msra.gmra.mxu0 %v20269_v27  ;;  %v16001_v30 = vpop.f32.mrf.mxu0  ;;  %v20608_v2 = vand.u32 4294901760, %v20581_v11  ;;  %v20630_v42 = vand.u32 4294901760, %v7325_v15  ;;  %v7317_v37 = vld [vmem:[#allocation2 + $0x20] sm:$0xff]  ;;  %v7529_v8 = vand.u32 4294901760, %v7528_v41  ;;  %v20657_v26 = vand.u32 4294901760, %v7324_v36 }
 0x282   : > { %23833 = vst [vmem:[#allocation112_spill] sm:$0xff] %v20592_v59  ;;  %16469 = vmatprep.subr.mxu1 %v20273_v23  ;;  %v20602_v20 = vadd.f32 %v4630_v57, %v23834_v60  ;;  %16487 = vmatprep.subr.mxu0 %v20545_v53  ;;  %v20645_v57 = vand.u32 4294901760, %v20617_v18  ;;  %v23838_v60 = vld [vmem:[#allocation59_spill] sm:$0xff]  ;;  %v20660_v41 = vsub.f32 %v7332_v58, %v20624_v19  ;;  %v7318_v59 = vld [vmem:[#allocation2 + $0x28] sm:$0xff] }
 0x283   : > { %16428 = vmatprep.mubr.f32.mxu1 %v6603_v51  ;;  %16470 = vmatpush3.msra.mxu1 %v20273_v23  ;;  %v20619_v9 = vpop.f32.mrf.mxu0  ;;  %v20626_v23 = vand.u32 4294901760, %v7335_v35  ;;  %v20695_v49 = vsub.f32 %v7324_v36, %v20657_v26  ;;  %v7344_v3 = vsel %vm226_vm1, %v7318_v59, 0 }
 0x284   : > { %23835 = vst [vmem:[#allocation56_spill] sm:$0xff] %v20602_v20  ;;  %16488 = vmatpush3.msra.mxu0 %v20545_v53  ;;  %23836 = vst [vmem:[#allocation131_spill] sm:$0xff] %v20619_v9  ;;  %16429 = vmatmul.mubr.f32.gmra.mxu1 %v6613_v34  ;;  %v15982_v51 = vpop.f32.mrf.mxu1  ;;  %v7535_v34 = vsub.f32 %v20581_v11, %v20608_v2 }
 0x285   : > { %16471 = vmatprep.subr.mxu1 %v20300_v55  ;;  %16489 = vmatprep.subr.mxu0 %v20556_v13  ;;  %v4642_v14 = vadd.f32 %v15982_v51, %v4521_v33  ;;  %v7323_v33 = vld [vmem:[#allocation5 + $0x200] sm:$0xff] }
 0x286   : > { %16450 = vmatprep.mubr.f32.mxu0 %v20316_v29  ;;  %16472 = vmatpush3.msra.mxu1 %v20300_v55  ;;  %v20640_v17 = vpop.f32.mrf.mxu1  ;;  %v20648_v55 = vsub.f32 %v7326_v46, %v20614_v62  ;;  %v7341_v46 = vsel %vm226_vm1, %v7317_v37, 0  ;;  %v20679_v37 = vand.u32 4294901760, %v7323_v33 }
 0x287   : > { %16490 = vmatpush3.msra.mxu0 %v20556_v13  ;;  %23837 = vst [vmem:[#allocation132_spill] sm:$0xff] %v20640_v17  ;;  %16473 = vmatprep.subr.mxu1 %v20322_v1  ;;  %v20651_v51 = vadd.f32 %v4642_v14, %v23838_v60  ;;  %v20663_v17 = vsub.f32 %v7335_v35, %v20626_v23  ;;  %v7536_v35 = vand.u32 4294901760, %v7535_v34  ;;  %v20687_v56 = vand.u32 4294901760, %v7341_v46 }
 0x288   : > { %16451 = vmatmul.mubr.f32.gmra.mxu0 %v20330_v4  ;;  %v20653_v9 = vpop.f32.mrf.mxu0  ;;  %16491 = vmatprep.subr.mxu0 %v20573_v48  ;;  %v7542_v14 = vsub.f32 %v20597_v31, %v20633_v45  ;;  %v20671_v60 = vsub.f32 %v7325_v15, %v20630_v42  ;;  %v7549_v15 = vsub.f32 %v20617_v18, %v20645_v57  ;;  %v20685_v54 = vand.u32 4294901760, %v20648_v55 }
 0x289   : > { %23839 = vst [vmem:[#allocation59_spill] sm:$0xff] %v20651_v51  ;;  %16474 = vmatpush3.msra.mxu1 %v20322_v1  ;;  %16475 = vmatprep.mubr.f32.mxu1 %v20267_v16  ;;  %v20673_v1 = vand.u32 4294901760, %v7338_v40  ;;  %v20710_v36 = vsub.f32 %v7323_v33, %v20679_v37  ;;  %v20717_v34 = vsub.f32 %v7341_v46, %v20687_v56  ;;  %v23843_v33 = vand.u32 4294901760, %v20660_v41 }
 0x28a   : > { %16492 = vmatpush3.msra.mxu0 %v20573_v48  ;;  %v20675_v58 = vpop.f32.mrf.mxu0  ;;  %16476 = vmatmul.mubr.f32.vlgmr.msra.gmra.mxu1 %v20269_v27  ;;  %v16029_v16 = vpop.f32.mrf.mxu1  ;;  %v20732_v46 = vand.u32 4294901760, %v20695_v49 }
 0x28b   : > { %23840 = vst [vmem:[#allocation133_spill] sm:$0xff] %v20675_v58  ;;  %16493 = vmatprep.subr.mxu0 %v20585_v0  ;;  %16515 = vmatprep.subr.mxu1 %v7529_v8  ;;  %v7319_v58 = vld [vmem:[#allocation2 + $0x30] sm:$0xff]  ;;  %v20689_v61 = vadd.f32 %v16029_v16, %v16001_v30  ;;  %v7543_v30 = vand.u32 4294901760, %v7542_v14  ;;  %v20703_v16 = vand.u32 4294901760, %v20671_v60  ;;  %v7556_v14 = vsub.f32 %v20648_v55, %v20685_v54 }
 0x28c   : > { %16453 = vmatprep.mubr.f32.mxu0 %v20362_v44  ;;  %16494 = vmatpush3.msra.mxu0 %v20585_v0  ;;  %v20698_v21 = vpop.f32.mrf.mxu1  ;;  %v7347_v59 = vsel %vm226_vm1, %v7319_v58, 0  ;;  %v7431_v58 = vsub.f32 %v20660_v41, %v23843_v33 }
 0x28d   : > { %16516 = vmatpush3.msra.mxu1 %v7529_v8  ;;  %23841 = vst [vmem:[#allocation134_spill] sm:$0xff] %v20698_v21  ;;  %16454 = vmatmul.mubr.f32.gmra.mxu0 %v20381_v47  ;;  %v20706_v8 = vsub.f32 %v7338_v40, %v20673_v1  ;;  %v16007_v27 = vpop.f32.mrf.mxu0  ;;  %v20719_v40 = vand.u32 4294901760, %v7344_v3  ;;  %v7320_v21 = vld [vmem:[#allocation2 + $0x38] sm:$0xff] }
 0x28e   : > { %16495 = vmatprep.subr.mxu0 %v20614_v62  ;;  %16517 = vmatprep.subr.mxu1 %v7536_v35  ;;  %v7350_v5 = vsel %vm226_vm1, %v7320_v21, 0  ;;  %v7570_v21 = vsub.f32 %v20695_v49, %v20732_v46 }
 0x28f   : > { %16478 = vmatprep.mubr.f32.mxu1 %v20316_v29  ;;  %16496 = vmatpush3.msra.mxu0 %v20614_v62  ;;  %v20721_v52 = vpop.f32.mrf.mxu0  ;;  %v7550_v29 = vand.u32 4294901760, %v7549_v15  ;;  %v7557_v15 = vand.u32 4294901760, %v7556_v14  ;;  %v23847_v63 = vand.u32 4294901760, %v20706_v8  ;;  %v20767_v39 = vand.u32 4294901760, %v7350_v5 }
 0x290   : > { %16518 = vmatpush3.msra.mxu1 %v7536_v35  ;;  %23842 = vst [vmem:[#allocation135_spill] sm:$0xff] %v20721_v52  ;;  %16497 = vmatprep.subr.mxu0 %v20630_v42  ;;  %v23844_v35 = vand.u32 4294901760, %v20663_v17  ;;  %v20738_v52 = vand.u32 4294901760, %v7347_v59 }
 0x291   : > { %16479 = vmatmul.mubr.f32.gmra.mxu1 %v20330_v4  ;;  %v16032_v50 = vpop.f32.mrf.mxu1  ;;  %16519 = vmatprep.subr.mxu1 %v7543_v30  ;;  %v7563_v4 = vsub.f32 %v20671_v60, %v20703_v16 }
 0x292   : > { %v7441_v28 = vsub.f32 %v20663_v17, %v23844_v35  ;;  %16456 = vmatprep.mubr.f32.mxu0 %v20410_v22  ;;  %v20741_v33 = vadd.f32 %v16032_v50, %v20653_v9  ;;  %16498 = vmatpush3.msra.mxu0 %v20630_v42  ;;  %v20745_v35 = vand.u32 4294901760, %v20710_v36  ;;  %v20754_v50 = vsub.f32 %v7344_v3, %v20719_v40 }
 0x293   : > { %16520 = vmatpush3.msra.mxu1 %v7543_v30  ;;  %v20748_v7 = vpop.f32.mrf.mxu1  ;;  %16457 = vmatmul.mubr.f32.gmra.mxu0 %v20423_v6  ;;  %v16010_v9 = vpop.f32.mrf.mxu0  ;;  %v7432_v30 = vand.u32 4294901760, %v7431_v58  ;;  %v7564_v14 = vand.u32 4294901760, %v7563_v4  ;;  %v7451_v3 = vsub.f32 %v20706_v8, %v23847_v63  ;;  %v20765_v12 = vsub.f32 %v7347_v59, %v20738_v52 }
 0x294   : > { %23845 = vst [vmem:[#allocation136_spill] sm:$0xff] %v20745_v35  ;;  %23846 = vst [vmem:[#allocation137_spill] sm:$0xff] %v20748_v7  ;;  %16499 = vmatprep.subr.mxu0 %v20657_v26  ;;  %16521 = vmatprep.subr.mxu1 %v7550_v29  ;;  %v7442_v25 = vand.u32 4294901760, %v7441_v28  ;;  %v7353_v7 = vsel %vm226_vm1, %v7321_v32, 0  ;;  %v7577_v32 = vsub.f32 %v20710_v36, %v20745_v35  ;;  %v23849_v63 = vand.u32 4294901760, %v20717_v34 }
 0x295   : > { %16481 = vmatprep.mubr.f32.mxu1 %v20362_v44  ;;  %16500 = vmatpush3.msra.mxu0 %v20657_v26  ;;  %v20769_v44 = vpop.f32.mrf.mxu0  ;;  %v20780_v58 = vand.u32 4294901760, %v7353_v7  ;;  %v7452_v51 = vand.u32 4294901760, %v7451_v3  ;;  %v7480_v20 = vand.u32 4294901760, %v20765_v12  ;;  %v20786_v35 = vsub.f32 %v7350_v5, %v20767_v39 }
 0x296   : > { %16522 = vmatpush3.msra.mxu1 %v7550_v29  ;;  %23848 = vst [vmem:[#allocation138_spill] sm:$0xff] %v20769_v44  ;;  %16501 = vmatprep.subr.mxu0 %v20679_v37  ;;  %v7461_v59 = vsub.f32 %v20717_v34, %v23849_v63  ;;  %v7470_v29 = vand.u32 4294901760, %v20754_v50 }
 0x297   : > { %16482 = vmatmul.mubr.f32.gmra.mxu1 %v20381_v47  ;;  %v16035_v28 = vpop.f32.mrf.mxu1  ;;  %16523 = vmatprep.subr.mxu1 %v7557_v15  ;;  %v7571_v47 = vand.u32 4294901760, %v7570_v21  ;;  %v20796_v21 = vsub.f32 %v7353_v7, %v20780_v58 }
 0x298   : > { %16502 = vmatpush3.msra.mxu0 %v20679_v37  ;;  %v4985_v4 = vadd.f32 %v16035_v28, %v16007_v27  ;;  %16503 = vmatprep.mubr.f32.mxu0 %v7432_v30  ;;  %v7578_v30 = vand.u32 4294901760, %v7577_v32 }
 0x299   : > { %16524 = vmatpush3.msra.mxu1 %v7557_v15  ;;  %v20782_v44 = vpop.f32.mrf.mxu1  ;;  %16504 = vmatmul.mubr.f32.vlgmr.msra.gmra.mxu0 %v7442_v25  ;;  %v16057_v38 = vpop.f32.mrf.mxu0  ;;  %v7462_v15 = vand.u32 4294901760, %v7461_v59  ;;  %v7471_v25 = vsub.f32 %v20754_v50, %v7470_v29 }
 0x29a   : > { %23850 = vst [vmem:[#allocation139_spill] sm:$0xff] %v20782_v44  ;;  %16525 = vmatprep.subr.mxu1 %v7564_v14  ;;  %16543 = vmatprep.subr.mxu0 %v20563_v43  ;;  %v5092_v27 = vadd.f32 %v16057_v38, %v20689_v61  ;;  %v7481_v61 = vsub.f32 %v20765_v12, %v7480_v20 }
 0x29b   : > { %16484 = vmatprep.mubr.f32.mxu1 %v20410_v22  ;;  %16526 = vmatpush3.msra.mxu1 %v7564_v14  ;;  %v20798_v5 = vpop.f32.mrf.mxu0  ;;  %v7500_v14 = vand.u32 4294901760, %v20796_v21 }
 0x29c   : > { %16544 = vmatpush3.msra.mxu0 %v20563_v43  ;;  %23851 = vst [vmem:[#allocation140_spill] sm:$0xff] %v20798_v5  ;;  %16485 = vmatmul.mubr.f32.gmra.mxu1 %v20423_v6  ;;  %v16038_v22 = vpop.f32.mrf.mxu1  ;;  %v7490_v43 = vand.u32 4294901760, %v20786_v35  ;;  %v7472_v6 = vand.u32 4294901760, %v7471_v25 }
 0x29d   : > { %16527 = vmatprep.subr.mxu1 %v7571_v47  ;;  %16545 = vmatprep.subr.mxu0 %v20581_v11  ;;  %v4997_v38 = vadd.f32 %v16038_v22, %v16010_v9  ;;  %v7482_v9 = vand.u32 4294901760, %v7481_v61 }
 0x29e   : > { %16506 = vmatprep.mubr.f32.mxu0 %v7452_v51  ;;  %16528 = vmatpush3.msra.mxu1 %v7571_v47  ;;  %v20807_v7 = vpop.f32.mrf.mxu1 }
 0x29f   : > { %16546 = vmatpush3.msra.mxu0 %v20581_v11  ;;  %23852 = vst [vmem:[#allocation141_spill] sm:$0xff] %v20807_v7  ;;  %16529 = vmatprep.subr.mxu1 %v7578_v30  ;;  %v7491_v11 = vsub.f32 %v20786_v35, %v7490_v43 }
 0x2a0   : > { %16507 = vmatmul.mubr.f32.gmra.mxu0 %v7462_v15  ;;  %v16060_v3 = vpop.f32.mrf.mxu0  ;;  %16547 = vmatprep.subr.mxu0 %v20597_v31 }
 0x2a1   : > { %16530 = vmatpush3.msra.mxu1 %v7578_v30  ;;  %v5106_v51 = vadd.f32 %v16060_v3, %v20741_v33  ;;  %16531 = vmatprep.mubr.f32.mxu1 %v20624_v19  ;;  %v7501_v33 = vsub.f32 %v20796_v21, %v7500_v14  ;;  %v7492_v59 = vand.u32 4294901760, %v7491_v11 }
 0x2a2   : > { %16548 = vmatpush3.msra.mxu0 %v20597_v31  ;;  %v20817_v32 = vpop.f32.mrf.mxu0  ;;  %16532 = vmatmul.mubr.f32.vlgmr.msra.gmra.mxu1 %v20626_v23  ;;  %v16085_v28 = vpop.f32.mrf.mxu1 }
 0x2a3   : > { %23853 = vst [vmem:[#allocation142_spill] sm:$0xff] %v20817_v32  ;;  %16549 = vmatprep.subr.mxu0 %v20617_v18  ;;  %16571 = vmatprep.subr.mxu1 %v20545_v53  ;;  %v5223_v31 = vadd.f32 %v16085_v28, %v5092_v27  ;;  %v7502_v27 = vand.u32 4294901760, %v7501_v33  ;;  %v23861_v33 = vand.u32 4294901760, %v20660_v41 }
 0x2a4   : > { %16509 = vmatprep.mubr.f32.mxu0 %v7472_v6  ;;  %16550 = vmatpush3.msra.mxu0 %v20617_v18  ;;  %v20827_v63 = vpop.f32.mrf.mxu1 }
 0x2a5   : > { %16572 = vmatpush3.msra.mxu1 %v20545_v53  ;;  %23854 = vst [vmem:[#allocation143_spill] sm:$0xff] %v20827_v63  ;;  %16510 = vmatmul.mubr.f32.gmra.mxu0 %v7482_v9  ;;  %v16063_v47 = vpop.f32.mrf.mxu0 }
 0x2a6   : > { %16551 = vmatprep.subr.mxu0 %v20648_v55  ;;  %16573 = vmatprep.subr.mxu1 %v20556_v13  ;;  %v5120_v15 = vadd.f32 %v16063_v47, %v4985_v4 }
 0x2a7   : > { %16534 = vmatprep.mubr.f32.mxu1 %v20673_v1  ;;  %16552 = vmatpush3.msra.mxu0 %v20648_v55  ;;  %v20834_v18 = vpop.f32.mrf.mxu0 }
 0x2a8   : > { %16574 = vmatpush3.msra.mxu1 %v20556_v13  ;;  %23855 = vst [vmem:[#allocation144_spill] sm:$0xff] %v20834_v18  ;;  %16553 = vmatprep.subr.mxu0 %v20671_v60 }
 0x2a9   : > { %16535 = vmatmul.mubr.f32.gmra.mxu1 %v20687_v56  ;;  %v16088_v30 = vpop.f32.mrf.mxu1  ;;  %16575 = vmatprep.subr.mxu1 %v20573_v48 }
 0x2aa   : > { %16512 = vmatprep.mubr.f32.mxu0 %v7492_v59  ;;  %v5239_v25 = vadd.f32 %v16088_v30, %v5106_v51  ;;  %16554 = vmatpush3.msra.mxu0 %v20671_v60 }
 0x2ab   : > { %16576 = vmatpush3.msra.mxu1 %v20573_v48  ;;  %v20841_v4 = vpop.f32.mrf.mxu1  ;;  %16513 = vmatmul.mubr.f32.gmra.mxu0 %v7502_v27  ;;  %v16066_v55 = vpop.f32.mrf.mxu0  ;;  %v23865_v27 = vand.u32 4294901760, %v20706_v8 }
 0x2ac   : > { %23856 = vst [vmem:[#allocation145_spill] sm:$0xff] %v20841_v4  ;;  %16555 = vmatprep.subr.mxu0 %v20695_v49  ;;  %16577 = vmatprep.subr.mxu1 %v20585_v0  ;;  %v5134_v22 = vadd.f32 %v16066_v55, %v4997_v38  ;;  %v23867_v55 = vand.u32 4294901760, %v20717_v34  ;;  %v8208_v4 = vld [vmem:[#allocation2 + $0x41] sm:$0xff] }
 0x2ad   : > { %16537 = vmatprep.mubr.f32.mxu1 %v20719_v40  ;;  %16556 = vmatpush3.msra.mxu0 %v20695_v49  ;;  %v20848_v61 = vpop.f32.mrf.mxu0 }
 0x2ae   : > { %16578 = vmatpush3.msra.mxu1 %v20585_v0  ;;  %23857 = vst [vmem:[#allocation146_spill] sm:$0xff] %v20848_v61  ;;  %16557 = vmatprep.subr.mxu0 %v20710_v36 }
 0x2af   : > { %16538 = vmatmul.mubr.f32.gmra.mxu1 %v20738_v52  ;;  %v16091_v60 = vpop.f32.mrf.mxu1  ;;  %16579 = vmatprep.subr.mxu1 %v20614_v62 }
 0x2b0   : > { %16558 = vmatpush3.msra.mxu0 %v20710_v36  ;;  %v5255_v6 = vadd.f32 %v16091_v60, %v5120_v15  ;;  %16559 = vmatprep.mubr.f32.mxu0 %v20660_v41  ;;  %v8217_v41 = vld [vmem:[#allocation5 + $0x278] sm:$0xff]  ;;  %v23869_v60 = vld [vmem:[#allocation53_spill] sm:$0xff] }
 0x2b1   : > { %16580 = vmatpush3.msra.mxu1 %v20614_v62  ;;  %v20856_v38 = vpop.f32.mrf.mxu1  ;;  %16560 = vmatmul.mubr.f32.vlgmr.msra.gmra.mxu0 %v20663_v17  ;;  %v16113_v49 = vpop.f32.mrf.mxu0 }
 0x2b2   : > { %23858 = vst [vmem:[#allocation147_spill] sm:$0xff] %v20856_v38  ;;  %16581 = vmatprep.subr.mxu1 %v20630_v42  ;;  %16599 = vmatprep.subr.mxu0 %v20588_v24  ;;  %v5372_v3 = vadd.f32 %v16113_v49, %v5223_v31 }
 0x2b3   : > { %16540 = vmatprep.mubr.f32.mxu1 %v20767_v39  ;;  %16582 = vmatpush3.msra.mxu1 %v20630_v42  ;;  %v20864_v36 = vpop.f32.mrf.mxu0 }
 0x2b4   : > { %16600 = vmatpush3.msra.mxu0 %v20588_v24  ;;  %23859 = vst [vmem:[#allocation148_spill] sm:$0xff] %v20864_v36  ;;  %16541 = vmatmul.mubr.f32.gmra.mxu1 %v20780_v58  ;;  %v16094_v51 = vpop.f32.mrf.mxu1 }
 0x2b5   : > { %16583 = vmatprep.subr.mxu1 %v20657_v26  ;;  %16601 = vmatprep.subr.mxu0 %v20608_v2  ;;  %v5271_v9 = vadd.f32 %v16094_v51, %v5134_v22 }
 0x2b6   : > { %16562 = vmatprep.mubr.f32.mxu0 %v20706_v8  ;;  %16584 = vmatpush3.msra.mxu1 %v20657_v26  ;;  %v20872_v11 = vpop.f32.mrf.mxu1 }
 0x2b7   : > { %16602 = vmatpush3.msra.mxu0 %v20608_v2  ;;  %23860 = vst [vmem:[#allocation149_spill] sm:$0xff] %v20872_v11  ;;  %16585 = vmatprep.subr.mxu1 %v20679_v37  ;;  %v23863_v2 = vand.u32 4294901760, %v20663_v17 }
 0x2b8   : > { %16563 = vmatmul.mubr.f32.gmra.mxu0 %v20717_v34  ;;  %v16116_v24 = vpop.f32.mrf.mxu0  ;;  %16603 = vmatprep.subr.mxu0 %v20633_v45 }
 0x2b9   : > { %16586 = vmatpush3.msra.mxu1 %v20679_v37  ;;  %v5384_v28 = vadd.f32 %v16116_v24, %v5239_v25  ;;  %16587 = vmatprep.mubr.f32.mxu1 %v23861_v33  ;;  %v23872_v24 = vld [vmem:[#allocation136_spill] sm:$0xff] }
 0x2ba   : > { %16604 = vmatpush3.msra.mxu0 %v20633_v45  ;;  %v20881_v31 = vpop.f32.mrf.mxu0  ;;  %16588 = vmatmul.mubr.f32.vlgmr.msra.gmra.mxu1 %v23863_v2  ;;  %v16141_v59 = vpop.f32.mrf.mxu1 }
 0x2bb   : > { %23862 = vst [vmem:[#allocation150_spill] sm:$0xff] %v20881_v31  ;;  %16605 = vmatprep.subr.mxu0 %v20645_v57  ;;  %16627 = vmatprep.subr.mxu1 %v20545_v53  ;;  %v5493_v47 = vadd.f32 %v16141_v59, %v5372_v3 }
 0x2bc   : > { %16565 = vmatprep.mubr.f32.mxu0 %v20754_v50  ;;  %16606 = vmatpush3.msra.mxu0 %v20645_v57  ;;  %v20890_v15 = vpop.f32.mrf.mxu1  ;;  %v8216_v57 = vld [vmem:[#allocation5 + $0x270] sm:$0xff]  ;;  %v8201_v50 = vld [vmem:[#allocation2 + $0x9] sm:$0xff] }
 0x2bd   : > { %16628 = vmatpush3.msra.mxu1 %v20545_v53  ;;  %23864 = vst [vmem:[#allocation151_spill] sm:$0xff] %v20890_v15  ;;  %16566 = vmatmul.mubr.f32.gmra.mxu0 %v20765_v12  ;;  %v20895_v45 = vadd.f32 %v5493_v47, %v20538_v10  ;;  %v16119_v17 = vpop.f32.mrf.mxu0  ;;  %v20902_v53 = vand.u32 4294901760, %v8217_v41  ;;  %v8213_v12 = vld [vmem:[#allocation5 + $0x258] sm:$0xff]  ;;  %v8219_v59 = vsel %vm226_vm1, %v8201_v50, 0 }
 0x2be   : > { %16607 = vmatprep.subr.mxu0 %v20685_v54  ;;  %16629 = vmatprep.subr.mxu1 %v20556_v13  ;;  %v5396_v30 = vadd.f32 %v16119_v17, %v5255_v6 }
 0x2bf   : > { %16590 = vmatprep.mubr.f32.mxu1 %v23865_v27  ;;  %16608 = vmatpush3.msra.mxu0 %v20685_v54  ;;  %v20904_v25 = vpop.f32.mrf.mxu0  ;;  %v8215_v54 = vld [vmem:[#allocation5 + $0x268] sm:$0xff]  ;;  %v20920_v34 = vsub.f32 %v8217_v41, %v20902_v53  ;;  %v23874_v41 = vld [vmem:[#allocation56_spill] sm:$0xff] }
 0x2c0   : > { %16630 = vmatpush3.msra.mxu1 %v20556_v13  ;;  %23866 = vst [vmem:[#allocation152_spill] sm:$0xff] %v20904_v25  ;;  %16609 = vmatprep.subr.mxu0 %v20703_v16  ;;  %v20913_v13 = vand.u32 4294901760, %v8216_v57  ;;  %v20930_v3 = vand.u32 4294901760, %v8215_v54 }
 0x2c1   : > { %16591 = vmatmul.mubr.f32.gmra.mxu1 %v23867_v55  ;;  %v16144_v10 = vpop.f32.mrf.mxu1  ;;  %16631 = vmatprep.subr.mxu1 %v20573_v48  ;;  %v20971_v55 = vand.u32 4294901760, %v8213_v12 }
 0x2c2   : > { %16568 = vmatprep.mubr.f32.mxu0 %v20786_v35  ;;  %v5505_v8 = vadd.f32 %v16144_v10, %v5384_v28  ;;  %16610 = vmatpush3.msra.mxu0 %v20703_v16  ;;  %v20938_v28 = vsub.f32 %v8216_v57, %v20913_v13  ;;  %v20954_v2 = vsub.f32 %v8215_v54, %v20930_v3  ;;  %v20981_v35 = vand.u32 4294901760, %v8219_v59 }
 0x2c3   : > { %16632 = vmatpush3.msra.mxu1 %v20573_v48  ;;  %v20915_v22 = vpop.f32.mrf.mxu1  ;;  %16569 = vmatmul.mubr.f32.gmra.mxu0 %v20796_v21  ;;  %v16122_v49 = vpop.f32.mrf.mxu0  ;;  %v8214_v48 = vld [vmem:[#allocation5 + $0x260] sm:$0xff] }
 0x2c4   : > { %23868 = vst [vmem:[#allocation153_spill] sm:$0xff] %v20915_v22  ;;  %16611 = vmatprep.subr.mxu0 %v20732_v46  ;;  %v20923_v6 = vadd.f32 %v5505_v8, %v23869_v60  ;;  %16633 = vmatprep.subr.mxu1 %v20585_v0  ;;  %v5408_v16 = vadd.f32 %v16122_v49, %v5271_v9  ;;  %v8203_v8 = vld [vmem:[#allocation2 + $0x19] sm:$0xff]  ;;  %v20990_v49 = vand.u32 4294901760, %v20954_v2 }
 0x2c5   : > { %16593 = vmatprep.mubr.f32.mxu1 %v7470_v29  ;;  %16612 = vmatpush3.msra.mxu0 %v20732_v46  ;;  %v20932_v51 = vpop.f32.mrf.mxu0  ;;  %v8202_v29 = vld [vmem:[#allocation2 + $0x11] sm:$0xff]  ;;  %v20945_v46 = vand.u32 4294901760, %v20920_v34  ;;  %v8225_v50 = vsel %vm226_vm1, %v8203_v8, 0 }
 0x2c6   : > { %23870 = vst [vmem:[#allocation53_spill] sm:$0xff] %v20923_v6  ;;  %16634 = vmatpush3.msra.mxu1 %v20585_v0  ;;  %23871 = vst [vmem:[#allocation154_spill] sm:$0xff] %v20932_v51  ;;  %16613 = vmatprep.subr.mxu0 %v23872_v24  ;;  %v20942_v0 = vand.u32 4294901760, %v8214_v48  ;;  %v8222_v47 = vsel %vm226_vm1, %v8202_v29, 0  ;;  %v8205_v51 = vld [vmem:[#allocation2 + $0x29] sm:$0xff] }
 0x2c7   : > { %16594 = vmatmul.mubr.f32.gmra.mxu1 %v7480_v20  ;;  %v16147_v33 = vpop.f32.mrf.mxu1  ;;  %16635 = vmatprep.subr.mxu1 %v20614_v62  ;;  %v8415_v57 = vsub.f32 %v20920_v34, %v20945_v46  ;;  %v8231_v15 = vsel %vm226_vm1, %v8205_v51, 0 }
 0x2c8   : > { %16614 = vmatpush3.msra.mxu0 %v23872_v24  ;;  %v5517_v9 = vadd.f32 %v16147_v33, %v5396_v30  ;;  %16615 = vmatprep.mubr.f32.mxu0 %v20624_v19  ;;  %v8212_v30 = vld [vmem:[#allocation5 + $0x250] sm:$0xff]  ;;  %v20974_v10 = vsub.f32 %v8214_v48, %v20942_v0  ;;  %v8211_v48 = vld [vmem:[#allocation5 + $0x248] sm:$0xff] }
 0x2c9   : > { %16636 = vmatpush3.msra.mxu1 %v20614_v62  ;;  %v20949_v20 = vpop.f32.mrf.mxu1  ;;  %16616 = vmatmul.mubr.f32.vlgmr.msra.gmra.mxu0 %v20626_v23  ;;  %v16169_v27 = vpop.f32.mrf.mxu0  ;;  %v20965_v62 = vand.u32 4294901760, %v20938_v28  ;;  %v20987_v60 = vand.u32 4294901760, %v8212_v30  ;;  %v8204_v24 = vld [vmem:[#allocation2 + $0x21] sm:$0xff]  ;;  %v8416_v33 = vand.u32 4294901760, %v8415_v57  ;;  %v21014_v8 = vand.u32 4294901760, %v8211_v48 }
 0x2ca   : > { %23873 = vst [vmem:[#allocation136_spill] sm:$0xff] %v20949_v20  ;;  %16637 = vmatprep.subr.mxu1 %v20630_v42  ;;  %v20959_v17 = vadd.f32 %v5517_v9, %v23874_v41  ;;  %16655 = vmatprep.subr.mxu0 %v20902_v53  ;;  %v21002_v9 = vand.u32 4294901760, %v20974_v10  ;;  %v23878_v41 = vld [vmem:[#allocation59_spill] sm:$0xff]  ;;  %v21017_v57 = vsub.f32 %v8219_v59, %v20981_v35 }
 0x2cb   : > { %16596 = vmatprep.mubr.f32.mxu1 %v7490_v43  ;;  %16638 = vmatpush3.msra.mxu1 %v20630_v42  ;;  %v20976_v54 = vpop.f32.mrf.mxu0  ;;  %v20983_v42 = vand.u32 4294901760, %v8222_v47  ;;  %v21052_v25 = vsub.f32 %v8211_v48, %v21014_v8 }
 0x2cc   : > { %23875 = vst [vmem:[#allocation56_spill] sm:$0xff] %v20959_v17  ;;  %16656 = vmatpush3.msra.mxu0 %v20902_v53  ;;  %23876 = vst [vmem:[#allocation155_spill] sm:$0xff] %v20976_v54  ;;  %16597 = vmatmul.mubr.f32.gmra.mxu1 %v7500_v14  ;;  %v16150_v43 = vpop.f32.mrf.mxu1  ;;  %v8422_v14 = vsub.f32 %v20938_v28, %v20965_v62 }
 0x2cd   : > { %16639 = vmatprep.subr.mxu1 %v20657_v26  ;;  %16657 = vmatprep.subr.mxu0 %v20913_v13  ;;  %v5529_v21 = vadd.f32 %v16150_v43, %v5408_v16  ;;  %v8210_v16 = vld [vmem:[#allocation5 + $0x240] sm:$0xff] }
 0x2ce   : > { %16618 = vmatprep.mubr.f32.mxu0 %v20673_v1  ;;  %16640 = vmatpush3.msra.mxu1 %v20657_v26  ;;  %v20997_v29 = vpop.f32.mrf.mxu1  ;;  %v21005_v26 = vsub.f32 %v8213_v12, %v20971_v55  ;;  %v8228_v12 = vsel %vm226_vm1, %v8204_v24, 0  ;;  %v21036_v24 = vand.u32 4294901760, %v8210_v16 }
 0x2cf   : > { %16658 = vmatpush3.msra.mxu0 %v20913_v13  ;;  %23877 = vst [vmem:[#allocation156_spill] sm:$0xff] %v20997_v29  ;;  %16641 = vmatprep.subr.mxu1 %v20679_v37  ;;  %v21008_v43 = vadd.f32 %v5529_v21, %v23878_v41  ;;  %v21020_v29 = vsub.f32 %v8222_v47, %v20983_v42  ;;  %v8423_v47 = vand.u32 4294901760, %v8422_v14  ;;  %v21044_v20 = vand.u32 4294901760, %v8228_v12 }
 0x2d0   : > { %16619 = vmatmul.mubr.f32.gmra.mxu0 %v20687_v56  ;;  %v21010_v54 = vpop.f32.mrf.mxu0  ;;  %16659 = vmatprep.subr.mxu0 %v20930_v3  ;;  %v8429_v21 = vsub.f32 %v20954_v2, %v20990_v49  ;;  %v21028_v41 = vsub.f32 %v8212_v30, %v20987_v60  ;;  %v8436_v30 = vsub.f32 %v20974_v10, %v21002_v9  ;;  %v21042_v11 = vand.u32 4294901760, %v21005_v26 }
 0x2d1   : > { %23879 = vst [vmem:[#allocation59_spill] sm:$0xff] %v21008_v43  ;;  %16642 = vmatpush3.msra.mxu1 %v20679_v37  ;;  %16643 = vmatprep.mubr.f32.mxu1 %v20624_v19  ;;  %v21030_v37 = vand.u32 4294901760, %v8225_v50  ;;  %v21067_v48 = vsub.f32 %v8210_v16, %v21036_v24  ;;  %v21074_v14 = vsub.f32 %v8228_v12, %v21044_v20  ;;  %v23883_v16 = vand.u32 4294901760, %v21017_v57 }
 0x2d2   : > { %16660 = vmatpush3.msra.mxu0 %v20930_v3  ;;  %v21032_v59 = vpop.f32.mrf.mxu0  ;;  %16644 = vmatmul.mubr.f32.vlgmr.msra.gmra.mxu1 %v20626_v23  ;;  %v16197_v19 = vpop.f32.mrf.mxu1  ;;  %v21089_v12 = vand.u32 4294901760, %v21052_v25 }
 0x2d3   : > { %23880 = vst [vmem:[#allocation157_spill] sm:$0xff] %v21032_v59  ;;  %16661 = vmatprep.subr.mxu0 %v20942_v0  ;;  %16683 = vmatprep.subr.mxu1 %v8416_v33  ;;  %v8206_v59 = vld [vmem:[#allocation2 + $0x31] sm:$0xff]  ;;  %v21046_v22 = vadd.f32 %v16197_v19, %v16169_v27  ;;  %v8430_v27 = vand.u32 4294901760, %v8429_v21  ;;  %v21060_v19 = vand.u32 4294901760, %v21028_v41  ;;  %v8443_v21 = vsub.f32 %v21005_v26, %v21042_v11 }
 0x2d4   : > { %16621 = vmatprep.mubr.f32.mxu0 %v20719_v40  ;;  %16662 = vmatpush3.msra.mxu0 %v20942_v0  ;;  %v21055_v31 = vpop.f32.mrf.mxu1  ;;  %v8234_v51 = vsel %vm226_vm1, %v8206_v59, 0  ;;  %v8318_v59 = vsub.f32 %v21017_v57, %v23883_v16 }
 0x2d5   : > { %16684 = vmatpush3.msra.mxu1 %v8416_v33  ;;  %23881 = vst [vmem:[#allocation158_spill] sm:$0xff] %v21055_v31  ;;  %16622 = vmatmul.mubr.f32.gmra.mxu0 %v20738_v52  ;;  %v21063_v33 = vsub.f32 %v8225_v50, %v21030_v37  ;;  %v16175_v23 = vpop.f32.mrf.mxu0  ;;  %v21076_v50 = vand.u32 4294901760, %v8231_v15  ;;  %v8207_v31 = vld [vmem:[#allocation2 + $0x39] sm:$0xff] }
 0x2d6   : > { %16663 = vmatprep.subr.mxu0 %v20971_v55  ;;  %16685 = vmatprep.subr.mxu1 %v8423_v47  ;;  %v8237_v18 = vsel %vm226_vm1, %v8207_v31, 0  ;;  %v8457_v31 = vsub.f32 %v21052_v25, %v21089_v12 }
 0x2d7   : > { %16646 = vmatprep.mubr.f32.mxu1 %v20673_v1  ;;  %16664 = vmatpush3.msra.mxu0 %v20971_v55  ;;  %v21078_v36 = vpop.f32.mrf.mxu0  ;;  %v8437_v1 = vand.u32 4294901760, %v8436_v30  ;;  %v8444_v30 = vand.u32 4294901760, %v8443_v21  ;;  %v23887_v32 = vand.u32 4294901760, %v21063_v33  ;;  %v21124_v5 = vand.u32 4294901760, %v8237_v18 }
 0x2d8   : > { %16686 = vmatpush3.msra.mxu1 %v8423_v47  ;;  %23882 = vst [vmem:[#allocation159_spill] sm:$0xff] %v21078_v36  ;;  %16665 = vmatprep.subr.mxu0 %v20987_v60  ;;  %v23884_v47 = vand.u32 4294901760, %v21020_v29  ;;  %v21095_v36 = vand.u32 4294901760, %v8234_v51 }
 0x2d9   : > { %16647 = vmatmul.mubr.f32.gmra.mxu1 %v20687_v56  ;;  %v16200_v61 = vpop.f32.mrf.mxu1  ;;  %16687 = vmatprep.subr.mxu1 %v8430_v27  ;;  %v8450_v56 = vsub.f32 %v21028_v41, %v21060_v19 }
 0x2da   : > { %v8328_v38 = vsub.f32 %v21020_v29, %v23884_v47  ;;  %16624 = vmatprep.mubr.f32.mxu0 %v20767_v39  ;;  %v21098_v16 = vadd.f32 %v16200_v61, %v21010_v54  ;;  %16666 = vmatpush3.msra.mxu0 %v20987_v60  ;;  %v21102_v47 = vand.u32 4294901760, %v21067_v48  ;;  %v21111_v61 = vsub.f32 %v8231_v15, %v21076_v50 }
 0x2db   : > { %16688 = vmatpush3.msra.mxu1 %v8430_v27  ;;  %v21105_v63 = vpop.f32.mrf.mxu1  ;;  %16625 = vmatmul.mubr.f32.gmra.mxu0 %v20780_v58  ;;  %v16178_v54 = vpop.f32.mrf.mxu0  ;;  %v8319_v27 = vand.u32 4294901760, %v8318_v59  ;;  %v8451_v21 = vand.u32 4294901760, %v8450_v56  ;;  %v8338_v15 = vsub.f32 %v21063_v33, %v23887_v32  ;;  %v21122_v44 = vsub.f32 %v8234_v51, %v21095_v36 }
 0x2dc   : > { %23885 = vst [vmem:[#allocation160_spill] sm:$0xff] %v21102_v47  ;;  %23886 = vst [vmem:[#allocation161_spill] sm:$0xff] %v21105_v63  ;;  %16667 = vmatprep.subr.mxu0 %v21014_v8  ;;  %16689 = vmatprep.subr.mxu1 %v8437_v1  ;;  %v8329_v7 = vand.u32 4294901760, %v8328_v38  ;;  %v8240_v63 = vsel %vm226_vm1, %v8208_v4, 0  ;;  %v8464_v4 = vsub.f32 %v21067_v48, %v21102_v47  ;;  %v23889_v32 = vand.u32 4294901760, %v21074_v14 }
 0x2dd   : > { %16649 = vmatprep.mubr.f32.mxu1 %v20719_v40  ;;  %16668 = vmatpush3.msra.mxu0 %v21014_v8  ;;  %v21126_v40 = vpop.f32.mrf.mxu0  ;;  %v21137_v59 = vand.u32 4294901760, %v8240_v63  ;;  %v8339_v43 = vand.u32 4294901760, %v8338_v15  ;;  %v8367_v17 = vand.u32 4294901760, %v21122_v44  ;;  %v21143_v47 = vsub.f32 %v8237_v18, %v21124_v5 }
 0x2de   : > { %16690 = vmatpush3.msra.mxu1 %v8437_v1  ;;  %23888 = vst [vmem:[#allocation162_spill] sm:$0xff] %v21126_v40  ;;  %16669 = vmatprep.subr.mxu0 %v21036_v24  ;;  %v8348_v51 = vsub.f32 %v21074_v14, %v23889_v32  ;;  %v8357_v1 = vand.u32 4294901760, %v21111_v61 }
 0x2df   : > { %16650 = vmatmul.mubr.f32.gmra.mxu1 %v20738_v52  ;;  %v16203_v38 = vpop.f32.mrf.mxu1  ;;  %16691 = vmatprep.subr.mxu1 %v8444_v30  ;;  %v8458_v52 = vand.u32 4294901760, %v8457_v31  ;;  %v21153_v31 = vsub.f32 %v8240_v63, %v21137_v59 }
 0x2e0   : > { %16670 = vmatpush3.msra.mxu0 %v21036_v24  ;;  %v5872_v56 = vadd.f32 %v16203_v38, %v16175_v23  ;;  %16671 = vmatprep.mubr.f32.mxu0 %v8319_v27  ;;  %v8465_v27 = vand.u32 4294901760, %v8464_v4 }
 0x2e1   : > { %16692 = vmatpush3.msra.mxu1 %v8444_v30  ;;  %v21139_v40 = vpop.f32.mrf.mxu1  ;;  %16672 = vmatmul.mubr.f32.vlgmr.msra.gmra.mxu0 %v8329_v7  ;;  %v16225_v6 = vpop.f32.mrf.mxu0  ;;  %v8349_v30 = vand.u32 4294901760, %v8348_v51  ;;  %v8358_v7 = vsub.f32 %v21111_v61, %v8357_v1 }
 0x2e2   : > { %23890 = vst [vmem:[#allocation163_spill] sm:$0xff] %v21139_v40  ;;  %16693 = vmatprep.subr.mxu1 %v8451_v21  ;;  %16711 = vmatprep.subr.mxu0 %v20920_v34  ;;  %v5979_v23 = vadd.f32 %v16225_v6, %v21046_v22  ;;  %v8368_v22 = vsub.f32 %v21122_v44, %v8367_v17 }
 0x2e3   : > { %16652 = vmatprep.mubr.f32.mxu1 %v20767_v39  ;;  %16694 = vmatpush3.msra.mxu1 %v8451_v21  ;;  %v21155_v18 = vpop.f32.mrf.mxu0  ;;  %v8387_v21 = vand.u32 4294901760, %v21153_v31 }
 0x2e4   : > { %16712 = vmatpush3.msra.mxu0 %v20920_v34  ;;  %23891 = vst [vmem:[#allocation164_spill] sm:$0xff] %v21155_v18  ;;  %16653 = vmatmul.mubr.f32.gmra.mxu1 %v20780_v58  ;;  %v16206_v39 = vpop.f32.mrf.mxu1  ;;  %v8377_v34 = vand.u32 4294901760, %v21143_v47  ;;  %v8359_v58 = vand.u32 4294901760, %v8358_v7 }
 0x2e5   : > { %16695 = vmatprep.subr.mxu1 %v8458_v52  ;;  %16713 = vmatprep.subr.mxu0 %v20938_v28  ;;  %v5884_v6 = vadd.f32 %v16206_v39, %v16178_v54  ;;  %v8369_v54 = vand.u32 4294901760, %v8368_v22 }
 0x2e6   : > { %16674 = vmatprep.mubr.f32.mxu0 %v8339_v43  ;;  %16696 = vmatpush3.msra.mxu1 %v8458_v52  ;;  %v21164_v63 = vpop.f32.mrf.mxu1 }
 0x2e7   : > { %16714 = vmatpush3.msra.mxu0 %v20938_v28  ;;  %23892 = vst [vmem:[#allocation165_spill] sm:$0xff] %v21164_v63  ;;  %16697 = vmatprep.subr.mxu1 %v8465_v27  ;;  %v8378_v28 = vsub.f32 %v21143_v47, %v8377_v34 }
 0x2e8   : > { %16675 = vmatmul.mubr.f32.gmra.mxu0 %v8349_v30  ;;  %v16228_v15 = vpop.f32.mrf.mxu0  ;;  %16715 = vmatprep.subr.mxu0 %v20954_v2 }
 0x2e9   : > { %16698 = vmatpush3.msra.mxu1 %v8465_v27  ;;  %v5993_v43 = vadd.f32 %v16228_v15, %v21098_v16  ;;  %16699 = vmatprep.mubr.f32.mxu1 %v20981_v35  ;;  %v8388_v16 = vsub.f32 %v21153_v31, %v8387_v21  ;;  %v8379_v51 = vand.u32 4294901760, %v8378_v28 }
 0x2ea   : > { %16716 = vmatpush3.msra.mxu0 %v20954_v2  ;;  %v21174_v4 = vpop.f32.mrf.mxu0  ;;  %16700 = vmatmul.mubr.f32.vlgmr.msra.gmra.mxu1 %v20983_v42  ;;  %v16253_v38 = vpop.f32.mrf.mxu1 }
 0x2eb   : > { %23893 = vst [vmem:[#allocation166_spill] sm:$0xff] %v21174_v4  ;;  %16717 = vmatprep.subr.mxu0 %v20974_v10  ;;  %16739 = vmatprep.subr.mxu1 %v20902_v53  ;;  %v6110_v2 = vadd.f32 %v16253_v38, %v5979_v23  ;;  %v8389_v23 = vand.u32 4294901760, %v8388_v16  ;;  %v23901_v16 = vand.u32 4294901760, %v21017_v57 }
 0x2ec   : > { %16677 = vmatprep.mubr.f32.mxu0 %v8359_v58  ;;  %16718 = vmatpush3.msra.mxu0 %v20974_v10  ;;  %v21184_v32 = vpop.f32.mrf.mxu1 }
 0x2ed   : > { %16740 = vmatpush3.msra.mxu1 %v20902_v53  ;;  %23894 = vst [vmem:[#allocation167_spill] sm:$0xff] %v21184_v32  ;;  %16678 = vmatmul.mubr.f32.gmra.mxu0 %v8369_v54  ;;  %v16231_v52 = vpop.f32.mrf.mxu0 }
 0x2ee   : > { %16719 = vmatprep.subr.mxu0 %v21005_v26  ;;  %16741 = vmatprep.subr.mxu1 %v20913_v13  ;;  %v6007_v30 = vadd.f32 %v16231_v52, %v5872_v56 }
 0x2ef   : > { %16702 = vmatprep.mubr.f32.mxu1 %v21030_v37  ;;  %16720 = vmatpush3.msra.mxu0 %v21005_v26  ;;  %v21191_v10 = vpop.f32.mrf.mxu0 }
 0x2f0   : > { %16742 = vmatpush3.msra.mxu1 %v20913_v13  ;;  %23895 = vst [vmem:[#allocation168_spill] sm:$0xff] %v21191_v10  ;;  %16721 = vmatprep.subr.mxu0 %v21028_v41  ;;  %v9095_v10 = vld [vmem:[#allocation2 + $0x42] sm:$0xff] }
 0x2f1   : > { %16703 = vmatmul.mubr.f32.gmra.mxu1 %v21044_v20  ;;  %v16256_v27 = vpop.f32.mrf.mxu1  ;;  %16743 = vmatprep.subr.mxu1 %v20930_v3 }
 0x2f2   : > { %16680 = vmatprep.mubr.f32.mxu0 %v8379_v51  ;;  %v6126_v7 = vadd.f32 %v16256_v27, %v5993_v43  ;;  %16722 = vmatpush3.msra.mxu0 %v21028_v41 }
 0x2f3   : > { %16744 = vmatpush3.msra.mxu1 %v20930_v3  ;;  %v21198_v56 = vpop.f32.mrf.mxu1  ;;  %16681 = vmatmul.mubr.f32.gmra.mxu0 %v8389_v23  ;;  %v16234_v26 = vpop.f32.mrf.mxu0  ;;  %v23905_v23 = vand.u32 4294901760, %v21063_v33 }
 0x2f4   : > { %23896 = vst [vmem:[#allocation169_spill] sm:$0xff] %v21198_v56  ;;  %16723 = vmatprep.subr.mxu0 %v21052_v25  ;;  %16745 = vmatprep.subr.mxu1 %v20942_v0  ;;  %v6021_v39 = vadd.f32 %v16234_v26, %v5884_v6  ;;  %v23907_v26 = vand.u32 4294901760, %v21074_v14 }
 0x2f5   : > { %16705 = vmatprep.mubr.f32.mxu1 %v21076_v50  ;;  %16724 = vmatpush3.msra.mxu0 %v21052_v25  ;;  %v21205_v22 = vpop.f32.mrf.mxu0 }
 0x2f6   : > { %16746 = vmatpush3.msra.mxu1 %v20942_v0  ;;  %23897 = vst [vmem:[#allocation170_spill] sm:$0xff] %v21205_v22  ;;  %16725 = vmatprep.subr.mxu0 %v21067_v48 }
 0x2f7   : > { %16706 = vmatmul.mubr.f32.gmra.mxu1 %v21095_v36  ;;  %v16259_v41 = vpop.f32.mrf.mxu1  ;;  %16747 = vmatprep.subr.mxu1 %v20971_v55 }
 0x2f8   : > { %16726 = vmatpush3.msra.mxu0 %v21067_v48  ;;  %v6142_v58 = vadd.f32 %v16259_v41, %v6007_v30  ;;  %16727 = vmatprep.mubr.f32.mxu0 %v21017_v57  ;;  %v9104_v57 = vld [vmem:[#allocation5 + $0x2b8] sm:$0xff]  ;;  %v23909_v41 = vld [vmem:[#allocation53_spill] sm:$0xff] }
 0x2f9   : > { %16748 = vmatpush3.msra.mxu1 %v20971_v55  ;;  %v21213_v6 = vpop.f32.mrf.mxu1  ;;  %16728 = vmatmul.mubr.f32.vlgmr.msra.gmra.mxu0 %v21020_v29  ;;  %v16281_v25 = vpop.f32.mrf.mxu0 }
 0x2fa   : > { %23898 = vst [vmem:[#allocation171_spill] sm:$0xff] %v21213_v6  ;;  %16749 = vmatprep.subr.mxu1 %v20987_v60  ;;  %16767 = vmatprep.subr.mxu0 %v20945_v46  ;;  %v6259_v15 = vadd.f32 %v16281_v25, %v6110_v2 }
 0x2fb   : > { %16708 = vmatprep.mubr.f32.mxu1 %v21124_v5  ;;  %16750 = vmatpush3.msra.mxu1 %v20987_v60  ;;  %v21221_v48 = vpop.f32.mrf.mxu0 }
 0x2fc   : > { %16768 = vmatpush3.msra.mxu0 %v20945_v46  ;;  %23899 = vst [vmem:[#allocation172_spill] sm:$0xff] %v21221_v48  ;;  %16709 = vmatmul.mubr.f32.gmra.mxu1 %v21137_v59  ;;  %v16262_v43 = vpop.f32.mrf.mxu1 }
 0x2fd   : > { %16751 = vmatprep.subr.mxu1 %v21014_v8  ;;  %16769 = vmatprep.subr.mxu0 %v20965_v62  ;;  %v6158_v54 = vadd.f32 %v16262_v43, %v6021_v39 }
 0x2fe   : > { %16730 = vmatprep.mubr.f32.mxu0 %v21063_v33  ;;  %16752 = vmatpush3.msra.mxu1 %v21014_v8  ;;  %v21229_v28 = vpop.f32.mrf.mxu1 }
 0x2ff   : > { %16770 = vmatpush3.msra.mxu0 %v20965_v62  ;;  %23900 = vst [vmem:[#allocation173_spill] sm:$0xff] %v21229_v28  ;;  %16753 = vmatprep.subr.mxu1 %v21036_v24  ;;  %v23903_v62 = vand.u32 4294901760, %v21020_v29 }
 0x300   : > { %16731 = vmatmul.mubr.f32.gmra.mxu0 %v21074_v14  ;;  %v16284_v46 = vpop.f32.mrf.mxu0  ;;  %16771 = vmatprep.subr.mxu0 %v20990_v49 }
 0x301   : > { %16754 = vmatpush3.msra.mxu1 %v21036_v24  ;;  %v6271_v38 = vadd.f32 %v16284_v46, %v6126_v7  ;;  %16755 = vmatprep.mubr.f32.mxu1 %v23901_v16  ;;  %v23912_v46 = vld [vmem:[#allocation160_spill] sm:$0xff] }
 0x302   : > { %16772 = vmatpush3.msra.mxu0 %v20990_v49  ;;  %v21238_v2 = vpop.f32.mrf.mxu0  ;;  %16756 = vmatmul.mubr.f32.vlgmr.msra.gmra.mxu1 %v23903_v62  ;;  %v16309_v51 = vpop.f32.mrf.mxu1 }
 0x303   : > { %23902 = vst [vmem:[#allocation174_spill] sm:$0xff] %v21238_v2  ;;  %16773 = vmatprep.subr.mxu0 %v21002_v9  ;;  %16795 = vmatprep.subr.mxu1 %v20902_v53  ;;  %v6380_v52 = vadd.f32 %v16309_v51, %v6259_v15 }
 0x304   : > { %16733 = vmatprep.mubr.f32.mxu0 %v21111_v61  ;;  %16774 = vmatpush3.msra.mxu0 %v21002_v9  ;;  %v21247_v30 = vpop.f32.mrf.mxu1  ;;  %v9103_v9 = vld [vmem:[#allocation5 + $0x2b0] sm:$0xff]  ;;  %v9088_v61 = vld [vmem:[#allocation2 + $0xa] sm:$0xff] }
 0x305   : > { %16796 = vmatpush3.msra.mxu1 %v20902_v53  ;;  %23904 = vst [vmem:[#allocation175_spill] sm:$0xff] %v21247_v30  ;;  %16734 = vmatmul.mubr.f32.gmra.mxu0 %v21122_v44  ;;  %v21252_v49 = vadd.f32 %v6380_v52, %v20895_v45  ;;  %v16287_v29 = vpop.f32.mrf.mxu0  ;;  %v21259_v53 = vand.u32 4294901760, %v9104_v57  ;;  %v9100_v44 = vld [vmem:[#allocation5 + $0x298] sm:$0xff]  ;;  %v9106_v51 = vsel %vm226_vm1, %v9088_v61, 0 }
 0x306   : > { %16775 = vmatprep.subr.mxu0 %v21042_v11  ;;  %16797 = vmatprep.subr.mxu1 %v20913_v13  ;;  %v6283_v27 = vadd.f32 %v16287_v29, %v6142_v58 }
 0x307   : > { %16758 = vmatprep.mubr.f32.mxu1 %v23905_v23  ;;  %16776 = vmatpush3.msra.mxu0 %v21042_v11  ;;  %v21261_v7 = vpop.f32.mrf.mxu0  ;;  %v21270_v11 = vand.u32 4294901760, %v9103_v9  ;;  %v21277_v14 = vsub.f32 %v9104_v57, %v21259_v53  ;;  %v23914_v57 = vld [vmem:[#allocation56_spill] sm:$0xff] }
 0x308   : > { %16798 = vmatpush3.msra.mxu1 %v20913_v13  ;;  %23906 = vst [vmem:[#allocation176_spill] sm:$0xff] %v21261_v7  ;;  %16777 = vmatprep.subr.mxu0 %v21060_v19  ;;  %v9102_v13 = vld [vmem:[#allocation5 + $0x2a8] sm:$0xff] }
 0x309   : > { %16759 = vmatmul.mubr.f32.gmra.mxu1 %v23907_v26  ;;  %v16312_v45 = vpop.f32.mrf.mxu1  ;;  %16799 = vmatprep.subr.mxu1 %v20930_v3  ;;  %v21287_v15 = vand.u32 4294901760, %v9102_v13  ;;  %v21328_v26 = vand.u32 4294901760, %v9100_v44 }
 0x30a   : > { %16736 = vmatprep.mubr.f32.mxu0 %v21143_v47  ;;  %v6392_v33 = vadd.f32 %v16312_v45, %v6271_v38  ;;  %16778 = vmatpush3.msra.mxu0 %v21060_v19  ;;  %v21295_v38 = vsub.f32 %v9103_v9, %v21270_v11  ;;  %v21338_v47 = vand.u32 4294901760, %v9106_v51 }
 0x30b   : > { %16800 = vmatpush3.msra.mxu1 %v20930_v3  ;;  %v21272_v39 = vpop.f32.mrf.mxu1  ;;  %16737 = vmatmul.mubr.f32.gmra.mxu0 %v21153_v31  ;;  %v16290_v25 = vpop.f32.mrf.mxu0  ;;  %v9101_v3 = vld [vmem:[#allocation5 + $0x2a0] sm:$0xff]  ;;  %v21311_v62 = vsub.f32 %v9102_v13, %v21287_v15 }
 0x30c   : > { %23908 = vst [vmem:[#allocation177_spill] sm:$0xff] %v21272_v39  ;;  %16779 = vmatprep.subr.mxu0 %v21089_v12  ;;  %v21280_v58 = vadd.f32 %v6392_v33, %v23909_v41  ;;  %16801 = vmatprep.subr.mxu1 %v20942_v0  ;;  %v6295_v19 = vadd.f32 %v16290_v25, %v6158_v54  ;;  %v9090_v33 = vld [vmem:[#allocation2 + $0x1a] sm:$0xff] }
 0x30d   : > { %16761 = vmatprep.mubr.f32.mxu1 %v8357_v1  ;;  %16780 = vmatpush3.msra.mxu0 %v21089_v12  ;;  %v21289_v43 = vpop.f32.mrf.mxu0  ;;  %v9089_v1 = vld [vmem:[#allocation2 + $0x12] sm:$0xff]  ;;  %v21302_v12 = vand.u32 4294901760, %v21277_v14  ;;  %v21347_v25 = vand.u32 4294901760, %v21311_v62  ;;  %v9112_v61 = vsel %vm226_vm1, %v9090_v33, 0 }
 0x30e   : > { %23910 = vst [vmem:[#allocation53_spill] sm:$0xff] %v21280_v58  ;;  %16802 = vmatpush3.msra.mxu1 %v20942_v0  ;;  %23911 = vst [vmem:[#allocation178_spill] sm:$0xff] %v21289_v43  ;;  %16781 = vmatprep.subr.mxu0 %v23912_v46  ;;  %v21299_v0 = vand.u32 4294901760, %v9101_v3  ;;  %v9109_v52 = vsel %vm226_vm1, %v9089_v1, 0 }
 0x30f   : > { %16762 = vmatmul.mubr.f32.gmra.mxu1 %v8367_v17  ;;  %v16315_v16 = vpop.f32.mrf.mxu1  ;;  %16803 = vmatprep.subr.mxu1 %v20971_v55  ;;  %v9302_v9 = vsub.f32 %v21277_v14, %v21302_v12 }
 0x310   : > { %16782 = vmatpush3.msra.mxu0 %v23912_v46  ;;  %v6404_v54 = vadd.f32 %v16315_v16, %v6283_v27  ;;  %16783 = vmatprep.mubr.f32.mxu0 %v20981_v35  ;;  %v9099_v27 = vld [vmem:[#allocation5 + $0x290] sm:$0xff]  ;;  %v21331_v45 = vsub.f32 %v9101_v3, %v21299_v0  ;;  %v9098_v3 = vld [vmem:[#allocation5 + $0x288] sm:$0xff] }
 0x311   : > { %16804 = vmatpush3.msra.mxu1 %v20971_v55  ;;  %v21306_v17 = vpop.f32.mrf.mxu1  ;;  %16784 = vmatmul.mubr.f32.vlgmr.msra.gmra.mxu0 %v20983_v42  ;;  %v16337_v23 = vpop.f32.mrf.mxu0  ;;  %v21322_v55 = vand.u32 4294901760, %v21295_v38  ;;  %v21344_v41 = vand.u32 4294901760, %v9099_v27  ;;  %v9091_v46 = vld [vmem:[#allocation2 + $0x22] sm:$0xff]  ;;  %v9303_v16 = vand.u32 4294901760, %v9302_v9  ;;  %v21371_v33 = vand.u32 4294901760, %v9098_v3 }
 0x312   : > { %23913 = vst [vmem:[#allocation160_spill] sm:$0xff] %v21306_v17  ;;  %16805 = vmatprep.subr.mxu1 %v20987_v60  ;;  %v21316_v29 = vadd.f32 %v6404_v54, %v23914_v57  ;;  %16823 = vmatprep.subr.mxu0 %v21259_v53  ;;  %v21359_v54 = vand.u32 4294901760, %v21331_v45  ;;  %v23918_v57 = vld [vmem:[#allocation59_spill] sm:$0xff]  ;;  %v21374_v9 = vsub.f32 %v9106_v51, %v21338_v47  ;;  %v9092_v17 = vld [vmem:[#allocation2 + $0x2a] sm:$0xff] }
 0x313   : > { %16764 = vmatprep.mubr.f32.mxu1 %v8377_v34  ;;  %16806 = vmatpush3.msra.mxu1 %v20987_v60  ;;  %v21333_v13 = vpop.f32.mrf.mxu0  ;;  %v21340_v60 = vand.u32 4294901760, %v9109_v52  ;;  %v21409_v39 = vsub.f32 %v9098_v3, %v21371_v33  ;;  %v9118_v30 = vsel %vm226_vm1, %v9092_v17, 0 }
 0x314   : > { %23915 = vst [vmem:[#allocation56_spill] sm:$0xff] %v21316_v29  ;;  %16824 = vmatpush3.msra.mxu0 %v21259_v53  ;;  %23916 = vst [vmem:[#allocation179_spill] sm:$0xff] %v21333_v13  ;;  %16765 = vmatmul.mubr.f32.gmra.mxu1 %v8387_v21  ;;  %v16318_v34 = vpop.f32.mrf.mxu1  ;;  %v9309_v21 = vsub.f32 %v21295_v38, %v21322_v55 }
 0x315   : > { %16807 = vmatprep.subr.mxu1 %v21014_v8  ;;  %16825 = vmatprep.subr.mxu0 %v21270_v11  ;;  %v6416_v31 = vadd.f32 %v16318_v34, %v6295_v19  ;;  %v9097_v19 = vld [vmem:[#allocation5 + $0x280] sm:$0xff] }
 0x316   : > { %16786 = vmatprep.mubr.f32.mxu0 %v21030_v37  ;;  %16808 = vmatpush3.msra.mxu1 %v21014_v8  ;;  %v21354_v1 = vpop.f32.mrf.mxu1  ;;  %v21362_v8 = vsub.f32 %v9100_v44, %v21328_v26  ;;  %v9115_v44 = vsel %vm226_vm1, %v9091_v46, 0  ;;  %v21393_v46 = vand.u32 4294901760, %v9097_v19 }
 0x317   : > { %16826 = vmatpush3.msra.mxu0 %v21270_v11  ;;  %23917 = vst [vmem:[#allocation180_spill] sm:$0xff] %v21354_v1  ;;  %16809 = vmatprep.subr.mxu1 %v21036_v24  ;;  %v21365_v34 = vadd.f32 %v6416_v31, %v23918_v57  ;;  %v21377_v1 = vsub.f32 %v9109_v52, %v21340_v60  ;;  %v9310_v52 = vand.u32 4294901760, %v9309_v21  ;;  %v21401_v28 = vand.u32 4294901760, %v9115_v44 }
 0x318   : > { %16787 = vmatmul.mubr.f32.gmra.mxu0 %v21044_v20  ;;  %v21367_v43 = vpop.f32.mrf.mxu0  ;;  %16827 = vmatprep.subr.mxu0 %v21287_v15  ;;  %v9316_v31 = vsub.f32 %v21311_v62, %v21347_v25  ;;  %v21385_v57 = vsub.f32 %v9099_v27, %v21344_v41  ;;  %v9323_v27 = vsub.f32 %v21331_v45, %v21359_v54  ;;  %v21399_v7 = vand.u32 4294901760, %v21362_v8 }
 0x319   : > { %23919 = vst [vmem:[#allocation59_spill] sm:$0xff] %v21365_v34  ;;  %16810 = vmatpush3.msra.mxu1 %v21036_v24  ;;  %16811 = vmatprep.mubr.f32.mxu1 %v20981_v35  ;;  %v21387_v24 = vand.u32 4294901760, %v9112_v61  ;;  %v21424_v3 = vsub.f32 %v9097_v19, %v21393_v46  ;;  %v21431_v21 = vsub.f32 %v9115_v44, %v21401_v28  ;;  %v23923_v19 = vand.u32 4294901760, %v21374_v9 }
 0x31a   : > { %16828 = vmatpush3.msra.mxu0 %v21287_v15  ;;  %v21389_v51 = vpop.f32.mrf.mxu0  ;;  %16812 = vmatmul.mubr.f32.vlgmr.msra.gmra.mxu1 %v20983_v42  ;;  %v16365_v35 = vpop.f32.mrf.mxu1  ;;  %v21446_v44 = vand.u32 4294901760, %v21409_v39 }
 0x31b   : > { %23920 = vst [vmem:[#allocation181_spill] sm:$0xff] %v21389_v51  ;;  %16829 = vmatprep.subr.mxu0 %v21299_v0  ;;  %16851 = vmatprep.subr.mxu1 %v9303_v16  ;;  %v9093_v51 = vld [vmem:[#allocation2 + $0x32] sm:$0xff]  ;;  %v21403_v13 = vadd.f32 %v16365_v35, %v16337_v23  ;;  %v9317_v23 = vand.u32 4294901760, %v9316_v31  ;;  %v21417_v35 = vand.u32 4294901760, %v21385_v57  ;;  %v9330_v31 = vsub.f32 %v21362_v8, %v21399_v7 }
 0x31c   : > { %16789 = vmatprep.mubr.f32.mxu0 %v21076_v50  ;;  %16830 = vmatpush3.msra.mxu0 %v21299_v0  ;;  %v21412_v6 = vpop.f32.mrf.mxu1  ;;  %v9121_v17 = vsel %vm226_vm1, %v9093_v51, 0  ;;  %v9205_v51 = vsub.f32 %v21374_v9, %v23923_v19 }
 0x31d   : > { %16852 = vmatpush3.msra.mxu1 %v9303_v16  ;;  %23921 = vst [vmem:[#allocation182_spill] sm:$0xff] %v21412_v6  ;;  %16790 = vmatmul.mubr.f32.gmra.mxu0 %v21095_v36  ;;  %v21420_v16 = vsub.f32 %v9112_v61, %v21387_v24  ;;  %v16343_v42 = vpop.f32.mrf.mxu0  ;;  %v21433_v61 = vand.u32 4294901760, %v9118_v30  ;;  %v9094_v6 = vld [vmem:[#allocation2 + $0x3a] sm:$0xff] }
 0x31e   : > { %16831 = vmatprep.subr.mxu0 %v21328_v26  ;;  %16853 = vmatprep.subr.mxu1 %v9310_v52  ;;  %v9124_v56 = vsel %vm226_vm1, %v9094_v6, 0  ;;  %v9344_v6 = vsub.f32 %v21409_v39, %v21446_v44 }
 0x31f   : > { %16814 = vmatprep.mubr.f32.mxu1 %v21030_v37  ;;  %16832 = vmatpush3.msra.mxu0 %v21328_v26  ;;  %v21435_v2 = vpop.f32.mrf.mxu0  ;;  %v9324_v37 = vand.u32 4294901760, %v9323_v27  ;;  %v9331_v27 = vand.u32 4294901760, %v9330_v31  ;;  %v23927_v63 = vand.u32 4294901760, %v21420_v16  ;;  %v21481_v18 = vand.u32 4294901760, %v9124_v56 }
 0x320   : > { %16854 = vmatpush3.msra.mxu1 %v9310_v52  ;;  %23922 = vst [vmem:[#allocation183_spill] sm:$0xff] %v21435_v2  ;;  %16833 = vmatprep.subr.mxu0 %v21344_v41  ;;  %v23924_v52 = vand.u32 4294901760, %v21377_v1  ;;  %v21452_v2 = vand.u32 4294901760, %v9121_v17 }
 0x321   : > { %16815 = vmatmul.mubr.f32.gmra.mxu1 %v21044_v20  ;;  %v16368_v48 = vpop.f32.mrf.mxu1  ;;  %16855 = vmatprep.subr.mxu1 %v9317_v23  ;;  %v9337_v20 = vsub.f32 %v21385_v57, %v21417_v35 }
 0x322   : > { %v9215_v22 = vsub.f32 %v21377_v1, %v23924_v52  ;;  %16792 = vmatprep.mubr.f32.mxu0 %v21124_v5  ;;  %v21455_v19 = vadd.f32 %v16368_v48, %v21367_v43  ;;  %16834 = vmatpush3.msra.mxu0 %v21344_v41  ;;  %v21459_v52 = vand.u32 4294901760, %v21424_v3  ;;  %v21468_v48 = vsub.f32 %v9118_v30, %v21433_v61 }
 0x323   : > { %16856 = vmatpush3.msra.mxu1 %v9317_v23  ;;  %v21462_v32 = vpop.f32.mrf.mxu1  ;;  %16793 = vmatmul.mubr.f32.gmra.mxu0 %v21137_v59  ;;  %v16346_v43 = vpop.f32.mrf.mxu0  ;;  %v9206_v23 = vand.u32 4294901760, %v9205_v51  ;;  %v9338_v31 = vand.u32 4294901760, %v9337_v20  ;;  %v9225_v30 = vsub.f32 %v21420_v16, %v23927_v63  ;;  %v21479_v4 = vsub.f32 %v9121_v17, %v21452_v2 }
 0x324   : > { %23925 = vst [vmem:[#allocation184_spill] sm:$0xff] %v21459_v52  ;;  %23926 = vst [vmem:[#allocation185_spill] sm:$0xff] %v21462_v32  ;;  %16835 = vmatprep.subr.mxu0 %v21371_v33  ;;  %16857 = vmatprep.subr.mxu1 %v9324_v37  ;;  %v9216_v40 = vand.u32 4294901760, %v9215_v22  ;;  %v9127_v32 = vsel %vm226_vm1, %v9095_v10, 0  ;;  %v9351_v10 = vsub.f32 %v21424_v3, %v21459_v52  ;;  %v23929_v63 = vand.u32 4294901760, %v21431_v21 }
 0x325   : > { %16817 = vmatprep.mubr.f32.mxu1 %v21076_v50  ;;  %16836 = vmatpush3.msra.mxu0 %v21371_v33  ;;  %v21483_v50 = vpop.f32.mrf.mxu0  ;;  %v21494_v51 = vand.u32 4294901760, %v9127_v32  ;;  %v9226_v34 = vand.u32 4294901760, %v9225_v30  ;;  %v9254_v29 = vand.u32 4294901760, %v21479_v4  ;;  %v21500_v52 = vsub.f32 %v9124_v56, %v21481_v18 }
 0x326   : > { %16858 = vmatpush3.msra.mxu1 %v9324_v37  ;;  %23928 = vst [vmem:[#allocation186_spill] sm:$0xff] %v21483_v50  ;;  %16837 = vmatprep.subr.mxu0 %v21393_v46  ;;  %v9235_v17 = vsub.f32 %v21431_v21, %v23929_v63  ;;  %v9244_v37 = vand.u32 4294901760, %v21468_v48 }
 0x327   : > { %16818 = vmatmul.mubr.f32.gmra.mxu1 %v21095_v36  ;;  %v16371_v22 = vpop.f32.mrf.mxu1  ;;  %16859 = vmatprep.subr.mxu1 %v9331_v27  ;;  %v9345_v36 = vand.u32 4294901760, %v9344_v6  ;;  %v21510_v6 = vsub.f32 %v9127_v32, %v21494_v51 }
 0x328   : > { %16838 = vmatpush3.msra.mxu0 %v21393_v46  ;;  %v6759_v20 = vadd.f32 %v16371_v22, %v16343_v42  ;;  %16839 = vmatprep.mubr.f32.mxu0 %v9206_v23  ;;  %v9352_v23 = vand.u32 4294901760, %v9351_v10 }
 0x329   : > { %16860 = vmatpush3.msra.mxu1 %v9331_v27  ;;  %v21496_v50 = vpop.f32.mrf.mxu1  ;;  %16840 = vmatmul.mubr.f32.vlgmr.msra.gmra.mxu0 %v9216_v40  ;;  %v16393_v58 = vpop.f32.mrf.mxu0  ;;  %v9236_v27 = vand.u32 4294901760, %v9235_v17  ;;  %v9245_v40 = vsub.f32 %v21468_v48, %v9244_v37 }
 0x32a   : > { %23930 = vst [vmem:[#allocation187_spill] sm:$0xff] %v21496_v50  ;;  %16861 = vmatprep.subr.mxu1 %v9338_v31  ;;  %16879 = vmatprep.subr.mxu0 %v21277_v14  ;;  %v6866_v42 = vadd.f32 %v16393_v58, %v21403_v13  ;;  %v9264_v58 = vand.u32 4294901760, %v21500_v52 }
 0x32b   : > { %16820 = vmatprep.mubr.f32.mxu1 %v21124_v5  ;;  %16862 = vmatpush3.msra.mxu1 %v9338_v31  ;;  %v21512_v56 = vpop.f32.mrf.mxu0  ;;  %v9274_v31 = vand.u32 4294901760, %v21510_v6 }
 0x32c   : > { %16880 = vmatpush3.msra.mxu0 %v21277_v14  ;;  %23931 = vst [vmem:[#allocation188_spill] sm:$0xff] %v21512_v56  ;;  %16821 = vmatmul.mubr.f32.gmra.mxu1 %v21137_v59  ;;  %v16374_v5 = vpop.f32.mrf.mxu1  ;;  %v9255_v14 = vsub.f32 %v21479_v4, %v9254_v29  ;;  %v9246_v59 = vand.u32 4294901760, %v9245_v40 }
 0x32d   : > { %16863 = vmatprep.subr.mxu1 %v9345_v36  ;;  %16881 = vmatprep.subr.mxu0 %v21295_v38  ;;  %v6771_v13 = vadd.f32 %v16374_v5, %v16346_v43 }
 0x32e   : > { %16842 = vmatprep.mubr.f32.mxu0 %v9226_v34  ;;  %16864 = vmatpush3.msra.mxu1 %v9345_v36  ;;  %v21521_v32 = vpop.f32.mrf.mxu1  ;;  %v9256_v43 = vand.u32 4294901760, %v9255_v14 }
 0x32f   : > { %16882 = vmatpush3.msra.mxu0 %v21295_v38  ;;  %23932 = vst [vmem:[#allocation189_spill] sm:$0xff] %v21521_v32  ;;  %16865 = vmatprep.subr.mxu1 %v9352_v23  ;;  %v9265_v38 = vsub.f32 %v21500_v52, %v9264_v58 }
 0x330   : > { %16843 = vmatmul.mubr.f32.gmra.mxu0 %v9236_v27  ;;  %v16396_v30 = vpop.f32.mrf.mxu0  ;;  %16883 = vmatprep.subr.mxu0 %v21311_v62 }
 0x331   : > { %16866 = vmatpush3.msra.mxu1 %v9352_v23  ;;  %v6880_v34 = vadd.f32 %v16396_v30, %v21455_v19  ;;  %16867 = vmatprep.mubr.f32.mxu1 %v21338_v47  ;;  %v9275_v19 = vsub.f32 %v21510_v6, %v9274_v31  ;;  %v9266_v17 = vand.u32 4294901760, %v9265_v38 }
 0x332   : > { %16884 = vmatpush3.msra.mxu0 %v21311_v62  ;;  %v21531_v10 = vpop.f32.mrf.mxu0  ;;  %16868 = vmatmul.mubr.f32.vlgmr.msra.gmra.mxu1 %v21340_v60  ;;  %v16421_v22 = vpop.f32.mrf.mxu1 }
 0x333   : > { %23933 = vst [vmem:[#allocation190_spill] sm:$0xff] %v21531_v10  ;;  %16885 = vmatprep.subr.mxu0 %v21331_v45  ;;  %16907 = vmatprep.subr.mxu1 %v21259_v53  ;;  %v6997_v62 = vadd.f32 %v16421_v22, %v6866_v42  ;;  %v9276_v42 = vand.u32 4294901760, %v9275_v19  ;;  %v23941_v19 = vand.u32 4294901760, %v21374_v9 }
 0x334   : > { %16845 = vmatprep.mubr.f32.mxu0 %v9246_v59  ;;  %16886 = vmatpush3.msra.mxu0 %v21331_v45  ;;  %v21541_v63 = vpop.f32.mrf.mxu1 }
 0x335   : > { %16908 = vmatpush3.msra.mxu1 %v21259_v53  ;;  %23934 = vst [vmem:[#allocation191_spill] sm:$0xff] %v21541_v63  ;;  %16846 = vmatmul.mubr.f32.gmra.mxu0 %v9256_v43  ;;  %v16399_v36 = vpop.f32.mrf.mxu0 }
 0x336   : > { %16887 = vmatprep.subr.mxu0 %v21362_v8  ;;  %16909 = vmatprep.subr.mxu1 %v21270_v11  ;;  %v6894_v27 = vadd.f32 %v16399_v36, %v6759_v20 }
 0x337   : > { %16870 = vmatprep.mubr.f32.mxu1 %v21387_v24  ;;  %16888 = vmatpush3.msra.mxu0 %v21362_v8  ;;  %v21548_v45 = vpop.f32.mrf.mxu0 }
 0x338   : > { %16910 = vmatpush3.msra.mxu1 %v21270_v11  ;;  %23935 = vst [vmem:[#allocation192_spill] sm:$0xff] %v21548_v45  ;;  %16889 = vmatprep.subr.mxu0 %v21385_v57 }
 0x339   : > { %16871 = vmatmul.mubr.f32.gmra.mxu1 %v21401_v28  ;;  %v16424_v23 = vpop.f32.mrf.mxu1  ;;  %16911 = vmatprep.subr.mxu1 %v21287_v15 }
 0x33a   : > { %16848 = vmatprep.mubr.f32.mxu0 %v9266_v17  ;;  %v7013_v40 = vadd.f32 %v16424_v23, %v6880_v34  ;;  %16890 = vmatpush3.msra.mxu0 %v21385_v57 }
 0x33b   : > { %16912 = vmatpush3.msra.mxu1 %v21287_v15  ;;  %v21555_v20 = vpop.f32.mrf.mxu1  ;;  %16849 = vmatmul.mubr.f32.gmra.mxu0 %v9276_v42  ;;  %v16402_v8 = vpop.f32.mrf.mxu0  ;;  %v23945_v42 = vand.u32 4294901760, %v21420_v16 }
 0x33c   : > { %23936 = vst [vmem:[#allocation193_spill] sm:$0xff] %v21555_v20  ;;  %16891 = vmatprep.subr.mxu0 %v21409_v39  ;;  %16913 = vmatprep.subr.mxu1 %v21299_v0  ;;  %v6908_v5 = vadd.f32 %v16402_v8, %v6771_v13  ;;  %v23947_v8 = vand.u32 4294901760, %v21431_v21 }
 0x33d   : > { %16873 = vmatprep.mubr.f32.mxu1 %v21433_v61  ;;  %16892 = vmatpush3.msra.mxu0 %v21409_v39  ;;  %v21562_v14 = vpop.f32.mrf.mxu0 }
 0x33e   : > { %16914 = vmatpush3.msra.mxu1 %v21299_v0  ;;  %23937 = vst [vmem:[#allocation194_spill] sm:$0xff] %v21562_v14  ;;  %16893 = vmatprep.subr.mxu0 %v21424_v3 }
 0x33f   : > { %16874 = vmatmul.mubr.f32.gmra.mxu1 %v21452_v2  ;;  %v16427_v57 = vpop.f32.mrf.mxu1  ;;  %16915 = vmatprep.subr.mxu1 %v21328_v26 }
 0x340   : > { %16894 = vmatpush3.msra.mxu0 %v21424_v3  ;;  %v7029_v59 = vadd.f32 %v16427_v57, %v6894_v27  ;;  %16895 = vmatprep.mubr.f32.mxu0 %v21374_v9  ;;  %v9991_v9 = vld [vmem:[#allocation5 + $0x2f8] sm:$0xff]  ;;  %v23949_v57 = vld [vmem:[#allocation53_spill] sm:$0xff] }
 0x341   : > { %16916 = vmatpush3.msra.mxu1 %v21328_v26  ;;  %v21570_v13 = vpop.f32.mrf.mxu1  ;;  %16896 = vmatmul.mubr.f32.vlgmr.msra.gmra.mxu0 %v21377_v1  ;;  %v16449_v39 = vpop.f32.mrf.mxu0 }
 0x342   : > { %23938 = vst [vmem:[#allocation195_spill] sm:$0xff] %v21570_v13  ;;  %16917 = vmatprep.subr.mxu1 %v21344_v41  ;;  %16935 = vmatprep.subr.mxu0 %v21302_v12  ;;  %v7146_v30 = vadd.f32 %v16449_v39, %v6997_v62 }
 0x343   : > { %16876 = vmatprep.mubr.f32.mxu1 %v21481_v18  ;;  %16918 = vmatpush3.msra.mxu1 %v21344_v41  ;;  %v21578_v3 = vpop.f32.mrf.mxu0 }
 0x344   : > { %16936 = vmatpush3.msra.mxu0 %v21302_v12  ;;  %23939 = vst [vmem:[#allocation196_spill] sm:$0xff] %v21578_v3  ;;  %16877 = vmatmul.mubr.f32.gmra.mxu1 %v21494_v51  ;;  %v16430_v34 = vpop.f32.mrf.mxu1  ;;  %v9982_v3 = vld [vmem:[#allocation2 + $0x43] sm:$0xff] }
 0x345   : > { %16919 = vmatprep.subr.mxu1 %v21371_v33  ;;  %16937 = vmatprep.subr.mxu0 %v21322_v55  ;;  %v7045_v43 = vadd.f32 %v16430_v34, %v6908_v5 }
 0x346   : > { %16898 = vmatprep.mubr.f32.mxu0 %v21420_v16  ;;  %16920 = vmatpush3.msra.mxu1 %v21371_v33  ;;  %v21586_v38 = vpop.f32.mrf.mxu1 }
 0x347   : > { %16938 = vmatpush3.msra.mxu0 %v21322_v55  ;;  %23940 = vst [vmem:[#allocation197_spill] sm:$0xff] %v21586_v38  ;;  %16921 = vmatprep.subr.mxu1 %v21393_v46  ;;  %v23943_v55 = vand.u32 4294901760, %v21377_v1 }
 0x348   : > { %16899 = vmatmul.mubr.f32.gmra.mxu0 %v21431_v21  ;;  %v16452_v12 = vpop.f32.mrf.mxu0  ;;  %16939 = vmatprep.subr.mxu0 %v21347_v25 }
 0x349   : > { %16922 = vmatpush3.msra.mxu1 %v21393_v46  ;;  %v7158_v22 = vadd.f32 %v16452_v12, %v7013_v40  ;;  %16923 = vmatprep.mubr.f32.mxu1 %v23941_v19  ;;  %v23952_v12 = vld [vmem:[#allocation184_spill] sm:$0xff] }
 0x34a   : > { %16940 = vmatpush3.msra.mxu0 %v21347_v25  ;;  %v21595_v62 = vpop.f32.mrf.mxu0  ;;  %16924 = vmatmul.mubr.f32.vlgmr.msra.gmra.mxu1 %v23943_v55  ;;  %v16477_v17 = vpop.f32.mrf.mxu1 }
 0x34b   : > { %23942 = vst [vmem:[#allocation198_spill] sm:$0xff] %v21595_v62  ;;  %16941 = vmatprep.subr.mxu0 %v21359_v54  ;;  %16963 = vmatprep.subr.mxu1 %v21259_v53  ;;  %v7267_v36 = vadd.f32 %v16477_v17, %v7146_v30 }
 0x34c   : > { %16901 = vmatprep.mubr.f32.mxu0 %v21468_v48  ;;  %16942 = vmatpush3.msra.mxu0 %v21359_v54  ;;  %v21604_v27 = vpop.f32.mrf.mxu1  ;;  %v9990_v54 = vld [vmem:[#allocation5 + $0x2f0] sm:$0xff]  ;;  %v9975_v48 = vld [vmem:[#allocation2 + $0xb] sm:$0xff] }
 0x34d   : > { %16964 = vmatpush3.msra.mxu1 %v21259_v53  ;;  %23944 = vst [vmem:[#allocation199_spill] sm:$0xff] %v21604_v27  ;;  %16902 = vmatmul.mubr.f32.gmra.mxu0 %v21479_v4  ;;  %v21609_v25 = vadd.f32 %v7267_v36, %v21252_v49  ;;  %v16455_v1 = vpop.f32.mrf.mxu0  ;;  %v21616_v53 = vand.u32 4294901760, %v9991_v9  ;;  %v9987_v4 = vld [vmem:[#allocation5 + $0x2d8] sm:$0xff]  ;;  %v9993_v17 = vsel %vm226_vm1, %v9975_v48, 0 }
 0x34e   : > { %16943 = vmatprep.subr.mxu0 %v21399_v7  ;;  %16965 = vmatprep.subr.mxu1 %v21270_v11  ;;  %v7170_v23 = vadd.f32 %v16455_v1, %v7029_v59 }
 0x34f   : > { %16926 = vmatprep.mubr.f32.mxu1 %v23945_v42  ;;  %16944 = vmatpush3.msra.mxu0 %v21399_v7  ;;  %v21618_v40 = vpop.f32.mrf.mxu0  ;;  %v21627_v7 = vand.u32 4294901760, %v9990_v54  ;;  %v21634_v21 = vsub.f32 %v9991_v9, %v21616_v53  ;;  %v23954_v9 = vld [vmem:[#allocation56_spill] sm:$0xff] }
 0x350   : > { %16966 = vmatpush3.msra.mxu1 %v21270_v11  ;;  %23946 = vst [vmem:[#allocation200_spill] sm:$0xff] %v21618_v40  ;;  %16945 = vmatprep.subr.mxu0 %v21417_v35  ;;  %v9989_v11 = vld [vmem:[#allocation5 + $0x2e8] sm:$0xff] }
 0x351   : > { %16927 = vmatmul.mubr.f32.gmra.mxu1 %v23947_v8  ;;  %v16480_v49 = vpop.f32.mrf.mxu1  ;;  %16967 = vmatprep.subr.mxu1 %v21287_v15  ;;  %v21644_v30 = vand.u32 4294901760, %v9989_v11  ;;  %v21685_v8 = vand.u32 4294901760, %v9987_v4 }
 0x352   : > { %16904 = vmatprep.mubr.f32.mxu0 %v21500_v52  ;;  %v7279_v16 = vadd.f32 %v16480_v49, %v7158_v22  ;;  %16946 = vmatpush3.msra.mxu0 %v21417_v35  ;;  %v21652_v22 = vsub.f32 %v9990_v54, %v21627_v7  ;;  %v21695_v52 = vand.u32 4294901760, %v9993_v17 }
 0x353   : > { %16968 = vmatpush3.msra.mxu1 %v21287_v15  ;;  %v21629_v5 = vpop.f32.mrf.mxu1  ;;  %16905 = vmatmul.mubr.f32.gmra.mxu0 %v21510_v6  ;;  %v16458_v39 = vpop.f32.mrf.mxu0  ;;  %v9988_v15 = vld [vmem:[#allocation5 + $0x2e0] sm:$0xff]  ;;  %v21668_v55 = vsub.f32 %v9989_v11, %v21644_v30 }
 0x354   : > { %23948 = vst [vmem:[#allocation201_spill] sm:$0xff] %v21629_v5  ;;  %16947 = vmatprep.subr.mxu0 %v21446_v44  ;;  %v21637_v59 = vadd.f32 %v7279_v16, %v23949_v57  ;;  %16969 = vmatprep.subr.mxu1 %v21299_v0  ;;  %v7182_v35 = vadd.f32 %v16458_v39, %v7045_v43  ;;  %v9977_v16 = vld [vmem:[#allocation2 + $0x1b] sm:$0xff] }
 0x355   : > { %16929 = vmatprep.mubr.f32.mxu1 %v9244_v37  ;;  %16948 = vmatpush3.msra.mxu0 %v21446_v44  ;;  %v21646_v34 = vpop.f32.mrf.mxu0  ;;  %v9976_v37 = vld [vmem:[#allocation2 + $0x13] sm:$0xff]  ;;  %v21659_v44 = vand.u32 4294901760, %v21634_v21  ;;  %v21704_v39 = vand.u32 4294901760, %v21668_v55  ;;  %v9999_v48 = vsel %vm226_vm1, %v9977_v16, 0 }
 0x356   : > { %23950 = vst [vmem:[#allocation53_spill] sm:$0xff] %v21637_v59  ;;  %16970 = vmatpush3.msra.mxu1 %v21299_v0  ;;  %23951 = vst [vmem:[#allocation202_spill] sm:$0xff] %v21646_v34  ;;  %16949 = vmatprep.subr.mxu0 %v23952_v12  ;;  %v21656_v0 = vand.u32 4294901760, %v9988_v15  ;;  %v9996_v36 = vsel %vm226_vm1, %v9976_v37, 0 }
 0x357   : > { %16930 = vmatmul.mubr.f32.gmra.mxu1 %v9254_v29  ;;  %v16483_v19 = vpop.f32.mrf.mxu1  ;;  %16971 = vmatprep.subr.mxu1 %v21328_v26  ;;  %v10189_v54 = vsub.f32 %v21634_v21, %v21659_v44 }
 0x358   : > { %16950 = vmatpush3.msra.mxu0 %v23952_v12  ;;  %v7291_v43 = vadd.f32 %v16483_v19, %v7170_v23  ;;  %16951 = vmatprep.mubr.f32.mxu0 %v21338_v47  ;;  %v9986_v23 = vld [vmem:[#allocation5 + $0x2d0] sm:$0xff]  ;;  %v21688_v49 = vsub.f32 %v9988_v15, %v21656_v0  ;;  %v9985_v15 = vld [vmem:[#allocation5 + $0x2c8] sm:$0xff] }
 0x359   : > { %16972 = vmatpush3.msra.mxu1 %v21328_v26  ;;  %v21663_v29 = vpop.f32.mrf.mxu1  ;;  %16952 = vmatmul.mubr.f32.vlgmr.msra.gmra.mxu0 %v21340_v60  ;;  %v16505_v42 = vpop.f32.mrf.mxu0  ;;  %v21679_v26 = vand.u32 4294901760, %v21652_v22  ;;  %v21701_v57 = vand.u32 4294901760, %v9986_v23  ;;  %v9978_v12 = vld [vmem:[#allocation2 + $0x23] sm:$0xff]  ;;  %v10190_v19 = vand.u32 4294901760, %v10189_v54  ;;  %v21728_v16 = vand.u32 4294901760, %v9985_v15 }
 0x35a   : > { %23953 = vst [vmem:[#allocation184_spill] sm:$0xff] %v21663_v29  ;;  %16973 = vmatprep.subr.mxu1 %v21344_v41  ;;  %v21673_v1 = vadd.f32 %v7291_v43, %v23954_v9  ;;  %16991 = vmatprep.subr.mxu0 %v21616_v53  ;;  %v21716_v43 = vand.u32 4294901760, %v21688_v49  ;;  %v23958_v9 = vld [vmem:[#allocation59_spill] sm:$0xff]  ;;  %v21731_v54 = vsub.f32 %v9993_v17, %v21695_v52  ;;  %v9979_v29 = vld [vmem:[#allocation2 + $0x2b] sm:$0xff] }
 0x35b   : > { %16932 = vmatprep.mubr.f32.mxu1 %v9264_v58  ;;  %16974 = vmatpush3.msra.mxu1 %v21344_v41  ;;  %v21690_v11 = vpop.f32.mrf.mxu0  ;;  %v21697_v41 = vand.u32 4294901760, %v9996_v36  ;;  %v10005_v5 = vsel %vm226_vm1, %v9979_v29, 0 }
 0x35c   : > { %23955 = vst [vmem:[#allocation56_spill] sm:$0xff] %v21673_v1  ;;  %16992 = vmatpush3.msra.mxu0 %v21616_v53  ;;  %23956 = vst [vmem:[#allocation203_spill] sm:$0xff] %v21690_v11  ;;  %16933 = vmatmul.mubr.f32.gmra.mxu1 %v9274_v31  ;;  %v16486_v58 = vpop.f32.mrf.mxu1  ;;  %v10196_v31 = vsub.f32 %v21652_v22, %v21679_v26  ;;  %v21766_v11 = vsub.f32 %v9985_v15, %v21728_v16 }
 0x35d   : > { %16975 = vmatprep.subr.mxu1 %v21371_v33  ;;  %16993 = vmatprep.subr.mxu0 %v21627_v7  ;;  %v7303_v6 = vadd.f32 %v16486_v58, %v7182_v35  ;;  %v9984_v35 = vld [vmem:[#allocation5 + $0x2c0] sm:$0xff] }
 0x35e   : > { %16954 = vmatprep.mubr.f32.mxu0 %v21387_v24  ;;  %16976 = vmatpush3.msra.mxu1 %v21371_v33  ;;  %v21711_v37 = vpop.f32.mrf.mxu1  ;;  %v21719_v33 = vsub.f32 %v9987_v4, %v21685_v8  ;;  %v10002_v4 = vsel %vm226_vm1, %v9978_v12, 0  ;;  %v21750_v12 = vand.u32 4294901760, %v9984_v35 }
 0x35f   : > { %16994 = vmatpush3.msra.mxu0 %v21627_v7  ;;  %23957 = vst [vmem:[#allocation204_spill] sm:$0xff] %v21711_v37  ;;  %16977 = vmatprep.subr.mxu1 %v21393_v46  ;;  %v21722_v58 = vadd.f32 %v7303_v6, %v23958_v9  ;;  %v21734_v37 = vsub.f32 %v9996_v36, %v21697_v41  ;;  %v10197_v36 = vand.u32 4294901760, %v10196_v31  ;;  %v21758_v38 = vand.u32 4294901760, %v10002_v4 }
 0x360   : > { %16955 = vmatmul.mubr.f32.gmra.mxu0 %v21401_v28  ;;  %v21724_v34 = vpop.f32.mrf.mxu0  ;;  %16995 = vmatprep.subr.mxu0 %v21644_v30  ;;  %v10203_v6 = vsub.f32 %v21668_v55, %v21704_v39  ;;  %v21742_v9 = vsub.f32 %v9986_v23, %v21701_v57  ;;  %v10210_v23 = vsub.f32 %v21688_v49, %v21716_v43  ;;  %v21756_v40 = vand.u32 4294901760, %v21719_v33 }
 0x361   : > { %23959 = vst [vmem:[#allocation59_spill] sm:$0xff] %v21722_v58  ;;  %16978 = vmatpush3.msra.mxu1 %v21393_v46  ;;  %16979 = vmatprep.mubr.f32.mxu1 %v21338_v47  ;;  %v21744_v46 = vand.u32 4294901760, %v9999_v48  ;;  %v21781_v15 = vsub.f32 %v9984_v35, %v21750_v12  ;;  %v21788_v31 = vsub.f32 %v10002_v4, %v21758_v38  ;;  %v23963_v35 = vand.u32 4294901760, %v21731_v54 }
 0x362   : > { %16996 = vmatpush3.msra.mxu0 %v21644_v30  ;;  %v21746_v17 = vpop.f32.mrf.mxu0  ;;  %16980 = vmatmul.mubr.f32.vlgmr.msra.gmra.mxu1 %v21340_v60  ;;  %v16533_v47 = vpop.f32.mrf.mxu1  ;;  %v21803_v4 = vand.u32 4294901760, %v21766_v11 }
 0x363   : > { %23960 = vst [vmem:[#allocation205_spill] sm:$0xff] %v21746_v17  ;;  %16997 = vmatprep.subr.mxu0 %v21656_v0  ;;  %17019 = vmatprep.subr.mxu1 %v10190_v19  ;;  %v9980_v17 = vld [vmem:[#allocation2 + $0x33] sm:$0xff]  ;;  %v21760_v13 = vadd.f32 %v16533_v47, %v16505_v42  ;;  %v10204_v42 = vand.u32 4294901760, %v10203_v6  ;;  %v21774_v47 = vand.u32 4294901760, %v21742_v9  ;;  %v10217_v6 = vsub.f32 %v21719_v33, %v21756_v40 }
 0x364   : > { %16957 = vmatprep.mubr.f32.mxu0 %v21433_v61  ;;  %16998 = vmatpush3.msra.mxu0 %v21656_v0  ;;  %v21769_v27 = vpop.f32.mrf.mxu1  ;;  %v10008_v29 = vsel %vm226_vm1, %v9980_v17, 0  ;;  %v10092_v17 = vsub.f32 %v21731_v54, %v23963_v35 }
 0x365   : > { %17020 = vmatpush3.msra.mxu1 %v10190_v19  ;;  %23961 = vst [vmem:[#allocation206_spill] sm:$0xff] %v21769_v27  ;;  %16958 = vmatmul.mubr.f32.gmra.mxu0 %v21452_v2  ;;  %v21777_v19 = vsub.f32 %v9999_v48, %v21744_v46  ;;  %v16511_v60 = vpop.f32.mrf.mxu0  ;;  %v21790_v48 = vand.u32 4294901760, %v10005_v5  ;;  %v9981_v27 = vld [vmem:[#allocation2 + $0x3b] sm:$0xff] }
 0x366   : > { %16999 = vmatprep.subr.mxu0 %v21685_v8  ;;  %17021 = vmatprep.subr.mxu1 %v10197_v36  ;;  %v10011_v32 = vsel %vm226_vm1, %v9981_v27, 0  ;;  %v10231_v27 = vsub.f32 %v21766_v11, %v21803_v4 }
 0x367   : > { %16982 = vmatprep.mubr.f32.mxu1 %v21387_v24  ;;  %17000 = vmatpush3.msra.mxu0 %v21685_v8  ;;  %v21792_v14 = vpop.f32.mrf.mxu0  ;;  %v10211_v24 = vand.u32 4294901760, %v10210_v23  ;;  %v10218_v23 = vand.u32 4294901760, %v10217_v6  ;;  %v23967_v20 = vand.u32 4294901760, %v21777_v19  ;;  %v21838_v56 = vand.u32 4294901760, %v10011_v32 }
 0x368   : > { %17022 = vmatpush3.msra.mxu1 %v10197_v36  ;;  %23962 = vst [vmem:[#allocation207_spill] sm:$0xff] %v21792_v14  ;;  %17001 = vmatprep.subr.mxu0 %v21701_v57  ;;  %v23964_v36 = vand.u32 4294901760, %v21734_v37  ;;  %v21809_v14 = vand.u32 4294901760, %v10008_v29 }
 0x369   : > { %16983 = vmatmul.mubr.f32.gmra.mxu1 %v21401_v28  ;;  %v16536_v62 = vpop.f32.mrf.mxu1  ;;  %17023 = vmatprep.subr.mxu1 %v10204_v42  ;;  %v10224_v28 = vsub.f32 %v21742_v9, %v21774_v47 }
 0x36a   : > { %v10102_v45 = vsub.f32 %v21734_v37, %v23964_v36  ;;  %16960 = vmatprep.mubr.f32.mxu0 %v21481_v18  ;;  %v21812_v35 = vadd.f32 %v16536_v62, %v21724_v34  ;;  %17002 = vmatpush3.msra.mxu0 %v21701_v57  ;;  %v21816_v36 = vand.u32 4294901760, %v21781_v15  ;;  %v21825_v62 = vsub.f32 %v10005_v5, %v21790_v48 }
 0x36b   : > { %17024 = vmatpush3.msra.mxu1 %v10204_v42  ;;  %v21819_v50 = vpop.f32.mrf.mxu1  ;;  %16961 = vmatmul.mubr.f32.gmra.mxu0 %v21494_v51  ;;  %v16514_v34 = vpop.f32.mrf.mxu0  ;;  %v10093_v42 = vand.u32 4294901760, %v10092_v17  ;;  %v10225_v6 = vand.u32 4294901760, %v10224_v28  ;;  %v10112_v5 = vsub.f32 %v21777_v19, %v23967_v20  ;;  %v21836_v10 = vsub.f32 %v10008_v29, %v21809_v14 }
 0x36c   : > { %23965 = vst [vmem:[#allocation208_spill] sm:$0xff] %v21816_v36  ;;  %23966 = vst [vmem:[#allocation209_spill] sm:$0xff] %v21819_v50  ;;  %17003 = vmatprep.subr.mxu0 %v21728_v16  ;;  %17025 = vmatprep.subr.mxu1 %v10211_v24  ;;  %v10103_v63 = vand.u32 4294901760, %v10102_v45  ;;  %v10014_v50 = vsel %vm226_vm1, %v9982_v3, 0  ;;  %v10238_v45 = vsub.f32 %v21781_v15, %v21816_v36  ;;  %v23969_v20 = vand.u32 4294901760, %v21788_v31 }
 0x36d   : > { %16985 = vmatprep.mubr.f32.mxu1 %v21433_v61  ;;  %17004 = vmatpush3.msra.mxu0 %v21728_v16  ;;  %v21840_v61 = vpop.f32.mrf.mxu0  ;;  %v21851_v17 = vand.u32 4294901760, %v10014_v50  ;;  %v10113_v58 = vand.u32 4294901760, %v10112_v5  ;;  %v10141_v1 = vand.u32 4294901760, %v21836_v10  ;;  %v21857_v36 = vsub.f32 %v10011_v32, %v21838_v56 }
 0x36e   : > { %17026 = vmatpush3.msra.mxu1 %v10211_v24  ;;  %23968 = vst [vmem:[#allocation210_spill] sm:$0xff] %v21840_v61  ;;  %17005 = vmatprep.subr.mxu0 %v21750_v12  ;;  %v10122_v29 = vsub.f32 %v21788_v31, %v23969_v20  ;;  %v10131_v24 = vand.u32 4294901760, %v21825_v62 }
 0x36f   : > { %16986 = vmatmul.mubr.f32.gmra.mxu1 %v21452_v2  ;;  %v16539_v3 = vpop.f32.mrf.mxu1  ;;  %17027 = vmatprep.subr.mxu1 %v10218_v23  ;;  %v10232_v2 = vand.u32 4294901760, %v10231_v27  ;;  %v21867_v27 = vsub.f32 %v10014_v50, %v21851_v17 }
 0x370   : > { %17006 = vmatpush3.msra.mxu0 %v21750_v12  ;;  %v7646_v28 = vadd.f32 %v16539_v3, %v16511_v60  ;;  %17007 = vmatprep.mubr.f32.mxu0 %v10093_v42  ;;  %v10239_v42 = vand.u32 4294901760, %v10238_v45 }
 0x371   : > { %17028 = vmatpush3.msra.mxu1 %v10218_v23  ;;  %v21853_v61 = vpop.f32.mrf.mxu1  ;;  %17008 = vmatmul.mubr.f32.vlgmr.msra.gmra.mxu0 %v10103_v63  ;;  %v16561_v59 = vpop.f32.mrf.mxu0  ;;  %v10123_v23 = vand.u32 4294901760, %v10122_v29  ;;  %v10132_v63 = vsub.f32 %v21825_v62, %v10131_v24 }
 0x372   : > { %23970 = vst [vmem:[#allocation211_spill] sm:$0xff] %v21853_v61  ;;  %17029 = vmatprep.subr.mxu1 %v10225_v6  ;;  %17047 = vmatprep.subr.mxu0 %v21634_v21  ;;  %v7753_v60 = vadd.f32 %v16561_v59, %v21760_v13  ;;  %v10142_v13 = vsub.f32 %v21836_v10, %v10141_v1 }
 0x373   : > { %16988 = vmatprep.mubr.f32.mxu1 %v21481_v18  ;;  %17030 = vmatpush3.msra.mxu1 %v10225_v6  ;;  %v21869_v32 = vpop.f32.mrf.mxu0  ;;  %v10161_v6 = vand.u32 4294901760, %v21867_v27 }
 0x374   : > { %17048 = vmatpush3.msra.mxu0 %v21634_v21  ;;  %23971 = vst [vmem:[#allocation212_spill] sm:$0xff] %v21869_v32  ;;  %16989 = vmatmul.mubr.f32.gmra.mxu1 %v21494_v51  ;;  %v16542_v18 = vpop.f32.mrf.mxu1  ;;  %v10151_v21 = vand.u32 4294901760, %v21857_v36  ;;  %v10133_v51 = vand.u32 4294901760, %v10132_v63 }
 0x375   : > { %17031 = vmatprep.subr.mxu1 %v10232_v2  ;;  %17049 = vmatprep.subr.mxu0 %v21652_v22  ;;  %v7658_v59 = vadd.f32 %v16542_v18, %v16514_v34  ;;  %v10143_v34 = vand.u32 4294901760, %v10142_v13 }
 0x376   : > { %17010 = vmatprep.mubr.f32.mxu0 %v10113_v58  ;;  %17032 = vmatpush3.msra.mxu1 %v10232_v2  ;;  %v21878_v50 = vpop.f32.mrf.mxu1 }
 0x377   : > { %17050 = vmatpush3.msra.mxu0 %v21652_v22  ;;  %23972 = vst [vmem:[#allocation213_spill] sm:$0xff] %v21878_v50  ;;  %17033 = vmatprep.subr.mxu1 %v10239_v42  ;;  %v10152_v22 = vsub.f32 %v21857_v36, %v10151_v21  ;;  %v10868_v50 = vld [vmem:[#allocation2 + $0x3c] sm:$0xff] }
 0x378   : > { %17011 = vmatmul.mubr.f32.gmra.mxu0 %v10123_v23  ;;  %v16564_v5 = vpop.f32.mrf.mxu0  ;;  %17051 = vmatprep.subr.mxu0 %v21668_v55 }
 0x379   : > { %17034 = vmatpush3.msra.mxu1 %v10239_v42  ;;  %v7767_v58 = vadd.f32 %v16564_v5, %v21812_v35  ;;  %17035 = vmatprep.mubr.f32.mxu1 %v21695_v52  ;;  %v10162_v35 = vsub.f32 %v21867_v27, %v10161_v6  ;;  %v10153_v29 = vand.u32 4294901760, %v10152_v22 }
 0x37a   : > { %17052 = vmatpush3.msra.mxu0 %v21668_v55  ;;  %v21888_v45 = vpop.f32.mrf.mxu0  ;;  %17036 = vmatmul.mubr.f32.vlgmr.msra.gmra.mxu1 %v21697_v41  ;;  %v16589_v3 = vpop.f32.mrf.mxu1 }
 0x37b   : > { %23973 = vst [vmem:[#allocation214_spill] sm:$0xff] %v21888_v45  ;;  %17053 = vmatprep.subr.mxu0 %v21688_v49  ;;  %17075 = vmatprep.subr.mxu1 %v21616_v53  ;;  %v7884_v55 = vadd.f32 %v16589_v3, %v7753_v60  ;;  %v10163_v60 = vand.u32 4294901760, %v10162_v35  ;;  %v23981_v35 = vand.u32 4294901760, %v21731_v54  ;;  %v10898_v45 = vsel %vm226_vm1, %v10868_v50, 0 }
 0x37c   : > { %17013 = vmatprep.mubr.f32.mxu0 %v10133_v51  ;;  %17054 = vmatpush3.msra.mxu0 %v21688_v49  ;;  %v21898_v20 = vpop.f32.mrf.mxu1  ;;  %v22195_v32 = vand.u32 4294901760, %v10898_v45 }
 0x37d   : > { %17076 = vmatpush3.msra.mxu1 %v21616_v53  ;;  %23974 = vst [vmem:[#allocation215_spill] sm:$0xff] %v21898_v20  ;;  %17014 = vmatmul.mubr.f32.gmra.mxu0 %v10143_v34  ;;  %v16567_v2 = vpop.f32.mrf.mxu0 }
 0x37e   : > { %17055 = vmatprep.subr.mxu0 %v21719_v33  ;;  %17077 = vmatprep.subr.mxu1 %v21627_v7  ;;  %v7781_v23 = vadd.f32 %v16567_v2, %v7646_v28 }
 0x37f   : > { %17038 = vmatprep.mubr.f32.mxu1 %v21744_v46  ;;  %17056 = vmatpush3.msra.mxu0 %v21719_v33  ;;  %v21905_v49 = vpop.f32.mrf.mxu0 }
 0x380   : > { %17078 = vmatpush3.msra.mxu1 %v21627_v7  ;;  %23975 = vst [vmem:[#allocation216_spill] sm:$0xff] %v21905_v49  ;;  %17057 = vmatprep.subr.mxu0 %v21742_v9 }
 0x381   : > { %17039 = vmatmul.mubr.f32.gmra.mxu1 %v21758_v38  ;;  %v16592_v42 = vpop.f32.mrf.mxu1  ;;  %17079 = vmatprep.subr.mxu1 %v21644_v30 }
 0x382   : > { %17016 = vmatprep.mubr.f32.mxu0 %v10153_v29  ;;  %v7900_v63 = vadd.f32 %v16592_v42, %v7767_v58  ;;  %17058 = vmatpush3.msra.mxu0 %v21742_v9 }
 0x383   : > { %17080 = vmatpush3.msra.mxu1 %v21644_v30  ;;  %v21912_v28 = vpop.f32.mrf.mxu1  ;;  %17017 = vmatmul.mubr.f32.gmra.mxu0 %v10163_v60  ;;  %v16570_v33 = vpop.f32.mrf.mxu0  ;;  %v23985_v60 = vand.u32 4294901760, %v21777_v19 }
 0x384   : > { %23976 = vst [vmem:[#allocation217_spill] sm:$0xff] %v21912_v28  ;;  %17059 = vmatprep.subr.mxu0 %v21766_v11  ;;  %17081 = vmatprep.subr.mxu1 %v21656_v0  ;;  %v7795_v18 = vadd.f32 %v16570_v33, %v7658_v59  ;;  %v23987_v33 = vand.u32 4294901760, %v21788_v31 }
 0x385   : > { %17041 = vmatprep.mubr.f32.mxu1 %v21790_v48  ;;  %17060 = vmatpush3.msra.mxu0 %v21766_v11  ;;  %v21919_v13 = vpop.f32.mrf.mxu0 }
 0x386   : > { %17082 = vmatpush3.msra.mxu1 %v21656_v0  ;;  %23977 = vst [vmem:[#allocation218_spill] sm:$0xff] %v21919_v13  ;;  %17061 = vmatprep.subr.mxu0 %v21781_v15  ;;  %v10867_v13 = vld [vmem:[#allocation2 + $0x34] sm:$0xff] }
 0x387   : > { %17042 = vmatmul.mubr.f32.gmra.mxu1 %v21809_v14  ;;  %v16595_v9 = vpop.f32.mrf.mxu1  ;;  %17083 = vmatprep.subr.mxu1 %v21685_v8 }
 0x388   : > { %17062 = vmatpush3.msra.mxu0 %v21781_v15  ;;  %v7916_v51 = vadd.f32 %v16595_v9, %v7781_v23  ;;  %17063 = vmatprep.mubr.f32.mxu0 %v21731_v54  ;;  %v10878_v54 = vld [vmem:[#allocation5 + $0x338] sm:$0xff]  ;;  %v23989_v9 = vld [vmem:[#allocation53_spill] sm:$0xff] }
 0x389   : > { %17084 = vmatpush3.msra.mxu1 %v21685_v8  ;;  %v21927_v59 = vpop.f32.mrf.mxu1  ;;  %17064 = vmatmul.mubr.f32.vlgmr.msra.gmra.mxu0 %v21734_v37  ;;  %v16617_v11 = vpop.f32.mrf.mxu0 }
 0x38a   : > { %23978 = vst [vmem:[#allocation219_spill] sm:$0xff] %v21927_v59  ;;  %17085 = vmatprep.subr.mxu1 %v21701_v57  ;;  %17103 = vmatprep.subr.mxu0 %v21659_v44  ;;  %v8033_v5 = vadd.f32 %v16617_v11, %v7884_v55 }
 0x38b   : > { %17044 = vmatprep.mubr.f32.mxu1 %v21838_v56  ;;  %17086 = vmatpush3.msra.mxu1 %v21701_v57  ;;  %v21935_v15 = vpop.f32.mrf.mxu0 }
 0x38c   : > { %17104 = vmatpush3.msra.mxu0 %v21659_v44  ;;  %23979 = vst [vmem:[#allocation220_spill] sm:$0xff] %v21935_v15  ;;  %17045 = vmatmul.mubr.f32.gmra.mxu1 %v21851_v17  ;;  %v16598_v58 = vpop.f32.mrf.mxu1 }
 0x38d   : > { %17087 = vmatprep.subr.mxu1 %v21728_v16  ;;  %17105 = vmatprep.subr.mxu0 %v21679_v26  ;;  %v7932_v34 = vadd.f32 %v16598_v58, %v7795_v18 }
 0x38e   : > { %17066 = vmatprep.mubr.f32.mxu0 %v21777_v19  ;;  %17088 = vmatpush3.msra.mxu1 %v21728_v16  ;;  %v21943_v22 = vpop.f32.mrf.mxu1 }
 0x38f   : > { %17106 = vmatpush3.msra.mxu0 %v21679_v26  ;;  %23980 = vst [vmem:[#allocation221_spill] sm:$0xff] %v21943_v22  ;;  %17089 = vmatprep.subr.mxu1 %v21750_v12  ;;  %v23983_v26 = vand.u32 4294901760, %v21734_v37  ;;  %v10866_v22 = vld [vmem:[#allocation2 + $0x2c] sm:$0xff] }
 0x390   : > { %17067 = vmatmul.mubr.f32.gmra.mxu0 %v21788_v31  ;;  %v16620_v44 = vpop.f32.mrf.mxu0  ;;  %17107 = vmatprep.subr.mxu0 %v21704_v39 }
 0x391   : > { %17090 = vmatpush3.msra.mxu1 %v21750_v12  ;;  %v8045_v3 = vadd.f32 %v16620_v44, %v7900_v63  ;;  %17091 = vmatprep.mubr.f32.mxu1 %v23981_v35  ;;  %v23992_v44 = vld [vmem:[#allocation208_spill] sm:$0xff] }
 0x392   : > { %17108 = vmatpush3.msra.mxu0 %v21704_v39  ;;  %v21952_v55 = vpop.f32.mrf.mxu0  ;;  %17092 = vmatmul.mubr.f32.vlgmr.msra.gmra.mxu1 %v23983_v26  ;;  %v16645_v29 = vpop.f32.mrf.mxu1 }
 0x393   : > { %23982 = vst [vmem:[#allocation222_spill] sm:$0xff] %v21952_v55  ;;  %17109 = vmatprep.subr.mxu0 %v21716_v43  ;;  %17131 = vmatprep.subr.mxu1 %v21616_v53  ;;  %v8154_v2 = vadd.f32 %v16645_v29, %v8033_v5  ;;  %v10892_v55 = vsel %vm226_vm1, %v10866_v22, 0  ;;  %v10895_v22 = vsel %vm226_vm1, %v10867_v13, 0 }
 0x394   : > { %17069 = vmatprep.mubr.f32.mxu0 %v21825_v62  ;;  %17110 = vmatpush3.msra.mxu0 %v21716_v43  ;;  %v21961_v23 = vpop.f32.mrf.mxu1  ;;  %v10877_v43 = vld [vmem:[#allocation5 + $0x330] sm:$0xff]  ;;  %v10862_v62 = vld [vmem:[#allocation2 + $0xc] sm:$0xff] }
 0x395   : > { %17132 = vmatpush3.msra.mxu1 %v21616_v53  ;;  %23984 = vst [vmem:[#allocation223_spill] sm:$0xff] %v21961_v23  ;;  %17070 = vmatmul.mubr.f32.gmra.mxu0 %v21836_v10  ;;  %v21966_v39 = vadd.f32 %v8154_v2, %v21609_v25  ;;  %v16623_v37 = vpop.f32.mrf.mxu0  ;;  %v21973_v53 = vand.u32 4294901760, %v10878_v54  ;;  %v10874_v10 = vld [vmem:[#allocation5 + $0x318] sm:$0xff]  ;;  %v10880_v29 = vsel %vm226_vm1, %v10862_v62, 0 }
 0x396   : > { %17111 = vmatprep.subr.mxu0 %v21756_v40  ;;  %17133 = vmatprep.subr.mxu1 %v21627_v7  ;;  %v8057_v42 = vadd.f32 %v16623_v37, %v7916_v51 }
 0x397   : > { %17094 = vmatprep.mubr.f32.mxu1 %v23985_v60  ;;  %17112 = vmatpush3.msra.mxu0 %v21756_v40  ;;  %v21975_v63 = vpop.f32.mrf.mxu0  ;;  %v21984_v40 = vand.u32 4294901760, %v10877_v43  ;;  %v21991_v31 = vsub.f32 %v10878_v54, %v21973_v53  ;;  %v23994_v54 = vld [vmem:[#allocation56_spill] sm:$0xff] }
 0x398   : > { %17134 = vmatpush3.msra.mxu1 %v21627_v7  ;;  %23986 = vst [vmem:[#allocation224_spill] sm:$0xff] %v21975_v63  ;;  %17113 = vmatprep.subr.mxu0 %v21774_v47  ;;  %v10876_v7 = vld [vmem:[#allocation5 + $0x328] sm:$0xff] }
 0x399   : > { %17095 = vmatmul.mubr.f32.gmra.mxu1 %v23987_v33  ;;  %v16648_v25 = vpop.f32.mrf.mxu1  ;;  %17135 = vmatprep.subr.mxu1 %v21644_v30  ;;  %v22001_v5 = vand.u32 4294901760, %v10876_v7  ;;  %v22042_v33 = vand.u32 4294901760, %v10874_v10 }
 0x39a   : > { %17072 = vmatprep.mubr.f32.mxu0 %v21857_v36  ;;  %v8166_v19 = vadd.f32 %v16648_v25, %v8045_v3  ;;  %17114 = vmatpush3.msra.mxu0 %v21774_v47  ;;  %v22009_v3 = vsub.f32 %v10877_v43, %v21984_v40  ;;  %v22052_v36 = vand.u32 4294901760, %v10880_v29 }
 0x39b   : > { %17136 = vmatpush3.msra.mxu1 %v21644_v30  ;;  %v21986_v18 = vpop.f32.mrf.mxu1  ;;  %17073 = vmatmul.mubr.f32.gmra.mxu0 %v21867_v27  ;;  %v16626_v11 = vpop.f32.mrf.mxu0  ;;  %v10875_v30 = vld [vmem:[#allocation5 + $0x320] sm:$0xff]  ;;  %v22025_v26 = vsub.f32 %v10876_v7, %v22001_v5 }
 0x39c   : > { %23988 = vst [vmem:[#allocation225_spill] sm:$0xff] %v21986_v18  ;;  %17115 = vmatprep.subr.mxu0 %v21803_v4  ;;  %v21994_v51 = vadd.f32 %v8166_v19, %v23989_v9  ;;  %17137 = vmatprep.subr.mxu1 %v21656_v0  ;;  %v8069_v47 = vadd.f32 %v16626_v11, %v7932_v34  ;;  %v10864_v19 = vld [vmem:[#allocation2 + $0x1c] sm:$0xff] }
 0x39d   : > { %17097 = vmatprep.mubr.f32.mxu1 %v10131_v24  ;;  %17116 = vmatpush3.msra.mxu0 %v21803_v4  ;;  %v22003_v58 = vpop.f32.mrf.mxu0  ;;  %v10863_v24 = vld [vmem:[#allocation2 + $0x14] sm:$0xff]  ;;  %v22016_v4 = vand.u32 4294901760, %v21991_v31  ;;  %v22061_v11 = vand.u32 4294901760, %v22025_v26  ;;  %v10886_v62 = vsel %vm226_vm1, %v10864_v19, 0 }
 0x39e   : > { %23990 = vst [vmem:[#allocation53_spill] sm:$0xff] %v21994_v51  ;;  %17138 = vmatpush3.msra.mxu1 %v21656_v0  ;;  %23991 = vst [vmem:[#allocation226_spill] sm:$0xff] %v22003_v58  ;;  %17117 = vmatprep.subr.mxu0 %v23992_v44  ;;  %v22013_v0 = vand.u32 4294901760, %v10875_v30  ;;  %v10883_v2 = vsel %vm226_vm1, %v10863_v24, 0 }
 0x39f   : > { %17098 = vmatmul.mubr.f32.gmra.mxu1 %v10141_v1  ;;  %v16651_v35 = vpop.f32.mrf.mxu1  ;;  %17139 = vmatprep.subr.mxu1 %v21685_v8  ;;  %v11076_v43 = vsub.f32 %v21991_v31, %v22016_v4 }
 0x3a0   : > { %17118 = vmatpush3.msra.mxu0 %v23992_v44  ;;  %v8178_v34 = vadd.f32 %v16651_v35, %v8057_v42  ;;  %17119 = vmatprep.mubr.f32.mxu0 %v21695_v52  ;;  %v10873_v42 = vld [vmem:[#allocation5 + $0x310] sm:$0xff]  ;;  %v22045_v25 = vsub.f32 %v10875_v30, %v22013_v0  ;;  %v10872_v30 = vld [vmem:[#allocation5 + $0x308] sm:$0xff] }
 0x3a1   : > { %17140 = vmatpush3.msra.mxu1 %v21685_v8  ;;  %v22020_v1 = vpop.f32.mrf.mxu1  ;;  %17120 = vmatmul.mubr.f32.vlgmr.msra.gmra.mxu0 %v21697_v41  ;;  %v16673_v60 = vpop.f32.mrf.mxu0  ;;  %v22036_v8 = vand.u32 4294901760, %v22009_v3  ;;  %v22058_v9 = vand.u32 4294901760, %v10873_v42  ;;  %v10865_v44 = vld [vmem:[#allocation2 + $0x24] sm:$0xff]  ;;  %v11077_v35 = vand.u32 4294901760, %v11076_v43  ;;  %v22085_v19 = vand.u32 4294901760, %v10872_v30 }
 0x3a2   : > { %23993 = vst [vmem:[#allocation208_spill] sm:$0xff] %v22020_v1  ;;  %17141 = vmatprep.subr.mxu1 %v21701_v57  ;;  %v22030_v37 = vadd.f32 %v8178_v34, %v23994_v54  ;;  %17159 = vmatprep.subr.mxu0 %v21973_v53  ;;  %v22073_v34 = vand.u32 4294901760, %v22045_v25  ;;  %v23998_v54 = vld [vmem:[#allocation59_spill] sm:$0xff]  ;;  %v22088_v43 = vsub.f32 %v10880_v29, %v22052_v36 }
 0x3a3   : > { %17100 = vmatprep.mubr.f32.mxu1 %v10151_v21  ;;  %17142 = vmatpush3.msra.mxu1 %v21701_v57  ;;  %v22047_v7 = vpop.f32.mrf.mxu0  ;;  %v22054_v57 = vand.u32 4294901760, %v10883_v2  ;;  %v22123_v18 = vsub.f32 %v10872_v30, %v22085_v19 }
 0x3a4   : > { %23995 = vst [vmem:[#allocation56_spill] sm:$0xff] %v22030_v37  ;;  %17160 = vmatpush3.msra.mxu0 %v21973_v53  ;;  %23996 = vst [vmem:[#allocation227_spill] sm:$0xff] %v22047_v7  ;;  %17101 = vmatmul.mubr.f32.gmra.mxu1 %v10161_v6  ;;  %v16654_v21 = vpop.f32.mrf.mxu1  ;;  %v11083_v6 = vsub.f32 %v22009_v3, %v22036_v8  ;;  %v24003_v13 = vand.u32 4294901760, %v22088_v43 }
 0x3a5   : > { %17143 = vmatprep.subr.mxu1 %v21728_v16  ;;  %17161 = vmatprep.subr.mxu0 %v21984_v40  ;;  %v8190_v27 = vadd.f32 %v16654_v21, %v8069_v47  ;;  %v10871_v47 = vld [vmem:[#allocation5 + $0x300] sm:$0xff] }
 0x3a6   : > { %17122 = vmatprep.mubr.f32.mxu0 %v21744_v46  ;;  %17144 = vmatpush3.msra.mxu1 %v21728_v16  ;;  %v22068_v24 = vpop.f32.mrf.mxu1  ;;  %v22076_v16 = vsub.f32 %v10874_v10, %v22042_v33  ;;  %v10889_v10 = vsel %vm226_vm1, %v10865_v44, 0  ;;  %v22107_v44 = vand.u32 4294901760, %v10871_v47 }
 0x3a7   : > { %17162 = vmatpush3.msra.mxu0 %v21984_v40  ;;  %23997 = vst [vmem:[#allocation228_spill] sm:$0xff] %v22068_v24  ;;  %17145 = vmatprep.subr.mxu1 %v21750_v12  ;;  %v22079_v21 = vadd.f32 %v8190_v27, %v23998_v54  ;;  %v22091_v24 = vsub.f32 %v10883_v2, %v22054_v57  ;;  %v11084_v2 = vand.u32 4294901760, %v11083_v6  ;;  %v22115_v63 = vand.u32 4294901760, %v10889_v10 }
 0x3a8   : > { %17123 = vmatmul.mubr.f32.gmra.mxu0 %v21758_v38  ;;  %v22081_v58 = vpop.f32.mrf.mxu0  ;;  %17163 = vmatprep.subr.mxu0 %v22001_v5  ;;  %v11090_v27 = vsub.f32 %v22025_v26, %v22061_v11  ;;  %v22099_v54 = vsub.f32 %v10873_v42, %v22058_v9  ;;  %v11097_v42 = vsub.f32 %v22045_v25, %v22073_v34  ;;  %v22113_v1 = vand.u32 4294901760, %v22076_v16 }
 0x3a9   : > { %23999 = vst [vmem:[#allocation59_spill] sm:$0xff] %v22079_v21  ;;  %17146 = vmatpush3.msra.mxu1 %v21750_v12  ;;  %17147 = vmatprep.mubr.f32.mxu1 %v21695_v52  ;;  %v22101_v12 = vand.u32 4294901760, %v10886_v62  ;;  %v22138_v30 = vsub.f32 %v10871_v47, %v22107_v44  ;;  %v22145_v6 = vsub.f32 %v10889_v10, %v22115_v63  ;;  %v22160_v10 = vand.u32 4294901760, %v22123_v18 }
 0x3aa   : > { %17164 = vmatpush3.msra.mxu0 %v22001_v5  ;;  %v22103_v29 = vpop.f32.mrf.mxu0  ;;  %17148 = vmatmul.mubr.f32.vlgmr.msra.gmra.mxu1 %v21697_v41  ;;  %v16701_v52 = vpop.f32.mrf.mxu1  ;;  %v10979_v47 = vsub.f32 %v22088_v43, %v24003_v13 }
 0x3ab   : > { %24000 = vst [vmem:[#allocation229_spill] sm:$0xff] %v22103_v29  ;;  %17165 = vmatprep.subr.mxu0 %v22013_v0  ;;  %17187 = vmatprep.subr.mxu1 %v11077_v35  ;;  %v22117_v59 = vadd.f32 %v16701_v52, %v16673_v60  ;;  %v11091_v60 = vand.u32 4294901760, %v11090_v27  ;;  %v22131_v52 = vand.u32 4294901760, %v22099_v54  ;;  %v11104_v27 = vsub.f32 %v22076_v16, %v22113_v1  ;;  %v10869_v29 = vld [vmem:[#allocation2 + $0x44] sm:$0xff] }
 0x3ac   : > { %17125 = vmatprep.mubr.f32.mxu0 %v21790_v48  ;;  %17166 = vmatpush3.msra.mxu0 %v22013_v0  ;;  %v22126_v49 = vpop.f32.mrf.mxu1  ;;  %v11118_v50 = vsub.f32 %v22123_v18, %v22160_v10 }
 0x3ad   : > { %17188 = vmatpush3.msra.mxu1 %v11077_v35  ;;  %24001 = vst [vmem:[#allocation230_spill] sm:$0xff] %v22126_v49  ;;  %17126 = vmatmul.mubr.f32.gmra.mxu0 %v21809_v14  ;;  %v22134_v35 = vsub.f32 %v10886_v62, %v22101_v12  ;;  %v16679_v41 = vpop.f32.mrf.mxu0  ;;  %v22147_v62 = vand.u32 4294901760, %v10892_v55 }
 0x3ae   : > { %17167 = vmatprep.subr.mxu0 %v22042_v33  ;;  %17189 = vmatprep.subr.mxu1 %v11084_v2 }
 0x3af   : > { %17150 = vmatprep.mubr.f32.mxu1 %v21744_v46  ;;  %17168 = vmatpush3.msra.mxu0 %v22042_v33  ;;  %v22149_v28 = vpop.f32.mrf.mxu0  ;;  %v11098_v46 = vand.u32 4294901760, %v11097_v42  ;;  %v11105_v42 = vand.u32 4294901760, %v11104_v27  ;;  %v24007_v20 = vand.u32 4294901760, %v22134_v35 }
 0x3b0   : > { %17190 = vmatpush3.msra.mxu1 %v11084_v2  ;;  %24002 = vst [vmem:[#allocation231_spill] sm:$0xff] %v22149_v28  ;;  %17169 = vmatprep.subr.mxu0 %v22058_v9  ;;  %v24004_v2 = vand.u32 4294901760, %v22091_v24  ;;  %v22166_v28 = vand.u32 4294901760, %v10895_v22 }
 0x3b1   : > { %17151 = vmatmul.mubr.f32.gmra.mxu1 %v21758_v38  ;;  %v16704_v23 = vpop.f32.mrf.mxu1  ;;  %17191 = vmatprep.subr.mxu1 %v11091_v60  ;;  %v11111_v38 = vsub.f32 %v22099_v54, %v22131_v52 }
 0x3b2   : > { %v10989_v61 = vsub.f32 %v22091_v24, %v24004_v2  ;;  %17128 = vmatprep.mubr.f32.mxu0 %v21838_v56  ;;  %v22169_v13 = vadd.f32 %v16704_v23, %v22081_v58  ;;  %17170 = vmatpush3.msra.mxu0 %v22058_v9  ;;  %v22173_v2 = vand.u32 4294901760, %v22138_v30  ;;  %v22182_v23 = vsub.f32 %v10892_v55, %v22147_v62 }
 0x3b3   : > { %17192 = vmatpush3.msra.mxu1 %v11091_v60  ;;  %v22176_v15 = vpop.f32.mrf.mxu1  ;;  %17129 = vmatmul.mubr.f32.gmra.mxu0 %v21851_v17  ;;  %v16682_v58 = vpop.f32.mrf.mxu0  ;;  %v10980_v60 = vand.u32 4294901760, %v10979_v47  ;;  %v11112_v27 = vand.u32 4294901760, %v11111_v38  ;;  %v10999_v55 = vsub.f32 %v22134_v35, %v24007_v20  ;;  %v22193_v7 = vsub.f32 %v10895_v22, %v22166_v28 }
 0x3b4   : > { %24005 = vst [vmem:[#allocation232_spill] sm:$0xff] %v22173_v2  ;;  %24006 = vst [vmem:[#allocation233_spill] sm:$0xff] %v22176_v15  ;;  %17171 = vmatprep.subr.mxu0 %v22085_v19  ;;  %17193 = vmatprep.subr.mxu1 %v11098_v46  ;;  %v10990_v49 = vand.u32 4294901760, %v10989_v61  ;;  %v10901_v15 = vsel %vm226_vm1, %v10869_v29, 0  ;;  %v11125_v61 = vsub.f32 %v22138_v30, %v22173_v2  ;;  %v24009_v20 = vand.u32 4294901760, %v22145_v6 }
 0x3b5   : > { %17153 = vmatprep.mubr.f32.mxu1 %v21790_v48  ;;  %17172 = vmatpush3.msra.mxu0 %v22085_v19  ;;  %v22197_v48 = vpop.f32.mrf.mxu0  ;;  %v22208_v47 = vand.u32 4294901760, %v10901_v15  ;;  %v11000_v21 = vand.u32 4294901760, %v10999_v55  ;;  %v11028_v37 = vand.u32 4294901760, %v22193_v7  ;;  %v22214_v2 = vsub.f32 %v10898_v45, %v22195_v32 }
 0x3b6   : > { %17194 = vmatpush3.msra.mxu1 %v11098_v46  ;;  %24008 = vst [vmem:[#allocation234_spill] sm:$0xff] %v22197_v48  ;;  %17173 = vmatprep.subr.mxu0 %v22107_v44  ;;  %v11009_v22 = vsub.f32 %v22145_v6, %v24009_v20  ;;  %v11018_v46 = vand.u32 4294901760, %v22182_v23 }
 0x3b7   : > { %17154 = vmatmul.mubr.f32.gmra.mxu1 %v21809_v14  ;;  %v16707_v29 = vpop.f32.mrf.mxu1  ;;  %17195 = vmatprep.subr.mxu1 %v11105_v42  ;;  %v11119_v14 = vand.u32 4294901760, %v11118_v50  ;;  %v22224_v50 = vsub.f32 %v10901_v15, %v22208_v47 }
 0x3b8   : > { %17174 = vmatpush3.msra.mxu0 %v22107_v44  ;;  %v8533_v38 = vadd.f32 %v16707_v29, %v16679_v41  ;;  %17175 = vmatprep.mubr.f32.mxu0 %v10980_v60  ;;  %v11126_v60 = vand.u32 4294901760, %v11125_v61 }
 0x3b9   : > { %17196 = vmatpush3.msra.mxu1 %v11105_v42  ;;  %v22210_v48 = vpop.f32.mrf.mxu1  ;;  %17176 = vmatmul.mubr.f32.vlgmr.msra.gmra.mxu0 %v10990_v49  ;;  %v16729_v51 = vpop.f32.mrf.mxu0  ;;  %v11010_v42 = vand.u32 4294901760, %v11009_v22  ;;  %v11019_v49 = vsub.f32 %v22182_v23, %v11018_v46 }
 0x3ba   : > { %24010 = vst [vmem:[#allocation235_spill] sm:$0xff] %v22210_v48  ;;  %17197 = vmatprep.subr.mxu1 %v11112_v27  ;;  %17215 = vmatprep.subr.mxu0 %v21991_v31  ;;  %v8640_v41 = vadd.f32 %v16729_v51, %v22117_v59  ;;  %v11029_v59 = vsub.f32 %v22193_v7, %v11028_v37 }
 0x3bb   : > { %17156 = vmatprep.mubr.f32.mxu1 %v21838_v56  ;;  %17198 = vmatpush3.msra.mxu1 %v11112_v27  ;;  %v22226_v45 = vpop.f32.mrf.mxu0  ;;  %v11048_v27 = vand.u32 4294901760, %v22224_v50 }
 0x3bc   : > { %17216 = vmatpush3.msra.mxu0 %v21991_v31  ;;  %24011 = vst [vmem:[#allocation236_spill] sm:$0xff] %v22226_v45  ;;  %17157 = vmatmul.mubr.f32.gmra.mxu1 %v21851_v17  ;;  %v16710_v56 = vpop.f32.mrf.mxu1  ;;  %v11038_v31 = vand.u32 4294901760, %v22214_v2  ;;  %v11020_v17 = vand.u32 4294901760, %v11019_v49 }
 0x3bd   : > { %17199 = vmatprep.subr.mxu1 %v11119_v14  ;;  %17217 = vmatprep.subr.mxu0 %v22009_v3  ;;  %v8545_v51 = vadd.f32 %v16710_v56, %v16682_v58  ;;  %v11030_v58 = vand.u32 4294901760, %v11029_v59 }
 0x3be   : > { %17178 = vmatprep.mubr.f32.mxu0 %v11000_v21  ;;  %17200 = vmatpush3.msra.mxu1 %v11119_v14  ;;  %v22235_v15 = vpop.f32.mrf.mxu1 }
 0x3bf   : > { %17218 = vmatpush3.msra.mxu0 %v22009_v3  ;;  %24012 = vst [vmem:[#allocation237_spill] sm:$0xff] %v22235_v15  ;;  %17201 = vmatprep.subr.mxu1 %v11126_v60  ;;  %v11039_v3 = vsub.f32 %v22214_v2, %v11038_v31  ;;  %v24057_v15 = vld [vmem:[#allocation20_spill] sm:$0xff] }
 0x3c0   : > { %17179 = vmatmul.mubr.f32.gmra.mxu0 %v11010_v42  ;;  %v16732_v55 = vpop.f32.mrf.mxu0  ;;  %17219 = vmatprep.subr.mxu0 %v22025_v26 }
 0x3c1   : > { %17202 = vmatpush3.msra.mxu1 %v11126_v60  ;;  %v8654_v21 = vadd.f32 %v16732_v55, %v22169_v13  ;;  %17203 = vmatprep.mubr.f32.mxu1 %v22052_v36  ;;  %v11049_v13 = vsub.f32 %v22224_v50, %v11048_v27  ;;  %v11040_v22 = vand.u32 4294901760, %v11039_v3 }
 0x3c2   : > { %17220 = vmatpush3.msra.mxu0 %v22025_v26  ;;  %v22245_v61 = vpop.f32.mrf.mxu0  ;;  %17204 = vmatmul.mubr.f32.vlgmr.msra.gmra.mxu1 %v22054_v57  ;;  %v16757_v29 = vpop.f32.mrf.mxu1 }
 0x3c3   : > { %24013 = vst [vmem:[#allocation238_spill] sm:$0xff] %v22245_v61  ;;  %17221 = vmatprep.subr.mxu0 %v22045_v25  ;;  %17243 = vmatprep.subr.mxu1 %v21973_v53  ;;  %v8771_v26 = vadd.f32 %v16757_v29, %v8640_v41  ;;  %v11050_v41 = vand.u32 4294901760, %v11049_v13  ;;  %v24021_v13 = vand.u32 4294901760, %v22088_v43  ;;  %v24062_v61 = vld [vmem:[#allocation23_spill] sm:$0xff] }
 0x3c4   : > { %17181 = vmatprep.mubr.f32.mxu0 %v11020_v17  ;;  %17222 = vmatpush3.msra.mxu0 %v22045_v25  ;;  %v22255_v20 = vpop.f32.mrf.mxu1 }
 0x3c5   : > { %17244 = vmatpush3.msra.mxu1 %v21973_v53  ;;  %24014 = vst [vmem:[#allocation239_spill] sm:$0xff] %v22255_v20  ;;  %17182 = vmatmul.mubr.f32.gmra.mxu0 %v11030_v58  ;;  %v16735_v14 = vpop.f32.mrf.mxu0 }
 0x3c6   : > { %17223 = vmatprep.subr.mxu0 %v22076_v16  ;;  %17245 = vmatprep.subr.mxu1 %v21984_v40  ;;  %v8668_v42 = vadd.f32 %v16735_v14, %v8533_v38 }
 0x3c7   : > { %17206 = vmatprep.mubr.f32.mxu1 %v22101_v12  ;;  %17224 = vmatpush3.msra.mxu0 %v22076_v16  ;;  %v22262_v25 = vpop.f32.mrf.mxu0 }
 0x3c8   : > { %17246 = vmatpush3.msra.mxu1 %v21984_v40  ;;  %24015 = vst [vmem:[#allocation240_spill] sm:$0xff] %v22262_v25  ;;  %17225 = vmatprep.subr.mxu0 %v22099_v54 }
 0x3c9   : > { %17207 = vmatmul.mubr.f32.gmra.mxu1 %v22115_v63  ;;  %v16760_v60 = vpop.f32.mrf.mxu1  ;;  %17247 = vmatprep.subr.mxu1 %v22001_v5 }
 0x3ca   : > { %17184 = vmatprep.mubr.f32.mxu0 %v11040_v22  ;;  %v8787_v49 = vadd.f32 %v16760_v60, %v8654_v21  ;;  %17226 = vmatpush3.msra.mxu0 %v22099_v54 }
 0x3cb   : > { %17248 = vmatpush3.msra.mxu1 %v22001_v5  ;;  %v22269_v38 = vpop.f32.mrf.mxu1  ;;  %17185 = vmatmul.mubr.f32.gmra.mxu0 %v11050_v41  ;;  %v16738_v16 = vpop.f32.mrf.mxu0  ;;  %v24026_v41 = vand.u32 4294901760, %v22134_v35 }
 0x3cc   : > { %24016 = vst [vmem:[#allocation241_spill] sm:$0xff] %v22269_v38  ;;  %17227 = vmatprep.subr.mxu0 %v22123_v18  ;;  %17249 = vmatprep.subr.mxu1 %v22013_v0  ;;  %v8682_v56 = vadd.f32 %v16738_v16, %v8545_v51  ;;  %v24028_v16 = vand.u32 4294901760, %v22145_v6 }
 0x3cd   : > { %17209 = vmatprep.mubr.f32.mxu1 %v22147_v62  ;;  %17228 = vmatpush3.msra.mxu0 %v22123_v18  ;;  %v22276_v59 = vpop.f32.mrf.mxu0 }
 0x3ce   : > { %17250 = vmatpush3.msra.mxu1 %v22013_v0  ;;  %24017 = vst [vmem:[#allocation242_spill] sm:$0xff] %v22276_v59  ;;  %17229 = vmatprep.subr.mxu0 %v22138_v30 }
 0x3cf   : > { %17210 = vmatmul.mubr.f32.gmra.mxu1 %v22166_v28  ;;  %v16763_v54 = vpop.f32.mrf.mxu1  ;;  %17251 = vmatprep.subr.mxu1 %v22042_v33 }
 0x3d0   : > { %17230 = vmatpush3.msra.mxu0 %v22138_v30  ;;  %v8803_v17 = vadd.f32 %v16763_v54, %v8668_v42  ;;  %17231 = vmatprep.mubr.f32.mxu0 %v22088_v43  ;;  %v11765_v43 = vld [vmem:[#allocation5 + $0x378] sm:$0xff]  ;;  %v24030_v54 = vld [vmem:[#allocation53_spill] sm:$0xff] }
 0x3d1   : > { %17252 = vmatpush3.msra.mxu1 %v22042_v33  ;;  %v22284_v51 = vpop.f32.mrf.mxu1  ;;  %17232 = vmatmul.mubr.f32.vlgmr.msra.gmra.mxu0 %v22091_v24  ;;  %v16785_v18 = vpop.f32.mrf.mxu0 }
 0x3d2   : > { %24018 = vst [vmem:[#allocation243_spill] sm:$0xff] %v22284_v51  ;;  %17253 = vmatprep.subr.mxu1 %v22058_v9  ;;  %17271 = vmatprep.subr.mxu0 %v22016_v4  ;;  %v8920_v55 = vadd.f32 %v16785_v18, %v8771_v26 }
 0x3d3   : > { %17212 = vmatprep.mubr.f32.mxu1 %v22195_v32  ;;  %17254 = vmatpush3.msra.mxu1 %v22058_v9  ;;  %v22292_v30 = vpop.f32.mrf.mxu0 }
 0x3d4   : > { %17272 = vmatpush3.msra.mxu0 %v22016_v4  ;;  %24019 = vst [vmem:[#allocation244_spill] sm:$0xff] %v22292_v30  ;;  %17213 = vmatmul.mubr.f32.gmra.mxu1 %v22208_v47  ;;  %v16766_v21 = vpop.f32.mrf.mxu1 }
 0x3d5   : > { %17255 = vmatprep.subr.mxu1 %v22085_v19  ;;  %17273 = vmatprep.subr.mxu0 %v22036_v8  ;;  %v8819_v58 = vadd.f32 %v16766_v21, %v8682_v56 }
 0x3d6   : > { %17234 = vmatprep.mubr.f32.mxu0 %v22134_v35  ;;  %17256 = vmatpush3.msra.mxu1 %v22085_v19  ;;  %v22300_v3 = vpop.f32.mrf.mxu1 }
 0x3d7   : > { %17274 = vmatpush3.msra.mxu0 %v22036_v8  ;;  %24020 = vst [vmem:[#allocation245_spill] sm:$0xff] %v22300_v3  ;;  %17257 = vmatprep.subr.mxu1 %v22107_v44  ;;  %v24023_v8 = vand.u32 4294901760, %v22091_v24 }
 0x3d8   : > { %17235 = vmatmul.mubr.f32.gmra.mxu0 %v22145_v6  ;;  %v16788_v4 = vpop.f32.mrf.mxu0  ;;  %17275 = vmatprep.subr.mxu0 %v22061_v11 }
 0x3d9   : > { %17258 = vmatpush3.msra.mxu1 %v22107_v44  ;;  %v8932_v29 = vadd.f32 %v16788_v4, %v8787_v49  ;;  %17259 = vmatprep.mubr.f32.mxu1 %v24021_v13  ;;  %v24033_v4 = vld [vmem:[#allocation232_spill] sm:$0xff] }
 0x3da   : > { %17276 = vmatpush3.msra.mxu0 %v22061_v11  ;;  %v22309_v26 = vpop.f32.mrf.mxu0  ;;  %17260 = vmatmul.mubr.f32.vlgmr.msra.gmra.mxu1 %v24023_v8  ;;  %v16813_v22 = vpop.f32.mrf.mxu1 }
 0x3db   : > { %24022 = vst [vmem:[#allocation246_spill] sm:$0xff] %v22309_v26  ;;  %17277 = vmatprep.subr.mxu0 %v22073_v34  ;;  %17299 = vmatprep.subr.mxu1 %v21973_v53  ;;  %v9041_v14 = vadd.f32 %v16813_v22, %v8920_v55 }
 0x3dc   : > { %17237 = vmatprep.mubr.f32.mxu0 %v22182_v23  ;;  %17278 = vmatpush3.msra.mxu0 %v22073_v34  ;;  %v22318_v42 = vpop.f32.mrf.mxu1  ;;  %v11764_v34 = vld [vmem:[#allocation5 + $0x370] sm:$0xff]  ;;  %v11749_v23 = vld [vmem:[#allocation2 + $0xd] sm:$0xff] }
 0x3dd   : > { %17300 = vmatpush3.msra.mxu1 %v21973_v53  ;;  %24024 = vst [vmem:[#allocation247_spill] sm:$0xff] %v22318_v42  ;;  %17238 = vmatmul.mubr.f32.gmra.mxu0 %v22193_v7  ;;  %v22323_v11 = vadd.f32 %v9041_v14, %v21966_v39  ;;  %v16791_v24 = vpop.f32.mrf.mxu0  ;;  %v22330_v53 = vand.u32 4294901760, %v11765_v43  ;;  %v11767_v22 = vsel %vm226_vm1, %v11749_v23, 0 }
 0x3de   : > { %17279 = vmatprep.subr.mxu0 %v22113_v1  ;;  %17301 = vmatprep.subr.mxu1 %v21984_v40  ;;  %v8944_v60 = vadd.f32 %v16791_v24, %v8803_v17 }
 0x3df   : > { %24025 = vst [vmem:[#allocation248_spill] sm:$0xff] %v22323_v11  ;;  %17262 = vmatprep.mubr.f32.mxu1 %v24026_v41  ;;  %17280 = vmatpush3.msra.mxu0 %v22113_v1  ;;  %v22332_v49 = vpop.f32.mrf.mxu0  ;;  %v11763_v1 = vld [vmem:[#allocation5 + $0x368] sm:$0xff]  ;;  %v22348_v6 = vsub.f32 %v11765_v43, %v22330_v53  ;;  %v24036_v43 = vld [vmem:[#allocation56_spill] sm:$0xff] }
 0x3e0   : > { %17302 = vmatpush3.msra.mxu1 %v21984_v40  ;;  %24027 = vst [vmem:[#allocation249_spill] sm:$0xff] %v22332_v49  ;;  %17281 = vmatprep.subr.mxu0 %v22131_v52  ;;  %v22341_v40 = vand.u32 4294901760, %v11764_v34  ;;  %v22358_v55 = vand.u32 4294901760, %v11763_v1  ;;  %v24073_v11 = vld [vmem:[#allocation28_spill] sm:$0xff] }
 0x3e1   : > { %17263 = vmatmul.mubr.f32.gmra.mxu1 %v24028_v16  ;;  %v16816_v39 = vpop.f32.mrf.mxu1  ;;  %17303 = vmatprep.subr.mxu1 %v22001_v5 }
 0x3e2   : > { %17240 = vmatprep.mubr.f32.mxu0 %v22214_v2  ;;  %v9053_v35 = vadd.f32 %v16816_v39, %v8932_v29  ;;  %17282 = vmatpush3.msra.mxu0 %v22131_v52  ;;  %v22366_v29 = vsub.f32 %v11764_v34, %v22341_v40  ;;  %v22382_v8 = vsub.f32 %v11763_v1, %v22358_v55  ;;  %v11760_v39 = vld [vmem:[#allocation5 + $0x350] sm:$0xff]  ;;  %v24042_v1 = vld [vmem:[#allocation13_spill] sm:$0xff] }
 0x3e3   : > { %17304 = vmatpush3.msra.mxu1 %v22001_v5  ;;  %v22343_v56 = vpop.f32.mrf.mxu1  ;;  %17241 = vmatmul.mubr.f32.gmra.mxu0 %v22224_v50  ;;  %v16794_v18 = vpop.f32.mrf.mxu0  ;;  %v11762_v5 = vld [vmem:[#allocation5 + $0x360] sm:$0xff]  ;;  %v11751_v2 = vld [vmem:[#allocation2 + $0x1d] sm:$0xff] }
 0x3e4   : > { %24029 = vst [vmem:[#allocation250_spill] sm:$0xff] %v22343_v56  ;;  %17283 = vmatprep.subr.mxu0 %v22160_v10  ;;  %v22351_v17 = vadd.f32 %v9053_v35, %v24030_v54  ;;  %17305 = vmatprep.subr.mxu1 %v22013_v0  ;;  %v8956_v52 = vadd.f32 %v16794_v18, %v8819_v58  ;;  %v22397_v16 = vand.u32 4294901760, %v22366_v29  ;;  %v24041_v35 = vld [vmem:[#allocation10_spill] sm:$0xff] }
 0x3e5   : > { %17265 = vmatprep.mubr.f32.mxu1 %v11018_v46  ;;  %17284 = vmatpush3.msra.mxu0 %v22160_v10  ;;  %v22360_v21 = vpop.f32.mrf.mxu0  ;;  %v11750_v46 = vld [vmem:[#allocation2 + $0x15] sm:$0xff]  ;;  %v22373_v10 = vand.u32 4294901760, %v22348_v6  ;;  %v565_v54 = vadd.f32 %v24042_v1, %v24041_v35 }
 0x3e6   : > { %24031 = vst [vmem:[#allocation53_spill] sm:$0xff] %v22351_v17  ;;  %17306 = vmatpush3.msra.mxu1 %v22013_v0  ;;  %24032 = vst [vmem:[#allocation251_spill] sm:$0xff] %v22360_v21  ;;  %17285 = vmatprep.subr.mxu0 %v24033_v4  ;;  %v22370_v0 = vand.u32 4294901760, %v11762_v5  ;;  %v11770_v14 = vsel %vm226_vm1, %v11750_v46, 0  ;;  %v24043_v46 = vld [vmem:[#allocation12_spill] sm:$0xff]  ;;  %v24047_v1 = vld [vmem:[#allocation17_spill] sm:$0xff] }
 0x3e7   : > { %17266 = vmatmul.mubr.f32.gmra.mxu1 %v11028_v37  ;;  %v16819_v13 = vpop.f32.mrf.mxu1  ;;  %17307 = vmatprep.subr.mxu1 %v22042_v33  ;;  %24034 = vst [vmem:[#allocation232_spill] sm:$0xff] %v22373_v10  ;;  %v11761_v37 = vld [vmem:[#allocation5 + $0x358] sm:$0xff]  ;;  %v11963_v18 = vsub.f32 %v22348_v6, %v22373_v10  ;;  %v11759_v50 = vld [vmem:[#allocation5 + $0x348] sm:$0xff]  ;;  %v24072_v17 = vld [vmem:[#allocation27_spill] sm:$0xff] }
 0x3e8   : > { %17286 = vmatpush3.msra.mxu0 %v24033_v4  ;;  %v9065_v58 = vadd.f32 %v16819_v13, %v8944_v60  ;;  %17287 = vmatprep.mubr.f32.mxu0 %v22052_v36  ;;  %v24039_v60 = vld [vmem:[#allocation11_spill] sm:$0xff]  ;;  %v22405_v4 = vand.u32 4294901760, %v11761_v37  ;;  %v22408_v23 = vsub.f32 %v11762_v5, %v22370_v0  ;;  %v24046_v5 = vld [vmem:[#allocation14_spill] sm:$0xff] }
 0x3e9   : > { %17308 = vmatpush3.msra.mxu1 %v22042_v33  ;;  %v22377_v7 = vpop.f32.mrf.mxu1  ;;  %17288 = vmatmul.mubr.f32.vlgmr.msra.gmra.mxu0 %v22054_v57  ;;  %v22389_v41 = vpop.f32.mrf.mxu0  ;;  %v24038_v33 = vld [vmem:[#allocation9_spill] sm:$0xff]  ;;  %v24044_v13 = vld [vmem:[#allocation15_spill] sm:$0xff]  ;;  %v589_v21 = vadd.f32 %v24047_v1, %v24046_v5  ;;  %v11970_v5 = vsub.f32 %v22366_v29, %v22397_v16  ;;  %v11773_v1 = vsel %vm226_vm1, %v11751_v2, 0  ;;  %v22455_v2 = vand.u32 4294901760, %v11759_v50 }
 0x3ea   : > { %24035 = vst [vmem:[#allocation252_spill] sm:$0xff] %v22377_v7  ;;  %17309 = vmatprep.subr.mxu1 %v22058_v9  ;;  %v22387_v24 = vadd.f32 %v9065_v58, %v24036_v43  ;;  %v553_v34 = vadd.f32 %v24039_v60, %v24038_v33  ;;  %17327 = vmatprep.subr.mxu0 %v22330_v53  ;;  %24040 = vst [vmem:[#allocation9_spill] sm:$0xff] %v22397_v16  ;;  %v24045_v43 = vld [vmem:[#allocation16_spill] sm:$0xff]  ;;  %v22420_v60 = vand.u32 4294901760, %v11770_v14  ;;  %v24051_v7 = vld [vmem:[#allocation19_spill] sm:$0xff] }
 0x3eb   : > { %17268 = vmatprep.mubr.f32.mxu1 %v11038_v31  ;;  %17310 = vmatpush3.msra.mxu1 %v22058_v9  ;;  %v22410_v31 = vpop.f32.mrf.mxu0  ;;  %v577_v58 = vadd.f32 %v24044_v13, %v24043_v46  ;;  %v22418_v9 = vand.u32 4294901760, %v11767_v22  ;;  %v22426_v46 = vand.u32 4294901760, %v11760_v39  ;;  %24056 = vst [vmem:[#allocation16_spill] sm:$0xff] %v22455_v2 }
 0x3ec   : > { %24037 = vst [vmem:[#allocation56_spill] sm:$0xff] %v22387_v24  ;;  %17328 = vmatpush3.msra.mxu0 %v22330_v53  ;;  %v683_v33 = vadd.f32 %v24045_v43, %v553_v34  ;;  %17269 = vmatmul.mubr.f32.gmra.mxu1 %v11048_v27  ;;  %v16822_v35 = vpop.f32.mrf.mxu1  ;;  %v22429_v34 = vand.u32 4294901760, %v22382_v8  ;;  %v11752_v27 = vld [vmem:[#allocation2 + $0x25] sm:$0xff]  ;;  %v24050_v43 = vld [vmem:[#allocation18_spill] sm:$0xff] }
 0x3ed   : > { %17311 = vmatprep.subr.mxu1 %v22085_v19  ;;  %17329 = vmatprep.subr.mxu0 %v22341_v40  ;;  %24048 = vst [vmem:[#allocation11_spill] sm:$0xff] %v22426_v46  ;;  %v9077_v13 = vadd.f32 %v16822_v35, %v8956_v52  ;;  %v697_v3 = vadd.f32 %v24050_v43, %v565_v54  ;;  %v11964_v52 = vand.u32 4294901760, %v11963_v18  ;;  %v22443_v54 = vand.u32 4294901760, %v22408_v23  ;;  %v11756_v24 = vld [vmem:[#allocation2 + $0x45] sm:$0xff] }
 0x3ee   : > { %17290 = vmatprep.mubr.f32.mxu0 %v22101_v12  ;;  %24049 = vst [vmem:[#allocation10_spill] sm:$0xff] %v22429_v34  ;;  %v813_v59 = vadd.f32 %v24051_v7, %v683_v33  ;;  %17312 = vmatpush3.msra.mxu1 %v22085_v19  ;;  %v22438_v49 = vpop.f32.mrf.mxu1  ;;  %v11758_v7 = vld [vmem:[#allocation5 + $0x340] sm:$0xff]  ;;  %v22446_v19 = vsub.f32 %v11761_v37, %v22405_v4  ;;  %v24054_v33 = vld [vmem:[#allocation59_spill] sm:$0xff]  ;;  %v11776_v37 = vsel %vm226_vm1, %v11752_v27, 0  ;;  %v24059_v27 = vld [vmem:[#allocation22_spill] sm:$0xff] }
 0x3ef   : > { %17330 = vmatpush3.msra.mxu0 %v22341_v40  ;;  %24052 = vst [vmem:[#allocation13_spill] sm:$0xff] %v22438_v49  ;;  %17313 = vmatprep.subr.mxu1 %v22107_v44  ;;  %24053 = vst [vmem:[#allocation12_spill] sm:$0xff] %v22443_v54  ;;  %v22449_v35 = vadd.f32 %v9077_v13, %v24054_v33  ;;  %v22458_v18 = vsub.f32 %v11767_v22, %v22418_v9  ;;  %v22472_v33 = vand.u32 4294901760, %v11773_v1  ;;  %v11753_v22 = vld [vmem:[#allocation2 + $0x2d] sm:$0xff] }
 0x3f0   : > { %17291 = vmatmul.mubr.f32.gmra.mxu0 %v22115_v63  ;;  %v22451_v43 = vpop.f32.mrf.mxu0  ;;  %17331 = vmatprep.subr.mxu0 %v22358_v55  ;;  %v22461_v49 = vsub.f32 %v11770_v14, %v22420_v60  ;;  %v711_v51 = vadd.f32 %v24057_v15, %v577_v58  ;;  %v11977_v13 = vsub.f32 %v22382_v8, %v22429_v34  ;;  %v24058_v14 = vld [vmem:[#allocation21_spill] sm:$0xff]  ;;  %v22480_v15 = vand.u32 4294901760, %v11758_v7 }
 0x3f1   : > { %24055 = vst [vmem:[#allocation15_spill] sm:$0xff] %v22449_v35  ;;  %17314 = vmatpush3.msra.mxu1 %v22107_v44  ;;  %17315 = vmatprep.mubr.f32.mxu1 %v22052_v36  ;;  %v22470_v44 = vsub.f32 %v11760_v39, %v22426_v46  ;;  %v829_v25 = vadd.f32 %v24058_v14, %v697_v3  ;;  %v11971_v36 = vand.u32 4294901760, %v11970_v5  ;;  %v22486_v48 = vand.u32 4294901760, %v22446_v19 }
 0x3f2   : > { %17332 = vmatpush3.msra.mxu0 %v22358_v55  ;;  %v22474_v56 = vpop.f32.mrf.mxu0  ;;  %v725_v26 = vadd.f32 %v24059_v27, %v589_v21  ;;  %17316 = vmatmul.mubr.f32.vlgmr.msra.gmra.mxu1 %v22054_v57  ;;  %24060 = vst [vmem:[#allocation14_spill] sm:$0xff] %v22480_v15  ;;  %v16869_v58 = vpop.f32.mrf.mxu1  ;;  %v11984_v39 = vsub.f32 %v22408_v23, %v22443_v54  ;;  %v22488_v3 = vand.u32 4294901760, %v11776_v37  ;;  %v11754_v21 = vld [vmem:[#allocation2 + $0x35] sm:$0xff]  ;;  %v11779_v38 = vsel %vm226_vm1, %v11753_v22, 0 }
 0x3f3   : > { %17333 = vmatprep.subr.mxu0 %v22370_v0  ;;  %17355 = vmatprep.subr.mxu1 %v11964_v52  ;;  %24061 = vst [vmem:[#allocation17_spill] sm:$0xff] %v22486_v48  ;;  %v22491_v57 = vadd.f32 %v16869_v58, %v22389_v41  ;;  %v22497_v27 = vsub.f32 %v11759_v50, %v22455_v2  ;;  %v11978_v41 = vand.u32 4294901760, %v11977_v13  ;;  %v24065_v50 = vld [vmem:[#allocation24_spill] sm:$0xff]  ;;  %v24066_v22 = vld [vmem:[#allocation25_spill] sm:$0xff]  ;;  %v24067_v13 = vld [vmem:[#allocation26_spill] sm:$0xff] }
 0x3f4   : > { %17293 = vmatprep.mubr.f32.mxu0 %v22147_v62  ;;  %17334 = vmatpush3.msra.mxu0 %v22370_v0  ;;  %v22500_v42 = vpop.f32.mrf.mxu1  ;;  %v845_v30 = vadd.f32 %v24062_v61, %v711_v51  ;;  %v22509_v58 = vsub.f32 %v11773_v1, %v22472_v33  ;;  %v964_v5 = vadd.f32 %v24065_v50, %v813_v59  ;;  %v11782_v51 = vsel %vm226_vm1, %v11754_v21, 0  ;;  %v11755_v50 = vld [vmem:[#allocation2 + $0x3d] sm:$0xff] }
 0x3f5   : > { %17356 = vmatpush3.msra.mxu1 %v11964_v52  ;;  %17294 = vmatmul.mubr.f32.gmra.mxu0 %v22166_v28  ;;  %v22506_v52 = vand.u32 4294901760, %v22470_v44  ;;  %v22511_v14 = vpop.f32.mrf.mxu0  ;;  %v861_v20 = vadd.f32 %v24066_v22, %v725_v26  ;;  %v22517_v61 = vsub.f32 %v11758_v7, %v22480_v15  ;;  %v976_v45 = vadd.f32 %v24067_v13, %v829_v25 }
 0x3f6   : > { %17335 = vmatprep.subr.mxu0 %v22405_v4  ;;  %24064 = vst [vmem:[#allocation19_spill] sm:$0xff] %v22509_v58  ;;  %17357 = vmatprep.subr.mxu1 %v11971_v36  ;;  %v11991_v1 = vsub.f32 %v22446_v19, %v22486_v48  ;;  %v22525_v59 = vsub.f32 %v11776_v37, %v22488_v3  ;;  %v22527_v26 = vand.u32 4294901760, %v11779_v38  ;;  %v11985_v7 = vand.u32 4294901760, %v11984_v39  ;;  %v24075_v39 = vld [vmem:[#allocation29_spill] sm:$0xff] }
 0x3f7   : > { %24063 = vst [vmem:[#allocation18_spill] sm:$0xff] %v22506_v52  ;;  %17318 = vmatprep.mubr.f32.mxu1 %v22101_v12  ;;  %17336 = vmatpush3.msra.mxu0 %v22405_v4  ;;  %v22529_v12 = vpop.f32.mrf.mxu0  ;;  %v24069_v25 = vand.u32 4294901760, %v22458_v18  ;;  %v24070_v21 = vand.u32 4294901760, %v22461_v49  ;;  %v22540_v37 = vand.u32 4294901760, %v22497_v27  ;;  %v22546_v35 = vand.u32 4294901760, %v11782_v51 }
 0x3f8   : > { %17358 = vmatpush3.msra.mxu1 %v11971_v36  ;;  %24068 = vst [vmem:[#allocation59_spill] sm:$0xff] %v22525_v59  ;;  %17337 = vmatprep.subr.mxu0 %v22426_v46  ;;  %v988_v48 = vadd.f32 %v24073_v11, %v845_v30  ;;  %v22555_v54 = vand.u32 4294901760, %v22517_v61  ;;  %v1097_v16 = vadd.f32 %v24075_v39, %v976_v45 }
 0x3f9   : > { %17319 = vmatmul.mubr.f32.gmra.mxu1 %v22115_v63  ;;  %v11866_v36 = vsub.f32 %v22458_v18, %v24069_v25  ;;  %v11876_v22 = vsub.f32 %v22461_v49, %v24070_v21  ;;  %24071 = vst [vmem:[#allocation20_spill] sm:$0xff] %v22540_v37  ;;  %v16872_v13 = vpop.f32.mrf.mxu1  ;;  %17359 = vmatprep.subr.mxu1 %v11978_v41 }
 0x3fa   : > { %17296 = vmatprep.mubr.f32.mxu0 %v22195_v32  ;;  %v11998_v63 = vsub.f32 %v22470_v44, %v22506_v52  ;;  %v22549_v25 = vadd.f32 %v16872_v13, %v22451_v43  ;;  %v1085_v21 = vadd.f32 %v24072_v17, %v964_v5  ;;  %17338 = vmatpush3.msra.mxu0 %v22426_v46  ;;  %v11785_v52 = vsel %vm226_vm1, %v11755_v50, 0  ;;  %v24084_v46 = vld [vmem:[#allocation35_spill] sm:$0xff] }
 0x3fb   : > { %17360 = vmatpush3.msra.mxu1 %v11978_v41  ;;  %24074 = vst [vmem:[#allocation21_spill] sm:$0xff] %v22555_v54  ;;  %v22558_v34 = vpop.f32.mrf.mxu1  ;;  %17297 = vmatmul.mubr.f32.gmra.mxu0 %v22208_v47  ;;  %v11992_v43 = vand.u32 4294901760, %v11991_v1  ;;  %v22565_v30 = vsub.f32 %v11779_v38, %v22527_v26  ;;  %v22567_v11 = vpop.f32.mrf.mxu0  ;;  %v11867_v5 = vand.u32 4294901760, %v11866_v36  ;;  %v11877_v41 = vand.u32 4294901760, %v11876_v22  ;;  %v24078_v36 = vld [vmem:[#allocation30_spill] sm:$0xff] }
 0x3fc   : > { %17339 = vmatprep.subr.mxu0 %v22455_v2  ;;  %17361 = vmatprep.subr.mxu1 %v11985_v7  ;;  %v12005_v45 = vsub.f32 %v22497_v27, %v22540_v37  ;;  %v11788_v50 = vsel %vm226_vm1, %v11756_v24, 0  ;;  %v11999_v1 = vand.u32 4294901760, %v11998_v63  ;;  %v24076_v13 = vand.u32 4294901760, %v22509_v58  ;;  %v24079_v37 = vld [vmem:[#allocation32_spill] sm:$0xff] }
 0x3fd   : > { %17321 = vmatprep.mubr.f32.mxu1 %v22147_v62  ;;  %17340 = vmatpush3.msra.mxu0 %v22455_v2  ;;  %v22578_v39 = vsub.f32 %v11782_v51, %v22546_v35  ;;  %v22580_v17 = vand.u32 4294901760, %v11785_v52  ;;  %v22582_v62 = vpop.f32.mrf.mxu0  ;;  %v1000_v22 = vadd.f32 %v24078_v36, %v861_v20  ;;  %v1234_v10 = vadd.f32 %v24079_v37, %v1085_v21  ;;  %v24082_v36 = vld [vmem:[#allocation33_spill] sm:$0xff] }
 0x3fe   : > { %17362 = vmatpush3.msra.mxu1 %v11985_v7  ;;  %v11886_v38 = vsub.f32 %v22509_v58, %v24076_v13  ;;  %24077 = vst [vmem:[#allocation22_spill] sm:$0xff] %v22582_v62  ;;  %17341 = vmatprep.subr.mxu0 %v22480_v15  ;;  %v12012_v24 = vsub.f32 %v22517_v61, %v22555_v54  ;;  %v24080_v51 = vand.u32 4294901760, %v22525_v59  ;;  %v22595_v20 = vand.u32 4294901760, %v11788_v50  ;;  %v24083_v54 = vld [vmem:[#allocation34_spill] sm:$0xff] }
 0x3ff   : > { %17322 = vmatmul.mubr.f32.gmra.mxu1 %v22166_v28  ;;  %v16875_v7 = vpop.f32.mrf.mxu1  ;;  %17363 = vmatprep.subr.mxu1 %v11992_v43  ;;  %v24081_v28 = vld [vmem:[#allocation31_spill] sm:$0xff]  ;;  %v1121_v58 = vadd.f32 %v24082_v36, %v1000_v22  ;;  %v1254_v2 = vadd.f32 %v24083_v54, %v1097_v16 }
 0x400   : > { %17342 = vmatpush3.msra.mxu0 %v22480_v15  ;;  %v11896_v63 = vsub.f32 %v22525_v59, %v24080_v51  ;;  %v22598_v37 = vadd.f32 %v16875_v7, %v22511_v14  ;;  %v1109_v21 = vadd.f32 %v24081_v28, %v988_v48  ;;  %17343 = vmatprep.mubr.f32.mxu0 %v11867_v5  ;;  %v12006_v15 = vand.u32 4294901760, %v12005_v45  ;;  %v24085_v7 = vld [vmem:[#allocation36_spill] sm:$0xff]  ;;  %v24086_v28 = vld [vmem:[#allocation37_spill] sm:$0xff] }
 0x401   : > { %17364 = vmatpush3.msra.mxu1 %v11992_v43  ;;  %v22603_v62 = vpop.f32.mrf.mxu1  ;;  %v1415_v51 = vadd.f32 %v24084_v46, %v1234_v10  ;;  %17344 = vmatmul.mubr.f32.vlgmr.msra.gmra.mxu0 %v11877_v41  ;;  %v11887_v13 = vand.u32 4294901760, %v11886_v38  ;;  %v11915_v59 = vand.u32 4294901760, %v22578_v39  ;;  %v22608_v14 = vsub.f32 %v11785_v52, %v22580_v17  ;;  %v16897_v48 = vpop.f32.mrf.mxu0  ;;  %v24089_v38 = vld [vmem:[#allocation39_spill] sm:$0xff] }
 0x402   : > { %17365 = vmatprep.subr.mxu1 %v11999_v1  ;;  %v1274_v22 = vadd.f32 %v24085_v7, %v1109_v21  ;;  %v1427_v16 = vadd.f32 %v24086_v28, %v1254_v2  ;;  %17383 = vmatprep.subr.mxu0 %v22348_v6  ;;  %v9527_v54 = vadd.f32 %v16897_v48, %v22491_v57  ;;  %v11897_v10 = vand.u32 4294901760, %v11896_v63  ;;  %v24088_v2 = vld [vmem:[#allocation38_spill] sm:$0xff]  ;;  %v24092_v63 = vld [vmem:[#allocation41_spill] sm:$0xff]  ;;  %v24093_v48 = vld [vmem:[#allocation44_spill] sm:$0xff] }
 0x403   : > { %17324 = vmatprep.mubr.f32.mxu1 %v22195_v32  ;;  %17366 = vmatpush3.msra.mxu1 %v11999_v1  ;;  %v12013_v46 = vand.u32 4294901760, %v12012_v24  ;;  %v24087_v43 = vand.u32 4294901760, %v22565_v30  ;;  %v22620_v5 = vsub.f32 %v11788_v50, %v22595_v20  ;;  %v9519_v41 = vpop.f32.mrf.mxu0  ;;  %v1294_v45 = vadd.f32 %v24088_v2, %v1121_v58  ;;  %v24090_v32 = vld [vmem:[#allocation40_spill] sm:$0xff]  ;;  %v24091_v57 = vld [vmem:[#allocation42_spill] sm:$0xff]  ;;  %v24095_v28 = vld [vmem:[#allocation45_spill] sm:$0xff] }
 0x404   : > { %17384 = vmatpush3.msra.mxu0 %v22348_v6  ;;  %v1439_v21 = vadd.f32 %v24089_v38, %v1274_v22  ;;  %v1545_v36 = vadd.f32 %v24090_v32, %v1415_v51  ;;  %17325 = vmatmul.mubr.f32.gmra.mxu1 %v22208_v47  ;;  %v16878_v6 = vpop.f32.mrf.mxu1  ;;  %v1559_v1 = vadd.f32 %v24091_v57, %v1427_v16  ;;  %v11925_v24 = vand.u32 4294901760, %v22608_v14  ;;  %v24094_v22 = vld [vmem:[#allocation43_spill] sm:$0xff]  ;;  %v24096_v38 = vld [vmem:[#allocation46_spill] sm:$0xff] }
 0x405   : > { %v11906_v52 = vsub.f32 %v22565_v30, %v24087_v43  ;;  %17367 = vmatprep.subr.mxu1 %v12006_v15  ;;  %17385 = vmatprep.subr.mxu0 %v22366_v29  ;;  %v11916_v50 = vsub.f32 %v22578_v39, %v11915_v59  ;;  %v22633_v58 = vadd.f32 %v16878_v6, %v22567_v11  ;;  %v11935_v2 = vand.u32 4294901760, %v22620_v5 }
 0x406   : > { %17346 = vmatprep.mubr.f32.mxu0 %v11887_v13  ;;  %v1451_v51 = vadd.f32 %v24092_v63, %v1294_v45  ;;  %v1573_v47 = vadd.f32 %v24093_v48, %v1439_v21  ;;  %17368 = vmatpush3.msra.mxu1 %v12006_v15  ;;  %v22638_v7 = vpop.f32.mrf.mxu1  ;;  %v1675_v13 = vadd.f32 %v24094_v22, %v1545_v36  ;;  %v24097_v45 = vld [vmem:[#allocation47_spill] sm:$0xff]  ;;  %v24098_v15 = vld [vmem:[#allocation48_spill] sm:$0xff]  ;;  %v24102_v48 = vld [vmem:[#allocation61_spill] sm:$0xff] }
 0x407   : > { %17386 = vmatpush3.msra.mxu0 %v22366_v29  ;;  %v1691_v16 = vadd.f32 %v24095_v28, %v1559_v1  ;;  %17369 = vmatprep.subr.mxu1 %v12013_v46  ;;  %v11907_v43 = vand.u32 4294901760, %v11906_v52  ;;  %v11926_v52 = vsub.f32 %v22608_v14, %v11925_v24  ;;  %v9390_v36 = vadd.f32 %v22500_v42, %v22410_v31  ;;  %v24099_v1 = vld [vmem:[#allocation49_spill] sm:$0xff] }
 0x408   : > { %17347 = vmatmul.mubr.f32.gmra.mxu0 %v11897_v10  ;;  %v16900_v11 = vpop.f32.mrf.mxu0  ;;  %v1587_v32 = vadd.f32 %v24096_v38, %v1451_v51  ;;  %v1707_v6 = vadd.f32 %v24097_v45, %v1573_v47  ;;  %17387 = vmatprep.subr.mxu0 %v22382_v8  ;;  %v1826_v21 = vadd.f32 %v24098_v15, %v1675_v13  ;;  %v11917_v10 = vand.u32 4294901760, %v11916_v50  ;;  %v24101_v51 = vld [vmem:[#allocation62_spill] sm:$0xff]  ;;  %v24103_v47 = vld [vmem:[#allocation65_spill] sm:$0xff]  ;;  %v24106_v38 = vld [vmem:[#allocation67_spill] sm:$0xff] }
 0x409   : > { %17370 = vmatpush3.msra.mxu1 %v12013_v46  ;;  %v9541_v29 = vadd.f32 %v16900_v11, %v22549_v25  ;;  %17371 = vmatprep.mubr.f32.mxu1 %v22418_v9  ;;  %v24100_v46 = vld [vmem:[#allocation58_spill] sm:$0xff]  ;;  %v2306_v22 = vadd.f32 %v24103_v47, %v24102_v48  ;;  %v11936_v42 = vsub.f32 %v22620_v5, %v11935_v2  ;;  %v24105_v11 = vld [vmem:[#allocation63_spill] sm:$0xff]  ;;  %v24107_v45 = vld [vmem:[#allocation68_spill] sm:$0xff] }
 0x40a   : > { %17388 = vmatpush3.msra.mxu0 %v22382_v8  ;;  %v9533_v57 = vpop.f32.mrf.mxu0  ;;  %v1723_v63 = vadd.f32 %v24099_v1, %v1587_v32  ;;  %v2294_v25 = vadd.f32 %v24101_v51, %v24100_v46  ;;  %17372 = vmatmul.mubr.f32.vlgmr.msra.gmra.mxu1 %v22420_v60  ;;  %v16925_v8 = vpop.f32.mrf.mxu1  ;;  %v9520_v31 = vadd.f32 %v9519_v41, %v9390_v36  ;;  %v24104_v13 = vld [vmem:[#allocation50_spill] sm:$0xff]  ;;  %v24110_v36 = vld [vmem:[#allocation71_spill] sm:$0xff] }
 0x40b   : > { %17389 = vmatprep.subr.mxu0 %v22408_v23  ;;  %17411 = vmatprep.subr.mxu1 %v22330_v53  ;;  %v22666_v50 = vadd.f32 %v16925_v8, %v9527_v54  ;;  %v1838_v28 = vadd.f32 %v24104_v13, %v1691_v16  ;;  %v2318_v32 = vadd.f32 %v24106_v38, %v24105_v11  ;;  %v24109_v51 = vld [vmem:[#allocation70_spill] sm:$0xff]  ;;  %v11927_v54 = vand.u32 4294901760, %v11926_v52  ;;  %v24111_v8 = vld [vmem:[#allocation72_spill] sm:$0xff] }
 0x40c   : > { %17349 = vmatprep.mubr.f32.mxu0 %v11907_v43  ;;  %v2424_v15 = vadd.f32 %v24107_v45, %v2294_v25  ;;  %17390 = vmatpush3.msra.mxu0 %v22408_v23  ;;  %v9649_v1 = vpop.f32.mrf.mxu1  ;;  %v24108_v43 = vld [vmem:[#allocation51_spill] sm:$0xff]  ;;  %v2438_v48 = vadd.f32 %v24109_v51, %v2306_v22  ;;  %v24113_v22 = vld [vmem:[#allocation66_spill] sm:$0xff]  ;;  %v11937_v52 = vand.u32 4294901760, %v11936_v42 }
 0x40d   : > { %17412 = vmatpush3.msra.mxu1 %v22330_v53  ;;  %v1947_v46 = vadd.f32 %v24108_v43, %v1826_v21  ;;  %17350 = vmatmul.mubr.f32.gmra.mxu0 %v11917_v10  ;;  %v16903_v41 = vpop.f32.mrf.mxu0  ;;  %v22677_v16 = vadd.f32 %v9649_v1, %v9520_v31  ;;  %v2452_v25 = vadd.f32 %v24111_v8, %v2318_v32  ;;  %v24112_v21 = vld [vmem:[#allocation52_spill] sm:$0xff]  ;;  %v24114_v10 = vld [vmem:[#allocation69_spill] sm:$0xff]  ;;  %v24118_v51 = vld [vmem:[#allocation74_spill] sm:$0xff] }
 0x40e   : > { %17391 = vmatprep.subr.mxu0 %v22446_v19  ;;  %v2554_v47 = vadd.f32 %v24110_v36, %v2424_v15  ;;  %17413 = vmatprep.subr.mxu1 %v22341_v40  ;;  %v9555_v23 = vadd.f32 %v16903_v41, %v22598_v37  ;;  %v1850_v13 = vadd.f32 %v24112_v21, %v1707_v6  ;;  %v24115_v32 = vld [vmem:[#allocation73_spill] sm:$0xff]  ;;  %v24116_v15 = vld [vmem:[#allocation75_spill] sm:$0xff]  ;;  %v24117_v43 = vld [vmem:[#allocation76_spill] sm:$0xff] }
 0x40f   : > { %17374 = vmatprep.mubr.f32.mxu1 %v22472_v33  ;;  %v2330_v11 = vadd.f32 %v24114_v10, %v24113_v22  ;;  %17392 = vmatpush3.msra.mxu0 %v22446_v19  ;;  %v9402_v31 = vadd.f32 %v22558_v34, %v22474_v56  ;;  %v9547_v38 = vpop.f32.mrf.mxu0  ;;  %v2570_v45 = vadd.f32 %v24115_v32, %v2438_v48  ;;  %v24119_v56 = vld [vmem:[#allocation78_spill] sm:$0xff]  ;;  %v24120_v48 = vld [vmem:[#allocation79_spill] sm:$0xff]  ;;  %v24121_v8 = vld [vmem:[#allocation80_spill] sm:$0xff] }
 0x410   : > { %17414 = vmatpush3.msra.mxu1 %v22341_v40  ;;  %v2586_v1 = vadd.f32 %v24116_v15, %v2452_v25  ;;  %v2705_v37 = vadd.f32 %v24117_v43, %v2554_v47  ;;  %17393 = vmatprep.subr.mxu0 %v22470_v44  ;;  %v24122_v21 = vld [vmem:[#allocation55_spill] sm:$0xff]  ;;  %v24123_v10 = vld [vmem:[#allocation77_spill] sm:$0xff]  ;;  %v24125_v32 = vld [vmem:[#allocation64_spill] sm:$0xff] }
 0x411   : > { %17375 = vmatmul.mubr.f32.gmra.mxu1 %v22488_v3  ;;  %v16928_v6 = vpop.f32.mrf.mxu1  ;;  %v2466_v19 = vadd.f32 %v24118_v51, %v2330_v11  ;;  %17415 = vmatprep.subr.mxu1 %v22358_v55  ;;  %v9534_v42 = vadd.f32 %v9533_v57, %v9402_v31  ;;  %v2717_v34 = vadd.f32 %v24119_v56, %v2570_v45  ;;  %v24126_v15 = vld [vmem:[#allocation54_spill] sm:$0xff] }
 0x412   : > { %17352 = vmatprep.mubr.f32.mxu0 %v11927_v54  ;;  %v22698_v41 = vadd.f32 %v16928_v6, %v9541_v29  ;;  %v2826_v36 = vadd.f32 %v24120_v48, %v2705_v37  ;;  %v2729_v25 = vadd.f32 %v24121_v8, %v2586_v1  ;;  %17394 = vmatpush3.msra.mxu0 %v22470_v44  ;;  %v24124_v54 = vld [vmem:[#allocation81_spill] sm:$0xff]  ;;  %v24128_v6 = vld [vmem:[#allocation60_spill] sm:$0xff] }
 0x413   : > { %17416 = vmatpush3.msra.mxu1 %v22358_v55  ;;  %v9665_v47 = vpop.f32.mrf.mxu1  ;;  %v1862_v22 = vadd.f32 %v24122_v21, %v1723_v63  ;;  %v2602_v11 = vadd.f32 %v24123_v10, %v2466_v19  ;;  %17353 = vmatmul.mubr.f32.gmra.mxu0 %v11937_v52  ;;  %v16906_v29 = vpop.f32.mrf.mxu0  ;;  %v2838_v31 = vadd.f32 %v24124_v54, %v2717_v34  ;;  %v24127_v1 = vld [vmem:[#allocation57_spill] sm:$0xff] }
 0x414   : > { %17395 = vmatprep.subr.mxu0 %v22497_v27  ;;  %v22708_v57 = vadd.f32 %v9665_v47, %v9534_v42  ;;  %v2850_v45 = vadd.f32 %v24125_v32, %v2729_v25  ;;  %17417 = vmatprep.subr.mxu1 %v22370_v0  ;;  %v9569_v44 = vadd.f32 %v16906_v29, %v22633_v58  ;;  %v24129_v42 = vld [vmem:[#allocation82_spill] sm:$0xff]  ;;  %v24132_v48 = vld [vmem:[#allocation85_spill] sm:$0xff]  ;;  %v24134_v47 = vld [vmem:[#allocation84_spill] sm:$0xff] }
 0x415   : > { %17377 = vmatprep.mubr.f32.mxu1 %v22527_v26  ;;  %v1959_v63 = vadd.f32 %v24126_v15, %v1838_v28  ;;  %v1971_v43 = vadd.f32 %v24127_v1, %v1850_v13  ;;  %17396 = vmatpush3.msra.mxu0 %v22497_v27  ;;  %v9414_v52 = vadd.f32 %v22603_v62, %v22529_v12  ;;  %v9561_v37 = vpop.f32.mrf.mxu0  ;;  %v24130_v28 = vld [vmem:[#allocation83_spill] sm:$0xff]  ;;  %v24131_v13 = vld [vmem:[#allocation86_spill] sm:$0xff]  ;;  %v24142_v1 = vld [vmem:[#allocation93_spill] sm:$0xff] }
 0x416   : > { %17418 = vmatpush3.msra.mxu1 %v22370_v0  ;;  %v1983_v51 = vadd.f32 %v24128_v6, %v1862_v22  ;;  %v22722_v19 = vadd.f32 %v2826_v36, %v1947_v46  ;;  %v2741_v56 = vadd.f32 %v24129_v42, %v2602_v11  ;;  %17397 = vmatprep.subr.mxu0 %v22517_v61  ;;  %v24133_v36 = vld [vmem:[#allocation89_spill] sm:$0xff]  ;;  %v24135_v22 = vld [vmem:[#allocation92_spill] sm:$0xff]  ;;  %v24137_v11 = vld [vmem:[#allocation87_spill] sm:$0xff] }
 0x417   : > { %17378 = vmatmul.mubr.f32.gmra.mxu1 %v22546_v35  ;;  %v16931_v58 = vpop.f32.mrf.mxu1  ;;  %v3181_v27 = vadd.f32 %v24131_v13, %v24130_v28  ;;  %17419 = vmatprep.subr.mxu1 %v22405_v4  ;;  %v9548_v12 = vadd.f32 %v9547_v38, %v9414_v52  ;;  %v22733_v34 = vadd.f32 %v2838_v31, %v1959_v63  ;;  %v24138_v29 = vld [vmem:[#allocation91_spill] sm:$0xff]  ;;  %v24139_v31 = vld [vmem:[#allocation94_spill] sm:$0xff]  ;;  %v24145_v28 = vld [vmem:[#allocation96_spill] sm:$0xff] }
 0x418   : > { %17398 = vmatpush3.msra.mxu0 %v22517_v61  ;;  %v22731_v62 = vadd.f32 %v16931_v58, %v9555_v23  ;;  %v22735_v46 = vadd.f32 %v2850_v45, %v1971_v43  ;;  %v3193_v8 = vadd.f32 %v24133_v36, %v24132_v48  ;;  %17399 = vmatprep.mubr.f32.mxu0 %v22458_v18  ;;  %v24136_v61 = vld [vmem:[#allocation11_spill] sm:$0xff]  ;;  %v24140_v45 = vld [vmem:[#allocation232_spill] sm:$0xff]  ;;  %v24141_v63 = vld [vmem:[#allocation90_spill] sm:$0xff] }
 0x419   : > { %17420 = vmatpush3.msra.mxu1 %v22405_v4  ;;  %v9681_v25 = vpop.f32.mrf.mxu1  ;;  %v2862_v21 = vadd.f32 %v24134_v47, %v2741_v56  ;;  %v3311_v10 = vadd.f32 %v24135_v22, %v3181_v27  ;;  %17400 = vmatmul.mubr.f32.vlgmr.msra.gmra.mxu0 %v22461_v49  ;;  %v16953_v38 = vpop.f32.mrf.mxu0  ;;  %v3205_v54 = vadd.f32 %v24138_v29, %v24137_v11  ;;  %v24143_v52 = vld [vmem:[#allocation95_spill] sm:$0xff]  ;;  %v24144_v42 = vld [vmem:[#allocation22_spill] sm:$0xff]  ;;  %v24146_v27 = vld [vmem:[#allocation97_spill] sm:$0xff] }
 0x41a   : > { %17421 = vmatprep.subr.mxu1 %v24136_v61  ;;  %v22745_v23 = vadd.f32 %v9681_v25, %v9548_v12  ;;  %v3325_v32 = vadd.f32 %v24139_v31, %v3193_v8  ;;  %17439 = vmatprep.subr.mxu0 %v24140_v45  ;;  %v9807_v15 = vadd.f32 %v16953_v38, %v22666_v50  ;;  %v24147_v50 = vld [vmem:[#allocation16_spill] sm:$0xff]  ;;  %v24148_v8 = vld [vmem:[#allocation98_spill] sm:$0xff]  ;;  %v24149_v47 = vld [vmem:[#allocation9_spill] sm:$0xff] }
 0x41b   : > { %17380 = vmatprep.mubr.f32.mxu1 %v22580_v17  ;;  %v3217_v43 = vadd.f32 %v24142_v1, %v24141_v63  ;;  %v3441_v6 = vadd.f32 %v24143_v52, %v3311_v10  ;;  %17422 = vmatpush3.msra.mxu1 %v24136_v61  ;;  %v9426_v56 = vadd.f32 %v22638_v7, %v24144_v42  ;;  %v9800_v58 = vpop.f32.mrf.mxu0  ;;  %v24150_v22 = vld [vmem:[#allocation19_spill] sm:$0xff]  ;;  %v24154_v63 = vld [vmem:[#allocation102_spill] sm:$0xff] }
 0x41c   : > { %17440 = vmatpush3.msra.mxu0 %v24140_v45  ;;  %v3339_v13 = vadd.f32 %v24145_v28, %v3205_v54  ;;  %v3457_v12 = vadd.f32 %v24146_v27, %v3325_v32  ;;  %17381 = vmatmul.mubr.f32.gmra.mxu1 %v22595_v20  ;;  %v16934_v48 = vpop.f32.mrf.mxu1  ;;  %v9801_v36 = vadd.f32 %v9800_v58, %v22677_v16  ;;  %v24151_v11 = vld [vmem:[#allocation99_spill] sm:$0xff]  ;;  %v24152_v54 = vld [vmem:[#allocation100_spill] sm:$0xff]  ;;  %v24153_v32 = vld [vmem:[#allocation101_spill] sm:$0xff] }
 0x41d   : > { %17423 = vmatprep.subr.mxu1 %v24147_v50  ;;  %v3353_v25 = vadd.f32 %v24148_v8, %v3217_v43  ;;  %17441 = vmatprep.subr.mxu0 %v24149_v47  ;;  %v9562_v10 = vadd.f32 %v9561_v37, %v9426_v56  ;;  %v22768_v7 = vadd.f32 %v16934_v48, %v9569_v44  ;;  %v24155_v43 = vld [vmem:[#allocation59_spill] sm:$0xff]  ;;  %v24156_v37 = vld [vmem:[#allocation14_spill] sm:$0xff] }
 0x41e   : > { %17402 = vmatprep.mubr.f32.mxu0 %v24150_v22  ;;  %v22770_v38 = vadd.f32 %v2862_v21, %v1983_v51  ;;  %v3473_v29 = vadd.f32 %v24151_v11, %v3339_v13  ;;  %v3592_v31 = vadd.f32 %v24152_v54, %v3441_v6  ;;  %17424 = vmatpush3.msra.mxu1 %v24147_v50  ;;  %v9697_v16 = vpop.f32.mrf.mxu1  ;;  %v24157_v21 = vld [vmem:[#allocation103_spill] sm:$0xff]  ;;  %v24159_v42 = vld [vmem:[#allocation110_spill] sm:$0xff]  ;;  %v24161_v13 = vld [vmem:[#allocation104_spill] sm:$0xff] }
 0x41f   : > { %17442 = vmatpush3.msra.mxu0 %v24149_v47  ;;  %v3489_v45 = vadd.f32 %v24153_v32, %v3353_v25  ;;  %v3604_v1 = vadd.f32 %v24154_v63, %v3457_v12  ;;  %17425 = vmatprep.subr.mxu1 %v24156_v37  ;;  %v22780_v44 = vadd.f32 %v9697_v16, %v9562_v10  ;;  %v24158_v6 = vld [vmem:[#allocation107_spill] sm:$0xff]  ;;  %v24160_v58 = vld [vmem:[#allocation10_spill] sm:$0xff]  ;;  %v24162_v12 = vld [vmem:[#allocation105_spill] sm:$0xff]  ;;  %v24164_v47 = vand.u32 4294901760, %v22458_v18 }
 0x420   : > { %17403 = vmatmul.mubr.f32.gmra.mxu0 %v24155_v43  ;;  %v16956_v51 = vpop.f32.mrf.mxu0  ;;  %v22783_v52 = vadd.f32 %v24157_v21, %v3592_v31  ;;  %v4068_v56 = vadd.f32 %v24159_v42, %v24158_v6  ;;  %17443 = vmatprep.subr.mxu0 %v24160_v58  ;;  %v3616_v27 = vadd.f32 %v24161_v13, %v3473_v29  ;;  %v24163_v8 = vld [vmem:[#allocation106_spill] sm:$0xff]  ;;  %v24165_v11 = vld [vmem:[#allocation109_spill] sm:$0xff]  ;;  %v24167_v16 = vld [vmem:[#allocation116_spill] sm:$0xff] }
 0x421   : > { %17426 = vmatpush3.msra.mxu1 %v24156_v37  ;;  %v9819_v28 = vadd.f32 %v16956_v51, %v22698_v41  ;;  %v22792_v48 = vadd.f32 %v24162_v12, %v3604_v1  ;;  %v3628_v25 = vadd.f32 %v24163_v8, %v3489_v45  ;;  %17427 = vmatprep.mubr.f32.mxu1 %v24164_v47  ;;  %v24166_v54 = vld [vmem:[#allocation113_spill] sm:$0xff]  ;;  %v24168_v41 = vand.u32 4294901760, %v22461_v49  ;;  %v24169_v29 = vld [vmem:[#allocation12_spill] sm:$0xff]  ;;  %v24171_v18 = vld [vmem:[#allocation111_spill] sm:$0xff] }
 0x422   : > { %17444 = vmatpush3.msra.mxu0 %v24160_v58  ;;  %v9812_v10 = vpop.f32.mrf.mxu0  ;;  %v4080_v31 = vadd.f32 %v24166_v54, %v24165_v11  ;;  %v4198_v32 = vadd.f32 %v24167_v16, %v4068_v56  ;;  %v16981_v1 = vpop.f32.mrf.mxu1  ;;  %v24170_v45 = vld [vmem:[#allocation88_spill] sm:$0xff]  ;;  %v24172_v21 = vld [vmem:[#allocation115_spill] sm:$0xff]  ;;  %17467 = vmatprep.subr.mxu1 %v22330_v53  ;;  %v24173_v58 = vld [vmem:[#allocation114_spill] sm:$0xff] }
 0x423   : > { %17428 = vmatmul.mubr.f32.vlgmr.msra.gmra.mxu1 %v24168_v41  ;;  %17445 = vmatprep.subr.mxu0 %v24169_v29  ;;  %v9813_v63 = vadd.f32 %v9812_v10, %v22708_v57  ;;  %v22806_v51 = vadd.f32 %v24170_v45, %v3616_v27  ;;  %v4092_v6 = vadd.f32 %v24172_v21, %v24171_v18  ;;  %v12652_v42 = vld [vmem:[#allocation5 + $0x3b8] sm:$0xff]  ;;  %v24174_v49 = vld [vmem:[#allocation117_spill] sm:$0xff]  ;;  %v24175_v12 = vld [vmem:[#allocation118_spill] sm:$0xff] }
 0x424   : > { %17405 = vmatprep.mubr.f32.mxu0 %v22565_v30  ;;  %v9928_v56 = vadd.f32 %v16981_v1, %v9807_v15  ;;  %v4104_v13 = vadd.f32 %v24174_v49, %v24173_v58  ;;  %v4212_v8 = vadd.f32 %v24175_v12, %v4080_v31  ;;  %v24176_v47 = vld [vmem:[#allocation119_spill] sm:$0xff]  ;;  %17446 = vmatpush3.msra.mxu0 %v24169_v29  ;;  %v9921_v27 = vpop.f32.mrf.mxu1  ;;  %v24177_v10 = vld [vmem:[#allocation120_spill] sm:$0xff]  ;;  %v24178_v54 = vld [vmem:[#allocation17_spill] sm:$0xff]  ;;  %v22831_v29 = vand.u32 4294901760, %v12652_v42 }
 0x425   : > { %v4328_v57 = vadd.f32 %v24176_v47, %v4198_v32  ;;  %17468 = vmatpush3.msra.mxu1 %v22330_v53  ;;  %v4226_v11 = vadd.f32 %v24177_v10, %v4092_v6  ;;  %17406 = vmatmul.mubr.f32.gmra.mxu0 %v22578_v39  ;;  %v24179_v16 = vld [vmem:[#allocation248_spill] sm:$0xff]  ;;  %v16959_v41 = vpop.f32.mrf.mxu0  ;;  %v22824_v1 = vadd.f32 %v9921_v27, %v9801_v36  ;;  %v24182_v31 = vld [vmem:[#allocation121_spill] sm:$0xff]  ;;  %v24183_v32 = vld [vmem:[#allocation122_spill] sm:$0xff]  ;;  %v24184_v53 = vand.u32 4294901760, %v24150_v22 }
 0x426   : > { %17447 = vmatprep.subr.mxu0 %v24178_v54  ;;  %v22822_v15 = vadd.f32 %v9928_v56, %v24179_v16  ;;  %v4344_v45 = vadd.f32 %v24182_v31, %v4212_v8  ;;  %v4240_v18 = vadd.f32 %v24183_v32, %v4104_v13  ;;  %17469 = vmatprep.subr.mxu1 %v22341_v40  ;;  %v24185_v6 = vld [vmem:[#allocation108_spill] sm:$0xff]  ;;  %v24186_v56 = vld [vmem:[#allocation123_spill] sm:$0xff]  ;;  %v24188_v47 = vld [vmem:[#allocation125_spill] sm:$0xff]  ;;  %v24190_v16 = vand.u32 4294901760, %v24155_v43 }
 0x427   : > { %24181 = vst [vmem:[#allocation24_spill] sm:$0xff] %v22824_v1  ;;  %17430 = vmatprep.mubr.f32.mxu1 %v24184_v53  ;;  %v9831_v21 = vadd.f32 %v16959_v41, %v22731_v62  ;;  %v3749_v58 = vadd.f32 %v24185_v6, %v3628_v25  ;;  %v4360_v49 = vadd.f32 %v24186_v56, %v4226_v11  ;;  %v24187_v12 = vld [vmem:[#allocation124_spill] sm:$0xff]  ;;  %v12651_v13 = vld [vmem:[#allocation5 + $0x3b0] sm:$0xff]  ;;  %v9824_v8 = vpop.f32.mrf.mxu0  ;;  %v24189_v22 = vld [vmem:[#allocation126_spill] sm:$0xff] }
 0x428   : > { %24180 = vst [vmem:[#allocation23_spill] sm:$0xff] %v22822_v15  ;;  %v4479_v36 = vadd.f32 %v24187_v12, %v4328_v57  ;;  %17448 = vmatpush3.msra.mxu0 %v24178_v54  ;;  %17470 = vmatpush3.msra.mxu1 %v22341_v40  ;;  %v4376_v27 = vadd.f32 %v24188_v47, %v4240_v18  ;;  %v24191_v62 = vld [vmem:[#allocation18_spill] sm:$0xff]  ;;  %v24192_v41 = vld [vmem:[#allocation127_spill] sm:$0xff]  ;;  %v24193_v31 = vld [vmem:[#allocation128_spill] sm:$0xff] }
 0x429   : > { %v4491_v10 = vadd.f32 %v24189_v22, %v4344_v45  ;;  %17431 = vmatmul.mubr.f32.gmra.mxu1 %v24190_v16  ;;  %17449 = vmatprep.subr.mxu0 %v24191_v62  ;;  %v9825_v25 = vadd.f32 %v9824_v8, %v22745_v23  ;;  %v16984_v11 = vpop.f32.mrf.mxu1  ;;  %v4503_v54 = vadd.f32 %v24193_v31, %v4360_v49  ;;  %v12650_v40 = vld [vmem:[#allocation5 + $0x3a8] sm:$0xff]  ;;  %v24194_v18 = vld [vmem:[#allocation129_spill] sm:$0xff]  ;;  %v22853_v23 = vand.u32 4294901760, %v12651_v13  ;;  %v24196_v49 = vld [vmem:[#allocation112_spill] sm:$0xff] }
 0x42a   : > { %v4600_v57 = vadd.f32 %v24192_v41, %v4479_v36  ;;  %17471 = vmatprep.subr.mxu1 %v22358_v55  ;;  %17408 = vmatprep.mubr.f32.mxu0 %v22608_v14  ;;  %v9940_v32 = vadd.f32 %v16984_v11, %v9819_v28  ;;  %v24195_v53 = vld [vmem:[#allocation130_spill] sm:$0xff]  ;;  %v22856_v6 = vsub.f32 %v12652_v42, %v22831_v29  ;;  %v24197_v36 = vld [vmem:[#allocation20_spill] sm:$0xff]  ;;  %v24198_v28 = vld [vmem:[#allocation53_spill] sm:$0xff]  ;;  %v24202_v42 = vand.u32 4294901760, %v22565_v30 }
 0x42b   : > { %v4612_v45 = vadd.f32 %v24194_v18, %v4491_v10  ;;  %v4515_v43 = vadd.f32 %v24195_v53, %v4376_v27  ;;  %17450 = vmatpush3.msra.mxu0 %v24191_v62  ;;  %17472 = vmatpush3.msra.mxu1 %v22358_v55  ;;  %v9933_v56 = vpop.f32.mrf.mxu1  ;;  %v4624_v12 = vadd.f32 %v24196_v49, %v4503_v54  ;;  %v16962_v47 = vpop.f32.mrf.mxu0  ;;  %v24201_v22 = vld [vmem:[#allocation132_spill] sm:$0xff]  ;;  %v22872_v16 = vand.u32 4294901760, %v12650_v40  ;;  %v12649_v62 = vld [vmem:[#allocation5 + $0x3a0] sm:$0xff]  ;;  %v24206_v54 = vld [vmem:[#allocation134_spill] sm:$0xff] }
 0x42c   : > { %17409 = vmatmul.mubr.f32.gmra.mxu0 %v22620_v5  ;;  %17451 = vmatprep.subr.mxu0 %v24197_v36  ;;  %v22862_v8 = vadd.f32 %v9940_v32, %v24198_v28  ;;  %v22864_v27 = vadd.f32 %v9933_v56, %v9813_v63  ;;  %v3758_v55 = vadd.f32 %v22783_v52, %v22722_v19  ;;  %v22890_v31 = vand.u32 4294901760, %v22856_v6  ;;  %v24212_v28 = vld [vmem:[#allocation140_spill] sm:$0xff]  ;;  %v12646_v5 = vld [vmem:[#allocation5 + $0x388] sm:$0xff] }
 0x42d   : > { %v4636_v10 = vadd.f32 %v24201_v22, %v4515_v43  ;;  %17473 = vmatprep.subr.mxu1 %v22370_v0  ;;  %17433 = vmatprep.mubr.f32.mxu1 %v24202_v42  ;;  %v22875_v11 = vadd.f32 %v16962_v47, %v22768_v7  ;;  %v3760_v63 = vadd.f32 %v22792_v48, %v22733_v34  ;;  %v9836_v30 = vpop.f32.mrf.mxu0  ;;  %v24203_v7 = vld [vmem:[#allocation21_spill] sm:$0xff]  ;;  %v24207_v43 = vld [vmem:[#allocation56_spill] sm:$0xff]  ;;  %v24215_v42 = vld [vmem:[#allocation139_spill] sm:$0xff] }
 0x42e   : > { %24199 = vst [vmem:[#allocation25_spill] sm:$0xff] %v22862_v8  ;;  %24200 = vst [vmem:[#allocation26_spill] sm:$0xff] %v22864_v27  ;;  %v3762_v41 = vadd.f32 %v22806_v51, %v22735_v46  ;;  %v3764_v19 = vadd.f32 %v3749_v58, %v22770_v38  ;;  %17452 = vmatpush3.msra.mxu0 %v24197_v36  ;;  %17474 = vmatpush3.msra.mxu1 %v22370_v0  ;;  %v12636_v46 = vld [vmem:[#allocation2 + $0xe] sm:$0xff]  ;;  %v12637_v38 = vld [vmem:[#allocation2 + $0x16] sm:$0xff] }
 0x42f   : > { %v22884_v52 = vadd.f32 %v4600_v57, %v3758_v55  ;;  %17434 = vmatmul.mubr.f32.gmra.mxu1 %v11915_v59  ;;  %17453 = vmatprep.subr.mxu0 %v24203_v7  ;;  %24204 = vst [vmem:[#allocation27_spill] sm:$0xff] %v22890_v31  ;;  %v22893_v34 = vsub.f32 %v12651_v13, %v22853_v23  ;;  %v16987_v0 = vpop.f32.mrf.mxu1  ;;  %v22904_v59 = vand.u32 4294901760, %v12649_v62  ;;  %v24205_v13 = vld [vmem:[#allocation131_spill] sm:$0xff]  ;;  %v12657_v53 = vsel %vm226_vm1, %v12637_v38, 0  ;;  %v24211_v36 = vld [vmem:[#allocation137_spill] sm:$0xff]  ;;  %v24218_v38 = vld [vmem:[#allocation142_spill] sm:$0xff] }
 0x430   : > { %v22896_v48 = vadd.f32 %v9836_v30, %v22780_v44  ;;  %v22898_v51 = vadd.f32 %v4612_v45, %v3760_v63  ;;  %v22900_v58 = vadd.f32 %v4624_v12, %v3762_v41  ;;  %17475 = vmatprep.subr.mxu1 %v22405_v4  ;;  %17454 = vmatpush3.msra.mxu0 %v24203_v7  ;;  %v12648_v44 = vld [vmem:[#allocation5 + $0x398] sm:$0xff]  ;;  %v24216_v41 = vld [vmem:[#allocation138_spill] sm:$0xff] }
 0x431   : > { %v9952_v39 = vadd.f32 %v16987_v0, %v9831_v21  ;;  %v22906_v57 = vadd.f32 %v4636_v10, %v3764_v19  ;;  %v4955_v32 = vadd.f32 %v24206_v54, %v24205_v13  ;;  %17455 = vmatprep.mubr.f32.mxu0 %v22418_v9  ;;  %17476 = vmatpush3.msra.mxu1 %v22405_v4  ;;  %v9945_v45 = vpop.f32.mrf.mxu1  ;;  %v12654_v21 = vsel %vm226_vm1, %v12636_v46, 0  ;;  %v22924_v12 = vpop.f32.mrf.mxu0  ;;  %v24210_v4 = vld [vmem:[#allocation133_spill] sm:$0xff]  ;;  %v24214_v10 = vld [vmem:[#allocation135_spill] sm:$0xff]  ;;  %v24237_v1 = vld [vmem:[#allocation152_spill] sm:$0xff] }
 0x432   : > { %v22913_v18 = vsub.f32 %v12650_v40, %v22872_v16  ;;  %17456 = vmatmul.mubr.f32.vlgmr.msra.gmra.mxu0 %v22420_v60  ;;  %17477 = vmatprep.subr.mxu1 %v24136_v61  ;;  %v22922_v49 = vadd.f32 %v9945_v45, %v9825_v25  ;;  %v4967_v40 = vadd.f32 %v24211_v36, %v24210_v4  ;;  %v22935_v22 = vand.u32 4294901760, %v22893_v34  ;;  %v12647_v25 = vld [vmem:[#allocation5 + $0x390] sm:$0xff]  ;;  %v24217_v19 = vld [vmem:[#allocation141_spill] sm:$0xff]  ;;  %v24220_v45 = vld [vmem:[#allocation144_spill] sm:$0xff] }
 0x433   : > { %v22920_v56 = vadd.f32 %v9952_v39, %v24207_v43  ;;  %v5085_v47 = vadd.f32 %v24212_v28, %v4955_v32  ;;  %17495 = vmatprep.subr.mxu0 %v22831_v29  ;;  %17436 = vmatprep.mubr.f32.mxu1 %v11925_v24  ;;  %v12850_v55 = vsub.f32 %v22856_v6, %v22890_v31  ;;  %v22943_v7 = vand.u32 4294901760, %v12648_v44  ;;  %v12638_v24 = vld [vmem:[#allocation2 + $0x1e] sm:$0xff]  ;;  %v22948_v46 = vpop.f32.mrf.mxu0 }
 0x434   : > { %24209 = vst [vmem:[#allocation29_spill] sm:$0xff] %v22922_v49  ;;  %24213 = vst [vmem:[#allocation30_spill] sm:$0xff] %v22935_v22  ;;  %v4979_v63 = vadd.f32 %v24215_v42, %v24214_v10  ;;  %v4991_v30 = vadd.f32 %v24217_v19, %v24216_v41  ;;  %17478 = vmatpush3.msra.mxu1 %v24136_v61  ;;  %17496 = vmatpush3.msra.mxu0 %v22831_v29  ;;  %v24219_v39 = vld [vmem:[#allocation143_spill] sm:$0xff]  ;;  %v22955_v61 = vand.u32 4294901760, %v12654_v21  ;;  %v16990_v32 = vpop.f32.mrf.mxu1 }
 0x435   : > { %24208 = vst [vmem:[#allocation28_spill] sm:$0xff] %v22920_v56  ;;  %v22946_v14 = vsub.f32 %v12649_v62, %v22904_v59  ;;  %v5099_v0 = vadd.f32 %v24218_v38, %v4967_v40  ;;  %v5215_v13 = vadd.f32 %v24219_v39, %v5085_v47  ;;  %17437 = vmatmul.mubr.f32.gmra.mxu1 %v11935_v2  ;;  %v22957_v54 = vand.u32 4294901760, %v12657_v53  ;;  %v12639_v2 = vld [vmem:[#allocation2 + $0x26] sm:$0xff]  ;;  %v24222_v40 = vld [vmem:[#allocation145_spill] sm:$0xff] }
 0x436   : > { %17479 = vmatprep.subr.mxu1 %v24147_v50  ;;  %v5113_v62 = vadd.f32 %v24220_v45, %v4979_v63  ;;  %17497 = vmatprep.subr.mxu0 %v22853_v23  ;;  %v22962_v43 = vand.u32 4294901760, %v12647_v25  ;;  %v22965_v4 = vand.u32 4294901760, %v22913_v18  ;;  %v9964_v36 = vadd.f32 %v16990_v32, %v22875_v11  ;;  %v9957_v63 = vpop.f32.mrf.mxu1  ;;  %v12645_v11 = vld [vmem:[#allocation5 + $0x380] sm:$0xff]  ;;  %v24228_v45 = vld [vmem:[#allocation146_spill] sm:$0xff] }
 0x437   : > { %17458 = vmatprep.mubr.f32.mxu0 %v22472_v33  ;;  %v5231_v28 = vadd.f32 %v24222_v40, %v5099_v0  ;;  %17480 = vmatpush3.msra.mxu1 %v24147_v50  ;;  %v12851_v47 = vand.u32 4294901760, %v12850_v55  ;;  %v12857_v10 = vsub.f32 %v22893_v34, %v22935_v22  ;;  %v12660_v42 = vsel %vm226_vm1, %v12638_v24, 0  ;;  %v24224_v50 = vld [vmem:[#allocation15_spill] sm:$0xff]  ;;  %v12640_v40 = vld [vmem:[#allocation2 + $0x2e] sm:$0xff] }
 0x438   : > { %24221 = vst [vmem:[#allocation32_spill] sm:$0xff] %v22965_v4  ;;  %17498 = vmatpush3.msra.mxu0 %v22853_v23  ;;  %17481 = vmatprep.subr.mxu1 %v24156_v37  ;;  %v22977_v41 = vand.u32 4294901760, %v22946_v14  ;;  %v22980_v19 = vsub.f32 %v12648_v44, %v22943_v7  ;;  %v22983_v38 = vadd.f32 %v9964_v36, %v24224_v50  ;;  %v22988_v0 = vpop.f32.mrf.mxu0  ;;  %v22992_v24 = vand.u32 4294901760, %v12646_v5  ;;  %v24230_v50 = vld [vmem:[#allocation148_spill] sm:$0xff] }
 0x439   : > { %17459 = vmatmul.mubr.f32.gmra.mxu0 %v22488_v3  ;;  %v22986_v55 = vadd.f32 %v9957_v63, %v22896_v48  ;;  %17499 = vmatprep.subr.mxu0 %v22872_v16  ;;  %v22995_v39 = vsub.f32 %v12654_v21, %v22955_v61  ;;  %v22998_v44 = vsub.f32 %v12657_v53, %v22957_v54  ;;  %v12663_v32 = vsel %vm226_vm1, %v12639_v2, 0  ;;  %v24229_v63 = vld [vmem:[#allocation147_spill] sm:$0xff] }
 0x43a   : > { %24223 = vst [vmem:[#allocation31_spill] sm:$0xff] %v22977_v41  ;;  %24225 = vst [vmem:[#allocation33_spill] sm:$0xff] %v22983_v38  ;;  %17482 = vmatpush3.msra.mxu1 %v24156_v37  ;;  %v23002_v36 = vadd.f32 %v24228_v45, %v4991_v30  ;;  %17483 = vmatprep.mubr.f32.mxu1 %v22418_v9  ;;  %v12864_v37 = vsub.f32 %v22913_v18, %v22965_v4  ;;  %v23011_v21 = vand.u32 4294901760, %v12660_v42  ;;  %v23013_v53 = vpop.f32.mrf.mxu0  ;;  %v17037_v38 = vpop.f32.mrf.mxu1  ;;  %v24242_v4 = vld [vmem:[#allocation136_spill] sm:$0xff] }
 0x43b   : > { %24226 = vst [vmem:[#allocation34_spill] sm:$0xff] %v22986_v55  ;;  %24227 = vst [vmem:[#allocation35_spill] sm:$0xff] %v22998_v44  ;;  %17500 = vmatpush3.msra.mxu0 %v22872_v16  ;;  %v23009_v48 = vsub.f32 %v12647_v25, %v22962_v43  ;;  %v5247_v2 = vadd.f32 %v24229_v63, %v5113_v62  ;;  %v5366_v30 = vadd.f32 %v24230_v50, %v5215_v13  ;;  %v12641_v13 = vld [vmem:[#allocation2 + $0x36] sm:$0xff] }
 0x43c   : > { %17484 = vmatmul.mubr.f32.vlgmr.msra.gmra.mxu1 %v22420_v60  ;;  %17501 = vmatprep.subr.mxu0 %v22904_v59  ;;  %v12858_v9 = vand.u32 4294901760, %v12857_v10  ;;  %v23019_v45 = vand.u32 4294901760, %v12645_v11  ;;  %v12871_v25 = vsub.f32 %v22946_v14, %v22977_v41  ;;  %v23025_v55 = vand.u32 4294901760, %v22980_v19  ;;  %v10276_v49 = vpop.f32.mrf.mxu1  ;;  %v24241_v41 = vld [vmem:[#allocation153_spill] sm:$0xff] }
 0x43d   : > { %17523 = vmatprep.subr.mxu1 %v12851_v47  ;;  %17461 = vmatprep.mubr.f32.mxu0 %v22527_v26  ;;  %v23027_v62 = vand.u32 4294901760, %v12663_v32  ;;  %v23030_v60 = vadd.f32 %v17037_v38, %v22924_v12  ;;  %v23036_v50 = vsub.f32 %v12646_v5, %v22992_v24  ;;  %v12666_v56 = vsel %vm226_vm1, %v12640_v40, 0  ;;  %v23047_v38 = vpop.f32.mrf.mxu0  ;;  %v24235_v5 = vld [vmem:[#allocation150_spill] sm:$0xff]  ;;  %v24236_v40 = vld [vmem:[#allocation151_spill] sm:$0xff] }
 0x43e   : > { %24231 = vst [vmem:[#allocation36_spill] sm:$0xff] %v23019_v45  ;;  %24232 = vst [vmem:[#allocation37_spill] sm:$0xff] %v23025_v55  ;;  %17502 = vmatpush3.msra.mxu0 %v22904_v59  ;;  %17524 = vmatpush3.msra.mxu1 %v12851_v47  ;;  %v12865_v8 = vand.u32 4294901760, %v12864_v37  ;;  %v23042_v12 = vand.u32 4294901760, %v23009_v48  ;;  %v23045_v47 = vsub.f32 %v12660_v42, %v23011_v21  ;;  %v12669_v15 = vsel %vm226_vm1, %v12641_v13, 0 }
 0x43f   : > { %17462 = vmatmul.mubr.f32.gmra.mxu0 %v22546_v35  ;;  %17503 = vmatprep.subr.mxu0 %v22943_v7  ;;  %v23050_v63 = vadd.f32 %v10276_v49, %v22948_v46  ;;  %v5378_v10 = vadd.f32 %v24235_v5, %v5231_v28  ;;  %v5487_v27 = vadd.f32 %v24236_v40, %v5366_v30  ;;  %v23066_v28 = vand.u32 4294901760, %v12666_v56  ;;  %v12642_v30 = vld [vmem:[#allocation2 + $0x3e] sm:$0xff] }
 0x440   : > { %24233 = vst [vmem:[#allocation38_spill] sm:$0xff] %v23042_v12  ;;  %24234 = vst [vmem:[#allocation39_spill] sm:$0xff] %v23045_v47  ;;  %17525 = vmatprep.subr.mxu1 %v12858_v9  ;;  %17486 = vmatprep.mubr.f32.mxu1 %v22472_v33  ;;  %v23056_v37 = vsub.f32 %v12645_v11, %v23019_v45  ;;  %v5390_v42 = vadd.f32 %v24237_v1, %v5247_v2  ;;  %v23068_v33 = vpop.f32.mrf.mxu0  ;;  %v12872_v11 = vand.u32 4294901760, %v12871_v25 }
 0x441   : > { %17504 = vmatpush3.msra.mxu0 %v22943_v7  ;;  %17526 = vmatpush3.msra.mxu1 %v12858_v9  ;;  %v12878_v49 = vsub.f32 %v22980_v19, %v23025_v55  ;;  %v23064_v46 = vsub.f32 %v12663_v32, %v23027_v62  ;;  %v24238_v1 = vand.u32 4294901760, %v22995_v39  ;;  %v24239_v9 = vand.u32 4294901760, %v22998_v44  ;;  %v17040_v5 = vpop.f32.mrf.mxu1  ;;  %v12643_v55 = vld [vmem:[#allocation2 + $0x46] sm:$0xff] }
 0x442   : > { %17487 = vmatmul.mubr.f32.gmra.mxu1 %v22488_v3  ;;  %17505 = vmatprep.subr.mxu0 %v22962_v43  ;;  %v23079_v32 = vand.u32 4294901760, %v23036_v50  ;;  %v12885_v3 = vsub.f32 %v23009_v48, %v23042_v12  ;;  %v23085_v40 = vand.u32 4294901760, %v12669_v15  ;;  %v5511_v22 = vadd.f32 %v24242_v4, %v5390_v42 }
 0x443   : > { %v12753_v2 = vsub.f32 %v22995_v39, %v24238_v1  ;;  %v12763_v13 = vsub.f32 %v22998_v44, %v24239_v9  ;;  %17527 = vmatprep.subr.mxu1 %v12865_v8  ;;  %17464 = vmatprep.mubr.f32.mxu0 %v22580_v17  ;;  %v23088_v1 = vadd.f32 %v17040_v5, %v22988_v0  ;;  %v23094_v31 = vand.u32 4294901760, %v23056_v37  ;;  %v10288_v44 = vpop.f32.mrf.mxu1  ;;  %v23103_v4 = vpop.f32.mrf.mxu0 }
 0x444   : > { %24240 = vst [vmem:[#allocation40_spill] sm:$0xff] %v23079_v32  ;;  %v5499_v9 = vadd.f32 %v24241_v41, %v5378_v10  ;;  %17506 = vmatpush3.msra.mxu0 %v22962_v43  ;;  %17528 = vmatpush3.msra.mxu1 %v12865_v8  ;;  %v12672_v12 = vsel %vm226_vm1, %v12642_v30, 0  ;;  %v12879_v25 = vand.u32 4294901760, %v12878_v49  ;;  %v23101_v41 = vsub.f32 %v12666_v56, %v23066_v28 }
 0x445   : > { %24243 = vst [vmem:[#allocation42_spill] sm:$0xff] %v23094_v31  ;;  %17465 = vmatmul.mubr.f32.gmra.mxu0 %v22595_v20  ;;  %17507 = vmatprep.subr.mxu0 %v22992_v24  ;;  %v23106_v8 = vadd.f32 %v10288_v44, %v23013_v53  ;;  %v12754_v10 = vand.u32 4294901760, %v12753_v2  ;;  %v12764_v42 = vand.u32 4294901760, %v12763_v13  ;;  %v12892_v30 = vsub.f32 %v23036_v50, %v23079_v32  ;;  %v24245_v2 = vld [vmem:[#allocation149_spill] sm:$0xff] }
 0x446   : > { %17529 = vmatprep.subr.mxu1 %v12872_v11  ;;  %17489 = vmatprep.mubr.f32.mxu1 %v22527_v26  ;;  %v12675_v49 = vsel %vm226_vm1, %v12643_v55, 0  ;;  %v12886_v56 = vand.u32 4294901760, %v12885_v3  ;;  %v24244_v5 = vand.u32 4294901760, %v23045_v47  ;;  %v23117_v44 = vsub.f32 %v12669_v15, %v23085_v40  ;;  %v10155_v26 = vpop.f32.mrf.mxu0 }
 0x447   : > { %17508 = vmatpush3.msra.mxu0 %v22992_v24  ;;  %17530 = vmatpush3.msra.mxu1 %v12872_v11  ;;  %v23119_v53 = vand.u32 4294901760, %v12672_v12  ;;  %v5263_v13 = vadd.f32 %v24245_v2, %v23002_v36  ;;  %v23124_v32 = vadd.f32 %v5487_v27, %v22884_v52  ;;  %v12899_v55 = vsub.f32 %v23056_v37, %v23094_v31  ;;  %v17043_v11 = vpop.f32.mrf.mxu1  ;;  %v24247_v52 = vld [vmem:[#allocation154_spill] sm:$0xff] }
 0x448   : > { %v12773_v0 = vsub.f32 %v23045_v47, %v24244_v5  ;;  %17490 = vmatmul.mubr.f32.gmra.mxu1 %v22546_v35  ;;  %17509 = vmatprep.subr.mxu0 %v23019_v45  ;;  %v24246_v15 = vand.u32 4294901760, %v23064_v46  ;;  %v23135_v5 = vand.u32 4294901760, %v12675_v49  ;;  %v23138_v27 = vadd.f32 %v17043_v11, %v23047_v38  ;;  %v24249_v11 = vld [vmem:[#allocation158_spill] sm:$0xff] }
 0x449   : > { %17531 = vmatprep.subr.mxu1 %v12879_v25  ;;  %17510 = vmatpush3.msra.mxu0 %v23019_v45  ;;  %v23141_v35 = vadd.f32 %v5499_v9, %v22898_v51  ;;  %v5402_v2 = vadd.f32 %v24247_v52, %v5263_v13  ;;  %v23145_v31 = vadd.f32 %v5511_v22, %v22900_v58  ;;  %v12893_v45 = vand.u32 4294901760, %v12892_v30  ;;  %v10300_v47 = vpop.f32.mrf.mxu1  ;;  %v17065_v9 = vpop.f32.mrf.mxu0  ;;  %v24248_v13 = vld [vmem:[#allocation155_spill] sm:$0xff]  ;;  %v24250_v22 = vld [vmem:[#allocation157_spill] sm:$0xff] }
 0x44a   : > { %v12783_v3 = vsub.f32 %v23064_v46, %v24246_v15  ;;  %17511 = vmatprep.mubr.f32.mxu0 %v12754_v10  ;;  %17532 = vmatpush3.msra.mxu1 %v12879_v25  ;;  %v12774_v15 = vand.u32 4294901760, %v12773_v0  ;;  %v23646_v36 = vand.u32 4294901760, %v23117_v44  ;;  %v23149_v38 = vsub.f32 %v12672_v12, %v23119_v53  ;;  %v24251_v10 = vld [vmem:[#allocation161_spill] sm:$0xff] }
 0x44b   : > { %17512 = vmatmul.mubr.f32.vlgmr.msra.gmra.mxu0 %v12764_v42  ;;  %17533 = vmatprep.subr.mxu1 %v12886_v56  ;;  %v23152_v51 = vadd.f32 %v10300_v47, %v23068_v33  ;;  %v5842_v58 = vadd.f32 %v24249_v11, %v24248_v13  ;;  %v5854_v25 = vadd.f32 %v24251_v10, %v24250_v22  ;;  %v12900_v42 = vand.u32 4294901760, %v12899_v55  ;;  %v10406_v52 = vpop.f32.mrf.mxu0  ;;  %v24253_v13 = vld [vmem:[#allocation156_spill] sm:$0xff] }
 0x44c   : > { %17551 = vmatprep.subr.mxu0 %v22856_v6  ;;  %17492 = vmatprep.mubr.f32.mxu1 %v22580_v17  ;;  %v10414_v0 = vadd.f32 %v17065_v9, %v23030_v60  ;;  %v12784_v12 = vand.u32 4294901760, %v12783_v3  ;;  %v24252_v47 = vand.u32 4294901760, %v23101_v41  ;;  %v23166_v30 = vsub.f32 %v12675_v49, %v23135_v5  ;;  %v24254_v22 = vld [vmem:[#allocation164_spill] sm:$0xff]  ;;  %v17046_v17 = vpop.f32.mrf.mxu1  ;;  %v24255_v60 = vld [vmem:[#allocation166_spill] sm:$0xff] }
 0x44d   : > { %17534 = vmatpush3.msra.mxu1 %v12886_v56  ;;  %17552 = vmatpush3.msra.mxu0 %v22856_v6  ;;  %v5523_v11 = vadd.f32 %v24253_v13, %v5402_v2  ;;  %v5972_v10 = vadd.f32 %v24254_v22, %v5842_v58  ;;  %v10407_v6 = vadd.f32 %v10406_v52, %v23050_v63  ;;  %v24256_v2 = vld [vmem:[#allocation159_spill] sm:$0xff]  ;;  %v24258_v58 = vld [vmem:[#allocation162_spill] sm:$0xff]  ;;  %v24261_v13 = vld [vmem:[#allocation169_spill] sm:$0xff] }
 0x44e   : > { %v12793_v33 = vsub.f32 %v23101_v41, %v24252_v47  ;;  %17493 = vmatmul.mubr.f32.gmra.mxu1 %v22595_v20  ;;  %17535 = vmatprep.subr.mxu1 %v12893_v45  ;;  %v5986_v56 = vadd.f32 %v24255_v60, %v5854_v25  ;;  %v12803_v49 = vsub.f32 %v23117_v44, %v23646_v36  ;;  %v24257_v20 = vld [vmem:[#allocation163_spill] sm:$0xff]  ;;  %v24259_v47 = vld [vmem:[#allocation165_spill] sm:$0xff]  ;;  %v24263_v55 = vld [vmem:[#allocation172_spill] sm:$0xff] }
 0x44f   : > { %17553 = vmatprep.subr.mxu0 %v22893_v34  ;;  %17514 = vmatprep.mubr.f32.mxu0 %v12774_v15  ;;  %v23179_v3 = vadd.f32 %v17046_v17, %v23103_v4  ;;  %v5866_v9 = vadd.f32 %v24257_v20, %v24256_v2  ;;  %v5878_v63 = vadd.f32 %v24259_v47, %v24258_v58  ;;  %v24260_v52 = vld [vmem:[#allocation167_spill] sm:$0xff]  ;;  %v10312_v15 = vpop.f32.mrf.mxu1  ;;  %v12822_v4 = vand.u32 4294901760, %v23166_v30  ;;  %v24262_v2 = vld [vmem:[#allocation168_spill] sm:$0xff] }
 0x450   : > { %v6102_v25 = vadd.f32 %v24260_v52, %v5972_v10  ;;  %17536 = vmatpush3.msra.mxu1 %v12893_v45  ;;  %17554 = vmatpush3.msra.mxu0 %v22893_v34  ;;  %v6118_v22 = vadd.f32 %v24261_v13, %v5986_v56  ;;  %v12794_v60 = vand.u32 4294901760, %v12793_v33  ;;  %v23189_v17 = vadd.f32 %v10312_v15, %v10155_v26  ;;  %v17068_v36 = vpop.f32.mrf.mxu0  ;;  %v24264_v45 = vld [vmem:[#allocation170_spill] sm:$0xff] }
 0x451   : > { %17515 = vmatmul.mubr.f32.gmra.mxu0 %v12784_v12  ;;  %17537 = vmatprep.subr.mxu1 %v12900_v42  ;;  %v6000_v20 = vadd.f32 %v24262_v2, %v5866_v9  ;;  %v10428_v34 = vadd.f32 %v17068_v36, %v23088_v1  ;;  %v6014_v10 = vadd.f32 %v24264_v45, %v5878_v63  ;;  %v24265_v56 = vld [vmem:[#allocation174_spill] sm:$0xff]  ;;  %v12804_v26 = vand.u32 4294901760, %v12803_v49  ;;  %v24269_v63 = vld [vmem:[#allocation177_spill] sm:$0xff] }
 0x452   : > { %v6253_v58 = vadd.f32 %v24263_v55, %v6102_v25  ;;  %17555 = vmatprep.subr.mxu0 %v22913_v18  ;;  %17538 = vmatpush3.msra.mxu1 %v12900_v42  ;;  %v6265_v12 = vadd.f32 %v24265_v56, %v6118_v22  ;;  %v24266_v33 = vand.u32 4294901760, %v23149_v38  ;;  %v10420_v47 = vpop.f32.mrf.mxu0  ;;  %v24267_v55 = vld [vmem:[#allocation171_spill] sm:$0xff]  ;;  %v17093_v36 = vpop.f32.mrf.mxu1  ;;  %v23215_v13 = vadd.f32 %v5523_v11, %v22906_v57  ;;  %v24271_v2 = vld [vmem:[#allocation182_spill] sm:$0xff]  ;;  %v24274_v56 = vld [vmem:[#allocation173_spill] sm:$0xff] }
 0x453   : > { %17539 = vmatprep.mubr.f32.mxu1 %v22955_v61  ;;  %17556 = vmatpush3.msra.mxu0 %v22913_v18  ;;  %v6134_v52 = vadd.f32 %v24267_v55, %v6000_v20  ;;  %v24268_v25 = vld [vmem:[#allocation175_spill] sm:$0xff]  ;;  %v10421_v1 = vadd.f32 %v10420_v47, %v23106_v8  ;;  %v12823_v18 = vsub.f32 %v23166_v30, %v12822_v4  ;;  %v24273_v8 = vld [vmem:[#allocation185_spill] sm:$0xff]  ;;  %v24276_v55 = vld [vmem:[#allocation188_spill] sm:$0xff] }
 0x454   : > { %v12813_v9 = vsub.f32 %v23149_v38, %v24266_v33  ;;  %v6374_v42 = vadd.f32 %v24268_v25, %v6253_v58  ;;  %17540 = vmatmul.mubr.f32.vlgmr.msra.gmra.mxu1 %v22957_v54  ;;  %17557 = vmatprep.subr.mxu0 %v22946_v14  ;;  %v6386_v15 = vadd.f32 %v24269_v63, %v6265_v12  ;;  %v24270_v22 = vld [vmem:[#allocation179_spill] sm:$0xff]  ;;  %v24272_v58 = vld [vmem:[#allocation181_spill] sm:$0xff]  ;;  %v24275_v33 = vld [vmem:[#allocation176_spill] sm:$0xff] }
 0x455   : > { %17579 = vmatprep.subr.mxu1 %v22831_v29  ;;  %17517 = vmatprep.mubr.f32.mxu0 %v12794_v60  ;;  %v23212_v49 = vadd.f32 %v17093_v36, %v10414_v0  ;;  %v6729_v20 = vadd.f32 %v24271_v2, %v24270_v22  ;;  %v6741_v45 = vadd.f32 %v24273_v8, %v24272_v58  ;;  %v10536_v60 = vpop.f32.mrf.mxu1  ;;  %v17071_v0 = vpop.f32.mrf.mxu0  ;;  %v24277_v36 = vld [vmem:[#allocation190_spill] sm:$0xff]  ;;  %v24279_v2 = vld [vmem:[#allocation191_spill] sm:$0xff]  ;;  %v24280_v58 = vld [vmem:[#allocation193_spill] sm:$0xff] }
 0x456   : > { %17558 = vmatpush3.msra.mxu0 %v22946_v14  ;;  %17580 = vmatpush3.msra.mxu1 %v22831_v29  ;;  %v6150_v12 = vadd.f32 %v24274_v56, %v6014_v10  ;;  %v6277_v47 = vadd.f32 %v24275_v33, %v6134_v52  ;;  %v12814_v57 = vand.u32 4294901760, %v12813_v9  ;;  %v23226_v11 = vadd.f32 %v10536_v60, %v10407_v6  ;;  %v24278_v52 = vld [vmem:[#allocation160_spill] sm:$0xff]  ;;  %v24285_v56 = vld [vmem:[#allocation178_spill] sm:$0xff] }
 0x457   : > { %17518 = vmatmul.mubr.f32.gmra.mxu0 %v12804_v26  ;;  %17559 = vmatprep.subr.mxu0 %v22980_v19  ;;  %v6859_v25 = vadd.f32 %v24276_v55, %v6729_v20  ;;  %v6873_v63 = vadd.f32 %v24277_v36, %v6741_v45  ;;  %v10442_v14 = vadd.f32 %v17071_v0, %v23138_v27  ;;  %v12824_v6 = vand.u32 4294901760, %v12823_v18  ;;  %v10434_v9 = vpop.f32.mrf.mxu0  ;;  %v24283_v45 = vld [vmem:[#allocation186_spill] sm:$0xff]  ;;  %v24288_v36 = vld [vmem:[#allocation192_spill] sm:$0xff] }
 0x458   : > { %17581 = vmatprep.subr.mxu1 %v22853_v23  ;;  %17542 = vmatprep.mubr.f32.mxu1 %v23011_v21  ;;  %v6419_v10 = vadd.f32 %v6374_v42, %v23124_v32  ;;  %v6421_v26 = vadd.f32 %v6386_v15, %v23141_v35  ;;  %v6398_v22 = vadd.f32 %v24278_v52, %v6277_v47  ;;  %v24281_v35 = vld [vmem:[#allocation183_spill] sm:$0xff]  ;;  %v24286_v47 = vld [vmem:[#allocation196_spill] sm:$0xff]  ;;  %v24287_v55 = vld [vmem:[#allocation198_spill] sm:$0xff] }
 0x459   : > { %17560 = vmatpush3.msra.mxu0 %v22980_v19  ;;  %17582 = vmatpush3.msra.mxu1 %v22853_v23  ;;  %v6989_v20 = vadd.f32 %v24279_v2, %v6859_v25  ;;  %v7005_v8 = vadd.f32 %v24280_v58, %v6873_v63  ;;  %v10435_v32 = vadd.f32 %v10434_v9, %v23152_v51  ;;  %v17096_v27 = vpop.f32.mrf.mxu1  ;;  %v24282_v42 = vld [vmem:[#allocation187_spill] sm:$0xff]  ;;  %v24284_v19 = vld [vmem:[#allocation189_spill] sm:$0xff]  ;;  %v24289_v52 = vld [vmem:[#allocation194_spill] sm:$0xff] }
 0x45a   : > { %17543 = vmatmul.mubr.f32.gmra.mxu1 %v23027_v62  ;;  %17561 = vmatprep.subr.mxu0 %v23009_v48  ;;  %v6753_v15 = vadd.f32 %v24282_v42, %v24281_v35  ;;  %v6765_v60 = vadd.f32 %v24284_v19, %v24283_v45  ;;  %v23248_v18 = vadd.f32 %v17096_v27, %v10428_v34  ;;  %v24292_v27 = vld [vmem:[#allocation180_spill] sm:$0xff]  ;;  %v24294_v42 = vld [vmem:[#allocation206_spill] sm:$0xff]  ;;  %v24295_v45 = vld [vmem:[#allocation195_spill] sm:$0xff] }
 0x45b   : > { %17583 = vmatprep.subr.mxu1 %v22872_v16  ;;  %17520 = vmatprep.mubr.f32.mxu0 %v12814_v57  ;;  %v6289_v33 = vadd.f32 %v24285_v56, %v6150_v12  ;;  %v7140_v0 = vadd.f32 %v24286_v47, %v6989_v20  ;;  %v7152_v25 = vadd.f32 %v24287_v55, %v7005_v8  ;;  %v10552_v51 = vpop.f32.mrf.mxu1  ;;  %v17074_v34 = vpop.f32.mrf.mxu0  ;;  %v24290_v12 = vld [vmem:[#allocation199_spill] sm:$0xff]  ;;  %v24291_v20 = vld [vmem:[#allocation201_spill] sm:$0xff] }
 0x45c   : > { %17562 = vmatpush3.msra.mxu0 %v23009_v48  ;;  %17584 = vmatpush3.msra.mxu1 %v22872_v16  ;;  %v6887_v63 = vadd.f32 %v24288_v36, %v6753_v15  ;;  %v6901_v9 = vadd.f32 %v24289_v52, %v6765_v60  ;;  %v23258_v57 = vadd.f32 %v10552_v51, %v10421_v1  ;;  %v24296_v60 = vld [vmem:[#allocation197_spill] sm:$0xff]  ;;  %v24298_v47 = vld [vmem:[#allocation227_spill] sm:$0xff]  ;;  %v24300_v51 = vld [vmem:[#allocation200_spill] sm:$0xff] }
 0x45d   : > { %17521 = vmatmul.mubr.f32.gmra.mxu0 %v12824_v6  ;;  %17563 = vmatprep.subr.mxu0 %v23036_v50  ;;  %v7261_v2 = vadd.f32 %v24290_v12, %v7140_v0  ;;  %v7273_v58 = vadd.f32 %v24291_v20, %v7152_v25  ;;  %v10456_v48 = vadd.f32 %v17074_v34, %v23179_v3  ;;  %v24293_v6 = vld [vmem:[#allocation203_spill] sm:$0xff]  ;;  %v10448_v1 = vpop.f32.mrf.mxu0  ;;  %v24299_v0 = vld [vmem:[#allocation230_spill] sm:$0xff]  ;;  %v24302_v34 = vld [vmem:[#allocation236_spill] sm:$0xff] }
 0x45e   : > { %17585 = vmatprep.subr.mxu1 %v22904_v59  ;;  %17545 = vmatprep.mubr.f32.mxu1 %v23066_v28  ;;  %v6423_v8 = vadd.f32 %v6398_v22, %v23145_v31  ;;  %v23267_v35 = vadd.f32 %v24292_v27, %v6289_v33  ;;  %v7616_v15 = vadd.f32 %v24294_v42, %v24293_v6  ;;  %v24297_v22 = vld [vmem:[#allocation212_spill] sm:$0xff]  ;;  %v24301_v52 = vld [vmem:[#allocation215_spill] sm:$0xff] }
 0x45f   : > { %17564 = vmatpush3.msra.mxu0 %v23036_v50  ;;  %17586 = vmatpush3.msra.mxu1 %v22904_v59  ;;  %v7021_v19 = vadd.f32 %v24295_v45, %v6887_v63  ;;  %v7037_v56 = vadd.f32 %v24296_v60, %v6901_v9  ;;  %v10449_v31 = vadd.f32 %v10448_v1, %v23189_v17  ;;  %v17099_v3 = vpop.f32.mrf.mxu1  ;;  %v24303_v20 = vld [vmem:[#allocation35_spill] sm:$0xff]  ;;  %v24309_v45 = vld [vmem:[#allocation220_spill] sm:$0xff] }
 0x460   : > { %17546 = vmatmul.mubr.f32.gmra.mxu1 %v23085_v40  ;;  %17565 = vmatprep.subr.mxu0 %v23056_v37  ;;  %v7746_v33 = vadd.f32 %v24297_v22, %v7616_v15  ;;  %v8503_v55 = vadd.f32 %v24299_v0, %v24298_v47  ;;  %v23283_v50 = vadd.f32 %v17099_v3, %v10442_v14  ;;  %v24307_v6 = vld [vmem:[#allocation27_spill] sm:$0xff]  ;;  %v24308_v15 = vld [vmem:[#allocation202_spill] sm:$0xff]  ;;  %v24312_v47 = vld [vmem:[#allocation229_spill] sm:$0xff] }
 0x461   : > { %17587 = vmatprep.subr.mxu1 %v22943_v7  ;;  %17566 = vmatpush3.msra.mxu0 %v23056_v37  ;;  %v7306_v25 = vadd.f32 %v7261_v2, %v6419_v10  ;;  %v7164_v36 = vadd.f32 %v24300_v51, %v7021_v19  ;;  %v23286_v63 = vadd.f32 %v7273_v58, %v6421_v26  ;;  %v10568_v17 = vpop.f32.mrf.mxu1  ;;  %v17121_v14 = vpop.f32.mrf.mxu0  ;;  %v24304_v10 = vld [vmem:[#allocation184_spill] sm:$0xff]  ;;  %v24305_v26 = vld [vmem:[#allocation205_spill] sm:$0xff]  ;;  %v24310_v60 = vld [vmem:[#allocation239_spill] sm:$0xff] }
 0x462   : > { %17567 = vmatprep.mubr.f32.mxu0 %v22995_v39  ;;  %17588 = vmatpush3.msra.mxu1 %v22943_v7  ;;  %v7876_v9 = vadd.f32 %v24301_v52, %v7746_v33  ;;  %v8633_v12 = vadd.f32 %v24302_v34, %v8503_v55  ;;  %v23294_v37 = vadd.f32 %v10568_v17, %v10435_v32  ;;  %v24306_v58 = vld [vmem:[#allocation209_spill] sm:$0xff]  ;;  %v24311_v22 = vld [vmem:[#allocation214_spill] sm:$0xff]  ;;  %v24314_v51 = vld [vmem:[#allocation223_spill] sm:$0xff] }
 0x463   : > { %17568 = vmatmul.mubr.f32.vlgmr.msra.gmra.mxu0 %v24303_v20  ;;  %17589 = vmatprep.subr.mxu1 %v22962_v43  ;;  %v7285_v2 = vadd.f32 %v24304_v10, %v7164_v36  ;;  %v7628_v27 = vadd.f32 %v24306_v58, %v24305_v26  ;;  %v10694_v42 = vadd.f32 %v17121_v14, %v23212_v49  ;;  %v10687_v3 = vpop.f32.mrf.mxu0  ;;  %v24313_v0 = vld [vmem:[#allocation233_spill] sm:$0xff]  ;;  %v24315_v17 = vld [vmem:[#allocation244_spill] sm:$0xff]  ;;  %v24317_v34 = vld [vmem:[#allocation39_spill] sm:$0xff] }
 0x464   : > { %17607 = vmatprep.subr.mxu0 %v24307_v6  ;;  %17548 = vmatprep.mubr.f32.mxu1 %v23119_v53  ;;  %v23303_v1 = vadd.f32 %v24308_v15, %v7037_v56  ;;  %v8027_v19 = vadd.f32 %v24309_v45, %v7876_v9  ;;  %v8763_v32 = vadd.f32 %v24310_v60, %v8633_v12  ;;  %v17102_v49 = vpop.f32.mrf.mxu1  ;;  %v24316_v9 = vld [vmem:[#allocation30_spill] sm:$0xff]  ;;  %v24318_v10 = vld [vmem:[#allocation207_spill] sm:$0xff]  ;;  %v24321_v15 = vld [vmem:[#allocation217_spill] sm:$0xff] }
 0x465   : > { %17590 = vmatpush3.msra.mxu1 %v22962_v43  ;;  %17608 = vmatpush3.msra.mxu0 %v24307_v6  ;;  %v7760_v33 = vadd.f32 %v24311_v22, %v7628_v27  ;;  %v8515_v55 = vadd.f32 %v24313_v0, %v24312_v47  ;;  %v10688_v56 = vadd.f32 %v10687_v3, %v23226_v11  ;;  %v24319_v26 = vld [vmem:[#allocation211_spill] sm:$0xff]  ;;  %v24320_v27 = vld [vmem:[#allocation238_spill] sm:$0xff]  ;;  %v24325_v3 = vld [vmem:[#allocation213_spill] sm:$0xff] }
 0x466   : > { %17549 = vmatmul.mubr.f32.gmra.mxu1 %v23135_v5  ;;  %17591 = vmatprep.subr.mxu1 %v22992_v24  ;;  %v8148_v36 = vadd.f32 %v24314_v51, %v8027_v19  ;;  %v8914_v52 = vadd.f32 %v24315_v17, %v8763_v32  ;;  %v23319_v12 = vadd.f32 %v17102_v49, %v10456_v48  ;;  %v10584_v11 = vpop.f32.mrf.mxu1  ;;  %v24322_v19 = vld [vmem:[#allocation247_spill] sm:$0xff]  ;;  %v24323_v48 = vld [vmem:[#allocation36_spill] sm:$0xff]  ;;  %v24324_v32 = vld [vmem:[#allocation210_spill] sm:$0xff] }
 0x467   : > { %17609 = vmatprep.subr.mxu0 %v24316_v9  ;;  %17570 = vmatprep.mubr.f32.mxu0 %v24317_v34  ;;  %v23321_v14 = vadd.f32 %v7285_v2, %v6423_v8  ;;  %v7640_v58 = vadd.f32 %v24319_v26, %v24318_v10  ;;  %v8647_v6 = vadd.f32 %v24320_v27, %v8515_v55  ;;  %v24326_v47 = vld [vmem:[#allocation241_spill] sm:$0xff]  ;;  %v24327_v55 = vld [vmem:[#allocation32_spill] sm:$0xff]  ;;  %v24329_v17 = vld [vmem:[#allocation222_spill] sm:$0xff] }
 0x468   : > { %17592 = vmatpush3.msra.mxu1 %v22992_v24  ;;  %17610 = vmatpush3.msra.mxu0 %v24316_v9  ;;  %v7892_v45 = vadd.f32 %v24321_v15, %v7760_v33  ;;  %v9035_v60 = vadd.f32 %v24322_v19, %v8914_v52  ;;  %v23332_v8 = vadd.f32 %v10584_v11, %v10449_v31  ;;  %v17124_v2 = vpop.f32.mrf.mxu0  ;;  %v24328_v49 = vld [vmem:[#allocation216_spill] sm:$0xff]  ;;  %v24330_v31 = vand.u32 4294901760, %v22995_v39  ;;  %v24331_v26 = vld [vmem:[#allocation231_spill] sm:$0xff]  ;;  %v24333_v11 = vld [vmem:[#allocation246_spill] sm:$0xff] }
 0x469   : > { %17571 = vmatmul.mubr.f32.gmra.mxu0 %v23064_v46  ;;  %17593 = vmatprep.subr.mxu1 %v24323_v48  ;;  %v7652_v22 = vadd.f32 %v24325_v3, %v24324_v32  ;;  %v8779_v0 = vadd.f32 %v24326_v47, %v8647_v6  ;;  %v10706_v33 = vadd.f32 %v17124_v2, %v23248_v18  ;;  %v24332_v27 = vld [vmem:[#allocation235_spill] sm:$0xff]  ;;  %v24334_v19 = vand.u32 4294901760, %v24303_v20  ;;  %v24338_v47 = vld [vmem:[#allocation240_spill] sm:$0xff] }
 0x46a   : > { %17611 = vmatprep.subr.mxu0 %v24327_v55  ;;  %17594 = vmatpush3.msra.mxu1 %v24323_v48  ;;  %v7774_v51 = vadd.f32 %v24328_v49, %v7640_v58  ;;  %v8039_v52 = vadd.f32 %v24329_v17, %v7892_v45  ;;  %v8193_v9 = vadd.f32 %v8148_v36, %v7306_v25  ;;  %v10699_v10 = vpop.f32.mrf.mxu0  ;;  %v24335_v18 = vld [vmem:[#allocation31_spill] sm:$0xff]  ;;  %v17149_v45 = vpop.f32.mrf.mxu1  ;;  %v24336_v25 = vld [vmem:[#allocation225_spill] sm:$0xff] }
 0x46b   : > { %17595 = vmatprep.mubr.f32.mxu1 %v24330_v31  ;;  %17612 = vmatpush3.msra.mxu0 %v24327_v55  ;;  %v8527_v6 = vadd.f32 %v24332_v27, %v24331_v26  ;;  %v8926_v15 = vadd.f32 %v24333_v11, %v8779_v0  ;;  %v10700_v58 = vadd.f32 %v10699_v10, %v23258_v57  ;;  %v24337_v32 = vld [vmem:[#allocation219_spill] sm:$0xff]  ;;  %v24339_v55 = vld [vmem:[#allocation250_spill] sm:$0xff]  ;;  %v24340_v49 = vld [vmem:[#allocation37_spill] sm:$0xff] }
 0x46c   : > { %17596 = vmatmul.mubr.f32.vlgmr.msra.gmra.mxu1 %v24334_v19  ;;  %17613 = vmatprep.subr.mxu0 %v24335_v18  ;;  %v8160_v36 = vadd.f32 %v24336_v25, %v8039_v52  ;;  %v9080_v39 = vadd.f32 %v9035_v60, %v8193_v9  ;;  %v10815_v2 = vadd.f32 %v17149_v45, %v10694_v42  ;;  %v10808_v57 = vpop.f32.mrf.mxu1  ;;  %v24341_v60 = vld [vmem:[#allocation24_spill] sm:$0xff]  ;;  %v24342_v52 = vld [vmem:[#allocation23_spill] sm:$0xff]  ;;  %v24343_v31 = vld [vmem:[#allocation218_spill] sm:$0xff] }
 0x46d   : > { %17635 = vmatprep.subr.mxu1 %v22831_v29  ;;  %17573 = vmatprep.mubr.f32.mxu0 %v23101_v41  ;;  %v7908_v3 = vadd.f32 %v24337_v32, %v7774_v51  ;;  %v8661_v0 = vadd.f32 %v24338_v47, %v8527_v6  ;;  %v9047_v20 = vadd.f32 %v24339_v55, %v8926_v15  ;;  %v17127_v42 = vpop.f32.mrf.mxu0  ;;  %v24344_v26 = vld [vmem:[#allocation243_spill] sm:$0xff]  ;;  %v24346_v11 = vld [vmem:[#allocation224_spill] sm:$0xff]  ;;  %v24348_v45 = vld [vmem:[#allocation237_spill] sm:$0xff] }
 0x46e   : > { %17614 = vmatpush3.msra.mxu0 %v24335_v18  ;;  %17636 = vmatpush3.msra.mxu1 %v22831_v29  ;;  %v9967_v17 = vadd.f32 %v24341_v60, %v9080_v39  ;;  %v23364_v9 = vadd.f32 %v10815_v2, %v24342_v52  ;;  %v10809_v51 = vadd.f32 %v10808_v57, %v10688_v56  ;;  %v24345_v29 = vand.u32 4294901760, %v24317_v34  ;;  %v24347_v18 = vld [vmem:[#allocation234_spill] sm:$0xff]  ;;  %v24349_v39 = vld [vmem:[#allocation249_spill] sm:$0xff]  ;;  %v24355_v60 = vld [vmem:[#allocation252_spill] sm:$0xff] }
 0x46f   : > { %17574 = vmatmul.mubr.f32.gmra.mxu0 %v23117_v44  ;;  %17615 = vmatprep.subr.mxu0 %v24340_v49  ;;  %v7788_v10 = vadd.f32 %v24343_v31, %v7652_v22  ;;  %v8795_v27 = vadd.f32 %v24344_v26, %v8661_v0  ;;  %v10718_v6 = vadd.f32 %v17127_v42, %v23283_v50  ;;  %v10711_v22 = vpop.f32.mrf.mxu0  ;;  %v24350_v34 = vand.u32 4294901760, %v23064_v46  ;;  %v24351_v50 = vld [vmem:[#allocation38_spill] sm:$0xff]  ;;  %v24353_v0 = vld [vmem:[#allocation221_spill] sm:$0xff] }
 0x470   : > { %17637 = vmatprep.subr.mxu1 %v22853_v23  ;;  %17598 = vmatprep.mubr.f32.mxu1 %v24345_v29  ;;  %v8051_v15 = vadd.f32 %v24346_v11, %v7908_v3  ;;  %v8195_v19 = vadd.f32 %v8160_v36, %v23286_v63  ;;  %v23376_v56 = vadd.f32 %v10809_v51, %v9967_v17  ;;  %v24352_v36 = vld [vmem:[#allocation208_spill] sm:$0xff]  ;;  %v24354_v57 = vld [vmem:[#allocation242_spill] sm:$0xff]  ;;  %v24358_v42 = vld [vmem:[#allocation25_spill] sm:$0xff] }
 0x471   : > { %17616 = vmatpush3.msra.mxu0 %v24340_v49  ;;  %17638 = vmatpush3.msra.mxu1 %v22853_v23  ;;  %v8539_v25 = vadd.f32 %v24348_v45, %v24347_v18  ;;  %v8938_v2 = vadd.f32 %v24349_v39, %v8795_v27  ;;  %v10712_v32 = vadd.f32 %v10711_v22, %v23294_v37  ;;  %v17152_v63 = vpop.f32.mrf.mxu1  ;;  %v24356_v17 = vld [vmem:[#allocation40_spill] sm:$0xff]  ;;  %v24360_v27 = vld [vmem:[#allocation245_spill] sm:$0xff]  ;;  %v24363_v45 = vld [vmem:[#allocation251_spill] sm:$0xff] }
 0x472   : > { %17599 = vmatmul.mubr.f32.gmra.mxu1 %v24350_v34  ;;  %17617 = vmatprep.subr.mxu0 %v24351_v50  ;;  %v8172_v3 = vadd.f32 %v24352_v36, %v8051_v15  ;;  %v9082_v47 = vadd.f32 %v9047_v20, %v8195_v19  ;;  %v10827_v23 = vadd.f32 %v17152_v63, %v10706_v33  ;;  %v24357_v20 = vld [vmem:[#allocation26_spill] sm:$0xff] }
 0x473   : > { %17639 = vmatprep.subr.mxu1 %v22872_v16  ;;  %17576 = vmatprep.mubr.f32.mxu0 %v23149_v38  ;;  %v7924_v55 = vadd.f32 %v24353_v0, %v7788_v10  ;;  %v8675_v49 = vadd.f32 %v24354_v57, %v8539_v25  ;;  %v9059_v46 = vadd.f32 %v24355_v60, %v8938_v2  ;;  %v10820_v37 = vpop.f32.mrf.mxu1  ;;  %v17130_v33 = vpop.f32.mrf.mxu0  ;;  %v24359_v10 = vld [vmem:[#allocation204_spill] sm:$0xff]  ;;  %v24362_v15 = vld [vmem:[#allocation226_spill] sm:$0xff]  ;;  %v24372_v60 = vld [vmem:[#allocation33_spill] sm:$0xff] }
 0x474   : > { %17618 = vmatpush3.msra.mxu0 %v24351_v50  ;;  %17640 = vmatpush3.msra.mxu1 %v22872_v16  ;;  %v9969_v52 = vadd.f32 %v24357_v20, %v9082_v47  ;;  %v23397_v51 = vadd.f32 %v10827_v23, %v24358_v42  ;;  %v10821_v31 = vadd.f32 %v10820_v37, %v10700_v58  ;;  %v24361_v16 = vand.u32 4294901760, %v23101_v41  ;;  %v24366_v2 = vld [vmem:[#allocation228_spill] sm:$0xff] }
 0x475   : > { %17577 = vmatmul.mubr.f32.gmra.mxu0 %v23166_v30  ;;  %17619 = vmatprep.subr.mxu0 %v24356_v17  ;;  %v7297_v26 = vadd.f32 %v24359_v10, %v23303_v1  ;;  %v8811_v29 = vadd.f32 %v24360_v27, %v8675_v49  ;;  %v10730_v11 = vadd.f32 %v17130_v33, %v23319_v12  ;;  %v10723_v1 = vpop.f32.mrf.mxu0  ;;  %v24364_v41 = vand.u32 4294901760, %v23117_v44  ;;  %v24365_v12 = vld [vmem:[#allocation42_spill] sm:$0xff] }
 0x476   : > { %17641 = vmatprep.subr.mxu1 %v22904_v59  ;;  %17601 = vmatprep.mubr.f32.mxu1 %v24361_v16  ;;  %v8063_v19 = vadd.f32 %v24362_v15, %v7924_v55  ;;  %v8197_v22 = vadd.f32 %v8172_v3, %v23321_v14  ;;  %v23410_v58 = vadd.f32 %v10821_v31, %v9969_v52  ;;  %v24369_v3 = vld [vmem:[#allocation28_spill] sm:$0xff]  ;;  %v24371_v30 = vld [vmem:[#allocation34_spill] sm:$0xff] }
 0x477   : > { %17620 = vmatpush3.msra.mxu0 %v24356_v17  ;;  %17642 = vmatpush3.msra.mxu1 %v22904_v59  ;;  %v6425_v18 = vadd.f32 %v23267_v35, %v23215_v13  ;;  %v8950_v25 = vadd.f32 %v24363_v45, %v8811_v29  ;;  %v10724_v39 = vadd.f32 %v10723_v1, %v23332_v8  ;;  %v17155_v14 = vpop.f32.mrf.mxu1  ;;  %v24367_v13 = vld [vmem:[#allocation13_spill] sm:$0xff] }
 0x478   : > { %17602 = vmatmul.mubr.f32.gmra.mxu1 %v24364_v41  ;;  %17621 = vmatprep.subr.mxu0 %v24365_v12  ;;  %v8184_v34 = vadd.f32 %v24366_v2, %v8063_v19  ;;  %v9084_v50 = vadd.f32 %v9059_v46, %v8197_v22  ;;  %v10839_v59 = vadd.f32 %v17155_v14, %v10718_v6  ;;  %v24368_v8 = vld [vmem:[#allocation29_spill] sm:$0xff]  ;;  %v24370_v6 = vand.u32 4294901760, %v23149_v38 }
 0x479   : > { %17643 = vmatprep.subr.mxu1 %v22943_v7  ;;  %17622 = vmatpush3.msra.mxu0 %v24365_v12  ;;  %v7312_v63 = vadd.f32 %v7297_v26, %v6425_v18  ;;  %v9071_v35 = vadd.f32 %v24367_v13, %v8950_v25  ;;  %v10832_v44 = vpop.f32.mrf.mxu1  ;;  %v17177_v0 = vpop.f32.mrf.mxu0 }
 0x47a   : > { %17623 = vmatprep.mubr.f32.mxu0 %v22955_v61  ;;  %17644 = vmatpush3.msra.mxu1 %v22943_v7  ;;  %v9971_v36 = vadd.f32 %v24368_v8, %v9084_v50  ;;  %v23429_v47 = vadd.f32 %v10839_v59, %v24369_v3  ;;  %v10833_v23 = vadd.f32 %v10832_v44, %v10712_v32 }
 0x47b   : > { %17624 = vmatmul.mubr.f32.vlgmr.msra.gmra.mxu0 %v22957_v54  ;;  %17645 = vmatprep.subr.mxu1 %v22962_v43  ;;  %v8199_v55 = vadd.f32 %v8184_v34, %v7312_v63  ;;  %v10982_v57 = vpop.f32.mrf.mxu0 }
 0x47c   : > { %17604 = vmatprep.mubr.f32.mxu1 %v24370_v6  ;;  %17646 = vmatpush3.msra.mxu1 %v22962_v43  ;;  %v23437_v7 = vadd.f32 %v10833_v23, %v9971_v36  ;;  %v17158_v32 = vpop.f32.mrf.mxu1 }
 0x47d   : > { %17605 = vmatmul.mubr.f32.gmra.mxu1 %v12822_v4  ;;  %17647 = vmatprep.subr.mxu1 %v22992_v24  ;;  %v9086_v49 = vadd.f32 %v9071_v35, %v8199_v55  ;;  %v10851_v43 = vadd.f32 %v17158_v32, %v10730_v11 }
 0x47e   : > { %17626 = vmatprep.mubr.f32.mxu0 %v23011_v21  ;;  %17648 = vmatpush3.msra.mxu1 %v22992_v24  ;;  %v10844_v38 = vpop.f32.mrf.mxu1 }
 0x47f   : > { %17627 = vmatmul.mubr.f32.gmra.mxu0 %v23027_v62  ;;  %17649 = vmatprep.subr.mxu1 %v24323_v48  ;;  %v9973_v4 = vadd.f32 %v24371_v30, %v9086_v49  ;;  %v23449_v24 = vadd.f32 %v10851_v43, %v24372_v60  ;;  %v10845_v46 = vadd.f32 %v10844_v38, %v10724_v39 }
 0x480   : > { %17650 = vmatpush3.msra.mxu1 %v24323_v48  ;;  %17651 = vmatprep.mubr.f32.mxu1 %v22955_v61  ;;  %v17180_v37 = vpop.f32.mrf.mxu0 }
 0x481   : > { %17652 = vmatmul.mubr.f32.vlgmr.msra.gmra.mxu1 %v22957_v54  ;;  %17629 = vmatprep.mubr.f32.mxu0 %v23066_v28  ;;  %v23453_v17 = vadd.f32 %v10845_v46, %v9973_v4 }
 0x482   : > { %17654 = vmatprep.mubr.f32.mxu1 %v23011_v21  ;;  %v11002_v48 = vpop.f32.mrf.mxu0  ;;  %v17205_v61 = vpop.f32.mrf.mxu1 }
 0x483   : > { %17630 = vmatmul.mubr.f32.gmra.mxu0 %v23085_v40  ;;  %v11170_v54 = vadd.f32 %v17205_v61, %v17177_v0 }
 0x484   : > { %17632 = vmatprep.mubr.f32.mxu0 %v23119_v53  ;;  %v11163_v20 = vpop.f32.mrf.mxu1 }
 0x485   : > { %17655 = vmatmul.mubr.f32.gmra.mxu1 %v23027_v62  ;;  %v17183_v52 = vpop.f32.mrf.mxu0  ;;  %v11164_v42 = vadd.f32 %v11163_v20, %v10982_v57 }
 0x486   : > { %17657 = vmatprep.mubr.f32.mxu1 %v23066_v28 }
 0x487   : > { %17633 = vmatmul.mubr.f32.gmra.mxu0 %v23135_v5  ;;  %v11022_v21 = vpop.f32.mrf.mxu0 }
 0x489   : > { %17658 = vmatmul.mubr.f32.gmra.mxu1 %v23085_v40  ;;  %v17208_v33 = vpop.f32.mrf.mxu1 }
 0x48a   : > { %17660 = vmatprep.mubr.f32.mxu1 %v23119_v53  ;;  %v11182_v31 = vadd.f32 %v17208_v33, %v17180_v37 }
 0x48b   : > { %v11175_v10 = vpop.f32.mrf.mxu1  ;;  %v17186_v26 = vpop.f32.mrf.mxu0 }
 0x48c   : > { %v11176_v62 = vadd.f32 %v11175_v10, %v11002_v48 }
 0x48d   : > { %17661 = vmatmul.mubr.f32.gmra.mxu1 %v23135_v5  ;;  %v11042_v27 = vpop.f32.mrf.mxu0 }
 0x48f   : > { %v17211_v29 = vpop.f32.mrf.mxu1 }
 0x490   : > { %v11194_v28 = vadd.f32 %v17211_v29, %v17183_v52 }
 0x491   : > { %v11187_v16 = vpop.f32.mrf.mxu1  ;;  %v17233_v15 = vpop.f32.mrf.mxu0 }
 0x492   : > { %v11188_v11 = vadd.f32 %v11187_v16, %v11022_v21  ;;  %v11301_v19 = vadd.f32 %v17233_v15, %v11170_v54 }
 0x493   : > { %v11293_v22 = vpop.f32.mrf.mxu0 }
 0x494   : > { %v17214_v1 = vpop.f32.mrf.mxu1  ;;  %v11294_v40 = vadd.f32 %v11293_v22, %v11164_v42 }
 0x495   : > { %v11206_v18 = vadd.f32 %v17214_v1, %v17186_v26 }
 0x496   : > { %v11199_v45 = vpop.f32.mrf.mxu1 }
 0x497   : > { %v11200_v53 = vadd.f32 %v11199_v45, %v11042_v27 }
 0x498   : > { %v17236_v25 = vpop.f32.mrf.mxu0 }
 0x499   : > { %v11315_v41 = vadd.f32 %v17236_v25, %v11182_v31 }
 0x49a   : > { %v11307_v12 = vpop.f32.mrf.mxu0  ;;  %v17261_v5 = vpop.f32.mrf.mxu1 }
 0x49b   : > { %v11308_v39 = vadd.f32 %v11307_v12, %v11176_v62  ;;  %v11432_v14 = vadd.f32 %v17261_v5, %v11301_v19 }
 0x49c   : > { %v11423_v2 = vpop.f32.mrf.mxu1 }
 0x49d   : > { %v17239_v34 = vpop.f32.mrf.mxu0  ;;  %v11424_v50 = vadd.f32 %v11423_v2, %v11294_v40 }
 0x49e   : > { %v11329_v59 = vadd.f32 %v17239_v34, %v11194_v28 }
 0x49f   : > { %v11321_v63 = vpop.f32.mrf.mxu0 }
 0x4a0   : > { %v11322_v13 = vadd.f32 %v11321_v63, %v11188_v11 }
 0x4a1   : > { %v17264_v35 = vpop.f32.mrf.mxu1 }
 0x4a2   : > { %v11448_v44 = vadd.f32 %v17264_v35, %v11315_v41 }
 0x4a3   : > { %v11439_v8 = vpop.f32.mrf.mxu1  ;;  %v17242_v36 = vpop.f32.mrf.mxu0 }
 0x4a4   : > { %v11440_v3 = vadd.f32 %v11439_v8, %v11308_v39  ;;  %v11343_v23 = vadd.f32 %v17242_v36, %v11206_v18 }
 0x4a5   : > { %v11335_v0 = vpop.f32.mrf.mxu0 }
 0x4a6   : > { %v11336_v6 = vadd.f32 %v11335_v0, %v11200_v53 }
 0x4a7   : > { %v17267_v55 = vpop.f32.mrf.mxu1 }
 0x4a8   : > { %v11464_v57 = vadd.f32 %v17267_v55, %v11329_v59 }
 0x4a9   : > { %v11455_v32 = vpop.f32.mrf.mxu1  ;;  %v17289_v43 = vpop.f32.mrf.mxu0 }
 0x4aa   : > { %v11456_v49 = vadd.f32 %v11455_v32, %v11322_v13  ;;  %v11581_v38 = vadd.f32 %v17289_v43, %v11432_v14 }
 0x4ab   : > { %v11574_v30 = vpop.f32.mrf.mxu0 }
 0x4ac   : > { %v17270_v4 = vpop.f32.mrf.mxu1  ;;  %v11575_v60 = vadd.f32 %v11574_v30, %v11424_v50 }
 0x4ad   : > { %v11480_v46 = vadd.f32 %v17270_v4, %v11343_v23 }
 0x4ae   : > { %v11471_v37 = vpop.f32.mrf.mxu1 }
 0x4af   : > { %v11472_v48 = vadd.f32 %v11471_v37, %v11336_v6 }
 0x4b0   : > { %v17292_v61 = vpop.f32.mrf.mxu0 }
 0x4b1   : > { %v11593_v54 = vadd.f32 %v17292_v61, %v11448_v44 }
 0x4b2   : > { %v11586_v20 = vpop.f32.mrf.mxu0  ;;  %v17317_v42 = vpop.f32.mrf.mxu1 }
 0x4b3   : > { %v11587_v52 = vadd.f32 %v11586_v20, %v11440_v3  ;;  %v11702_v21 = vadd.f32 %v17317_v42, %v11581_v38 }
 0x4b4   : > { %v11695_v33 = vpop.f32.mrf.mxu1 }
 0x4b5   : > { %v23463_v31 = vadd.f32 %v11702_v21, %v23364_v9  ;;  %v17295_v10 = vpop.f32.mrf.mxu0  ;;  %v11696_v26 = vadd.f32 %v11695_v33, %v11575_v60 }
 0x4b6   : > { %v11605_v62 = vadd.f32 %v17295_v10, %v11464_v57 }
 0x4b7   : > { %v23466_v27 = vadd.f32 %v11696_v26, %v23376_v56  ;;  %v11598_v29 = vpop.f32.mrf.mxu0 }
 0x4b8   : > { %v11599_v28 = vadd.f32 %v11598_v29, %v11456_v49 }
 0x4b9   : > { %v17320_v16 = vpop.f32.mrf.mxu1 }
 0x4ba   : > { %v11714_v11 = vadd.f32 %v17320_v16, %v11593_v54 }
 0x4bb   : > { %v11707_v15 = vpop.f32.mrf.mxu1  ;;  %v17298_v22 = vpop.f32.mrf.mxu0 }
 0x4bc   : > { %v23469_v19 = vadd.f32 %v11714_v11, %v23397_v51  ;;  %v11708_v1 = vadd.f32 %v11707_v15, %v11587_v52  ;;  %v11617_v40 = vadd.f32 %v17298_v22, %v11480_v46 }
 0x4bd   : > { %v11610_v18 = vpop.f32.mrf.mxu0 }
 0x4be   : > { %v23472_v9 = vadd.f32 %v11708_v1, %v23410_v58  ;;  %v11611_v45 = vadd.f32 %v11610_v18, %v11472_v48 }
 0x4bf   : > { %v17323_v53 = vpop.f32.mrf.mxu1 }
 0x4c0   : > { %v11726_v25 = vadd.f32 %v17323_v53, %v11605_v62 }
 0x4c1   : > { %v11719_v56 = vpop.f32.mrf.mxu1  ;;  %v17345_v39 = vpop.f32.mrf.mxu0 }
 0x4c2   : > { %v23475_v41 = vadd.f32 %v11726_v25, %v23429_v47  ;;  %v11720_v12 = vadd.f32 %v11719_v56, %v11599_v28 }
 0x4c3   : > { %v11869_v51 = vpop.f32.mrf.mxu0 }
 0x4c4   : > { %v23478_v5 = vadd.f32 %v11720_v12, %v23437_v7  ;;  %v17326_v14 = vpop.f32.mrf.mxu1 }
 0x4c5   : > { %v11738_v2 = vadd.f32 %v17326_v14, %v11617_v40 }
 0x4c6   : > { %v11731_v34 = vpop.f32.mrf.mxu1 }
 0x4c7   : > { %v23481_v58 = vadd.f32 %v11738_v2, %v23449_v24  ;;  %v11732_v50 = vadd.f32 %v11731_v34, %v11611_v45 }
 0x4c8   : > { %v17348_v59 = vpop.f32.mrf.mxu0 }
 0x4c9   : > { %v23484_v63 = vadd.f32 %v11732_v50, %v23453_v17 }
 0x4ca   : > { %v11889_v13 = vpop.f32.mrf.mxu0  ;;  %v17373_v47 = vpop.f32.mrf.mxu1 }
 0x4cb   : > { %v12057_v35 = vadd.f32 %v17373_v47, %v17345_v39 }
 0x4cc   : > { %v12050_v44 = vpop.f32.mrf.mxu1 }
 0x4cd   : > { %v17351_v8 = vpop.f32.mrf.mxu0  ;;  %v12051_v36 = vadd.f32 %v12050_v44, %v11869_v51 }
 0x4cf   : > { %v11909_v7 = vpop.f32.mrf.mxu0 }
 0x4d1   : > { %v17376_v3 = vpop.f32.mrf.mxu1 }
 0x4d2   : > { %v12069_v23 = vadd.f32 %v17376_v3, %v17348_v59 }
 0x4d3   : > { %v12062_v0 = vpop.f32.mrf.mxu1  ;;  %v17354_v6 = vpop.f32.mrf.mxu0 }
 0x4d4   : > { %v12063_v55 = vadd.f32 %v12062_v0, %v11889_v13 }
 0x4d5   : > { %v11929_v57 = vpop.f32.mrf.mxu0 }
 0x4d7   : > { %v17379_v24 = vpop.f32.mrf.mxu1 }
 0x4d8   : > { %v12081_v32 = vadd.f32 %v17379_v24, %v17351_v8 }
 0x4d9   : > { %v12074_v49 = vpop.f32.mrf.mxu1  ;;  %v17401_v38 = vpop.f32.mrf.mxu0 }
 0x4da   : > { %v12075_v43 = vadd.f32 %v12074_v49, %v11909_v7  ;;  %v12188_v11 = vadd.f32 %v17401_v38, %v12057_v35 }
 0x4db   : > { %v12180_v17 = vpop.f32.mrf.mxu0 }
 0x4dc   : > { %v17382_v30 = vpop.f32.mrf.mxu1  ;;  %v12181_v22 = vadd.f32 %v12180_v17, %v12051_v36 }
 0x4dd   : > { %v12093_v4 = vadd.f32 %v17382_v30, %v17354_v6 }
 0x4de   : > { %v12086_v60 = vpop.f32.mrf.mxu1 }
 0x4df   : > { %v12087_v46 = vadd.f32 %v12086_v60, %v11929_v57 }
 0x4e0   : > { %v17404_v37 = vpop.f32.mrf.mxu0 }
 0x4e1   : > { %v12202_v56 = vadd.f32 %v17404_v37, %v12069_v23 }
 0x4e2   : > { %v12194_v48 = vpop.f32.mrf.mxu0 }
 0x4e3   : > { %v17429_v61 = vpop.f32.mrf.mxu1  ;;  %v12195_v14 = vadd.f32 %v12194_v48, %v12063_v55 }
 0x4e4   : > { %v12319_v1 = vadd.f32 %v17429_v61, %v12188_v11 }
 0x4e5   : > { %v12310_v54 = vpop.f32.mrf.mxu1  ;;  %v17407_v20 = vpop.f32.mrf.mxu0 }
 0x4e6   : > { %v12311_v18 = vadd.f32 %v12310_v54, %v12181_v22  ;;  %v12216_v36 = vadd.f32 %v17407_v20, %v12081_v32 }
 0x4e7   : > { %v12208_v52 = vpop.f32.mrf.mxu0 }
 0x4e8   : > { %v12209_v0 = vadd.f32 %v12208_v52, %v12075_v43 }
 0x4e9   : > { %v17432_v42 = vpop.f32.mrf.mxu1 }
 0x4ea   : > { %v12335_v2 = vadd.f32 %v17432_v42, %v12202_v56 }
 0x4eb   : > { %v12326_v21 = vpop.f32.mrf.mxu1 }
 0x4ec   : > { %v17410_v33 = vpop.f32.mrf.mxu0  ;;  %v12327_v13 = vadd.f32 %v12326_v21, %v12195_v14 }
 0x4ed   : > { %v12230_v30 = vadd.f32 %v17410_v33, %v12093_v4 }
 0x4ee   : > { %v12222_v10 = vpop.f32.mrf.mxu0 }
 0x4ef   : > { %v17435_v26 = vpop.f32.mrf.mxu1  ;;  %v12223_v48 = vadd.f32 %v12222_v10, %v12087_v46 }
 0x4f0   : > { %v12351_v6 = vadd.f32 %v17435_v26, %v12216_v36 }
 0x4f1   : > { %v12342_v62 = vpop.f32.mrf.mxu1 }
 0x4f2   : > { %v17457_v29 = vpop.f32.mrf.mxu0  ;;  %v12343_v24 = vadd.f32 %v12342_v62, %v12209_v0 }
 0x4f3   : > { %v12468_v45 = vadd.f32 %v17457_v29, %v12319_v1 }
 0x4f4   : > { %v12461_v28 = vpop.f32.mrf.mxu0 }
 0x4f5   : > { %v17438_v16 = vpop.f32.mrf.mxu1  ;;  %v12462_v12 = vadd.f32 %v12461_v28, %v12311_v18 }
 0x4f6   : > { %v12367_v61 = vadd.f32 %v17438_v16, %v12230_v30 }
 0x4f7   : > { %v12358_v15 = vpop.f32.mrf.mxu1 }
 0x4f8   : > { %v12359_v20 = vadd.f32 %v12358_v15, %v12223_v48 }
 0x4f9   : > { %v17460_v40 = vpop.f32.mrf.mxu0 }
 0x4fa   : > { %v12480_v47 = vadd.f32 %v17460_v40, %v12335_v2 }
 0x4fb   : > { %v12473_v53 = vpop.f32.mrf.mxu0 }
 0x4fc   : > { %v17485_v25 = vpop.f32.mrf.mxu1  ;;  %v12474_v7 = vadd.f32 %v12473_v53, %v12327_v13 }
 0x4fd   : > { %v12589_v39 = vadd.f32 %v17485_v25, %v12468_v45 }
 0x4fe   : > { %v12582_v51 = vpop.f32.mrf.mxu1 }
 0x4ff   : > { %v23487_v34 = vadd.f32 %v12589_v39, %v23463_v31  ;;  %v17463_v50 = vpop.f32.mrf.mxu0  ;;  %v12583_v59 = vadd.f32 %v12582_v51, %v12462_v12 }
 0x500   : > { %v12492_v49 = vadd.f32 %v17463_v50, %v12351_v6 }
 0x501   : > { %v23490_v35 = vadd.f32 %v12583_v59, %v23466_v27  ;;  %v12485_v44 = vpop.f32.mrf.mxu0 }
 0x502   : > { %v17488_v8 = vpop.f32.mrf.mxu1  ;;  %v12486_v60 = vadd.f32 %v12485_v44, %v12343_v24 }
 0x503   : > { %v12601_v3 = vadd.f32 %v17488_v8, %v12480_v47 }
 0x504   : > { %v12594_v23 = vpop.f32.mrf.mxu1 }
 0x505   : > { %v23493_v55 = vadd.f32 %v12601_v3, %v23469_v19  ;;  %v17466_v31 = vpop.f32.mrf.mxu0  ;;  %v12595_v57 = vadd.f32 %v12594_v23, %v12474_v7 }
 0x506   : > { %v12504_v52 = vadd.f32 %v17466_v31, %v12367_v61 }
 0x507   : > { %v23496_v38 = vadd.f32 %v12595_v57, %v23472_v9  ;;  %v12497_v27 = vpop.f32.mrf.mxu0 }
 0x508   : > { %v17491_v17 = vpop.f32.mrf.mxu1  ;;  %v12498_v26 = vadd.f32 %v12497_v27, %v12359_v20 }
 0x509   : > { %v12613_v32 = vadd.f32 %v17491_v17, %v12492_v49 }
 0x50a   : > { %v12606_v37 = vpop.f32.mrf.mxu1 }
 0x50b   : > { %v23499_v43 = vadd.f32 %v12613_v32, %v23475_v41  ;;  %v12607_v19 = vadd.f32 %v12606_v37, %v12486_v60  ;;  %v17513_v54 = vpop.f32.mrf.mxu0 }
 0x50d   : > { %v23502_v42 = vadd.f32 %v12607_v19, %v23478_v5  ;;  %v12756_v9 = vpop.f32.mrf.mxu0 }
 0x50e   : > { %v17494_v21 = vpop.f32.mrf.mxu1 }
 0x50f   : > { %v12625_v62 = vadd.f32 %v17494_v21, %v12504_v52 }
 0x510   : > { %v12618_v4 = vpop.f32.mrf.mxu1 }
 0x511   : > { %v23505_v33 = vadd.f32 %v12625_v62, %v23481_v58  ;;  %v12619_v46 = vadd.f32 %v12618_v4, %v12498_v26  ;;  %v17516_v10 = vpop.f32.mrf.mxu0 }
 0x513   : > { %v23508_v41 = vadd.f32 %v12619_v46, %v23484_v63  ;;  %v12776_v29 = vpop.f32.mrf.mxu0 }
 0x514   : > { %v17541_v28 = vpop.f32.mrf.mxu1 }
 0x515   : > { %v12944_v8 = vadd.f32 %v17541_v28, %v17513_v54 }
 0x516   : > { %v12937_v16 = vpop.f32.mrf.mxu1 }
 0x517   : > { %v17519_v11 = vpop.f32.mrf.mxu0  ;;  %v12938_v3 = vadd.f32 %v12937_v16, %v12756_v9 }
 0x519   : > { %v12796_v15 = vpop.f32.mrf.mxu0 }
 0x51a   : > { %v17544_v5 = vpop.f32.mrf.mxu1 }
 0x51b   : > { %v12956_v31 = vadd.f32 %v17544_v5, %v17516_v10 }
 0x51c   : > { %v12949_v22 = vpop.f32.mrf.mxu1 }
 0x51d   : > { %v17522_v1 = vpop.f32.mrf.mxu0  ;;  %v12950_v17 = vadd.f32 %v12949_v22, %v12776_v29 }
 0x51f   : > { %v23510_v40 = vpop.f32.mrf.mxu0 }
 0x520   : > { %v17547_v18 = vpop.f32.mrf.mxu1 }
 0x521   : > { %v12968_v37 = vadd.f32 %v17547_v18, %v17519_v11 }
 0x522   : > { %v12961_v45 = vpop.f32.mrf.mxu1 }
 0x523   : > { %v17569_v58 = vpop.f32.mrf.mxu0  ;;  %v12962_v9 = vadd.f32 %v12961_v45, %v12796_v15 }
 0x524   : > { %v13075_v23 = vadd.f32 %v17569_v58, %v12944_v8 }
 0x525   : > { %v13067_v53 = vpop.f32.mrf.mxu0 }
 0x526   : > { %v17550_v25 = vpop.f32.mrf.mxu1  ;;  %v13068_v57 = vadd.f32 %v13067_v53, %v12938_v3 }
 0x527   : > { %v12980_v28 = vadd.f32 %v17550_v25, %v17522_v1 }
 0x528   : > { %v12973_v56 = vpop.f32.mrf.mxu1 }
 0x529   : > { %v17572_v12 = vpop.f32.mrf.mxu0  ;;  %v12974_v58 = vadd.f32 %v12973_v56, %v23510_v40 }
 0x52a   : > { %v13089_v30 = vadd.f32 %v17572_v12, %v12956_v31 }
 0x52b   : > { %v13081_v63 = vpop.f32.mrf.mxu0 }
 0x52c   : > { %v17597_v39 = vpop.f32.mrf.mxu1  ;;  %v13082_v19 = vadd.f32 %v13081_v63, %v12950_v17 }
 0x52d   : > { %v13206_v24 = vadd.f32 %v17597_v39, %v13075_v23 }
 0x52e   : > { %v13197_v51 = vpop.f32.mrf.mxu1 }
 0x52f   : > { %v17575_v14 = vpop.f32.mrf.mxu0  ;;  %v13198_v60 = vadd.f32 %v13197_v51, %v13068_v57 }
 0x530   : > { %v13103_v21 = vadd.f32 %v17575_v14, %v12968_v37 }
 0x531   : > { %v13095_v2 = vpop.f32.mrf.mxu0 }
 0x532   : > { %v17600_v50 = vpop.f32.mrf.mxu1  ;;  %v13096_v16 = vadd.f32 %v13095_v2, %v12962_v9 }
 0x533   : > { %v13222_v54 = vadd.f32 %v17600_v50, %v13089_v30 }
 0x534   : > { %v13213_v59 = vpop.f32.mrf.mxu1 }
 0x535   : > { %v17578_v13 = vpop.f32.mrf.mxu0  ;;  %v13214_v4 = vadd.f32 %v13213_v59, %v13082_v19 }
 0x536   : > { %v13117_v53 = vadd.f32 %v17578_v13, %v12980_v28 }
 0x537   : > { %v13109_v47 = vpop.f32.mrf.mxu0 }
 0x538   : > { %v17603_v44 = vpop.f32.mrf.mxu1  ;;  %v13110_v2 = vadd.f32 %v13109_v47, %v12974_v58 }
 0x539   : > { %v13238_v11 = vadd.f32 %v17603_v44, %v13103_v21 }
 0x53a   : > { %v13229_v36 = vpop.f32.mrf.mxu1 }
 0x53b   : > { %v17625_v7 = vpop.f32.mrf.mxu0  ;;  %v13230_v12 = vadd.f32 %v13229_v36, %v13096_v16 }
 0x53c   : > { %v13355_v32 = vadd.f32 %v17625_v7, %v13206_v24 }
 0x53d   : > { %v17606_v0 = vpop.f32.mrf.mxu1  ;;  %v13348_v6 = vpop.f32.mrf.mxu0 }
 0x53e   : > { %v13349_v20 = vadd.f32 %v13348_v6, %v13198_v60 }
 0x53f   : > { %v13245_v49 = vpop.f32.mrf.mxu1  ;;  %v17628_v27 = vpop.f32.mrf.mxu0 }
 0x540   : > { %v13367_v46 = vadd.f32 %v17628_v27, %v13222_v54  ;;  %v13246_v44 = vadd.f32 %v13245_v49, %v13110_v2 }
 0x541   : > { %v13360_v48 = vpop.f32.mrf.mxu0  ;;  %v17653_v61 = vpop.f32.mrf.mxu1 }
 0x542   : > { %v13476_v52 = vadd.f32 %v17653_v61, %v13355_v32  ;;  %v13361_v22 = vadd.f32 %v13360_v48, %v13214_v4 }
 0x543   : > { %v17631_v26 = vpop.f32.mrf.mxu0  ;;  %v13469_v62 = vpop.f32.mrf.mxu1 }
 0x544   : > { %v13516_v10 = vadd.f32 %v13476_v52, %v23487_v34  ;;  %v13470_v29 = vadd.f32 %v13469_v62, %v13349_v20  ;;  %v13379_v25 = vadd.f32 %v17631_v26, %v13238_v11 }
 0x545   : > { %v13372_v5 = vpop.f32.mrf.mxu0  ;;  %v17656_v15 = vpop.f32.mrf.mxu1 }
 0x546   : > { %13524 = vst.msk [vmem:[%s23520_s27 + $0x8] sm:$0xff] %vm226_vm1, %v13516_v10  ;;  %v13515_v18 = vadd.f32 %v13470_v29, %v23490_v35  ;;  %v13488_v45 = vadd.f32 %v17656_v15, %v13367_v46  ;;  %vm13532_vm2 = vcmp.ge.f32.partialorder %v13516_v10, 0.6  ;;  %v13254_v35 = vadd.f32 %v17606_v0, %v13117_v53 }
 0x547   : > { %v17634_v34 = vpop.f32.mrf.mxu0  ;;  %v13481_v63 = vpop.f32.mrf.mxu1  ;;  %v13540_v1 = vsel %vm13532_vm2, -inf, %v13516_v10  ;;  %v13373_v40 = vadd.f32 %v13372_v5, %v13230_v12 }
 0x548   : > { %13523 = vst.msk [vmem:[%s23520_s27] sm:$0xff] %vm226_vm1, %v13515_v18  ;;  %v13518_v39 = vadd.f32 %v13488_v45, %v23493_v55  ;;  %v13482_v51 = vadd.f32 %v13481_v63, %v13361_v22  ;;  %v13550_v14 = vsel %vm226_vm1, %v13540_v1, -inf  ;;  %vm13531_vm3 = vcmp.ge.f32.partialorder %v13515_v18, 0.6 }
 0x549   : > { %v17659_v50 = vpop.f32.mrf.mxu1  ;;  %13551 = vmax.xlane.f32.xlu0 %v13550_v14  ;;  %v13384_v13 = vpop.f32.mrf.mxu0  ;;  %v13391_v55 = vadd.f32 %v17634_v34, %v13254_v35  ;;  %v13539_v7 = vsel %vm13531_vm3, -inf, %v13515_v18 }
 0x54a   : > { %13526 = vst.msk [vmem:[%s23520_s27 + $0x18] sm:$0xff] %vm226_vm1, %v13518_v39  ;;  %v13517_v56 = vadd.f32 %v13482_v51, %v23496_v38  ;;  %v13500_v59 = vadd.f32 %v17659_v50, %v13379_v25  ;;  %vm13534_vm4 = vcmp.ge.f32.partialorder %v13518_v39, 0.6  ;;  %v13547_v0 = vsel %vm226_vm1, %v13539_v7, -inf }
 0x54b   : > { %v13493_v8 = vpop.f32.mrf.mxu1  ;;  %v13542_v36 = vsel %vm13534_vm4, -inf, %v13518_v39  ;;  %v13385_v38 = vadd.f32 %v13384_v13, %v13246_v44 }
 0x54c   : > { %13525 = vst.msk [vmem:[%s23520_s27 + $0x10] sm:$0xff] %vm226_vm1, %v13517_v56  ;;  %v13520_v47 = vadd.f32 %v13500_v59, %v23499_v43  ;;  %v13494_v3 = vadd.f32 %v13493_v8, %v13373_v40  ;;  %v13556_v23 = vsel %vm226_vm1, %v13542_v36, -inf  ;;  %vm13533_vm5 = vcmp.ge.f32.partialorder %v13517_v56, 0.6 }
 0x54d   : > { %v17662_v6 = vpop.f32.mrf.mxu1  ;;  %13557 = vmax.xlane.f32.xlu1 %v13556_v23  ;;  %13548 = vmax.xlane.f32.xlu0 %v13547_v0  ;;  %v13541_v24 = vsel %vm13533_vm5, -inf, %v13517_v56 }
 0x54e   : > { %13528 = vst.msk [vmem:[%s23520_s27 + $0x28] sm:$0xff] %vm226_vm1, %v13520_v47  ;;  %v13519_v31 = vadd.f32 %v13494_v3, %v23502_v42  ;;  %v13512_v57 = vadd.f32 %v17662_v6, %v13391_v55  ;;  %vm13536_vm6 = vcmp.ge.f32.partialorder %v13520_v47, 0.6  ;;  %v13553_v17 = vsel %vm226_vm1, %v13541_v24, -inf }
 0x54f   : > { %v13505_v43 = vpop.f32.mrf.mxu1  ;;  %v13544_v60 = vsel %vm13536_vm6, -inf, %v13520_v47 }
 0x550   : > { %13527 = vst.msk [vmem:[%s23520_s27 + $0x20] sm:$0xff] %vm226_vm1, %v13519_v31  ;;  %v13522_v49 = vadd.f32 %v13512_v57, %v23505_v33  ;;  %v13506_v27 = vadd.f32 %v13505_v43, %v13385_v38  ;;  %vm13535_vm7 = vcmp.ge.f32.partialorder %v13519_v31, 0.6  ;;  %v13562_v37 = vsel %vm226_vm1, %v13544_v60, -inf }
 0x551   : > { %13554 = vmax.xlane.f32.xlu1 %v13553_v17  ;;  %v13543_v30 = vsel %vm13535_vm7, -inf, %v13519_v31 }
 0x552   : > { %13530 = vst.msk [vmem:[%s23520_s27 + $0x38] sm:$0xff] %vm226_vm1, %v13522_v49  ;;  %v13521_v42 = vadd.f32 %v13506_v27, %v23508_v41  ;;  %v13559_v32 = vsel %vm226_vm1, %v13543_v30, -inf  ;;  %vm13538_vm8 = vcmp.ge.f32.partialorder %v13522_v49, 0.6 }
 0x553   : > { %13560 = vmax.xlane.f32.xlu0 %v13559_v32  ;;  %v13546_v48 = vsel %vm13538_vm8, -inf, %v13522_v49 }
 0x554   : > { %13529 = vst.msk [vmem:[%s23520_s27 + $0x30] sm:$0xff] %vm226_vm1, %v13521_v42  ;;  %vm13537_vm9 = vcmp.ge.f32.partialorder %v13521_v42, 0.6  ;;  %v13568_v19 = vsel %vm226_vm1, %v13546_v48, -inf }
 0x555   : > { %13563 = vmax.xlane.f32.xlu1 %v13562_v37  ;;  %v13545_v33 = vsel %vm13537_vm9, -inf, %v13521_v42 }
 0x556   : > { %v13565_v61 = vsel %vm226_vm1, %v13545_v33, -inf }
 0x557   : > { %13566 = vmax.xlane.f32.xlu0 %v13565_v61 }
 0x559   : > { %13569 = vmax.xlane.f32.xlu1 %v13568_v19 }
 0x5d2   : > { %v13552_v54 = vpop.xlane.xlu0 %13551 }
 0x5d6   : > { %v13558_v41 = vpop.xlane.xlu1 %13557  ;;  %v13549_v20 = vpop.xlane.xlu0 %13548 }
 0x5da   : > { %v13555_v52 = vpop.xlane.xlu1 %13554 }
 0x5dc   : > { %v13561_v9 = vpop.xlane.xlu0 %13560 }
 0x5dd   : > { %v13571_v46 = vmax.f32 %v13549_v20, %v13561_v9 }
 0x5de   : > { %v13564_v21 = vpop.xlane.xlu1 %13563 }
 0x5df   : > { %v13572_v62 = vmax.f32 %v13552_v54, %v13564_v21 }
 0x5e0   : > { %v13567_v26 = vpop.xlane.xlu0 %13566 }
 0x5e1   : > { %v13573_v10 = vmax.f32 %v13555_v52, %v13567_v26  ;;  %v13575_v28 = vmax.f32 %v13571_v46, %v13572_v62 }
 0x5e2   : > { %v13570_v4 = vpop.xlane.xlu1 %13569 }
 0x5e3   : > { %v13574_v29 = vmax.f32 %v13558_v41, %v13570_v4 }
 0x5e5   : > { %v13576_v16 = vmax.f32 %v13573_v10, %v13574_v29 }
 0x5e7   : > { %v13577_v11 = vmax.f32 %v13575_v28, %v13576_v16 }
 0x5e9   : > { %v13578_v5 = vrot.slane %v13577_v11, 4 }
 0x5eb   : > { %v13579_v15 = vmax.f32 %v13577_v11, %v13578_v5 }
 0x5ed   : > { %v13580_v22 = vrot.slane %v13579_v15, 2 }
 0x5ef   : > { %v13581_v18 = vmax.f32 %v13579_v15, %v13580_v22 }
 0x5f1   : > { %v13582_v45 = vrot.slane %v13581_v18, 1 }
 0x5f3   : > { %v13583_v58 = vmax.f32 %v13581_v18, %v13582_v45 }
 0x5f5   : > { %13584 = vst [vmem:[%s214_s12] sm:$0x1] %v13583_v58 }
 0x5f6 PF: > { %p15_p0 = scmp.ge.s32.totalorder %s17879_s22, 4   ;;  %s24373_s12 = smov %s17800_s13 }
 0x5f7   : > { %s24374_s13 = smov %s17804_s14  ;;  %s24375_s14 = smov %s17899_s30 }
 0x5f8   : > { %s24376_s15 = smov %s17879_s22  ;;  %17 = sbr.rel (!%p15_p0) target bundleno = 4 (0x4), region = 98 }
 0x5fd   :  { %13618 = vsyncpa [#allocation4], 1 }
 0x5fe   :  { %13620 = vsyncpa [#allocation4 + $0x1], 1 }
 0x5ff   :  { %13621 = vsyncpa [#allocation6], 1 }

</bundles_post_ra>
